<compile_context>
chip_gen: v7x
topology: tpu7x:2x2x1
jax: 0.10.0
libtpu: 0.0.40
codegen_flags: <defaults>
</compile_context>

<pallas_src>
import jax
import jax.numpy as jnp
from jax.experimental import pallas as pl
from jax.experimental.pallas import tpu as pltpu
import numpy as np


def _round_up(x: int, m: int) -> int:
    return ((x + m - 1) // m) * m


# ---------------------------------------------------------------------------
# Reference positional feature construction (plain JAX) -- mirrors sin_pos_encoding
# (used only for the correctness check in __main__)
# ---------------------------------------------------------------------------
def sin_pos_encoding_jax(nx: int, ny: int) -> jnp.ndarray:
    """Absolute sinusoidal positional encoding of shape (nx, ny, 2*nx + 2*ny - 6)."""
    xfreqs = 1.0 / jnp.arange(2, nx + 1, dtype=jnp.float32)   # (nx-1,)
    yfreqs = 1.0 / jnp.arange(2, ny + 1, dtype=jnp.float32)   # (ny-1,)
    xm = jnp.broadcast_to(jnp.arange(1, nx + 1, dtype=jnp.float32)[:, None], (nx, ny))[..., None]
    ym = jnp.broadcast_to(jnp.arange(1, ny + 1, dtype=jnp.float32)[None, :], (nx, ny))[..., None]
    two_pi = jnp.float32(2.0 * np.pi)
    sinx = jnp.sin(two_pi * xfreqs[1:] * xm)   # (nx, ny, nx-2)
    cosx = jnp.cos(two_pi * xfreqs * xm)       # (nx, ny, nx-1)
    siny = jnp.sin(two_pi * yfreqs[1:] * ym)   # (nx, ny, ny-2)
    cosy = jnp.cos(two_pi * yfreqs * ym)       # (nx, ny, ny-1)
    return jnp.concatenate([sinx, cosx, siny, cosy], axis=-1)


# ---------------------------------------------------------------------------
# Frequency / selector tables describing the feature columns (built once, f32,
# with the same op-order as the reference so the sin/cos arguments match bit-exactly).
# Column c of the feature matrix is:  iscos[c]*cos(fx[c]*x + fy[c]*y) + (1-iscos[c])*sin(...)
# Padded columns have fx = fy = iscos = 0  ->  feature == 0.
# ---------------------------------------------------------------------------
def _pos_coef_tables(nx: int, ny: int, d_pad: int):
    two_pi = jnp.float32(2.0 * np.pi)
    cx = two_pi * (1.0 / jnp.arange(2, nx + 1, dtype=jnp.float32))   # (nx-1,)
    cy = two_pi * (1.0 / jnp.arange(2, ny + 1, dtype=jnp.float32))   # (ny-1,)
    zeros_x = jnp.zeros(2 * nx - 3, jnp.float32)                      # (nx-2)+(nx-1)
    zeros_y = jnp.zeros(2 * ny - 3, jnp.float32)
    # column order matches concatenate([sinx, cosx, siny, cosy], axis=-1)
    fx = jnp.concatenate([cx[1:], cx, zeros_y])
    fy = jnp.concatenate([zeros_x, cy[1:], cy])
    iscos = jnp.concatenate([jnp.zeros(nx - 2, jnp.float32), jnp.ones(nx - 1, jnp.float32),
                             jnp.zeros(ny - 2, jnp.float32), jnp.ones(ny - 1, jnp.float32)])
    d = 2 * nx + 2 * ny - 6
    pad = d_pad - d
    fx = jnp.pad(fx, (0, pad)).reshape(d_pad, 1)
    fy = jnp.pad(fy, (0, pad)).reshape(d_pad, 1)
    iscos = jnp.pad(iscos, (0, pad)).reshape(d_pad, 1)
    return fx, fy, iscos


def _features_t(x_row, y_row, fx, fy, iscos):
    """Transposed features (D_pad, n) from x/y coordinate rows (1, n) and tables (D_pad, 1)."""
    arg = fx * x_row + fy * y_row
    return iscos * jnp.cos(arg) + (1.0 - iscos) * jnp.sin(arg)


# ---------------------------------------------------------------------------
# Pallas kernels: transposed 2-layer MLP (Linear -> LeakyReLU -> Linear) on the MXU
# ---------------------------------------------------------------------------
def _mlp_on_features(feat_t, w1t_ref, b1_ref, w2t_ref, b2_ref, o_ref):
    # feat_t: (D_pad, TM)   w1t: (H, D_pad)  b1: (H, 1)   w2t: (E, H)  b2: (E, 1)  o: (E, TM)
    h = jnp.dot(w1t_ref[...], feat_t, preferred_element_type=jnp.float32) + b1_ref[...]
    h = jnp.where(h >= 0.0, h, jnp.float32(0.01) * h)       # LeakyReLU (PyTorch default slope)
    o_ref[...] = jnp.dot(w2t_ref[...], h, preferred_element_type=jnp.float32) + b2_ref[...]


def _fused_kernel(coords_ref, fx_ref, fy_ref, iscos_ref, w1t_ref, b1_ref, w2t_ref, b2_ref, o_ref):
    # Generate the sinusoidal features for this row tile directly in VMEM (no HBM feature matrix).
    x = coords_ref[0:1, :]                                    # (1, TM)
    y = coords_ref[1:2, :]                                    # (1, TM)
    feat_t = _features_t(x, y, fx_ref[...], fy_ref[...], iscos_ref[...])   # (D_pad, TM)
    _mlp_on_features(feat_t, w1t_ref, b1_ref, w2t_ref, b2_ref, o_ref)


def _stream_kernel(feat_t_ref, w1t_ref, b1_ref, w2t_ref, b2_ref, o_ref):
    _mlp_on_features(feat_t_ref[...], w1t_ref, b1_ref, w2t_ref, b2_ref, o_ref)


# ---------------------------------------------------------------------------
# Module wrapper (periodic=True branch)
# TODO(synk): non-periodic branch (pos_features -> x/y in [0,1]) not implemented; the module
#             default is periodic=True, which is what the reference forward uses.
# ---------------------------------------------------------------------------
def functional_pos_embedding(x, params):
    """x: (B, C, nx, ny) -- only its spatial shape is used.
    Returns (1, embed_dim, nx, ny), matching the PyTorch module output."""
    nx, ny = int(x.shape[-2]), int(x.shape[-1])
    w1, b1, w2, b2 = params                       # (D, H), (H,), (H, E), (E,)
    D = 2 * nx + 2 * ny - 6
    H = w1.shape[1]
    E = w2.shape[1]
    M = nx * ny

    # Tiling: rows per grid step (lane dim of every tile) -- multiple of 128, capped for VMEM.
    TM = min(2048, _round_up(M, 128))
    M_pad = _round_up(M, TM)
    D_pad = _round_up(D, 128)

    # Resident tables / weights (tiny).
    fx, fy, iscos = _pos_coef_tables(nx, ny, D_pad)           # (D_pad, 1) each
    w1t = jnp.pad(w1.astype(jnp.float32), ((0, D_pad - D), (0, 0))).T     # (H, D_pad), zero rows
    w2t = w2.astype(jnp.float32).T                                         # (E, H)
    b1c = b1.astype(jnp.float32).reshape(H, 1)
    b2c = b2.astype(jnp.float32).reshape(E, 1)

    # Per-row (x, y) coordinates, row-major over (nx, ny), laid out lane-dense as (2, M_pad).
    ix = jnp.repeat(jnp.arange(1, nx + 1, dtype=jnp.float32), ny)          # (M,)
    iy = jnp.tile(jnp.arange(1, ny + 1, dtype=jnp.float32), nx)            # (M,)
    coords = jnp.pad(jnp.stack([ix, iy], axis=0), ((0, 0), (0, M_pad - M)))  # (2, M_pad)

    grid = (M_pad // TM,)
    const_spec = lambda shape: pl.BlockSpec(shape, lambda i: (0, 0))
    compiler_params = pltpu.CompilerParams(
        dimension_semantics=("parallel",),        # shard row tiles across TCs on v7x
        vmem_limit_bytes=32 << 20,                # modest budget; fits v7x 64 MiB with headroom
    )
    out_spec = pl.BlockSpec((E, TM), lambda i: (0, i))
    out_shape = jax.ShapeDtypeStruct((E, M_pad), jnp.float32)

    fused_call = pl.pallas_call(
        _fused_kernel,
        out_shape=out_shape,
        grid=grid,
        in_specs=[
            pl.BlockSpec((2, TM), lambda i: (0, i)),   # coordinates: streamed per tile
            const_spec((D_pad, 1)),                    # fx
            const_spec((D_pad, 1)),                    # fy
            const_spec((D_pad, 1)),                    # iscos
            const_spec((H, D_pad)),                    # W1^T (resident)
            const_spec((H, 1)),                        # b1
            const_spec((E, H)),                        # W2^T (resident)
            const_spec((E, 1)),                        # b2
        ],
        out_specs=out_spec,
        compiler_params=compiler_params,
    )

    try:
        out_t = fused_call(coords, fx, fy, iscos, w1t, b1c, w2t, b2c)     # (E, M_pad)
        out_t = jax.block_until_ready(out_t)
    except Exception:
        # TODO(synk): this Mosaic build could not lower in-kernel vector sin/cos; fall back to
        # streaming XLA-precomputed transposed features through the same tiled/lane-dense kernel.
        feat_t = _features_t(coords[0:1, :], coords[1:2, :], fx, fy, iscos)   # (D_pad, M_pad)
        stream_call = pl.pallas_call(
            _stream_kernel,
            out_shape=out_shape,
            grid=grid,
            in_specs=[
                pl.BlockSpec((D_pad, TM), lambda i: (0, i)),
                const_spec((H, D_pad)),
                const_spec((H, 1)),
                const_spec((E, H)),
                const_spec((E, 1)),
            ],
            out_specs=out_spec,
            compiler_params=compiler_params,
        )
        out_t = stream_call(feat_t, w1t, b1c, w2t, b2c)

    out = out_t[:, :M].reshape(E, nx, ny)          # lane-dense result reshapes directly (no transpose)
    return out[None, ...]                          # (1, E, nx, ny)


def init_params(key, in_dim, hidden_dim, embed_dim):
    k1, k2, k3, k4 = jax.random.split(key, 4)
    # Deterministic, Kaiming-uniform-like init (LazyLinear / Linear shapes).
    lim1 = 1.0 / np.sqrt(in_dim)
    lim2 = 1.0 / np.sqrt(hidden_dim)
    w1 = jax.random.uniform(k1, (in_dim, hidden_dim), jnp.float32, -lim1, lim1)
    b1 = jax.random.uniform(k2, (hidden_dim,), jnp.float32, -lim1, lim1)
    w2 = jax.random.uniform(k3, (hidden_dim, embed_dim), jnp.float32, -lim2, lim2)
    b2 = jax.random.uniform(k4, (embed_dim,), jnp.float32, -lim2, lim2)
    return w1, b1, w2, b2


if __name__ == "__main__":
    key = jax.random.PRNGKey(0)
    kx, kp = jax.random.split(key)

    B, C, NX, NY = 2, 4, 16, 16
    EMBED_DIM, HIDDEN_DIM = 32, 64

    x = jax.random.normal(kx, (B, C, NX, NY), dtype=jnp.float32)

    D = 2 * NX + 2 * NY - 6                      # feature dim of sin_pos_encoding
    params = init_params(kp, D, HIDDEN_DIM, EMBED_DIM)

    out = functional_pos_embedding(x, params)
    out = jax.block_until_ready(out)
    assert out.shape == (1, EMBED_DIM, NX, NY), out.shape

    # Pure-JAX reference check of the full path (feature construction + MLP).
    feat = sin_pos_encoding_jax(NX, NY).reshape(NX * NY, D)
    w1, b1, w2, b2 = params
    h = feat @ w1 + b1
    h = jnp.where(h >= 0, h, 0.01 * h)
    ref = (h @ w2 + b2).reshape(NX, NY, EMBED_DIM)
    ref = jnp.transpose(ref, (2, 0, 1))[None, ...]
    # Tolerance covers f32 transcendental-implementation and MXU accumulation-order differences.
    np.testing.assert_allclose(np.asarray(out), np.asarray(ref), rtol=1e-4, atol=1e-4)

    print("KERNEL_OK")
</pallas_src>

<mosaic_0001>
module attributes {stable_mosaic.version = 11 : i64} {
  func.func @_fused_kernel(%arg0: i32, %arg1: memref<2x256xf32, #tpu.memory_space<vmem>>, %arg2: memref<128x1xf32, #tpu.memory_space<vmem>>, %arg3: memref<128x1xf32, #tpu.memory_space<vmem>>, %arg4: memref<128x1xf32, #tpu.memory_space<vmem>>, %arg5: memref<64x128xf32, #tpu.memory_space<vmem>>, %arg6: memref<64x1xf32, #tpu.memory_space<vmem>>, %arg7: memref<32x64xf32, #tpu.memory_space<vmem>>, %arg8: memref<32x1xf32, #tpu.memory_space<vmem>>, %arg9: memref<32x256xf32, #tpu.memory_space<vmem>>) attributes {dimension_semantics = [#tpu.dimension_semantics<parallel>], iteration_bounds = array<i64: 1>, scalar_prefetch = 0 : i64, scratch_operands = 0 : i64, tpu.core_type = #tpu.core_type<tc>, window_params = [{transform_indices = @transform_0, window_bounds = array<i64: 2, 256>}, {pipeline_mode = #tpu.pipeline_mode<synchronous>, transform_indices = @transform_1, window_bounds = array<i64: 128, 1>}, {pipeline_mode = #tpu.pipeline_mode<synchronous>, transform_indices = @transform_2, window_bounds = array<i64: 128, 1>}, {pipeline_mode = #tpu.pipeline_mode<synchronous>, transform_indices = @transform_3, window_bounds = array<i64: 128, 1>}, {pipeline_mode = #tpu.pipeline_mode<synchronous>, transform_indices = @transform_4, window_bounds = array<i64: 64, 128>}, {pipeline_mode = #tpu.pipeline_mode<synchronous>, transform_indices = @transform_5, window_bounds = array<i64: 64, 1>}, {pipeline_mode = #tpu.pipeline_mode<synchronous>, transform_indices = @transform_6, window_bounds = array<i64: 32, 64>}, {pipeline_mode = #tpu.pipeline_mode<synchronous>, transform_indices = @transform_7, window_bounds = array<i64: 32, 1>}, {transform_indices = @transform_8, window_bounds = array<i64: 32, 256>}]} {
    %c0 = arith.constant 0 : index
    %c0_0 = arith.constant 0 : index
    %0 = vector.load %arg1[%c0, %c0_0] : memref<2x256xf32, #tpu.memory_space<vmem>>, vector<1x256xf32>
    %c1 = arith.constant 1 : index
    %c0_1 = arith.constant 0 : index
    %1 = vector.load %arg1[%c1, %c0_1] : memref<2x256xf32, #tpu.memory_space<vmem>>, vector<1x256xf32>
    %c0_2 = arith.constant 0 : index
    %c0_3 = arith.constant 0 : index
    %2 = vector.load %arg2[%c0_2, %c0_3] : memref<128x1xf32, #tpu.memory_space<vmem>>, vector<128x1xf32>
    %c0_4 = arith.constant 0 : index
    %c0_5 = arith.constant 0 : index
    %3 = vector.load %arg3[%c0_4, %c0_5] : memref<128x1xf32, #tpu.memory_space<vmem>>, vector<128x1xf32>
    %c0_6 = arith.constant 0 : index
    %c0_7 = arith.constant 0 : index
    %4 = vector.load %arg4[%c0_6, %c0_7] : memref<128x1xf32, #tpu.memory_space<vmem>>, vector<128x1xf32>
    %5 = vector.broadcast %2 : vector<128x1xf32> to vector<128x256xf32>
    %6 = vector.broadcast %0 : vector<1x256xf32> to vector<128x256xf32>
    %7 = arith.mulf %5, %6 : vector<128x256xf32>
    %8 = vector.broadcast %3 : vector<128x1xf32> to vector<128x256xf32>
    %9 = vector.broadcast %1 : vector<1x256xf32> to vector<128x256xf32>
    %10 = arith.mulf %8, %9 : vector<128x256xf32>
    %11 = arith.addf %7, %10 : vector<128x256xf32>
    %12 = math.cos %11 : vector<128x256xf32>
    %13 = vector.broadcast %4 : vector<128x1xf32> to vector<128x256xf32>
    %14 = arith.mulf %13, %12 : vector<128x256xf32>
    %cst = arith.constant 1.000000e+00 : f32
    %15 = vector.broadcast %cst : f32 to vector<128x1xf32>
    %16 = arith.subf %15, %4 : vector<128x1xf32>
    %17 = math.sin %11 : vector<128x256xf32>
    %18 = vector.broadcast %16 : vector<128x1xf32> to vector<128x256xf32>
    %19 = arith.mulf %18, %17 : vector<128x256xf32>
    %20 = arith.addf %14, %19 : vector<128x256xf32>
    %c0_8 = arith.constant 0 : index
    %c0_9 = arith.constant 0 : index
    %21 = vector.load %arg5[%c0_8, %c0_9] : memref<64x128xf32, #tpu.memory_space<vmem>>, vector<64x128xf32>
    %cst_10 = arith.constant dense<0.000000e+00> : vector<64x256xf32>
    %22 = tpu.matmul %21, %20, %cst_10 {dimension_numbers = #tpu.dot_dimension_numbers<[1], [0], [0], [1], [0, 0, 1, 1], [], []>} : vector<64x128xf32>, vector<128x256xf32>, vector<64x256xf32> -> vector<64x256xf32>
    %c0_11 = arith.constant 0 : index
    %c0_12 = arith.constant 0 : index
    %23 = vector.load %arg6[%c0_11, %c0_12] : memref<64x1xf32, #tpu.memory_space<vmem>>, vector<64x1xf32>
    %24 = vector.broadcast %23 : vector<64x1xf32> to vector<64x256xf32>
    %25 = arith.addf %22, %24 : vector<64x256xf32>
    %cst_13 = arith.constant 0.000000e+00 : f32
    %26 = vector.broadcast %cst_13 : f32 to vector<64x256xf32>
    %27 = arith.cmpf oge, %25, %26 : vector<64x256xf32>
    %cst_14 = arith.constant 0.00999999977 : f32
    %28 = vector.broadcast %cst_14 : f32 to vector<64x256xf32>
    %29 = arith.mulf %28, %25 : vector<64x256xf32>
    %30 = arith.select %27, %25, %29 : vector<64x256xi1>, vector<64x256xf32>
    %c0_15 = arith.constant 0 : index
    %c0_16 = arith.constant 0 : index
    %31 = vector.load %arg7[%c0_15, %c0_16] : memref<32x64xf32, #tpu.memory_space<vmem>>, vector<32x64xf32>
    %cst_17 = arith.constant dense<0.000000e+00> : vector<32x256xf32>
    %32 = tpu.matmul %31, %30, %cst_17 {dimension_numbers = #tpu.dot_dimension_numbers<[1], [0], [0], [1], [0, 0, 1, 1], [], []>} : vector<32x64xf32>, vector<64x256xf32>, vector<32x256xf32> -> vector<32x256xf32>
    %c0_18 = arith.constant 0 : index
    %c0_19 = arith.constant 0 : index
    %33 = vector.load %arg8[%c0_18, %c0_19] : memref<32x1xf32, #tpu.memory_space<vmem>>, vector<32x1xf32>
    %34 = vector.broadcast %33 : vector<32x1xf32> to vector<32x256xf32>
    %35 = arith.addf %32, %34 : vector<32x256xf32>
    %c0_20 = arith.constant 0 : index
    %c0_21 = arith.constant 0 : index
    %36 = vector.load %arg9[%c0_20, %c0_21] : memref<32x256xf32, #tpu.memory_space<vmem>>, vector<32x256xf32>
    tpu.vector_store %arg9[%c0_20, %c0_21], %35 {strides = array<i32>} : memref<32x256xf32, #tpu.memory_space<vmem>>, vector<32x256xf32>,
    return
  }
  func.func @transform_0(%arg0: i32) -> (i32, i32) {
    %c0_i32 = arith.constant 0 : i32
    %c0_i32_0 = arith.constant 0 : i32
    return %c0_i32, %arg0 : i32, i32
  }
  func.func @transform_1(%arg0: i32) -> (i32, i32) {
    %c0_i32 = arith.constant 0 : i32
    %c0_i32_0 = arith.constant 0 : i32
    %c0_i32_1 = arith.constant 0 : i32
    return %c0_i32, %c0_i32_0 : i32, i32
  }
  func.func @transform_2(%arg0: i32) -> (i32, i32) {
    %c0_i32 = arith.constant 0 : i32
    %c0_i32_0 = arith.constant 0 : i32
    %c0_i32_1 = arith.constant 0 : i32
    return %c0_i32, %c0_i32_0 : i32, i32
  }
  func.func @transform_3(%arg0: i32) -> (i32, i32) {
    %c0_i32 = arith.constant 0 : i32
    %c0_i32_0 = arith.constant 0 : i32
    %c0_i32_1 = arith.constant 0 : i32
    return %c0_i32, %c0_i32_0 : i32, i32
  }
  func.func @transform_4(%arg0: i32) -> (i32, i32) {
    %c0_i32 = arith.constant 0 : i32
    %c0_i32_0 = arith.constant 0 : i32
    %c0_i32_1 = arith.constant 0 : i32
    return %c0_i32, %c0_i32_0 : i32, i32
  }
  func.func @transform_5(%arg0: i32) -> (i32, i32) {
    %c0_i32 = arith.constant 0 : i32
    %c0_i32_0 = arith.constant 0 : i32
    %c0_i32_1 = arith.constant 0 : i32
    return %c0_i32, %c0_i32_0 : i32, i32
  }
  func.func @transform_6(%arg0: i32) -> (i32, i32) {
    %c0_i32 = arith.constant 0 : i32
    %c0_i32_0 = arith.constant 0 : i32
    %c0_i32_1 = arith.constant 0 : i32
    return %c0_i32, %c0_i32_0 : i32, i32
  }
  func.func @transform_7(%arg0: i32) -> (i32, i32) {
    %c0_i32 = arith.constant 0 : i32
    %c0_i32_0 = arith.constant 0 : i32
    %c0_i32_1 = arith.constant 0 : i32
    return %c0_i32, %c0_i32_0 : i32, i32
  }
  func.func @transform_8(%arg0: i32) -> (i32, i32) {
    %c0_i32 = arith.constant 0 : i32
    %c0_i32_0 = arith.constant 0 : i32
    return %c0_i32, %arg0 : i32, i32
  }
}

module attributes {stable_mosaic.version = 11 : i64} {
  func.func @_stream_kernel(%arg0: i32, %arg1: memref<128x256xf32, #tpu.memory_space<vmem>>, %arg2: memref<64x128xf32, #tpu.memory_space<vmem>>, %arg3: memref<64x1xf32, #tpu.memory_space<vmem>>, %arg4: memref<32x64xf32, #tpu.memory_space<vmem>>, %arg5: memref<32x1xf32, #tpu.memory_space<vmem>>, %arg6: memref<32x256xf32, #tpu.memory_space<vmem>>) attributes {dimension_semantics = [#tpu.dimension_semantics<parallel>], iteration_bounds = array<i64: 1>, scalar_prefetch = 0 : i64, scratch_operands = 0 : i64, tpu.core_type = #tpu.core_type<tc>, window_params = [{transform_indices = @transform_0, window_bounds = array<i64: 128, 256>}, {pipeline_mode = #tpu.pipeline_mode<synchronous>, transform_indices = @transform_1, window_bounds = array<i64: 64, 128>}, {pipeline_mode = #tpu.pipeline_mode<synchronous>, transform_indices = @transform_2, window_bounds = array<i64: 64, 1>}, {pipeline_mode = #tpu.pipeline_mode<synchronous>, transform_indices = @transform_3, window_bounds = array<i64: 32, 64>}, {pipeline_mode = #tpu.pipeline_mode<synchronous>, transform_indices = @transform_4, window_bounds = array<i64: 32, 1>}, {transform_indices = @transform_5, window_bounds = array<i64: 32, 256>}]} {
    %c0 = arith.constant 0 : index
    %c0_0 = arith.constant 0 : index
    %0 = vector.load %arg1[%c0, %c0_0] : memref<128x256xf32, #tpu.memory_space<vmem>>, vector<128x256xf32>
    %c0_1 = arith.constant 0 : index
    %c0_2 = arith.constant 0 : index
    %1 = vector.load %arg2[%c0_1, %c0_2] : memref<64x128xf32, #tpu.memory_space<vmem>>, vector<64x128xf32>
    %cst = arith.constant dense<0.000000e+00> : vector<64x256xf32>
    %2 = tpu.matmul %1, %0, %cst {dimension_numbers = #tpu.dot_dimension_numbers<[1], [0], [0], [1], [0, 0, 1, 1], [], []>} : vector<64x128xf32>, vector<128x256xf32>, vector<64x256xf32> -> vector<64x256xf32>
    %c0_3 = arith.constant 0 : index
    %c0_4 = arith.constant 0 : index
    %3 = vector.load %arg3[%c0_3, %c0_4] : memref<64x1xf32, #tpu.memory_space<vmem>>, vector<64x1xf32>
    %4 = vector.broadcast %3 : vector<64x1xf32> to vector<64x256xf32>
    %5 = arith.addf %2, %4 : vector<64x256xf32>
    %cst_5 = arith.constant 0.000000e+00 : f32
    %6 = vector.broadcast %cst_5 : f32 to vector<64x256xf32>
    %7 = arith.cmpf oge, %5, %6 : vector<64x256xf32>
    %cst_6 = arith.constant 0.00999999977 : f32
    %8 = vector.broadcast %cst_6 : f32 to vector<64x256xf32>
    %9 = arith.mulf %8, %5 : vector<64x256xf32>
    %10 = arith.select %7, %5, %9 : vector<64x256xi1>, vector<64x256xf32>
    %c0_7 = arith.constant 0 : index
    %c0_8 = arith.constant 0 : index
    %11 = vector.load %arg4[%c0_7, %c0_8] : memref<32x64xf32, #tpu.memory_space<vmem>>, vector<32x64xf32>
    %cst_9 = arith.constant dense<0.000000e+00> : vector<32x256xf32>
    %12 = tpu.matmul %11, %10, %cst_9 {dimension_numbers = #tpu.dot_dimension_numbers<[1], [0], [0], [1], [0, 0, 1, 1], [], []>} : vector<32x64xf32>, vector<64x256xf32>, vector<32x256xf32> -> vector<32x256xf32>
    %c0_10 = arith.constant 0 : index
    %c0_11 = arith.constant 0 : index
    %13 = vector.load %arg5[%c0_10, %c0_11] : memref<32x1xf32, #tpu.memory_space<vmem>>, vector<32x1xf32>
    %14 = vector.broadcast %13 : vector<32x1xf32> to vector<32x256xf32>
    %15 = arith.addf %12, %14 : vector<32x256xf32>
    %c0_12 = arith.constant 0 : index
    %c0_13 = arith.constant 0 : index
    %16 = vector.load %arg6[%c0_12, %c0_13] : memref<32x256xf32, #tpu.memory_space<vmem>>, vector<32x256xf32>
    tpu.vector_store %arg6[%c0_12, %c0_13], %15 {strides = array<i32>} : memref<32x256xf32, #tpu.memory_space<vmem>>, vector<32x256xf32>,
    return
  }
  func.func @transform_0(%arg0: i32) -> (i32, i32) {
    %c0_i32 = arith.constant 0 : i32
    %c0_i32_0 = arith.constant 0 : i32
    return %c0_i32, %arg0 : i32, i32
  }
  func.func @transform_1(%arg0: i32) -> (i32, i32) {
    %c0_i32 = arith.constant 0 : i32
    %c0_i32_0 = arith.constant 0 : i32
    %c0_i32_1 = arith.constant 0 : i32
    return %c0_i32, %c0_i32_0 : i32, i32
  }
  func.func @transform_2(%arg0: i32) -> (i32, i32) {
    %c0_i32 = arith.constant 0 : i32
    %c0_i32_0 = arith.constant 0 : i32
    %c0_i32_1 = arith.constant 0 : i32
    return %c0_i32, %c0_i32_0 : i32, i32
  }
  func.func @transform_3(%arg0: i32) -> (i32, i32) {
    %c0_i32 = arith.constant 0 : i32
    %c0_i32_0 = arith.constant 0 : i32
    %c0_i32_1 = arith.constant 0 : i32
    return %c0_i32, %c0_i32_0 : i32, i32
  }
  func.func @transform_4(%arg0: i32) -> (i32, i32) {
    %c0_i32 = arith.constant 0 : i32
    %c0_i32_0 = arith.constant 0 : i32
    %c0_i32_1 = arith.constant 0 : i32
    return %c0_i32, %c0_i32_0 : i32, i32
  }
  func.func @transform_5(%arg0: i32) -> (i32, i32) {
    %c0_i32 = arith.constant 0 : i32
    %c0_i32_0 = arith.constant 0 : i32
    return %c0_i32, %arg0 : i32, i32
  }
}

</mosaic_0001>

<bundles_post_ra>
// kernel: tpu_custom_call.1
= control target key start
LH: loop header
LB: loop body
LE: loop exit
PB: predicated region body
PF: predicated region fallthrough
CT: control target
= control target key end

     0   :  { %v8228_v2 = vmov 0   ;;  %v162_v5 = vlaneseq  ;;  %s13891_s0 = inlined_call_operand.vmem [shape: f32[2,256], index: 0, kind: input, shape index: {}]   ;;  %s13892_s1 = inlined_call_operand.vmem [shape: f32[128,1], index: 1, kind: input, shape index: {}]   ;;  %s13893_s2 = inlined_call_operand.vmem [shape: f32[128,1], index: 2, kind: input, shape index: {}]   ;;  %s13894_s3 = inlined_call_operand.vmem [shape: f32[128,1], index: 3, kind: input, shape index: {}]   ;;  %s13895_s4 = inlined_call_operand.vmem [shape: f32[64,128], index: 4, kind: input, shape index: {}]   ;;  %s13896_s5 = inlined_call_operand.vmem [shape: f32[64,1], index: 5, kind: input, shape index: {}]   ;;  %s13897_s6 = inlined_call_operand.vmem [shape: f32[32,64], index: 6, kind: input, shape index: {}]   ;;  %s13898_s7 = inlined_call_operand.vmem [shape: f32[32,1], index: 7, kind: input, shape index: {}]   ;;  %s13899_s8 = inlined_call_operand.hbm [shape: f32[32,256], index: 8, kind: output, shape index: {}]  }
   0x1   :  { %v49_v0 = vld [vmem:[%s13893_s2] sm:$0xff]  ;;  %8075 = vset.pattern.permute.xlu1 %v8228_v2  ;;  %8074 = vset.pattern.permute.xlu0 %v8228_v2  ;;  %v50_v3 = vld [vmem:[%s13893_s2 + $0x8] sm:$0xff]  ;;  %v36_v6 = vld [vmem:[%s13892_s1 + $0x18] sm:$0xff] }
   0x2   :  { %v33_v1 = vld [vmem:[%s13892_s1] sm:$0xff]  ;;  %206 = vperm.xlu1 %8075, %v49_v0   ;;  %v34_v4 = vld [vmem:[%s13892_s1 + $0x8] sm:$0xff]  ;;  %v35_v7 = vld [vmem:[%s13892_s1 + $0x10] sm:$0xff]  ;;  %v8302_v8 = vshrl.u32 %v162_v5, 7 }
   0x3   :  { %83 = vperm.xlu0 %8074, %v33_v1   ;;  %v52_v9 = vld [vmem:[%s13893_s2 + $0x18] sm:$0xff]  ;;  %v51_v10 = vld [vmem:[%s13893_s2 + $0x10] sm:$0xff]  ;;  %v38_v12 = vld [vmem:[%s13892_s1 + $0x28] sm:$0xff] }
   0x4   :  { %v164_v11 = vsub.s32 0, %v8302_v8  ;;  %v37_v13 = vld [vmem:[%s13892_s1 + $0x20] sm:$0xff]  ;;  %v54_v18 = vld [vmem:[%s13893_s2 + $0x28] sm:$0xff] }
   0x5   :  { %v8320_v14 = vld [vmem:[%s13891_s0 + $0x1] ss:$2 sm:$0x3]  ;;  %v8328_v16 = vld [vmem:[%s13891_s0] ss:$2 sm:$0x3] }
   0x6   :  { %211 = vperm.xlu1 %8075, %v50_v3   ;;  %v8323_v15 = vrot.slane %v8320_v14, %v164_v11  ;;  %v8331_v17 = vrot.slane %v8328_v16, %v164_v11  ;;  %v53_v19 = vld [vmem:[%s13893_s2 + $0x20] sm:$0xff] }
   0x7   :  { %88 = vperm.xlu0 %8074, %v34_v4  }
   0xa   :  { %98 = vperm.xlu1 %8075, %v36_v6  }
   0xb   :  { %93 = vperm.xlu0 %8074, %v35_v7  }
   0xe   :  { %221 = vperm.xlu1 %8075, %v52_v9  }
   0xf   :  { %216 = vperm.xlu0 %8074, %v51_v10  }
  0x12   :  { %108 = vperm.xlu1 %8075, %v38_v12  }
  0x13   :  { %103 = vperm.xlu0 %8074, %v37_v13  }
  0x14   :  { %13 = vsyncpa [#allocation3], 0  ;;  %v40_v20 = vld [vmem:[%s13892_s1 + $0x38] sm:$0xff]  ;;  %v39_v21 = vld [vmem:[%s13892_s1 + $0x30] sm:$0xff] }
  0x15   :  { %v56_v22 = vld [vmem:[%s13893_s2 + $0x38] sm:$0xff]  ;;  %v55_v23 = vld [vmem:[%s13893_s2 + $0x30] sm:$0xff]  ;;  %v42_v24 = vld [vmem:[%s13892_s1 + $0x48] sm:$0xff] }
  0x16   :  { %231 = vperm.xlu1 %8075, %v54_v18   ;;  %v41_v25 = vld [vmem:[%s13892_s1 + $0x40] sm:$0xff]  ;;  %v58_v26 = vld [vmem:[%s13893_s2 + $0x48] sm:$0xff]  ;;  %v44_v28 = vld [vmem:[%s13892_s1 + $0x58] sm:$0xff] }
  0x17   :  { %226 = vperm.xlu0 %8074, %v53_v19   ;;  %v57_v27 = vld [vmem:[%s13893_s2 + $0x40] sm:$0xff]  ;;  %v43_v29 = vld [vmem:[%s13892_s1 + $0x50] sm:$0xff]  ;;  %v60_v30 = vld [vmem:[%s13893_s2 + $0x58] sm:$0xff] }
  0x18   :  { %v59_v31 = vld [vmem:[%s13893_s2 + $0x50] sm:$0xff]  ;;  %v46_v32 = vld [vmem:[%s13892_s1 + $0x68] sm:$0xff]  ;;  %v45_v33 = vld [vmem:[%s13892_s1 + $0x60] sm:$0xff] }
  0x19   :  { %v62_v34 = vld [vmem:[%s13893_s2 + $0x68] sm:$0xff]  ;;  %v61_v35 = vld [vmem:[%s13893_s2 + $0x60] sm:$0xff]  ;;  %v48_v36 = vld [vmem:[%s13892_s1 + $0x78] sm:$0xff] }
  0x1a   :  { %118 = vperm.xlu1 %8075, %v40_v20   ;;  %v47_v37 = vld [vmem:[%s13892_s1 + $0x70] sm:$0xff]  ;;  %v64_v38 = vld [vmem:[%s13893_s2 + $0x78] sm:$0xff]  ;;  %v66_v40 = vld [vmem:[%s13894_s3 + $0x8] sm:$0xff] }
  0x1b   :  { %113 = vperm.xlu0 %8074, %v39_v21   ;;  %v63_v39 = vld [vmem:[%s13893_s2 + $0x70] sm:$0xff]  ;;  %v65_v41 = vld [vmem:[%s13894_s3] sm:$0xff]  ;;  %v3768_v42 = vsub.f32 1.0, %v66_v40  ;;  %v68_v44 = vld [vmem:[%s13894_s3 + $0x18] sm:$0xff] }
  0x1c   :  { %v3767_v43 = vsub.f32 1.0, %v65_v41  ;;  %v67_v45 = vld [vmem:[%s13894_s3 + $0x10] sm:$0xff]  ;;  %v3770_v46 = vsub.f32 1.0, %v68_v44  ;;  %v70_v48 = vld [vmem:[%s13894_s3 + $0x28] sm:$0xff]  ;;  %v69_v49 = vld [vmem:[%s13894_s3 + $0x20] sm:$0xff] }
  0x1d   :  { %v3769_v47 = vsub.f32 1.0, %v67_v45  ;;  %v3772_v50 = vsub.f32 1.0, %v70_v48  ;;  %v3771_v51 = vsub.f32 1.0, %v69_v49  ;;  %v72_v52 = vld [vmem:[%s13894_s3 + $0x38] sm:$0xff]  ;;  %v71_v53 = vld [vmem:[%s13894_s3 + $0x30] sm:$0xff]  ;;  %v74_v56 = vld [vmem:[%s13894_s3 + $0x48] sm:$0xff] }
  0x1e   :  { %241 = vperm.xlu1 %8075, %v56_v22   ;;  %v3774_v54 = vsub.f32 1.0, %v72_v52  ;;  %v3773_v55 = vsub.f32 1.0, %v71_v53  ;;  %v73_v57 = vld [vmem:[%s13894_s3 + $0x40] sm:$0xff]  ;;  %v3776_v58 = vsub.f32 1.0, %v74_v56  ;;  %v76_v60 = vld [vmem:[%s13894_s3 + $0x58] sm:$0xff]  ;;  %v75_v61 = vld [vmem:[%s13894_s3 + $0x50] sm:$0xff] }
  0x1f   :  { %236 = vperm.xlu0 %8074, %v55_v23   ;;  %v3775_v59 = vsub.f32 1.0, %v73_v57  ;;  %v3778_v62 = vsub.f32 1.0, %v76_v60  ;;  %v3777_v63 = vsub.f32 1.0, %v75_v61  ;;  %v78_v0 = vld [vmem:[%s13894_s3 + $0x68] sm:$0xff]  ;;  %v77_v1 = vld [vmem:[%s13894_s3 + $0x60] sm:$0xff]  ;;  %v80_v4 = vld [vmem:[%s13894_s3 + $0x78] sm:$0xff] }
  0x20   :  { %v3780_v2 = vsub.f32 1.0, %v78_v0  ;;  %v3779_v3 = vsub.f32 1.0, %v77_v1  ;;  %v79_v5 = vld [vmem:[%s13894_s3 + $0x70] sm:$0xff]  ;;  %v3782_v6 = vsub.f32 1.0, %v80_v4  ;;  %v7264_v9 = vld [vmem:[%s13896_s5 + $0x8] sm:$0xff]  ;;  %v7263_v10 = vld [vmem:[%s13896_s5] sm:$0xff] }
  0x21   :  { %v3781_v7 = vsub.f32 1.0, %v79_v5  ;;  %v7266_v19 = vld [vmem:[%s13896_s5 + $0x18] sm:$0xff]  ;;  %v7265_v21 = vld [vmem:[%s13896_s5 + $0x10] sm:$0xff] }
  0x22   :  { %128 = vperm.xlu1 %8075, %v42_v24  }
  0x23   :  { %123 = vperm.xlu0 %8074, %v41_v25  }
  0x26   :  { %251 = vperm.xlu1 %8075, %v58_v26   ;;  %v7268_v26 = vld [vmem:[%s13896_s5 + $0x28] sm:$0xff] }
  0x27   :  { %246 = vperm.xlu0 %8074, %v57_v27   ;;  %v168_v27 = vsub.s32 1, %v8302_v8  ;;  %v7269_v8 = vld [vmem:[%s13896_s5 + $0x30] sm:$0xff] }
  0x2a   :  { %138 = vperm.xlu1 %8075, %v44_v28   ;;  %v7267_v28 = vld [vmem:[%s13896_s5 + $0x20] sm:$0xff] }
  0x2b   :  { %133 = vperm.xlu0 %8074, %v43_v29  }
  0x2e   :  { %261 = vperm.xlu1 %8075, %v60_v30  }
  0x2f   :  { %256 = vperm.xlu0 %8074, %v59_v31   ;;  %v7270_v31 = vld [vmem:[%s13896_s5 + $0x38] sm:$0xff] }
  0x32   :  { %148 = vperm.xlu1 %8075, %v46_v32   ;;  %v8484_v32 = vrot.slane %v8320_v14, %v168_v27  ;;  %v7477_v14 = vld [vmem:[%s13898_s7 + $0x8] sm:$0xff] }
  0x33   :  { %143 = vperm.xlu0 %8074, %v45_v33   ;;  %v8490_v33 = vrot.slane %v8328_v16, %v168_v27  ;;  %v7476_v16 = vld [vmem:[%s13898_s7] sm:$0xff] }
  0x36   :  { %271 = vperm.xlu1 %8075, %v62_v34  }
  0x37   :  { %266 = vperm.xlu0 %8074, %v61_v35  }
  0x3a   :  { %158 = vperm.xlu1 %8075, %v48_v36  }
  0x3b   :  { %153 = vperm.xlu0 %8074, %v47_v37  }
  0x3e   :  { %281 = vperm.xlu1 %8075, %v64_v38  }
  0x3f   :  { %276 = vperm.xlu0 %8074, %v63_v39  }
  0x42   :  { %3662 = vperm.xlu1 %8075, %v66_v40  }
  0x43   :  { %3657 = vperm.xlu0 %8074, %v65_v41   ;;  %v7479_v41 = vld [vmem:[%s13898_s7 + $0x18] sm:$0xff] }
  0x46   :  { %7118 = vperm.xlu1 %8075, %v3768_v42  }
  0x47   :  { %7113 = vperm.xlu0 %8074, %v3767_v43   ;;  %v7478_v43 = vld [vmem:[%s13898_s7 + $0x10] sm:$0xff] }
  0x4a   :  { %3672 = vperm.xlu1 %8075, %v68_v44  }
  0x4b   :  { %3667 = vperm.xlu0 %8074, %v67_v45  }
  0x4e   :  { %7128 = vperm.xlu1 %8075, %v3770_v46  }
  0x4f   :  { %7123 = vperm.xlu0 %8074, %v3769_v47  }
  0x52   :  { %3682 = vperm.xlu1 %8075, %v70_v48  }
  0x53   :  { %3677 = vperm.xlu0 %8074, %v69_v49  }
  0x56   :  { %7138 = vperm.xlu1 %8075, %v3772_v50  }
  0x57   :  { %7133 = vperm.xlu0 %8074, %v3771_v51  }
  0x5a   :  { %3692 = vperm.xlu1 %8075, %v72_v52  }
  0x5b   :  { %3687 = vperm.xlu0 %8074, %v71_v53  }
  0x5e   :  { %7148 = vperm.xlu1 %8075, %v3774_v54  }
  0x5f   :  { %7143 = vperm.xlu0 %8074, %v3773_v55  }
  0x62   :  { %3702 = vperm.xlu1 %8075, %v74_v56  }
  0x63   :  { %3697 = vperm.xlu0 %8074, %v73_v57  }
  0x66   :  { %7158 = vperm.xlu1 %8075, %v3776_v58  }
  0x67   :  { %7153 = vperm.xlu0 %8074, %v3775_v59  }
  0x6a   :  { %3712 = vperm.xlu1 %8075, %v76_v60  }
  0x6b   :  { %3707 = vperm.xlu0 %8074, %v75_v61  }
  0x6e   :  { %7168 = vperm.xlu1 %8075, %v3778_v62  }
  0x6f   :  { %7163 = vperm.xlu0 %8074, %v3777_v63  }
  0x72   :  { %3722 = vperm.xlu1 %8075, %v78_v0  }
  0x73   :  { %3717 = vperm.xlu0 %8074, %v77_v1  }
  0x76   :  { %7178 = vperm.xlu1 %8075, %v3780_v2  }
  0x77   :  { %7173 = vperm.xlu0 %8074, %v3779_v3  }
  0x7a   :  { %3732 = vperm.xlu1 %8075, %v80_v4  }
  0x7b   :  { %3727 = vperm.xlu0 %8074, %v79_v5  }
  0x7e   :  { %7188 = vperm.xlu1 %8075, %v3782_v6  }
  0x7f   :  { %7183 = vperm.xlu0 %8074, %v3781_v7  }
  0x81   :  { %v207_v11 = vpop.permute.xlu1 %206 }
  0x82   :  { %v84_v12 = vpop.permute.xlu0 %83  ;;  %v295_v13 = vmul.f32 %v8323_v15, %v207_v11  ;;  %7278 = vperm.xlu1 %8075, %v7264_v9   ;;  %v296_v61 = vmul.f32 %v8484_v32, %v207_v11 }
  0x83   :  { %v172_v18 = vmul.f32 %v8331_v17, %v84_v12  ;;  %7273 = vperm.xlu0 %8074, %v7263_v10   ;;  %v173_v62 = vmul.f32 %v8490_v33, %v84_v12 }
  0x85   :  { %v8458_v20 = vadd.f32 %v295_v13, %v172_v18  ;;  %v8463_v22 = vpop.permute.xlu1 %211  ;;  %v8538_v5 = vadd.f32 %v296_v61, %v173_v62 }
  0x86   :  { %v8465_v23 = vpop.permute.xlu0 %88  ;;  %v297_v24 = vmul.f32 %v8323_v15, %v8463_v22  ;;  %7288 = vperm.xlu1 %8075, %v7266_v19   ;;  %v298_v18 = vmul.f32 %v8484_v32, %v8463_v22 }
  0x87   :  { %v174_v25 = vmul.f32 %v8331_v17, %v8465_v23  ;;  %7283 = vperm.xlu0 %8074, %v7265_v21   ;;  %14231 = vst [vmem:[#allocation13_spill] sm:$0xff] %v8538_v5  ;;  %v362_v7 = vand.u32 2139095040, %v8458_v20  ;;  %v465_v10 = vand.u32 2139095040, %v8538_v5  ;;  %v175_v19 = vmul.f32 %v8490_v33, %v8465_v23 }
  0x89   :  { %v8478_v29 = vadd.f32 %v297_v24, %v174_v25  ;;  %v99_v30 = vpop.permute.xlu1 %98  ;;  %v363_v12 = vshrl.u32 %v362_v7, 23  ;;  %v466_v13 = vshrl.u32 %v465_v10, 23 }
  0x8a   :  { %7298 = vperm.xlu1 %8075, %v7268_v26   ;;  %v178_v37 = vmul.f32 %v8331_v17, %v99_v30  ;;  %v179_v38 = vmul.f32 %v8490_v33, %v99_v30  ;;  %v94_v42 = vpop.permute.xlu0 %93 }
  0x8b   :  { %7293 = vperm.xlu0 %8074, %v7267_v28   ;;  %v176_v46 = vmul.f32 %v8331_v17, %v94_v42  ;;  %v177_v47 = vmul.f32 %v8490_v33, %v94_v42  ;;  %v7627_v28 = vadd.s32 4294967169, %v363_v12  ;;  %v13900_v12 = vmov 2102212464  }
  0x8d   :  { %v222_v34 = vpop.permute.xlu1 %221 }
  0x8e   :  { %v301_v35 = vmul.f32 %v8323_v15, %v222_v34  ;;  %v302_v36 = vmul.f32 %v8484_v32, %v222_v34  ;;  %7308 = vperm.xlu1 %8075, %v7270_v31   ;;  %v217_v45 = vpop.permute.xlu0 %216  ;;  %v8554_v34 = vadd.f32 %v298_v18, %v175_v19  ;;  %v13906_v18 = vmov 920167782  }
  0x8f   :  { %7303 = vperm.xlu0 %8074, %v7269_v8   ;;  %v299_v48 = vmul.f32 %v8323_v15, %v217_v45  ;;  %v300_v49 = vmul.f32 %v8484_v32, %v217_v45  ;;  %v7631_v8 = vadd.s32 4294967169, %v466_v13 }
  0x90   :  { %v8502_v39 = vadd.f32 %v301_v35, %v178_v37  ;;  %v8504_v40 = vadd.f32 %v302_v36, %v179_v38  ;;  %v568_v35 = vand.u32 2139095040, %v8478_v29  ;;  %v369_v38 = vadd.s32 1, %v7627_v28 }
  0x91   :  { %v109_v44 = vpop.permute.xlu1 %108  ;;  %v8516_v50 = vadd.f32 %v299_v48, %v176_v46  ;;  %v8518_v51 = vadd.f32 %v300_v49, %v177_v47  ;;  %v671_v42 = vand.u32 2139095040, %v8554_v34 }
  0x92   :  { %14223 = vst [vmem:[#allocation5_spill] sm:$0xff] %v8502_v39  ;;  %14224 = vst [vmem:[#allocation6_spill] sm:$0xff] %v8504_v40  ;;  %7487 = vperm.xlu1 %8075, %v7477_v14   ;;  %v182_v53 = vmul.f32 %v8331_v17, %v109_v44  ;;  %v183_v54 = vmul.f32 %v8490_v33, %v109_v44  ;;  %v104_v59 = vpop.permute.xlu0 %103  ;;  %vm370_vm0 = vcmp.gt.s32.totalorder %v369_v38, 0  ;;  %v980_v48 = vand.u32 2139095040, %v8502_v39 }
  0x93   :  { %7482 = vperm.xlu0 %8074, %v7476_v16   ;;  %14225 = vst [vmem:[#allocation7_spill] sm:$0xff] %v8516_v50  ;;  %14226 = vst [vmem:[#allocation8_spill] sm:$0xff] %v8518_v51  ;;  %v180_v63 = vmul.f32 %v8331_v17, %v104_v59  ;;  %v181_v0 = vmul.f32 %v8490_v33, %v104_v59  ;;  %v672_v44 = vshrl.u32 %v671_v42, 23  ;;  %v371_v46 = vsel %vm370_vm0, %v369_v38, 0 }
  0x94   :  { %v1083_v59 = vand.u32 2139095040, %v8504_v40 }
  0x95   :  { %v232_v52 = vpop.permute.xlu1 %231 }
  0x96   :  { %7497 = vperm.xlu1 %8075, %v7479_v41   ;;  %v305_v55 = vmul.f32 %v8323_v15, %v232_v52  ;;  %v306_v56 = vmul.f32 %v8484_v32, %v232_v52  ;;  %v227_v60 = vpop.permute.xlu0 %226  ;;  %v472_v41 = vadd.s32 1, %v7631_v8  ;;  %v7639_v52 = vadd.s32 4294967169, %v672_v44 }
  0x97   :  { %7492 = vperm.xlu0 %8074, %v7478_v43   ;;  %v303_v1 = vmul.f32 %v8323_v15, %v227_v60  ;;  %v304_v2 = vmul.f32 %v8484_v32, %v227_v60  ;;  %v569_v43 = vshrl.u32 %v568_v35, 23  ;;  %v981_v60 = vshrl.u32 %v980_v48, 23 }
  0x98   :  { %v8524_v57 = vadd.f32 %v305_v55, %v182_v53  ;;  %v8526_v58 = vadd.f32 %v306_v56, %v183_v54  ;;  %vm473_vm1 = vcmp.gt.s32.totalorder %v472_v41, 0  ;;  %v8567_v54 = vand.u32 31, %v371_v46 }
  0x99   :  { %v8534_v3 = vadd.f32 %v303_v1, %v180_v63  ;;  %v8536_v4 = vadd.f32 %v304_v2, %v181_v0  ;;  %v119_v6 = vpop.permute.xlu1 %118  ;;  %v7635_v45 = vadd.s32 4294967169, %v569_v43  ;;  %v474_v47 = vsel %vm473_vm1, %v472_v41, 0 }
  0x9a   :  { %14227 = vst [vmem:[#allocation9_spill] sm:$0xff] %v8524_v57  ;;  %14228 = vst [vmem:[#allocation10_spill] sm:$0xff] %v8526_v58  ;;  %v114_v9 = vpop.permute.xlu0 %113  ;;  %v186_v21 = vmul.f32 %v8331_v17, %v119_v6  ;;  %v187_v24 = vmul.f32 %v8490_v33, %v119_v6  ;;  %v8569_v56 = vand.u32 31, %v474_v47  ;;  %v678_v61 = vadd.s32 1, %v7639_v52 }
  0x9b   :  { %14229 = vst [vmem:[#allocation11_spill] sm:$0xff] %v8534_v3  ;;  %14230 = vst [vmem:[#allocation12_spill] sm:$0xff] %v8536_v4  ;;  %v184_v36 = vmul.f32 %v8331_v17, %v114_v9  ;;  %v185_v37 = vmul.f32 %v8490_v33, %v114_v9  ;;  %v575_v55 = vadd.s32 1, %v7635_v45  ;;  %v8573_v62 = vsub.s32 32, %v8567_v54 }
  0x9c   :  { %14236 = vst [vmem:[#allocation18_spill] sm:$0xff] %v8569_v56  ;;  %v8576_v0 = vsub.s32 32, %v8569_v56  ;;  %v1084_v1 = vshrl.u32 %v1083_v59, 23  ;;  %v7651_v6 = vadd.s32 4294967169, %v981_v60  ;;  %v8579_v9 = vshrl.u32 %v371_v46, 5 }
  0x9d   :  { %v242_v11 = vpop.permute.xlu1 %241  ;;  %vm576_vm2 = vcmp.gt.s32.totalorder %v575_v55, 0  ;;  %v8581_v10 = vshrl.u32 %v474_v47, 5  ;;  %vm679_vm3 = vcmp.gt.s32.totalorder %v678_v61, 0  ;;  %v385_v13 = vshll.u32 %v13900_v12, %v8567_v54 }
  0x9e   :  { %v309_v25 = vmul.f32 %v8323_v15, %v242_v11  ;;  %v310_v26 = vmul.f32 %v8484_v32, %v242_v11  ;;  %v237_v27 = vpop.permute.xlu0 %236  ;;  %14237 = vst [vmem:[#allocation19_spill] sm:$0xff] %v8576_v0  ;;  %v577_v11 = vsel %vm576_vm2, %v575_v55, 0  ;;  %v386_v19 = vshrl.u32 %v13906_v18, %v8573_v62 }
  0x9f   :  { %v307_v22 = vmul.f32 %v8323_v15, %v237_v27  ;;  %v308_v23 = vmul.f32 %v8484_v32, %v237_v27  ;;  %14238 = vst [vmem:[#allocation20_spill] sm:$0xff] %v8581_v10  ;;  %v489_v27 = vshrl.u32 %v13906_v18, %v8576_v0  ;;  %v7655_v8 = vadd.s32 4294967169, %v1084_v1 }
  0xa0   :  { %v8550_v30 = vadd.f32 %v309_v25, %v186_v21  ;;  %v8552_v31 = vadd.f32 %v310_v26, %v187_v24  ;;  %v8589_v21 = vshll.u32 %v13906_v18, %v8567_v54  ;;  %v488_v24 = vshll.u32 %v13900_v12, %v8569_v56 }
  0xa1   :  { %v8561_v14 = vadd.f32 %v307_v22, %v184_v36  ;;  %v8563_v16 = vadd.f32 %v308_v23, %v185_v37  ;;  %v129_v49 = vpop.permute.xlu1 %128  ;;  %v13912_v25 = vmov 1326507024   ;;  %v8603_v22 = vand.u32 31, %v577_v11 }
  0xa2   :  { %14232 = vst [vmem:[#allocation14_spill] sm:$0xff] %v8550_v30  ;;  %14233 = vst [vmem:[#allocation15_spill] sm:$0xff] %v8552_v31  ;;  %v124_v53 = vpop.permute.xlu0 %123  ;;  %v8595_v26 = vshrl.u32 %v13912_v25, %v8573_v62  ;;  %v8601_v28 = vshrl.u32 %v13912_v25, %v8576_v0  ;;  %v680_v23 = vsel %vm679_vm3, %v678_v61, 0  ;;  %v987_v35 = vadd.s32 1, %v7651_v6 }
  0xa3   :  { %14234 = vst [vmem:[#allocation16_spill] sm:$0xff] %v8561_v14  ;;  %14235 = vst [vmem:[#allocation17_spill] sm:$0xff] %v8563_v16  ;;  %v774_v36 = vand.u32 2139095040, %v8516_v50  ;;  %v190_v38 = vmul.f32 %v8331_v17, %v129_v49  ;;  %v191_v41 = vmul.f32 %v8490_v33, %v129_v49  ;;  %v188_v45 = vmul.f32 %v8331_v17, %v124_v53 }
  0xa4   :  { %v189_v46 = vmul.f32 %v8490_v33, %v124_v53  ;;  %v1090_v52 = vadd.s32 1, %v7655_v8  ;;  %v877_v55 = vand.u32 2139095040, %v8518_v51  ;;  %v491_v49 = vshll.u32 %v13906_v18, %v8569_v56 }
  0xa5   :  { %v252_v63 = vpop.permute.xlu1 %251  ;;  %v775_v61 = vshrl.u32 %v774_v36, 23  ;;  %v8625_v53 = vor.u32 %v386_v19, %v385_v13  ;;  %vm394_vm4 = vcmp.lt.s32.totalorder %v8579_v9, 4  ;;  %vm988_vm5 = vcmp.gt.s32.totalorder %v987_v35, 0 }
  0xa6   :  { %v247_v2 = vpop.permute.xlu0 %246  ;;  %v313_v42 = vmul.f32 %v8323_v15, %v252_v63  ;;  %v314_v43 = vmul.f32 %v8484_v32, %v252_v63  ;;  %v8630_v6 = vor.u32 %v489_v27, %v488_v24  ;;  %v493_v8 = vor.u32 %v8601_v28, %v491_v49 }
  0xa7   :  { %v311_v47 = vmul.f32 %v8323_v15, %v247_v2  ;;  %v312_v48 = vmul.f32 %v8484_v32, %v247_v2  ;;  %14243 = vst [vmem:[#allocation25_spill] sm:$0xff] %v8625_v53  ;;  %v390_v2 = vor.u32 %v8595_v26, %v8589_v21  ;;  %vm497_vm6 = vcmp.lt.s32.totalorder %v8581_v10, 4 }
  0xa8   :  { %v8615_v59 = vadd.f32 %v313_v42, %v190_v38  ;;  %v8617_v60 = vadd.f32 %v314_v43, %v191_v41  ;;  %14244 = vst [vmem:[#allocation26_spill] sm:$0xff] %v8630_v6  ;;  %v8634_v38 = vshrl.u32 %v577_v11, 5  ;;  %v8636_v36 = vand.u32 31, %v680_v23 }
  0xa9   :  { %v139_v37 = vpop.permute.xlu1 %138  ;;  %v8621_v63 = vadd.f32 %v311_v47, %v188_v45  ;;  %v8623_v1 = vadd.f32 %v312_v48, %v189_v46  ;;  %v8639_v13 = vsub.s32 32, %v8603_v22  ;;  %v591_v19 = vshll.u32 %v13900_v12, %v8603_v22 }
  0xaa   :  { %v134_v44 = vpop.permute.xlu0 %133  ;;  %14239 = vst [vmem:[#allocation21_spill] sm:$0xff] %v8615_v59  ;;  %14240 = vst [vmem:[#allocation22_spill] sm:$0xff] %v8617_v60  ;;  %vm1091_vm7 = vcmp.gt.s32.totalorder %v1090_v52, 0  ;;  %v878_v21 = vshrl.u32 %v877_v55, 23  ;;  %v989_v24 = vsel %vm988_vm5, %v987_v35, 0  ;;  %v7643_v27 = vadd.s32 4294967169, %v775_v61 }
  0xab   :  { %14241 = vst [vmem:[#allocation23_spill] sm:$0xff] %v8621_v63  ;;  %14242 = vst [vmem:[#allocation24_spill] sm:$0xff] %v8623_v1  ;;  %v1392_v28 = vand.u32 2139095040, %v8524_v57  ;;  %v1495_v42 = vand.u32 2139095040, %v8526_v58  ;;  %v194_v11 = vmul.f32 %v8331_v17, %v139_v37  ;;  %v195_v43 = vmul.f32 %v8490_v33, %v139_v37 }
  0xac   :  { %v192_v47 = vmul.f32 %v8331_v17, %v134_v44  ;;  %v193_v48 = vmul.f32 %v8490_v33, %v134_v44  ;;  %v592_v49 = vshrl.u32 %v13906_v18, %v8639_v13  ;;  %v595_v61 = vshrl.u32 %v13912_v25, %v8639_v13 }
  0xad   :  { %v262_v41 = vpop.permute.xlu1 %261  ;;  %v7647_v12 = vadd.s32 4294967169, %v878_v21  ;;  %v8668_v57 = vand.u32 31, %v989_v24  ;;  %v781_v18 = vadd.s32 1, %v7643_v27  ;;  %v1393_v51 = vshrl.u32 %v1392_v28, 23 }
  0xae   :  { %v257_v26 = vpop.permute.xlu0 %256  ;;  %v317_v45 = vmul.f32 %v8323_v15, %v262_v41  ;;  %v318_v46 = vmul.f32 %v8484_v32, %v262_v41  ;;  %v8662_v41 = vsub.s32 32, %v8636_v36  ;;  %v1496_v21 = vshrl.u32 %v1495_v42, 23 }
  0xaf   :  { %v315_v55 = vmul.f32 %v8323_v15, %v257_v26  ;;  %v316_v35 = vmul.f32 %v8484_v32, %v257_v26  ;;  %14249 = vst [vmem:[#allocation31_spill] sm:$0xff] %v8668_v57  ;;  %v1092_v26 = vsel %vm1091_vm7, %v1090_v52, 0  ;;  %v8687_v52 = vsel %vm497_vm6, %v8630_v6, 920167782 }
  0xb0   :  { %v8657_v7 = vadd.f32 %v317_v45, %v194_v11  ;;  %v8659_v37 = vadd.f32 %v318_v46, %v195_v43  ;;  %v8674_v11 = vsel %vm394_vm4, %v8625_v53, 920167782  ;;  %v14251_v43 = vmov 920167782   ;;  %14253 = vst [vmem:[#allocation34_spill] sm:$0xff] %v8687_v52 }
  0xb1   :  { %v8664_v58 = vadd.f32 %v315_v55, %v192_v47  ;;  %v8666_v44 = vadd.f32 %v316_v35, %v193_v48  ;;  %14250 = vst [vmem:[#allocation32_spill] sm:$0xff] %v8674_v11  ;;  %v594_v45 = vshll.u32 %v14251_v43, %v8603_v22  ;;  %v8678_v46 = vshrl.u32 %v680_v23, 5 }
  0xb2   :  { %14245 = vst [vmem:[#allocation27_spill] sm:$0xff] %v8657_v7  ;;  %14246 = vst [vmem:[#allocation28_spill] sm:$0xff] %v8659_v37  ;;  %v8682_v47 = vsel %vm394_vm4, %v390_v2, 1326507024  ;;  %v8691_v27 = vsel %vm497_vm6, %v493_v8, 1326507024  ;;  %v8693_v28 = vor.u32 %v592_v49, %v591_v19  ;;  %v695_v23 = vshrl.u32 %v14251_v43, %v8662_v41 }
  0xb3   :  { %14247 = vst [vmem:[#allocation29_spill] sm:$0xff] %v8664_v58  ;;  %14248 = vst [vmem:[#allocation30_spill] sm:$0xff] %v8666_v44  ;;  %v596_v48 = vor.u32 %v595_v61, %v594_v45  ;;  %v8697_v42 = vand.u32 31, %v1092_v26  ;;  %v884_v55 = vadd.s32 1, %v7647_v12  ;;  %v698_v2 = vshrl.u32 %v13912_v25, %v8662_v41 }
  0xb4   :  { %14252 = vst [vmem:[#allocation33_spill] sm:$0xff] %v8682_v47  ;;  %14254 = vst [vmem:[#allocation35_spill] sm:$0xff] %v8691_v27  ;;  %v8702_v35 = vsub.s32 32, %v8668_v57  ;;  %vm782_vm8 = vcmp.gt.s32.totalorder %v781_v18, 0  ;;  %v7667_v50 = vadd.s32 4294967169, %v1393_v51  ;;  %vm600_vm9 = vcmp.lt.s32.totalorder %v8634_v38, 4 }
  0xb5   :  { %14255 = vst [vmem:[#allocation36_spill] sm:$0xff] %v8697_v42  ;;  %v14257_v8 = vmov 2102212464   ;;  %v7671_v49 = vadd.s32 4294967169, %v1496_v21  ;;  %v1186_v61 = vand.u32 2139095040, %v8534_v3  ;;  %v697_v45 = vshll.u32 %v14251_v43, %v8636_v36 }
  0xb6   :  { %14256 = vst [vmem:[#allocation37_spill] sm:$0xff] %v8702_v35  ;;  %v694_v19 = vshll.u32 %v14257_v8, %v8636_v36  ;;  %v8711_v12 = vsel %vm600_vm9, %v8693_v28, 920167782  ;;  %vm703_vm10 = vcmp.lt.s32.totalorder %v8678_v46, 4  ;;  %v1289_v51 = vand.u32 2139095040, %v8536_v4 }
  0xb7   :  { %v8720_v40 = vsub.s32 32, %v8697_v42  ;;  %v783_v21 = vsel %vm782_vm8, %v781_v18, 0  ;;  %vm885_vm11 = vcmp.gt.s32.totalorder %v884_v55, 0  ;;  %v8724_v3 = vsel %vm600_vm9, %v596_v48, 1326507024 }
  0xb8   :  { %v8717_v25 = vor.u32 %v695_v23, %v694_v19  ;;  %v699_v39 = vor.u32 %v698_v2, %v697_v45  ;;  %v1004_v6 = vshrl.u32 %v14251_v43, %v8702_v35  ;;  %v1399_v27 = vadd.s32 1, %v7667_v50 }
  0xb9   :  { %14258 = vst [vmem:[#allocation38_spill] sm:$0xff] %v8720_v40  ;;  %v8728_v52 = vshrl.u32 %v989_v24, 5  ;;  %v1003_v23 = vshll.u32 %v14257_v8, %v8668_v57  ;;  %v1502_v19 = vadd.s32 1, %v7671_v49  ;;  %v1187_v4 = vshrl.u32 %v1186_v61, 23 }
  0xba   :  { %v14260_v10 = vmov 1326507024   ;;  %v8734_v56 = vand.u32 31, %v783_v21  ;;  %v886_v0 = vsel %vm885_vm11, %v884_v55, 0  ;;  %v1290_v48 = vshrl.u32 %v1289_v51, 23 }
  0xbb   :  { %14259 = vst [vmem:[#allocation39_spill] sm:$0xff] %v8728_v52  ;;  %v1007_v18 = vshrl.u32 %v14260_v10, %v8702_v35  ;;  %v8739_v2 = vsel %vm703_vm10, %v8717_v25, 920167782  ;;  %v8741_v50 = vshrl.u32 %v1092_v26, 5  ;;  %v1107_v24 = vshrl.u32 %v14251_v43, %v8720_v40 }
  0xbc   :  { %14261 = vst [vmem:[#allocation40_spill] sm:$0xff] %v8734_v56  ;;  %v1110_v49 = vshrl.u32 %v14260_v10, %v8720_v40  ;;  %v8747_v61 = vor.u32 %v1004_v6, %v1003_v23  ;;  %v1006_v45 = vshll.u32 %v14251_v43, %v8668_v57  ;;  %v1106_v55 = vshll.u32 %v14257_v8, %v8697_v42 }
  0xbd   :  { %14262 = vst [vmem:[#allocation41_spill] sm:$0xff] %v8741_v50  ;;  %vm1400_vm12 = vcmp.gt.s32.totalorder %v1399_v27, 0  ;;  %v1109_v51 = vshll.u32 %v14251_v43, %v8697_v42  ;;  %v8755_v26 = vand.u32 31, %v886_v0  ;;  %vm1503_vm13 = vcmp.gt.s32.totalorder %v1502_v19, 0 }
  0xbe   :  { %14263 = vst [vmem:[#allocation42_spill] sm:$0xff] %v8747_v61  ;;  %v7659_v35 = vadd.s32 4294967169, %v1187_v4  ;;  %v1008_v5 = vor.u32 %v1007_v18, %v1006_v45  ;;  %vm1012_vm14 = vcmp.lt.s32.totalorder %v8728_v52, 4  ;;  %v8759_v6 = vsub.s32 32, %v8734_v56 }
  0xbf   :  { %14264 = vst [vmem:[#allocation43_spill] sm:$0xff] %v8755_v26  ;;  %v7663_v23 = vadd.s32 4294967169, %v1290_v48  ;;  %v8761_v40 = vor.u32 %v1107_v24, %v1106_v55  ;;  %v1111_v57 = vor.u32 %v1110_v49, %v1109_v51  ;;  %v1401_v53 = vsel %vm1400_vm12, %v1399_v27, 0 }
  0xc0   :  { %14265 = vst [vmem:[#allocation44_spill] sm:$0xff] %v8759_v6  ;;  %v1804_v47 = vand.u32 2139095040, %v8550_v30  ;;  %v8766_v42 = vsel %vm703_vm10, %v699_v39, 1326507024  ;;  %v8771_v4 = vsel %vm1012_vm14, %v8747_v61, 920167782  ;;  %v798_v49 = vshrl.u32 %v14251_v43, %v8759_v6 }
  0xc1   :  { %14266 = vst [vmem:[#allocation45_spill] sm:$0xff] %v8761_v40  ;;  %14267 = vst [vmem:[#allocation46_spill] sm:$0xff] %v8771_v4  ;;  %vm1115_vm15 = vcmp.lt.s32.totalorder %v8741_v50, 4  ;;  %v1504_v18 = vsel %vm1503_vm13, %v1502_v19, 0  ;;  %v8774_v45 = vshrl.u32 %v783_v21, 5  ;;  %v8777_v48 = vsub.s32 32, %v8755_v26 }
  0xc2   :  { %v1193_v27 = vadd.s32 1, %v7659_v35  ;;  %v1907_v24 = vand.u32 2139095040, %v8552_v31  ;;  %v8782_v39 = vsel %vm1012_vm14, %v1008_v5, 1326507024  ;;  %v8786_v55 = vand.u32 31, %v1401_v53 }
  0xc3   :  { %14268 = vst [vmem:[#allocation47_spill] sm:$0xff] %v8777_v48  ;;  %14269 = vst [vmem:[#allocation48_spill] sm:$0xff] %v8782_v39  ;;  %v1296_v51 = vadd.s32 1, %v7663_v23  ;;  %v8791_v21 = vsel %vm1115_vm15, %v8761_v40, 920167782  ;;  %v8797_v19 = vand.u32 31, %v1504_v18  ;;  %v797_v5 = vshll.u32 %v14257_v8, %v8734_v56 }
  0xc4   :  { %14270 = vst [vmem:[#allocation49_spill] sm:$0xff] %v8786_v55  ;;  %14271 = vst [vmem:[#allocation50_spill] sm:$0xff] %v8791_v21  ;;  %v8795_v35 = vsel %vm1115_vm15, %v1111_v57, 1326507024  ;;  %v1805_v31 = vshrl.u32 %v1804_v47, 23  ;;  %v800_v30 = vshll.u32 %v14251_v43, %v8734_v56  ;;  %v801_v23 = vshrl.u32 %v14260_v10, %v8759_v6 }
  0xc5   :  { %14272 = vst [vmem:[#allocation51_spill] sm:$0xff] %v8795_v35  ;;  %14273 = vst [vmem:[#allocation52_spill] sm:$0xff] %v8797_v19  ;;  %v8805_v61 = vshrl.u32 %v886_v0, 5  ;;  %vm806_vm0 = vcmp.lt.s32.totalorder %v8774_v45, 4  ;;  %v901_v57 = vshrl.u32 %v14251_v43, %v8777_v48  ;;  %vm1194_vm1 = vcmp.gt.s32.totalorder %v1193_v27, 0 }
  0xc6   :  { %v1908_v40 = vshrl.u32 %v1907_v24, 23  ;;  %v8810_v35 = vor.u32 %v798_v49, %v797_v5  ;;  %v904_v47 = vshrl.u32 %v14260_v10, %v8777_v48  ;;  %v8815_v21 = vsub.s32 32, %v8786_v55 }
  0xc7   :  { %vm1297_vm2 = vcmp.gt.s32.totalorder %v1296_v51, 0  ;;  %v900_v0 = vshll.u32 %v14257_v8, %v8755_v26  ;;  %v903_v56 = vshll.u32 %v14251_v43, %v8755_v26  ;;  %v8822_v6 = vsub.s32 32, %v8797_v19 }
  0xc8   :  { %14274 = vst [vmem:[#allocation53_spill] sm:$0xff] %v8810_v35  ;;  %14275 = vst [vmem:[#allocation54_spill] sm:$0xff] %v8815_v21  ;;  %v7683_v50 = vadd.s32 4294967169, %v1805_v31  ;;  %v802_v24 = vor.u32 %v801_v23, %v800_v30  ;;  %vm909_vm3 = vcmp.lt.s32.totalorder %v8805_v61, 4  ;;  %v1195_v49 = vsel %vm1194_vm1, %v1193_v27, 0 }
  0xc9   :  { %14276 = vst [vmem:[#allocation55_spill] sm:$0xff] %v8822_v6  ;;  %v1598_v5 = vand.u32 2139095040, %v8561_v14  ;;  %v8826_v48 = vor.u32 %v901_v57, %v900_v0  ;;  %v1298_v39 = vsel %vm1297_vm2, %v1296_v51, 0  ;;  %v7687_v4 = vadd.s32 4294967169, %v1908_v40 }
  0xca   :  { %v1701_v52 = vand.u32 2139095040, %v8563_v16  ;;  %v8832_v26 = vsel %vm806_vm0, %v8810_v35, 920167782  ;;  %v905_v11 = vor.u32 %v904_v47, %v903_v56  ;;  %v1416_v30 = vshrl.u32 %v14251_v43, %v8815_v21 }
  0xcb   :  { %14277 = vst [vmem:[#allocation56_spill] sm:$0xff] %v8826_v48  ;;  %14278 = vst [vmem:[#allocation57_spill] sm:$0xff] %v8832_v26  ;;  %v1419_v31 = vshrl.u32 %v14260_v10, %v8815_v21  ;;  %v8838_v27 = vshrl.u32 %v1401_v53, 5  ;;  %v1519_v51 = vshrl.u32 %v14251_v43, %v8822_v6  ;;  %v8842_v40 = vand.u32 31, %v1195_v49 }
  0xcc   :  { %v1811_v23 = vadd.s32 1, %v7683_v50  ;;  %v1415_v57 = vshll.u32 %v14257_v8, %v8786_v55  ;;  %v1418_v56 = vshll.u32 %v14251_v43, %v8786_v55  ;;  %v8848_v47 = vand.u32 31, %v1298_v39 }
  0xcd   :  { %14279 = vst [vmem:[#allocation58_spill] sm:$0xff] %v8838_v27  ;;  %14280 = vst [vmem:[#allocation59_spill] sm:$0xff] %v8842_v40  ;;  %v1599_v0 = vshrl.u32 %v1598_v5, 23  ;;  %v8850_v16 = vshrl.u32 %v1504_v18, 5  ;;  %v1518_v53 = vshll.u32 %v14257_v8, %v8797_v19  ;;  %v1914_v14 = vadd.s32 1, %v7687_v4 }
  0xce   :  { %14281 = vst [vmem:[#allocation60_spill] sm:$0xff] %v8848_v47  ;;  %v1702_v21 = vshrl.u32 %v1701_v52, 23  ;;  %v8856_v35 = vsel %vm806_vm0, %v802_v24, 1326507024  ;;  %v8858_v50 = vor.u32 %v1416_v30, %v1415_v57  ;;  %v1420_v26 = vor.u32 %v1419_v31, %v1418_v56 }
  0xcf   :  { %14282 = vst [vmem:[#allocation61_spill] sm:$0xff] %v8850_v16  ;;  %v1522_v55 = vshrl.u32 %v14260_v10, %v8822_v6  ;;  %v8865_v18 = vsel %vm909_vm3, %v8826_v48, 920167782  ;;  %v8867_v5 = vor.u32 %v1519_v51, %v1518_v53  ;;  %v8870_v4 = vsub.s32 32, %v8842_v40 }
  0xd0   :  { %14283 = vst [vmem:[#allocation62_spill] sm:$0xff] %v8858_v50  ;;  %14284 = vst [vmem:[#allocation63_spill] sm:$0xff] %v8865_v18  ;;  %vm1812_vm5 = vcmp.gt.s32.totalorder %v1811_v23, 0  ;;  %v8874_v52 = vsel %vm909_vm3, %v905_v11, 1326507024  ;;  %v1521_v24 = vshll.u32 %v14251_v43, %v8797_v19  ;;  %v8879_v30 = vsub.s32 32, %v8848_v47 }
  0xd1   :  { %14285 = vst [vmem:[#allocation64_spill] sm:$0xff] %v8867_v5  ;;  %14286 = vst [vmem:[#allocation65_spill] sm:$0xff] %v8870_v4  ;;  %v7675_v31 = vadd.s32 4294967169, %v1599_v0  ;;  %vm1424_vm7 = vcmp.lt.s32.totalorder %v8838_v27, 4  ;;  %vm1527_vm8 = vcmp.lt.s32.totalorder %v8850_v16, 4  ;;  %vm1915_vm11 = vcmp.gt.s32.totalorder %v1914_v14, 0 }
  0xd2   :  { %14287 = vst [vmem:[#allocation66_spill] sm:$0xff] %v8874_v52  ;;  %14288 = vst [vmem:[#allocation67_spill] sm:$0xff] %v8879_v30  ;;  %v7679_v51 = vadd.s32 4294967169, %v1702_v21  ;;  %v8886_v57 = vsel %vm1424_vm7, %v8858_v50, 920167782  ;;  %v1523_v56 = vor.u32 %v1522_v55, %v1521_v24  ;;  %v1813_v53 = vsel %vm1812_vm5, %v1811_v23, 0 }
  0xd3   :  { %14289 = vst [vmem:[#allocation68_spill] sm:$0xff] %v8886_v57  ;;  %v8890_v11 = vsel %vm1424_vm7, %v1420_v26, 1326507024  ;;  %v8895_v0 = vsel %vm1527_vm8, %v8867_v5, 920167782  ;;  %v8897_v19 = vshrl.u32 %v1195_v49, 5  ;;  %v1210_v21 = vshrl.u32 %v14251_v43, %v8870_v4 }
  0xd4   :  { %14290 = vst [vmem:[#allocation69_spill] sm:$0xff] %v8890_v11  ;;  %14291 = vst [vmem:[#allocation70_spill] sm:$0xff] %v8895_v0  ;;  %v1213_v6 = vshrl.u32 %v14260_v10, %v8870_v4  ;;  %v1313_v50 = vshrl.u32 %v14251_v43, %v8879_v30  ;;  %v1916_v26 = vsel %vm1915_vm11, %v1914_v14, 0  ;;  %v1605_v11 = vadd.s32 1, %v7675_v31 }
  0xd5   :  { %14292 = vst [vmem:[#allocation71_spill] sm:$0xff] %v8897_v19  ;;  %v2216_v55 = vand.u32 2139095040, %v8615_v59  ;;  %v1209_v23 = vshll.u32 %v14257_v8, %v8842_v40  ;;  %v8908_v24 = vshrl.u32 %v1298_v39, 5  ;;  %v8910_v49 = vand.u32 31, %v1813_v53 }
  0xd6   :  { %v1708_v5 = vadd.s32 1, %v7679_v51  ;;  %v1212_v0 = vshll.u32 %v14251_v43, %v8842_v40  ;;  %v1312_v4 = vshll.u32 %v14257_v8, %v8848_v47  ;;  %v1316_v14 = vshrl.u32 %v14260_v10, %v8879_v30 }
  0xd7   :  { %14293 = vst [vmem:[#allocation72_spill] sm:$0xff] %v8908_v24  ;;  %14294 = vst [vmem:[#allocation73_spill] sm:$0xff] %v8910_v49  ;;  %v2319_v31 = vand.u32 2139095040, %v8617_v60  ;;  %v8919_v59 = vor.u32 %v1210_v21, %v1209_v23  ;;  %v1315_v39 = vshll.u32 %v14251_v43, %v8848_v47  ;;  %v8923_v57 = vand.u32 31, %v1916_v26 }
  0xd8   :  { %v2010_v51 = vand.u32 2139095040, %v8621_v63  ;;  %v1214_v27 = vor.u32 %v1213_v6, %v1212_v0  ;;  %v8926_v48 = vor.u32 %v1313_v50, %v1312_v4  ;;  %vm1606_vm12 = vcmp.gt.s32.totalorder %v1605_v11, 0 }
  0xd9   :  { %14295 = vst [vmem:[#allocation74_spill] sm:$0xff] %v8919_v59  ;;  %14296 = vst [vmem:[#allocation75_spill] sm:$0xff] %v8923_v57  ;;  %v2217_v40 = vshrl.u32 %v2216_v55, 23  ;;  %v8930_v52 = vsel %vm1527_vm8, %v1523_v56, 1326507024  ;;  %v8933_v60 = vsub.s32 32, %v8910_v49  ;;  %v1317_v23 = vor.u32 %v1316_v14, %v1315_v39 }
  0xda   :  { %14297 = vst [vmem:[#allocation76_spill] sm:$0xff] %v8926_v48  ;;  %14298 = vst [vmem:[#allocation77_spill] sm:$0xff] %v8930_v52  ;;  %vm1709_vm13 = vcmp.gt.s32.totalorder %v1708_v5, 0  ;;  %v2113_v21 = vand.u32 2139095040, %v8623_v1  ;;  %vm14107_vm1 = vcmp.lt.s32.totalorder %v8897_v19, 4  ;;  %vm14010_vm2 = vcmp.lt.s32.totalorder %v8908_v24, 4 }
  0xdb   :  { %14299 = vst [vmem:[#allocation78_spill] sm:$0xff] %v8933_v60  ;;  %v2320_v6 = vshrl.u32 %v2319_v31, 23  ;;  %v8941_v50 = vsel %vm14107_vm1, %v8919_v59, 920167782  ;;  %v8944_v4 = vsub.s32 32, %v8923_v57  ;;  %v1607_v56 = vsel %vm1606_vm12, %v1605_v11, 0 }
  0xdc   :  { %14300 = vst [vmem:[#allocation79_spill] sm:$0xff] %v8941_v50  ;;  %v2011_v0 = vshrl.u32 %v2010_v51, 23  ;;  %v8948_v55 = vsel %vm14107_vm1, %v1214_v27, 1326507024  ;;  %v8953_v14 = vsel %vm14010_vm2, %v8926_v48, 920167782  ;;  %v1828_v63 = vshrl.u32 %v14251_v43, %v8933_v60 }
  0xdd   :  { %14301 = vst [vmem:[#allocation80_spill] sm:$0xff] %v8944_v4  ;;  %14302 = vst [vmem:[#allocation81_spill] sm:$0xff] %v8948_v55  ;;  %v1710_v31 = vsel %vm1709_vm13, %v1708_v5, 0  ;;  %v7699_v39 = vadd.s32 4294967169, %v2217_v40  ;;  %v8955_v1 = vshrl.u32 %v1813_v53, 5  ;;  %v1831_v11 = vshrl.u32 %v14260_v10, %v8933_v60 }
  0xde   :  { %14303 = vst [vmem:[#allocation82_spill] sm:$0xff] %v8953_v14  ;;  %v2114_v51 = vshrl.u32 %v2113_v21, 23  ;;  %v1827_v27 = vshll.u32 %v14257_v8, %v8910_v49  ;;  %v8963_v47 = vshrl.u32 %v1916_v26, 5  ;;  %v8965_v30 = vand.u32 31, %v1607_v56 }
  0xdf   :  { %14304 = vst [vmem:[#allocation83_spill] sm:$0xff] %v8955_v1  ;;  %v7703_v48 = vadd.s32 4294967169, %v2320_v6  ;;  %v1830_v40 = vshll.u32 %v14251_v43, %v8910_v49  ;;  %v1931_v5 = vshrl.u32 %v14251_v43, %v8944_v4  ;;  %v8971_v53 = vand.u32 31, %v1710_v31 }
  0xe0   :  { %14305 = vst [vmem:[#allocation84_spill] sm:$0xff] %v8963_v47  ;;  %14306 = vst [vmem:[#allocation85_spill] sm:$0xff] %v8965_v30  ;;  %v7691_v14 = vadd.s32 4294967169, %v2011_v0  ;;  %v8975_v21 = vsel %vm14010_vm2, %v1317_v23, 1326507024  ;;  %v1934_v26 = vshrl.u32 %v14260_v10, %v8944_v4  ;;  %v2223_v60 = vadd.s32 1, %v7699_v39 }
  0xe1   :  { %14307 = vst [vmem:[#allocation86_spill] sm:$0xff] %v8971_v53  ;;  %14308 = vst [vmem:[#allocation87_spill] sm:$0xff] %v8975_v21  ;;  %v2628_v59 = vand.u32 2139095040, %v8657_v7  ;;  %v8980_v6 = vor.u32 %v1828_v63, %v1827_v27  ;;  %v1832_v55 = vor.u32 %v1831_v11, %v1830_v40  ;;  %v1930_v49 = vshll.u32 %v14257_v8, %v8923_v57 }
  0xe2   :  { %v7695_v50 = vadd.s32 4294967169, %v2114_v51  ;;  %vm14002_vm5 = vcmp.lt.s32.totalorder %v8955_v1, 4  ;;  %v1933_v0 = vshll.u32 %v14251_v43, %v8923_v57  ;;  %v8988_v23 = vsub.s32 32, %v8965_v30 }
  0xe3   :  { %14309 = vst [vmem:[#allocation88_spill] sm:$0xff] %v8980_v6  ;;  %v2326_v21 = vadd.s32 1, %v7703_v48  ;;  %v8990_v4 = vor.u32 %v1931_v5, %v1930_v49  ;;  %vm14048_vm11 = vcmp.lt.s32.totalorder %v8963_v47, 4  ;;  %v8994_v63 = vsub.s32 32, %v8971_v53 }
  0xe4   :  { %14310 = vst [vmem:[#allocation89_spill] sm:$0xff] %v8988_v23  ;;  %v2017_v39 = vadd.s32 1, %v7691_v14  ;;  %v1935_v11 = vor.u32 %v1934_v26, %v1933_v0  ;;  %vm2224_vm12 = vcmp.gt.s32.totalorder %v2223_v60, 0  ;;  %v2629_v51 = vshrl.u32 %v2628_v59, 23 }
  0xe5   :  { %14311 = vst [vmem:[#allocation90_spill] sm:$0xff] %v8990_v4  ;;  %14312 = vst [vmem:[#allocation91_spill] sm:$0xff] %v8994_v63  ;;  %v2731_v27 = vand.u32 2139095040, %v8659_v37  ;;  %v9000_v40 = vsel %vm14002_vm5, %v8980_v6, 920167782  ;;  %v9006_v49 = vshrl.u32 %v1607_v56, 5  ;;  %v1622_v14 = vshrl.u32 %v14251_v43, %v8988_v23 }
  0xe6   :  { %14313 = vst [vmem:[#allocation92_spill] sm:$0xff] %v9000_v40  ;;  %v9004_v48 = vsel %vm14002_vm5, %v1832_v55, 1326507024  ;;  %v2120_v5 = vadd.s32 1, %v7695_v50  ;;  %v1625_v59 = vshrl.u32 %v14260_v10, %v8988_v23  ;;  %v9012_v26 = vshrl.u32 %v1710_v31, 5 }
  0xe7   :  { %14314 = vst [vmem:[#allocation93_spill] sm:$0xff] %v9004_v48  ;;  %14315 = vst [vmem:[#allocation94_spill] sm:$0xff] %v9006_v49  ;;  %vm2327_vm13 = vcmp.gt.s32.totalorder %v2326_v21, 0  ;;  %v1725_v0 = vshrl.u32 %v14251_v43, %v8994_v63  ;;  %v1728_v37 = vshrl.u32 %v14260_v10, %v8994_v63  ;;  %v2225_v55 = vsel %vm2224_vm12, %v2223_v60, 0 }
  0xe8   :  { %14316 = vst [vmem:[#allocation95_spill] sm:$0xff] %v9012_v26  ;;  %vm2018_vm5 = vcmp.gt.s32.totalorder %v2017_v39, 0  ;;  %v1621_v50 = vshll.u32 %v14257_v8, %v8965_v30  ;;  %v1624_v56 = vshll.u32 %v14251_v43, %v8965_v30  ;;  %v7715_v7 = vadd.s32 4294967169, %v2629_v51 }
  0xe9   :  { %v2732_v57 = vshrl.u32 %v2731_v27, 23  ;;  %v1724_v31 = vshll.u32 %v14257_v8, %v8971_v53  ;;  %v1727_v23 = vshll.u32 %v14251_v43, %v8971_v53  ;;  %v2328_v6 = vsel %vm2327_vm13, %v2326_v21, 0 }
  0xea   :  { %vm2121_vm2 = vcmp.gt.s32.totalorder %v2120_v5, 0  ;;  %v9026_v48 = vor.u32 %v1622_v14, %v1621_v50  ;;  %v9028_v60 = vand.u32 31, %v2225_v55  ;;  %v2019_v63 = vsel %vm2018_vm5, %v2017_v39, 0 }
  0xeb   :  { %v2422_v40 = vand.u32 2139095040, %v8664_v58  ;;  %v9034_v51 = vsel %vm14048_vm11, %v8990_v4, 920167782  ;;  %v1626_v27 = vor.u32 %v1625_v59, %v1624_v56  ;;  %v9036_v30 = vor.u32 %v1725_v0, %v1724_v31 }
  0xec   :  { %14317 = vst [vmem:[#allocation96_spill] sm:$0xff] %v9026_v48  ;;  %14318 = vst [vmem:[#allocation97_spill] sm:$0xff] %v9028_v60  ;;  %v1729_v1 = vor.u32 %v1728_v37, %v1727_v23  ;;  %v9038_v24 = vand.u32 31, %v2328_v6  ;;  %v2122_v21 = vsel %vm2121_vm2, %v2120_v5, 0  ;;  %v2635_v53 = vadd.s32 1, %v7715_v7 }
  0xed   :  { %14319 = vst [vmem:[#allocation98_spill] sm:$0xff] %v9034_v51  ;;  %14320 = vst [vmem:[#allocation99_spill] sm:$0xff] %v9036_v30  ;;  %v7719_v14 = vadd.s32 4294967169, %v2732_v57  ;;  %v9042_v50 = vsel %vm14048_vm11, %v1935_v11, 1326507024  ;;  %vm14032_vm5 = vcmp.lt.s32.totalorder %v9006_v49, 4  ;;  %v2239_v31 = vshll.u32 %v14257_v8, %v9028_v60  ;;  %v149_v51 = vpop.permute.xlu1 %148 }
  0xee   :  { %14321 = vst [vmem:[#allocation100_spill] sm:$0xff] %v9038_v24  ;;  %14322 = vst [vmem:[#allocation101_spill] sm:$0xff] %v9042_v50  ;;  %vm14031_vm12 = vcmp.lt.s32.totalorder %v9012_v26, 4  ;;  %v9046_v39 = vand.u32 31, %v2019_v63  ;;  %v9051_v59 = vsel %vm14032_vm5, %v9026_v48, 920167782 }
  0xef   :  { %14324 = vst [vmem:[#allocation103_spill] sm:$0xff] %v9051_v59  ;;  %v9053_v37 = vshrl.u32 %v2225_v55, 5  ;;  %v9056_v7 = vsub.s32 32, %v9028_v60  ;;  %v2423_v57 = vshrl.u32 %v2422_v40, 23  ;;  %v9060_v23 = vsel %vm14032_vm5, %v1626_v27, 1326507024 }
  0xf0   :  { %14323 = vst [vmem:[#allocation102_spill] sm:$0xff] %v9046_v39  ;;  %14327 = vst [vmem:[#allocation106_spill] sm:$0xff] %v9060_v23  ;;  %v9065_v11 = vsel %vm14031_vm12, %v9036_v30, 920167782  ;;  %v9067_v5 = vand.u32 31, %v2122_v21  ;;  %v2525_v0 = vand.u32 2139095040, %v8666_v44  ;;  %v2242_v27 = vshll.u32 %v14251_v43, %v9028_v60 }
  0xf1   :  { %14325 = vst [vmem:[#allocation104_spill] sm:$0xff] %v9053_v37  ;;  %14326 = vst [vmem:[#allocation105_spill] sm:$0xff] %v9056_v7  ;;  %v9072_v55 = vsel %vm14031_vm12, %v1729_v1, 1326507024  ;;  %v9075_v56 = vsub.s32 32, %v9038_v24  ;;  %vm2636_vm2 = vcmp.gt.s32.totalorder %v2635_v53, 0  ;;  %v2240_v1 = vshrl.u32 %v14251_v43, %v9056_v7 }
  0xf2   :  { %14328 = vst [vmem:[#allocation107_spill] sm:$0xff] %v9065_v11  ;;  %14329 = vst [vmem:[#allocation108_spill] sm:$0xff] %v9067_v5  ;;  %v2738_v40 = vadd.s32 1, %v7719_v14  ;;  %v9081_v58 = vshrl.u32 %v2328_v6, 5  ;;  %v9084_v30 = vsub.s32 32, %v9046_v39  ;;  %vm14099_vm13 = vcmp.lt.s32.totalorder %v9053_v37, 4 }
  0xf3   :  { %14330 = vst [vmem:[#allocation109_spill] sm:$0xff] %v9072_v55  ;;  %14331 = vst [vmem:[#allocation110_spill] sm:$0xff] %v9075_v56  ;;  %v2342_v44 = vshll.u32 %v14257_v8, %v9038_v24  ;;  %v7707_v14 = vadd.s32 4294967169, %v2423_v57  ;;  %v2345_v55 = vshll.u32 %v14251_v43, %v9038_v24  ;;  %v9094_v11 = vsub.s32 32, %v9067_v5 }
  0xf4   :  { %14332 = vst [vmem:[#allocation111_spill] sm:$0xff] %v9081_v58  ;;  %14333 = vst [vmem:[#allocation112_spill] sm:$0xff] %v9084_v30  ;;  %v2637_v6 = vsel %vm2636_vm2, %v2635_v53, 0  ;;  %v2526_v60 = vshrl.u32 %v2525_v0, 23  ;;  %v2243_v26 = vshrl.u32 %v14260_v10, %v9056_v7  ;;  %v2343_v48 = vshrl.u32 %v14251_v43, %v9075_v56 }
  0xf5   :  { %14334 = vst [vmem:[#allocation113_spill] sm:$0xff] %v9094_v11  ;;  %v2346_v23 = vshrl.u32 %v14260_v10, %v9075_v56  ;;  %vm2739_vm12 = vcmp.gt.s32.totalorder %v2738_v40, 0  ;;  %vm14097_vm5 = vcmp.lt.s32.totalorder %v9081_v58, 4  ;;  %v9103_v57 = vshrl.u32 %v2019_v63, 5 }
  0xf6   :  { %v2034_v24 = vshrl.u32 %v14251_v43, %v9084_v30  ;;  %v9107_v59 = vshrl.u32 %v2122_v21, 5  ;;  %v9109_v53 = vor.u32 %v2240_v1, %v2239_v31  ;;  %v2037_v0 = vshrl.u32 %v14260_v10, %v9084_v30 }
  0xf7   :  { %14335 = vst [vmem:[#allocation114_spill] sm:$0xff] %v9103_v57  ;;  %v9113_v7 = vand.u32 31, %v2637_v6  ;;  %v2429_v49 = vadd.s32 1, %v7707_v14  ;;  %v2033_v56 = vshll.u32 %v14257_v8, %v9046_v39  ;;  %v2137_v63 = vshrl.u32 %v14251_v43, %v9094_v11 }
  0xf8   :  { %14336 = vst [vmem:[#allocation115_spill] sm:$0xff] %v9107_v59  ;;  %14337 = vst [vmem:[#allocation116_spill] sm:$0xff] %v9109_v53  ;;  %v2740_v4 = vsel %vm2739_vm12, %v2738_v40, 0  ;;  %v7711_v50 = vadd.s32 4294967169, %v2526_v60  ;;  %v2244_v47 = vor.u32 %v2243_v26, %v2242_v27  ;;  %v9119_v21 = vor.u32 %v2343_v48, %v2342_v44 }
  0xf9   :  { %14338 = vst [vmem:[#allocation117_spill] sm:$0xff] %v9113_v7  ;;  %v2347_v31 = vor.u32 %v2346_v23, %v2345_v55  ;;  %v2036_v1 = vshll.u32 %v14251_v43, %v9046_v39  ;;  %v9123_v30 = vor.u32 %v2034_v24, %v2033_v56  ;;  %vm14096_vm2 = vcmp.lt.s32.totalorder %v9103_v57, 4 }
  0xfa   :  { %14339 = vst [vmem:[#allocation118_spill] sm:$0xff] %v9119_v21  ;;  %v2136_v14 = vshll.u32 %v14257_v8, %v9067_v5  ;;  %v2140_v19 = vshrl.u32 %v14260_v10, %v9094_v11  ;;  %v9131_v60 = vsub.s32 32, %v9113_v7  ;;  %v9133_v44 = vand.u32 31, %v2740_v4 }
  0xfb   :  { %14340 = vst [vmem:[#allocation119_spill] sm:$0xff] %v9123_v30  ;;  %v2038_v40 = vor.u32 %v2037_v0, %v2036_v1  ;;  %vm2430_vm12 = vcmp.gt.s32.totalorder %v2429_v49, 0  ;;  %v9138_v24 = vsel %vm14099_vm13, %v9109_v53, 920167782  ;;  %v2139_v26 = vshll.u32 %v14251_v43, %v9067_v5 }
  0xfc   :  { %14341 = vst [vmem:[#allocation120_spill] sm:$0xff] %v9131_v60  ;;  %14342 = vst [vmem:[#allocation121_spill] sm:$0xff] %v9133_v44  ;;  %v9140_v48 = vor.u32 %v2137_v63, %v2136_v14  ;;  %v2532_v23 = vadd.s32 1, %v7711_v50  ;;  %v9146_v55 = vsel %vm14099_vm13, %v2244_v47, 1326507024  ;;  %vm14064_vm11 = vcmp.lt.s32.totalorder %v9107_v59, 4  ;;  %v272_v47 = vpop.permute.xlu1 %271 }
  0xfd   :  { %14343 = vst [vmem:[#allocation122_spill] sm:$0xff] %v9138_v24  ;;  %14345 = vst [vmem:[#allocation124_spill] sm:$0xff] %v9146_v55  ;;  %v9151_v56 = vsel %vm14097_vm5, %v9119_v21, 920167782  ;;  %v9155_v27 = vsel %vm14097_vm5, %v2347_v31, 1326507024  ;;  %v2141_v63 = vor.u32 %v2140_v19, %v2139_v26  ;;  %v2652_v14 = vshrl.u32 %v14251_v43, %v9131_v60 }
  0xfe   :  { %14344 = vst [vmem:[#allocation123_spill] sm:$0xff] %v9140_v48  ;;  %14346 = vst [vmem:[#allocation125_spill] sm:$0xff] %v9151_v56  ;;  %v9160_v0 = vsel %vm14096_vm2, %v9123_v30, 920167782  ;;  %v2431_v50 = vsel %vm2430_vm12, %v2429_v49, 0  ;;  %v9170_v31 = vsub.s32 32, %v9133_v44  ;;  %v198_v5 = vmul.f32 %v8331_v17, %v149_v51  ;;  %v144_v30 = vpop.permute.xlu0 %143 }
  0xff   :  { %14347 = vst [vmem:[#allocation126_spill] sm:$0xff] %v9155_v27  ;;  %14348 = vst [vmem:[#allocation127_spill] sm:$0xff] %v9160_v0  ;;  %v9165_v1 = vsel %vm14096_vm2, %v2038_v40, 1326507024  ;;  %v9176_v19 = vsel %vm14064_vm11, %v9140_v48, 920167782  ;;  %v2655_v49 = vshrl.u32 %v14260_v10, %v9131_v60  ;;  %v199_v40 = vmul.f32 %v8490_v33, %v149_v51 }
 0x100   :  { %14349 = vst [vmem:[#allocation128_spill] sm:$0xff] %v9165_v1  ;;  %14350 = vst [vmem:[#allocation129_spill] sm:$0xff] %v9170_v31  ;;  %vm2533_vm12 = vcmp.gt.s32.totalorder %v2532_v23, 0  ;;  %v2651_v26 = vshll.u32 %v14257_v8, %v9113_v7  ;;  %v9183_v11 = vand.u32 31, %v2431_v50  ;;  %v321_v1 = vmul.f32 %v8323_v15, %v272_v47  ;;  %v159_v58 = vpop.permute.xlu1 %158 }
 0x101   :  { %14351 = vst [vmem:[#allocation130_spill] sm:$0xff] %v9176_v19  ;;  %v322_v0 = vmul.f32 %v8484_v32, %v272_v47  ;;  %v9189_v48 = vsel %vm14064_vm11, %v2141_v63, 1326507024  ;;  %v9191_v19 = vshrl.u32 %v2637_v6, 5  ;;  %v2654_v60 = vshll.u32 %v14251_v43, %v9113_v7 }
 0x102   :  { %14352 = vst [vmem:[#allocation131_spill] sm:$0xff] %v9183_v11  ;;  %14353 = vst [vmem:[#allocation132_spill] sm:$0xff] %v9189_v48  ;;  %v9195_v51 = vshrl.u32 %v2740_v4, 5  ;;  %v9197_v57 = vor.u32 %v2652_v14, %v2651_v26  ;;  %v2755_v39 = vshrl.u32 %v14251_v43, %v9170_v31  ;;  %v2758_v21 = vshrl.u32 %v14260_v10, %v9170_v31 }
 0x103   :  { %14354 = vst [vmem:[#allocation133_spill] sm:$0xff] %v9191_v19  ;;  %v2534_v47 = vsel %vm2533_vm12, %v2532_v23, 0  ;;  %v2656_v27 = vor.u32 %v2655_v49, %v2654_v60  ;;  %v2754_v63 = vshll.u32 %v14257_v8, %v9133_v44  ;;  %v196_v6 = vmul.f32 %v8331_v17, %v144_v30 }
 0x104   :  { %14355 = vst [vmem:[#allocation134_spill] sm:$0xff] %v9195_v51  ;;  %14356 = vst [vmem:[#allocation135_spill] sm:$0xff] %v9197_v57  ;;  %v197_v48 = vmul.f32 %v8490_v33, %v144_v30  ;;  %v2757_v4 = vshll.u32 %v14251_v43, %v9133_v44  ;;  %v9210_v14 = vsub.s32 32, %v9183_v11  ;;  %v9212_v26 = vadd.f32 %v321_v1, %v198_v5  ;;  %v267_v1 = vpop.permute.xlu0 %266 }
 0x105   :  { %v9214_v7 = vadd.f32 %v322_v0, %v199_v40  ;;  %vm14095_vm12 = vcmp.lt.s32.totalorder %v9191_v19, 4  ;;  %vm14098_vm11 = vcmp.lt.s32.totalorder %v9195_v51, 4  ;;  %v9218_v60 = vshrl.u32 %v2431_v50, 5 }
 0x106   :  { %14357 = vst [vmem:[#allocation136_spill] sm:$0xff] %v9210_v14  ;;  %14358 = vst [vmem:[#allocation137_spill] sm:$0xff] %v9212_v26  ;;  %v9220_v23 = vand.u32 31, %v2534_v47  ;;  %v9225_v30 = vsel %vm14095_vm12, %v9197_v57, 920167782  ;;  %v9227_v49 = vor.u32 %v2755_v39, %v2754_v63  ;;  %v2759_v31 = vor.u32 %v2758_v21, %v2757_v4 }
 0x107   :  { %14359 = vst [vmem:[#allocation138_spill] sm:$0xff] %v9214_v7  ;;  %14360 = vst [vmem:[#allocation139_spill] sm:$0xff] %v9218_v60  ;;  %v9229_v5 = vshrl.u32 %v2534_v47, 5  ;;  %v9233_v0 = vsel %vm14095_vm12, %v2656_v27, 1326507024  ;;  %v589_v39 = vshrl.u32 %v14257_v8, %v8639_v13  ;;  %v2446_v21 = vshrl.u32 %v14251_v43, %v9210_v14 }
 0x108   :  { %14361 = vst [vmem:[#allocation140_spill] sm:$0xff] %v9220_v23  ;;  %14362 = vst [vmem:[#allocation141_spill] sm:$0xff] %v9225_v30  ;;  %v14071_v40 = vmov 2475754826   ;;  %v14073_v44 = vmov 2131351028   ;;  %v2449_v47 = vshrl.u32 %v14260_v10, %v9210_v14  ;;  %v2445_v14 = vshll.u32 %v14257_v8, %v9183_v11 }
 0x109   :  { %14363 = vst [vmem:[#allocation142_spill] sm:$0xff] %v9227_v49  ;;  %14364 = vst [vmem:[#allocation143_spill] sm:$0xff] %v9229_v5  ;;  %v583_v50 = vshrl.u32 %v14071_v40, %v8639_v13  ;;  %v586_v59 = vshrl.u32 %v14073_v44, %v8639_v13  ;;  %v3040_v27 = vand.u32 2139095040, %v9212_v26  ;;  %v3143_v63 = vand.u32 2139095040, %v9214_v7 }
 0x10a   :  { %14365 = vst [vmem:[#allocation144_spill] sm:$0xff] %v9233_v0  ;;  %v9248_v4 = vsub.s32 32, %v9220_v23  ;;  %v14086_v40 = vmov 683565275   ;;  %v14367_v30 = vmov 2475754826   ;;  %v2448_v26 = vshll.u32 %v14251_v43, %v9183_v11 }
 0x10b   :  { %v582_v44 = vshll.u32 %v14086_v40, %v8603_v22  ;;  %v585_v57 = vshll.u32 %v14367_v30, %v8603_v22  ;;  %v14368_v0 = vmov 2131351028   ;;  %v319_v7 = vmul.f32 %v8323_v15, %v267_v1 }
 0x10c   :  { %14366 = vst [vmem:[#allocation145_spill] sm:$0xff] %v9248_v4  ;;  %v588_v19 = vshll.u32 %v14368_v0, %v8603_v22  ;;  %v320_v56 = vmul.f32 %v8484_v32, %v267_v1  ;;  %v14369_v24 = vand.u32 2147483647, %v8478_v29  ;;  %v9271_v22 = vsel %vm14098_vm11, %v9227_v49, 920167782 }
 0x10d   :  { %v9264_v53 = vor.u32 %v583_v50, %v582_v44  ;;  %v9266_v55 = vor.u32 %v586_v59, %v585_v57  ;;  %14370 = vst [vmem:[#allocation146_spill] sm:$0xff] %v9271_v22  ;;  %v9275_v11 = vsel %vm14098_vm11, %v2759_v31, 1326507024  ;;  %v3041_v52 = vshrl.u32 %v3040_v27, 23 }
 0x10e   :  { %v572_v40 = vand.u32 8388607, %v14369_v24  ;;  %v590_v37 = vor.u32 %v589_v39, %v588_v19  ;;  %14371 = vst [vmem:[#allocation147_spill] sm:$0xff] %v9275_v11  ;;  %v3144_v1 = vshrl.u32 %v3143_v63, 23  ;;  %v9277_v16 = vor.u32 %v2446_v21, %v2445_v14 }
 0x10f   :  { %v2450_v18 = vor.u32 %v2449_v47, %v2448_v26  ;;  %vm14106_vm12 = vcmp.lt.s32.totalorder %v9218_v60, 4  ;;  %v2549_v59 = vshrl.u32 %v14251_v43, %v9248_v4  ;;  %v9282_v57 = vadd.f32 %v319_v7, %v196_v6 }
 0x110   :  { %14372 = vst [vmem:[#allocation148_spill] sm:$0xff] %v9277_v16  ;;  %v9284_v44 = vadd.f32 %v320_v56, %v197_v48  ;;  %vm597_vm2 = vcmp.lt.s32.totalorder %v8634_v38, 1  ;;  %vm599_vm5 = vcmp.lt.s32.totalorder %v8634_v38, 3  ;;  %v9290_v24 = vshrl.u32 %v14260_v10, %v9248_v4 }
 0x111   :  { %14373 = vst [vmem:[#allocation149_spill] sm:$0xff] %v9282_v57  ;;  %v573_v31 = vor.u32 8388608, %v572_v40  ;;  %v605_v19 = vsel %vm597_vm2, %v9264_v53, %v9266_v55  ;;  %v607_v7 = vsel %vm599_vm5, %v590_v37, %v8711_v12  ;;  %v7731_v48 = vadd.s32 4294967169, %v3041_v52  ;;  %v282_v12 = vpop.permute.xlu1 %281 }
 0x112   :  { %14374 = vst [vmem:[#allocation150_spill] sm:$0xff] %v9284_v44  ;;  %v7735_v56 = vadd.s32 4294967169, %v3144_v1  ;;  %v609_v6 = vsel %vm597_vm2, %v9266_v55, %v590_v37  ;;  %v611_v14 = vsel %vm599_vm5, %v8693_v28, %v8724_v3  ;;  %v2548_v26 = vshll.u32 %v14257_v8, %v9220_v23 }
 0x113   :  { %v9310_v40 = vshll.u32 %v14251_v43, %v9220_v23  ;;  %vm14150_vm11 = vcmp.lt.s32.totalorder %v9229_v5, 4  ;;  %vm598_vm13 = vcmp.lt.s32.totalorder %v8634_v38, 2  ;;  %v9317_v52 = vsel %vm14106_vm12, %v9277_v16, 920167782 }
 0x114   :  { %14375 = vst [vmem:[#allocation151_spill] sm:$0xff] %v9317_v52  ;;  %v2834_v50 = vand.u32 2139095040, %v9282_v57  ;;  %v2937_v3 = vand.u32 2139095040, %v9284_v44  ;;  %v608_v28 = vsel %vm598_vm13, %v605_v19, %v607_v7  ;;  %v9325_v39 = vsel %vm14106_vm12, %v2450_v18, 1326507024  ;;  %v154_v44 = vpop.permute.xlu0 %153 }
 0x115   :  { %14376 = vst [vmem:[#allocation152_spill] sm:$0xff] %v9325_v39  ;;  %v9327_v21 = vor.u32 %v2549_v59, %v2548_v26  ;;  %v612_v47 = vsel %vm598_vm13, %v609_v6, %v611_v14  ;;  %v9331_v27 = vshll.u32 %v573_v31, 8  ;;  %v3047_v1 = vadd.s32 1, %v7731_v48 }
 0x116   :  { %v3150_v57 = vadd.s32 1, %v7735_v56  ;;  %v325_v23 = vmul.f32 %v8323_v15, %v282_v12  ;;  %v202_v19 = vmul.f32 %v8331_v17, %v159_v58  ;;  %v326_v18 = vmul.f32 %v8484_v32, %v282_v12 }
 0x117   :  { %14377 = vst [vmem:[#allocation153_spill] sm:$0xff] %v9327_v21  ;;  %v9339_v59 = vmul.u32.u64.low %v9331_v27, %v608_v28  ;;  %v9340_v7 = vmul.u32.u64.high %v9331_v27, %v608_v28, %v9339_v59  ;;  %v2835_v6 = vshrl.u32 %v2834_v50, 23  ;;  %v2938_v31 = vshrl.u32 %v2937_v3, 23 }
 0x118   :  { %v9344_v14 = vmul.u32.u64.low %v9331_v27, %v612_v47  ;;  %v9345_v26 = vmul.u32.u64.high %v9331_v27, %v612_v47, %v9344_v14  ;;  %v9350_v48 = vsel %vm14150_vm11, %v9327_v21, 920167782  ;;  %v203_v56 = vmul.f32 %v8490_v33, %v159_v58 }
 0x119   :  { %14378 = vst [vmem:[#allocation154_spill] sm:$0xff] %v9350_v48  ;;  %v200_v12 = vmul.f32 %v8331_v17, %v154_v44  ;;  %v201_v63 = vmul.f32 %v8490_v33, %v154_v44  ;;  %vm3048_vm12 = vcmp.gt.s32.totalorder %v3047_v1, 0  ;;  %vm3151_vm1 = vcmp.gt.s32.totalorder %v3150_v57, 0  ;;  %v277_v48 = vpop.permute.xlu0 %276 }
 0x11a   :  { %v9355_v28 = vadd.f32 %v325_v23, %v202_v19  ;;  %v602_v3 = vsel %vm600_vm9, %v590_v37, 2102212464  ;;  %v686_v47 = vshrl.u32 %v14367_v30, %v8662_v41  ;;  %v689_v14 = vshrl.u32 %v14368_v0, %v8662_v41 }
 0x11b   :  { %v692_v17 = vshrl.u32 %v14257_v8, %v8662_v41  ;;  %v7723_v58 = vadd.s32 4294967169, %v2835_v6  ;;  %v7727_v33 = vadd.s32 4294967169, %v2938_v31  ;;  %v9366_v44 = vadd.f32 %v326_v18, %v203_v56 }
 0x11c   :  { %14379 = vst [vmem:[#allocation155_spill] sm:$0xff] %v9355_v28  ;;  %v14381_v23 = vmov 683565275   ;;  %v3049_v50 = vsel %vm3048_vm12, %v3047_v1, 0  ;;  %v688_v21 = vshll.u32 %v14367_v30, %v8636_v36  ;;  %v691_v4 = vshll.u32 %v14368_v0, %v8636_v36 }
 0x11d   :  { %14380 = vst [vmem:[#allocation156_spill] sm:$0xff] %v9366_v44  ;;  %v581_v19 = vshrl.u32 %v14381_v23, %v8639_v13  ;;  %v685_v37 = vshll.u32 %v14381_v23, %v8636_v36  ;;  %v3152_v16 = vsel %vm3151_vm1, %v3150_v57, 0  ;;  %v603_v13 = vsel %vm599_vm5, %v9266_v55, %v602_v3 }
 0x11e   :  { %v14382_v1 = vand.u32 2147483647, %v8554_v34  ;;  %v623_v31 = vadd.s32 1, %v9340_v7  ;;  %v9388_v39 = vor.u32 %v689_v14, %v688_v21  ;;  %v693_v36 = vor.u32 %v692_v17, %v691_v4 }
 0x11f   :  { %v601_v18 = vsel %vm597_vm2, %v581_v19, %v9264_v53  ;;  %v9386_v56 = vor.u32 %v686_v47, %v685_v37  ;;  %v3452_v57 = vand.u32 2139095040, %v9355_v28  ;;  %v323_v52 = vmul.f32 %v8323_v15, %v277_v48 }
 0x120   :  { %v675_v6 = vand.u32 8388607, %v14382_v1  ;;  %v324_v53 = vmul.f32 %v8484_v32, %v277_v48  ;;  %vm622_vm9 = vc.u32 %v9345_v26, %v9339_v59  ;;  %v9395_v55 = vand.u32 31, %v3049_v50 }
 0x121   :  { %v2841_v3 = vadd.s32 1, %v7723_v58  ;;  %v3555_v19 = vand.u32 2139095040, %v9366_v44  ;;  %v604_v47 = vsel %vm598_vm13, %v601_v18, %v603_v13  ;;  %v9400_v21 = vand.u32 31, %v3152_v16 }
 0x122   :  { %14383 = vst [vmem:[#allocation157_spill] sm:$0xff] %v9395_v55  ;;  %v2944_v4 = vadd.s32 1, %v7727_v33  ;;  %vm700_vm1 = vcmp.lt.s32.totalorder %v8678_v46, 1  ;;  %vm702_vm5 = vcmp.lt.s32.totalorder %v8678_v46, 3  ;;  %v624_v15 = vsel %vm622_vm9, %v623_v31, %v9340_v7 }
 0x123   :  { %14384 = vst [vmem:[#allocation158_spill] sm:$0xff] %v9400_v21  ;;  %v676_v32 = vor.u32 8388608, %v675_v6  ;;  %v708_v48 = vsel %vm700_vm1, %v9386_v56, %v9388_v39  ;;  %v710_v38 = vsel %vm702_vm5, %v693_v36, %v8739_v2  ;;  %v3453_v14 = vshrl.u32 %v3452_v57, 23 }
 0x124   :  { %v620_v17 = vmul.u32 %v9331_v27, %v604_v47  ;;  %v712_v58 = vsel %vm700_vm1, %v9388_v39, %v693_v36  ;;  %v714_v7 = vsel %vm702_vm5, %v8717_v25, %v8766_v42  ;;  %v14385_v33 = vor.u32 %v9290_v24, %v9310_v40 }
 0x125   :  { %v9428_v2 = vsub.s32 32, %v9395_v55  ;;  %v9430_v27 = vadd.f32 %v323_v52, %v200_v12  ;;  %vm701_vm13 = vcmp.lt.s32.totalorder %v8678_v46, 2  ;;  %vm2842_vm2 = vcmp.gt.s32.totalorder %v2841_v3, 0 }
 0x126   :  { %v9425_v37 = vsel %vm14150_vm11, %v14385_v33, 1326507024  ;;  %v9433_v18 = vadd.f32 %v324_v53, %v201_v63  ;;  %v9435_v13 = vadd.s32 %v624_v15, %v620_v17  ;;  %v711_v25 = vsel %vm701_vm13, %v708_v48, %v710_v38 }
 0x127   :  { %14386 = vst [vmem:[#allocation159_spill] sm:$0xff] %v9425_v37  ;;  %14387 = vst [vmem:[#allocation160_spill] sm:$0xff] %v9428_v2  ;;  %v9440_v42 = vsub.s32 32, %v9400_v21  ;;  %v3556_v24 = vshrl.u32 %v3555_v19, 23  ;;  %v715_v40 = vsel %vm701_vm13, %v712_v58, %v714_v7  ;;  %v9444_v1 = vshll.u32 %v676_v32, 8 }
 0x128   :  { %14388 = vst [vmem:[#allocation161_spill] sm:$0xff] %v9430_v27  ;;  %14389 = vst [vmem:[#allocation162_spill] sm:$0xff] %v9433_v18  ;;  %v9446_v52 = vshrl.u32 %v3049_v50, 5  ;;  %v9448_v12 = vshrl.u32 %v3152_v16, 5  ;;  %vm2945_vm12 = vcmp.gt.s32.totalorder %v2944_v4, 0  ;;  %v9450_v63 = vadd.s32 4294967169, %v3453_v14 }
 0x129   :  { %14390 = vst [vmem:[#allocation163_spill] sm:$0xff] %v9440_v42  ;;  %v3064_v6 = vshrl.u32 %v14251_v43, %v9428_v2  ;;  %v2843_v31 = vsel %vm2842_vm2, %v2841_v3, 0  ;;  %v9455_v57 = vmul.u32.u64.low %v9444_v1, %v711_v25  ;;  %v9456_v53 = vmul.u32.u64.high %v9444_v1, %v711_v25, %v9455_v57 }
 0x12a   :  { %14391 = vst [vmem:[#allocation164_spill] sm:$0xff] %v9446_v52  ;;  %14392 = vst [vmem:[#allocation165_spill] sm:$0xff] %v9448_v12  ;;  %v3067_v19 = vshrl.u32 %v14260_v10, %v9428_v2  ;;  %v626_v50 = vadd.s32 536870912, %v9435_v13  ;;  %v9463_v16 = vmul.u32.u64.low %v9444_v1, %v715_v40  ;;  %v9464_v47 = vmul.u32.u64.high %v9444_v1, %v715_v40, %v9463_v16 }
 0x12b   :  { %v3063_v15 = vshll.u32 %v14257_v8, %v9395_v55  ;;  %v3167_v3 = vshrl.u32 %v14251_v43, %v9440_v42  ;;  %v3170_v32 = vshrl.u32 %v14260_v10, %v9440_v42  ;;  %v7751_v48 = vadd.s32 4294967169, %v3556_v24 }
 0x12c   :  { %v3066_v38 = vshll.u32 %v14251_v43, %v9395_v55  ;;  %vm14148_vm9 = vcmp.lt.s32.totalorder %v9446_v52, 4  ;;  %v9475_v14 = vand.u32 31, %v2843_v31  ;;  %v2946_v17 = vsel %vm2945_vm12, %v2944_v4, 0 }
 0x12d   :  { %v3166_v58 = vshll.u32 %v14257_v8, %v9400_v21  ;;  %v3169_v7 = vshll.u32 %v14251_v43, %v9400_v21  ;;  %v9481_v33 = vshrl.u32 %v2843_v31, 5  ;;  %v705_v25 = vsel %vm703_vm10, %v693_v36, 2102212464 }
 0x12e   :  { %14393 = vst [vmem:[#allocation166_spill] sm:$0xff] %v9475_v14  ;;  %v9485_v24 = vor.u32 %v3064_v6, %v3063_v15  ;;  %v3068_v40 = vor.u32 %v3067_v19, %v3066_v38  ;;  %vm14147_vm2 = vcmp.lt.s32.totalorder %v9448_v12, 4  ;;  %v9488_v16 = vshrl.u32 %v626_v50, 30 }
 0x12f   :  { %14394 = vst [vmem:[#allocation167_spill] sm:$0xff] %v9481_v33  ;;  %v684_v4 = vshrl.u32 %v14381_v23, %v8662_v41  ;;  %v9492_v44 = vor.u32 %v3167_v3, %v3166_v58  ;;  %v3171_v28 = vor.u32 %v3170_v32, %v3169_v7  ;;  %v9494_v42 = vshrl.u32 %v2946_v17, 5 }
 0x130   :  { %14395 = vst [vmem:[#allocation168_spill] sm:$0xff] %v9485_v24  ;;  %v9496_v31 = vand.u32 31, %v2946_v17  ;;  %v9499_v21 = vsub.s32 32, %v9475_v14  ;;  %v2857_v36 = vshll.u32 %v14257_v8, %v9475_v14  ;;  %v706_v41 = vsel %vm702_vm5, %v9388_v39, %v705_v25 }
 0x131   :  { %14396 = vst [vmem:[#allocation169_spill] sm:$0xff] %v9492_v44  ;;  %14397 = vst [vmem:[#allocation170_spill] sm:$0xff] %v9494_v42  ;;  %v704_v6 = vsel %vm700_vm1, %v684_v4, %v9386_v56  ;;  %v726_v19 = vadd.s32 1, %v9456_v53  ;;  %v377_v50 = vshrl.u32 %v14367_v30, %v8573_v62  ;;  %v380_v15 = vshrl.u32 %v14368_v0, %v8573_v62 }
 0x132   :  { %14398 = vst [vmem:[#allocation171_spill] sm:$0xff] %v9496_v31  ;;  %14399 = vst [vmem:[#allocation172_spill] sm:$0xff] %v9499_v21  ;;  %v383_v3 = vshrl.u32 %v14257_v8, %v8573_v62  ;;  %v9519_v32 = vsel %vm14148_vm9, %v9485_v24, 920167782  ;;  %v628_v56 = vshll.u32 %v9488_v16, 30  ;;  %vm725_vm10 = vc.u32 %v9464_v47, %v9455_v57 }
 0x133   :  { %14400 = vst [vmem:[#allocation173_spill] sm:$0xff] %v9519_v32  ;;  %v707_v38 = vsel %vm701_vm13, %v704_v6, %v706_v41  ;;  %v376_v17 = vshll.u32 %v14381_v23, %v8567_v54  ;;  %v379_v58 = vshll.u32 %v14367_v30, %v8567_v54  ;;  %v382_v7 = vshll.u32 %v14368_v0, %v8567_v54 }
 0x134   :  { %v9535_v25 = vsel %vm14148_vm9, %v3068_v40, 1326507024  ;;  %v2858_v4 = vshrl.u32 %v14251_v43, %v9499_v21  ;;  %v2860_v46 = vshll.u32 %v14251_v43, %v9475_v14  ;;  %v2861_v6 = vshrl.u32 %v14260_v10, %v9499_v21 }
 0x135   :  { %14401 = vst [vmem:[#allocation174_spill] sm:$0xff] %v9535_v25  ;;  %v727_v41 = vsel %vm725_vm10, %v726_v19, %v9456_v53  ;;  %v9544_v39 = vor.u32 %v377_v50, %v376_v17  ;;  %v9546_v24 = vor.u32 %v380_v15, %v379_v58  ;;  %v384_v54 = vor.u32 %v383_v3, %v382_v7 }
 0x136   :  { %vm14149_vm1 = vcmp.lt.s32.totalorder %v9481_v33, 4  ;;  %v9550_v40 = vsub.s32 %v9435_v13, %v628_v56  ;;  %v723_v25 = vmul.u32 %v9444_v1, %v707_v38  ;;  %v14402_v32 = vand.u32 2147483647, %v8458_v20  ;;  %v14432_v33 = vld [vmem:[#allocation37_spill] sm:$0xff] }
 0x137   :  { %v9558_v21 = vsel %vm14147_vm2, %v9492_v44, 920167782  ;;  %v9562_v53 = vsel %vm14147_vm2, %v3171_v28, 1326507024  ;;  %v9565_v19 = vsub.s32 32, %v9496_v31  ;;  %v2960_v13 = vshll.u32 %v14257_v8, %v9496_v31 }
 0x138   :  { %v366_v14 = vand.u32 8388607, %v14402_v32  ;;  %14403 = vst [vmem:[#allocation175_spill] sm:$0xff] %v9558_v21  ;;  %14404 = vst [vmem:[#allocation176_spill] sm:$0xff] %v9562_v53  ;;  %v9571_v1 = vshll.u32 %v14251_v43, %v9496_v31  ;;  %v9573_v50 = vadd.s32 %v727_v41, %v723_v25  ;;  %vm391_vm5 = vcmp.lt.s32.totalorder %v8579_v9, 1  ;;  %v14407_v32 = vld [vmem:[#allocation32_spill] sm:$0xff] }
 0x139   :  { %14405 = vst [vmem:[#allocation177_spill] sm:$0xff] %v9565_v19  ;;  %vm393_vm13 = vcmp.lt.s32.totalorder %v8579_v9, 3  ;;  %v9577_v15 = vor.u32 %v2858_v4, %v2857_v36  ;;  %v2862_v28 = vor.u32 %v2861_v6, %v2860_v46  ;;  %v399_v3 = vsel %vm391_vm5, %v9544_v39, %v9546_v24  ;;  %v14409_v6 = vld [vmem:[#allocation25_spill] sm:$0xff]  ;;  %v14413_v53 = vld [vmem:[#allocation18_spill] sm:$0xff] }
 0x13a   :  { %v401_v56 = vsel %vm393_vm13, %v384_v54, %v14407_v32  ;;  %v3459_v38 = vadd.s32 1, %v9450_v63  ;;  %v3562_v17 = vadd.s32 1, %v7751_v48  ;;  %v631_v58 = vsub.s32 0, %v9550_v40  ;;  %v14410_v32 = vld [vmem:[#allocation13_spill] sm:$0xff] }
 0x13b   :  { %14406 = vst [vmem:[#allocation178_spill] sm:$0xff] %v9577_v15  ;;  %v367_v7 = vor.u32 8388608, %v366_v14  ;;  %v2961_v36 = vshrl.u32 %v14251_v43, %v9565_v19  ;;  %v9592_v25 = vshrl.u32 %v14260_v10, %v9565_v19  ;;  %v3246_v4 = vand.u32 2139095040, %v9430_v27  ;;  %v14408_v14 = vld [vmem:[#allocation33_spill] sm:$0xff]  ;;  %v14411_v19 = vld [vmem:[#allocation19_spill] sm:$0xff] }
 0x13c   :  { %vm392_vm12 = vcmp.lt.s32.totalorder %v8579_v9, 2  ;;  %v729_v46 = vadd.s32 536870912, %v9573_v50  ;;  %v403_v48 = vsel %vm391_vm5, %v9546_v24, %v384_v54  ;;  %v405_v41 = vsel %vm393_vm13, %v14409_v6, %v14408_v14 }
 0x13d   :  { %v402_v63 = vsel %vm392_vm12, %v399_v3, %v401_v56  ;;  %v480_v27 = vshrl.u32 %v14367_v30, %v14411_v19  ;;  %v483_v21 = vshrl.u32 %v14368_v0, %v14411_v19  ;;  %v486_v3 = vshrl.u32 %v14257_v8, %v14411_v19 }
 0x13e   :  { %v9616_v56 = vsel %vm14149_vm1, %v9577_v15, 920167782  ;;  %v3349_v44 = vand.u32 2139095040, %v9433_v18  ;;  %v7636_v14 = vmin.u32 %v631_v58, %v9550_v40  ;;  %v9620_v6 = vshll.u32 %v367_v7, 8 }
 0x13f   :  { %14412 = vst [vmem:[#allocation32_spill] sm:$0xff] %v9616_v56  ;;  %v406_v31 = vsel %vm392_vm12, %v403_v48, %v405_v41  ;;  %v479_v12 = vshll.u32 %v14381_v23, %v14413_v53  ;;  %v482_v52 = vshll.u32 %v14367_v30, %v14413_v53  ;;  %v485_v55 = vshll.u32 %v14368_v0, %v14413_v53 }
 0x140   :  { %vm3460_vm10 = vcmp.gt.s32.totalorder %v3459_v38, 0  ;;  %v9630_v15 = vshrl.u32 %v729_v46, 30  ;;  %v9633_v18 = vmul.u32.u64.low %v9620_v6, %v402_v63  ;;  %v9634_v58 = vmul.u32.u64.high %v9620_v6, %v402_v63, %v9633_v18 }
 0x141   :  { %v14414_v7 = vand.u32 2147483647, %v14410_v32  ;;  %v9639_v41 = vor.u32 %v480_v27, %v479_v12  ;;  %v9641_v56 = vor.u32 %v483_v21, %v482_v52  ;;  %v487_v2 = vor.u32 %v486_v3, %v485_v55  ;;  %v14417_v21 = vld [vmem:[#allocation20_spill] sm:$0xff] }
 0x142   :  { %v9645_v37 = vsel %vm14149_vm1, %v2862_v28, 1326507024  ;;  %v633_v53 = vclz %v7636_v14  ;;  %v9648_v46 = vmul.u32.u64.low %v9620_v6, %v406_v31  ;;  %v9649_v5 = vmul.u32.u64.high %v9620_v6, %v406_v31, %v9648_v46 }
 0x143   :  { %v469_v48 = vand.u32 8388607, %v14414_v7  ;;  %14415 = vst [vmem:[#allocation33_spill] sm:$0xff] %v9645_v37  ;;  %v9651_v63 = vor.u32 %v2961_v36, %v2960_v13  ;;  %v2965_v60 = vor.u32 %v9592_v25, %v9571_v1  ;;  %v3461_v7 = vsel %vm3460_vm10, %v3459_v38, 0  ;;  %v14418_v13 = vld [vmem:[#allocation34_spill] sm:$0xff]  ;;  %v14419_v36 = vld [vmem:[#allocation35_spill] sm:$0xff] }
 0x144   :  { %vm3563_vm2 = vcmp.gt.s32.totalorder %v3562_v17, 0  ;;  %v3247_v27 = vshrl.u32 %v3246_v4, 23  ;;  %v396_v55 = vsel %vm394_vm4, %v384_v54, 2102212464  ;;  %vm494_vm9 = vcmp.lt.s32.totalorder %v14417_v21, 1  ;;  %v14420_v25 = vld [vmem:[#allocation26_spill] sm:$0xff] }
 0x145   :  { %14416 = vst [vmem:[#allocation25_spill] sm:$0xff] %v9651_v63  ;;  %vm496_vm1 = vcmp.lt.s32.totalorder %v14417_v21, 3  ;;  %vm14199_vm11 = vcmp.lt.s32.totalorder %v9494_v42, 4  ;;  %v731_v52 = vshll.u32 %v9630_v15, 30  ;;  %v470_v12 = vor.u32 8388608, %v469_v48  ;;  %v14431_v42 = vld [vmem:[#allocation5_spill] sm:$0xff] }
 0x146   :  { %v502_v31 = vsel %vm494_vm9, %v9639_v41, %v9641_v56  ;;  %v504_v1 = vsel %vm496_vm1, %v487_v2, %v14418_v13  ;;  %v7637_v28 = vadd.s32 4294967294, %v633_v53  ;;  %v375_v54 = vshrl.u32 %v14381_v23, %v8573_v62 }
 0x147   :  { %v506_v38 = vsel %vm494_vm9, %v9641_v56, %v487_v2  ;;  %v508_v4 = vsel %vm496_vm1, %v14420_v25, %v14419_v36  ;;  %v9677_v3 = vand.u32 31, %v3461_v7  ;;  %v3564_v14 = vsel %vm3563_vm2, %v3562_v17, 0 }
 0x148   :  { %v3350_v48 = vshrl.u32 %v3349_v44, 23  ;;  %vm495_vm4 = vcmp.lt.s32.totalorder %v14417_v21, 2  ;;  %v7739_v53 = vadd.s32 4294967169, %v3247_v27  ;;  %v395_v62 = vsel %vm391_vm5, %v375_v54, %v9544_v39 }
 0x149   :  { %14421 = vst [vmem:[#allocation13_spill] sm:$0xff] %v9677_v3  ;;  %v397_v46 = vsel %vm393_vm13, %v9546_v24, %v396_v55  ;;  %v505_v13 = vsel %vm495_vm4, %v502_v31, %v504_v1  ;;  %v9690_v36 = vsub.s32 %v9573_v50, %v731_v52  ;;  %v417_v17 = vadd.s32 1, %v9634_v58 }
 0x14a   :  { %v509_v44 = vsel %vm495_vm4, %v506_v38, %v508_v4  ;;  %v9695_v27 = vshll.u32 %v470_v12, 8  ;;  %v9697_v25 = vshrl.u32 %v3461_v7, 5  ;;  %v9699_v39 = vand.u32 31, %v3564_v14 }
 0x14b   :  { %vm7638_vm2 = vcmp.lt.s32.totalorder %v7637_v28, 0  ;;  %vm416_vm5 = vc.u32 %v9649_v5, %v9633_v18  ;;  %v7743_v24 = vadd.s32 4294967169, %v3350_v48  ;;  %v398_v50 = vsel %vm392_vm12, %v395_v62, %v397_v46 }
 0x14c   :  { %14422 = vst [vmem:[#allocation19_spill] sm:$0xff] %v9697_v25  ;;  %14423 = vst [vmem:[#allocation18_spill] sm:$0xff] %v9699_v39  ;;  %v9706_v55 = vmul.u32.u64.low %v9695_v27, %v505_v13  ;;  %v9707_v52 = vmul.u32.u64.high %v9695_v27, %v505_v13, %v9706_v55  ;;  %v9710_v31 = vshrl.u32 %v3564_v14, 5  ;;  %v3253_v12 = vadd.s32 1, %v7739_v53 }
 0x14d   :  { %v9713_v7 = vmul.u32.u64.low %v9695_v27, %v509_v44  ;;  %v9714_v1 = vmul.u32.u64.high %v9695_v27, %v509_v44, %v9713_v7  ;;  %v9717_v54 = vsub.s32 32, %v9677_v3  ;;  %v9719_v38 = vsel %vm7638_vm2, 0, %v7637_v28 }
 0x14e   :  { %14424 = vst [vmem:[#allocation20_spill] sm:$0xff] %v9710_v31  ;;  %v734_v9 = vsub.s32 0, %v9690_v36  ;;  %v418_v4 = vsel %vm416_vm5, %v417_v17, %v9634_v58  ;;  %v9726_v48 = vsel %vm14199_vm11, %v9651_v63, 920167782  ;;  %v9730_v14 = vsel %vm14199_vm11, %v2965_v60, 1326507024 }
 0x14f   :  { %14425 = vst [vmem:[#allocation34_spill] sm:$0xff] %v9717_v54  ;;  %14426 = vst [vmem:[#allocation35_spill] sm:$0xff] %v9726_v48  ;;  %v9733_v53 = vsub.s32 32, %v9699_v39  ;;  %v414_v62 = vmul.u32 %v9620_v6, %v398_v50  ;;  %v3475_v28 = vshll.u32 %v14257_v8, %v9677_v3  ;;  %v3478_v58 = vshll.u32 %v14251_v43, %v9677_v3 }
 0x150   :  { %14427 = vst [vmem:[#allocation26_spill] sm:$0xff] %v9730_v14  ;;  %v3356_v46 = vadd.s32 1, %v7743_v24  ;;  %v499_v13 = vsel %vm497_vm6, %v487_v2, 2102212464  ;;  %vm3254_vm13 = vcmp.gt.s32.totalorder %v3253_v12, 0  ;;  %v641_v17 = vsub.s32 4294967266, %v9719_v38 }
 0x151   :  { %14428 = vst [vmem:[#allocation179_spill] sm:$0xff] %v9733_v53  ;;  %v9743_v60 = vadd.s32 %v418_v4, %v414_v62  ;;  %v478_v44 = vshrl.u32 %v14381_v23, %v14411_v19  ;;  %v3476_v6 = vshrl.u32 %v14251_v43, %v9717_v54  ;;  %v3479_v50 = vshrl.u32 %v14260_v10, %v9717_v54 }
 0x152   :  { %v3578_v24 = vshll.u32 %v14257_v8, %v9699_v39  ;;  %v7640_v7 = vmin.u32 %v734_v9, %v9690_v36  ;;  %v3579_v2 = vshrl.u32 %v14251_v43, %v9733_v53  ;;  %v9758_v4 = vshll.u32 %v14251_v43, %v9699_v39 }
 0x153   :  { %v498_v19 = vsel %vm494_vm9, %v478_v44, %v9639_v41  ;;  %v500_v62 = vsel %vm496_vm1, %v9641_v56, %v499_v13  ;;  %vm14184_vm6 = vcmp.lt.s32.totalorder %v9697_v25, 4  ;;  %v3582_v9 = vshrl.u32 %v14260_v10, %v9733_v53 }
 0x154   :  { %v3255_v3 = vsel %vm3254_vm13, %v3253_v12, 0  ;;  %vm3357_vm12 = vcmp.gt.s32.totalorder %v3356_v46, 0  ;;  %v520_v54 = vadd.s32 1, %v9707_v52  ;;  %v637_v39 = vsub.s32 32, %v9719_v38 }
 0x155   :  { %v642_v63 = vadd.s32 127, %v641_v17  ;;  %v420_v14 = vadd.s32 536870912, %v9743_v60  ;;  %vm519_vm9 = vc.u32 %v9714_v1, %v9706_v55  ;;  %v9774_v41 = vor.u32 %v3476_v6, %v3475_v28 }
 0x156   :  { %v3480_v56 = vor.u32 %v3479_v50, %v3478_v58  ;;  %v736_v13 = vclz %v7640_v7  ;;  %v501_v44 = vsel %vm495_vm4, %v498_v19, %v500_v62  ;;  %v9778_v53 = vand.u32 31, %v3255_v3  ;;  %v14433_v50 = vld [vmem:[#allocation31_spill] sm:$0xff] }
 0x157   :  { %14429 = vst [vmem:[#allocation180_spill] sm:$0xff] %v9774_v41  ;;  %v3358_v12 = vsel %vm3357_vm12, %v3356_v46, 0  ;;  %v621_v48 = vadd.s32 %v9339_v59, %v9345_v26  ;;  %v14164_v17 = vand.u32 2147483647, %v14431_v42  ;;  %v521_v37 = vsel %vm519_vm9, %v520_v54, %v9707_v52 }
 0x158   :  { %14430 = vst [vmem:[#allocation181_spill] sm:$0xff] %v9778_v53  ;;  %v995_v22 = vshrl.u32 %v14367_v30, %v14432_v33  ;;  %v998_v28 = vshrl.u32 %v14368_v0, %v14432_v33  ;;  %v1001_v21 = vshrl.u32 %v14257_v8, %v14432_v33  ;;  %vm14183_vm1 = vcmp.lt.s32.totalorder %v9710_v31, 4 }
 0x159   :  { %v639_v58 = vshrl.u32 %v621_v48, %v637_v39  ;;  %v643_v46 = vshll.u32 %v642_v63, 23  ;;  %v9791_v6 = vshrl.u32 %v420_v14, 30  ;;  %v517_v59 = vmul.u32 %v9695_v27, %v501_v44 }
 0x15a   :  { %v7641_v26 = vadd.s32 4294967294, %v736_v13  ;;  %v994_v52 = vshll.u32 %v14381_v23, %v14433_v50  ;;  %v997_v54 = vshll.u32 %v14367_v30, %v14433_v50  ;;  %v1000_v7 = vshll.u32 %v14368_v0, %v14433_v50  ;;  %v14442_v50 = vld [vmem:[#allocation42_spill] sm:$0xff] }
 0x15b   :  { %v9800_v19 = vor.u32 %v3579_v2, %v3578_v24  ;;  %v3583_v62 = vor.u32 %v3582_v9, %v9758_v4  ;;  %v9803_v39 = vadd.s32 %v521_v37, %v517_v59  ;;  %v984_v63 = vand.u32 8388607, %v14164_v17  ;;  %v14441_v59 = vld [vmem:[#allocation48_spill] sm:$0xff] }
 0x15c   :  { %v638_v27 = vshll.u32 %v9550_v40, %v9719_v38  ;;  %v9809_v48 = vor.u32 %v995_v22, %v994_v52  ;;  %v9811_v14 = vor.u32 %v998_v28, %v997_v54  ;;  %v1002_v13 = vor.u32 %v1001_v21, %v1000_v7  ;;  %v14439_v28 = vld [vmem:[#allocation39_spill] sm:$0xff] }
 0x15d   :  { %14434 = vst [vmem:[#allocation37_spill] sm:$0xff] %v9800_v19  ;;  %v9816_v24 = vsel %vm14184_vm6, %v9774_v41, 920167782  ;;  %v9818_v2 = vand.u32 31, %v3358_v12  ;;  %v644_v37 = vor.u32 4788187, %v643_v46  ;;  %vm657_vm11 = vweird.f32 %v8478_v29 }
 0x15e   :  { %14435 = vst [vmem:[#allocation31_spill] sm:$0xff] %v9816_v24  ;;  %v422_v4 = vshll.u32 %v9791_v6, 30  ;;  %v9823_v9 = vsel %vm14184_vm6, %v3480_v56, 1326507024  ;;  %v9826_v22 = vsub.s32 32, %v9778_v53  ;;  %v640_v40 = vor.u32 %v639_v58, %v638_v27  ;;  %v14440_v46 = vld [vmem:[#allocation46_spill] sm:$0xff] }
 0x15f   :  { %14436 = vst [vmem:[#allocation182_spill] sm:$0xff] %v9818_v2  ;;  %14437 = vst [vmem:[#allocation183_spill] sm:$0xff] %v9823_v9  ;;  %vm7642_vm10 = vcmp.lt.s32.totalorder %v7641_v26, 0  ;;  %v523_v38 = vadd.s32 536870912, %v9803_v39  ;;  %v985_v44 = vor.u32 8388608, %v984_v63  ;;  %vm1009_vm4 = vcmp.lt.s32.totalorder %v14439_v28, 1 }
 0x160   :  { %14438 = vst [vmem:[#allocation184_spill] sm:$0xff] %v9826_v22  ;;  %vm1011_vm2 = vcmp.lt.s32.totalorder %v14439_v28, 3  ;;  %v1017_v21 = vsel %vm1009_vm4, %v9809_v48, %v9811_v14  ;;  %v1021_v58 = vsel %vm1009_vm4, %v9811_v14, %v1002_v13  ;;  %v9846_v54 = vsub.s32 32, %v9818_v2  ;;  %v14450_v41 = vld [vmem:[#allocation6_spill] sm:$0xff] }
 0x161   :  { %v1019_v56 = vsel %vm1011_vm2, %v1002_v13, %v14440_v46  ;;  %v1023_v52 = vsel %vm1011_vm2, %v14442_v50, %v14441_v59  ;;  %v645_v7 = vand.u32 2147483647, %v644_v37  ;;  %v9848_v63 = vsel %vm7642_vm10, 0, %v7641_v26 }
 0x162   :  { %14443 = vst [vmem:[#allocation39_spill] sm:$0xff] %v9846_v54  ;;  %v9851_v27 = vsub.s32 %v9743_v60, %v422_v4  ;;  %v9856_v46 = vsel %vm14183_vm1, %v9800_v19, 920167782  ;;  %v9860_v17 = vsel %vm14183_vm1, %v3583_v62, 1326507024  ;;  %v9862_v24 = vshrl.u32 %v3255_v3, 5 }
 0x163   :  { %14444 = vst [vmem:[#allocation46_spill] sm:$0xff] %v9856_v46  ;;  %14445 = vst [vmem:[#allocation48_spill] sm:$0xff] %v9860_v17  ;;  %vm1010_vm5 = vcmp.lt.s32.totalorder %v14439_v28, 2  ;;  %v9865_v59 = vshrl.u32 %v3358_v12, 5  ;;  %v647_v26 = vcvt.s32.f32 %v640_v40  ;;  %v3270_v4 = vshrl.u32 %v14251_v43, %v9826_v22  ;;  %v14452_v17 = vld [vmem:[#allocation36_spill] sm:$0xff] }
 0x164   :  { %14446 = vst [vmem:[#allocation42_spill] sm:$0xff] %v9862_v24  ;;  %v1020_v60 = vsel %vm1010_vm5, %v1017_v21, %v1019_v56  ;;  %v1024_v37 = vsel %vm1010_vm5, %v1021_v58, %v1023_v52  ;;  %v744_v50 = vsub.s32 4294967266, %v9848_v63  ;;  %v9874_v62 = vshrl.u32 %v523_v38, 30 }
 0x165   :  { %14447 = vst [vmem:[#allocation185_spill] sm:$0xff] %v9865_v59  ;;  %v9876_v3 = vshll.u32 %v985_v44, 8  ;;  %v9880_v12 = vshrl.u32 %v14260_v10, %v9826_v22  ;;  %v3373_v40 = vshrl.u32 %v14251_v43, %v9846_v54  ;;  %v648_v21 = vmul.f32 %v647_v26, %v645_v7 }
 0x166   :  { %v425_v56 = vsub.s32 0, %v9851_v27  ;;  %v3269_v44 = vshll.u32 %v14257_v8, %v9778_v53  ;;  %v9898_v22 = vshll.u32 %v14251_v43, %v9778_v53  ;;  %v3372_v7 = vshll.u32 %v14257_v8, %v9818_v2 }
 0x167   :  { %v9886_v58 = vmul.u32.u64.low %v9876_v3, %v1024_v37  ;;  %v9887_v52 = vmul.u32.u64.high %v9876_v3, %v1024_v37, %v9886_v58  ;;  %v9890_v46 = vmul.u32.u64.low %v9876_v3, %v1020_v60  ;;  %v9891_v38 = vmul.u32.u64.high %v9876_v3, %v1020_v60, %v9890_v46 }
 0x168   :  { %v9904_v26 = vshll.u32 %v14251_v43, %v9818_v2  ;;  %v9908_v37 = vshrl.u32 %v14260_v10, %v9846_v54  ;;  %vm567_vm13 = vcmp.lt.s32.totalorder %v8478_v29, 0  ;;  %v740_v60 = vsub.s32 32, %v9848_v63 }
 0x169   :  { %v745_v58 = vadd.s32 127, %v744_v50  ;;  %v525_v19 = vshll.u32 %v9874_v62, 30  ;;  %v9913_v53 = vor.u32 %v3270_v4, %v3269_v44  ;;  %v9917_v31 = vor.u32 %v3373_v40, %v3372_v7  ;;  %v14451_v44 = vld [vmem:[#allocation38_spill] sm:$0xff] }
 0x16a   :  { %v724_v43 = vadd.s32 %v9455_v57, %v9464_v47  ;;  %v649_v2 = vxor.u32 2147483648, %v648_v21  ;;  %v7628_v10 = vmin.u32 %v425_v56, %v9851_v27  ;;  %v993_v54 = vshrl.u32 %v14381_v23, %v14432_v33 }
 0x16b   :  { %14448 = vst [vmem:[#allocation186_spill] sm:$0xff] %v9913_v53  ;;  %14449 = vst [vmem:[#allocation187_spill] sm:$0xff] %v9917_v31  ;;  %v1014_v50 = vsel %vm1012_vm14, %v1002_v13, 2102212464  ;;  %v1098_v9 = vshrl.u32 %v14367_v30, %v14451_v44  ;;  %v1101_v40 = vshrl.u32 %v14368_v0, %v14451_v44  ;;  %v1104_v57 = vshrl.u32 %v14257_v8, %v14451_v44 }
 0x16c   :  { %vm14198_vm12 = vcmp.lt.s32.totalorder %v9862_v24, 4  ;;  %v742_v47 = vshrl.u32 %v724_v43, %v740_v60  ;;  %v746_v56 = vshll.u32 %v745_v58, 23  ;;  %v9935_v33 = vsub.s32 %v9803_v39, %v525_v19 }
 0x16d   :  { %v1013_v13 = vsel %vm1009_vm4, %v993_v54, %v9809_v48  ;;  %v1015_v7 = vsel %vm1011_vm2, %v9811_v14, %v1014_v50  ;;  %v1097_v4 = vshll.u32 %v14381_v23, %v14452_v17  ;;  %v1100_v25 = vshll.u32 %v14367_v30, %v14452_v17 }
 0x16e   :  { %v1103_v60 = vshll.u32 %v14368_v0, %v14452_v17  ;;  %v14453_v19 = vand.u32 2147483647, %v8478_v29  ;;  %v741_v48 = vshll.u32 %v9690_v36, %v9848_v63  ;;  %v427_v54 = vclz %v7628_v10 }
 0x16f   :  { %vm1034_vm9 = vc.u32 %v9887_v52, %v9890_v46  ;;  %v1035_v14 = vadd.s32 1, %v9891_v38  ;;  %v14456_v58 = vand.u32 2147483647, %v14450_v41  ;;  %v1099_v50 = vor.u32 %v1098_v9, %v1097_v4  ;;  %v14457_v4 = vld [vmem:[#allocation41_spill] sm:$0xff] }
 0x170   :  { %vm9951_vm14 = vcmp.le.f32.partialorder %v14453_v19, 0.7853982  ;;  %v1102_v17 = vor.u32 %v1101_v40, %v1100_v25  ;;  %v1105_v49 = vor.u32 %v1104_v57, %v1103_v60  ;;  %v3377_v19 = vor.u32 %v9908_v37, %v9904_v26  ;;  %v14458_v40 = vld [vmem:[#allocation50_spill] sm:$0xff] }
 0x171   :  { %v1087_v43 = vand.u32 8388607, %v14456_v58  ;;  %v747_v11 = vor.u32 4788187, %v746_v56  ;;  %v528_v51 = vsub.s32 0, %v9935_v33  ;;  %v1016_v36 = vsel %vm1010_vm5, %v1013_v13, %v1015_v7  ;;  %v14460_v56 = vld [vmem:[#allocation45_spill] sm:$0xff] }
 0x172   :  { %v650_v63 = vsel %vm567_vm13, %v649_v2, %v648_v21  ;;  %v651_v10 = vsub.s32 4, %v9488_v16  ;;  %v743_v42 = vor.u32 %v742_v47, %v741_v48  ;;  %v754_v58 = vsub.s32 4, %v9630_v15  ;;  %v14459_v47 = vld [vmem:[#allocation51_spill] sm:$0xff] }
 0x173   :  { %v7629_v9 = vadd.s32 4294967294, %v427_v54  ;;  %v1036_v25 = vsel %vm1034_vm9, %v1035_v14, %v9891_v38  ;;  %vm1112_vm10 = vcmp.lt.s32.totalorder %v14457_v4, 1  ;;  %vm1114_vm4 = vcmp.lt.s32.totalorder %v14457_v4, 3 }
 0x174   :  { %v1032_v26 = vmul.u32 %v9876_v3, %v1016_v36  ;;  %v1088_v37 = vor.u32 8388608, %v1087_v43  ;;  %v1120_v28 = vsel %vm1112_vm10, %v1099_v50, %v1102_v17  ;;  %v1122_v2 = vsel %vm1114_vm4, %v1105_v49, %v14458_v40 }
 0x175   :  { %vm14197_vm2 = vcmp.lt.s32.totalorder %v9865_v59, 4  ;;  %v748_v21 = vand.u32 2147483647, %v747_v11  ;;  %v7632_v57 = vmin.u32 %v528_v51, %v9935_v33  ;;  %v1124_v38 = vsel %vm1112_vm10, %v1102_v17, %v1105_v49 }
 0x176   :  { %v1126_v3 = vsel %vm1114_vm4, %v14460_v56, %v14459_v47  ;;  %v9991_v13 = vsel %vm14198_vm12, %v9913_v53, 920167782  ;;  %vm670_vm5 = vcmp.lt.s32.totalorder %v8554_v34, 0  ;;  %v9994_v7 = vadd.s32 %v1036_v25, %v1032_v26 }
 0x177   :  { %14461 = vst [vmem:[#allocation38_spill] sm:$0xff] %v9991_v13  ;;  %vm1113_vm9 = vcmp.lt.s32.totalorder %v14457_v4, 2  ;;  %v14462_v11 = vand.u32 2147483647, %v8554_v34  ;;  %v750_v60 = vcvt.s32.f32 %v743_v42  ;;  %vm7630_vm6 = vcmp.lt.s32.totalorder %v7629_v9, 0 }
 0x178   :  { %v1123_v48 = vsel %vm1113_vm9, %v1120_v28, %v1122_v2  ;;  %v652_v54 = vsel %vm567_vm13, %v651_v10, %v9488_v16  ;;  %v653_v14 = vsel %vm9951_vm14, %v8478_v29, %v650_v63  ;;  %v1127_v43 = vsel %vm1113_vm9, %v1124_v38, %v1126_v3 }
 0x179   :  { %vm9999_vm1 = vcmp.le.f32.partialorder %v14462_v11, 0.7853982  ;;  %v10013_v36 = vshll.u32 %v1088_v37, 8  ;;  %v751_v25 = vmul.f32 %v750_v60, %v748_v21  ;;  %v755_v42 = vsel %vm670_vm5, %v754_v58, %v9630_v15 }
 0x17a   :  { %v445_v26 = vsub.s32 4, %v9791_v6  ;;  %v530_v28 = vclz %v7632_v57  ;;  %v10019_v40 = vsel %vm7630_vm6, 0, %v7629_v9  ;;  %v1038_v16 = vadd.s32 536870912, %v9994_v7 }
 0x17b   :  { %v10023_v10 = vmul.u32.u64.low %v10013_v36, %v1123_v48  ;;  %v10024_v63 = vmul.u32.u64.high %v10013_v36, %v1123_v48, %v10023_v10  ;;  %8076 = vcosq.f32 %v653_v14  ;;  %vm361_vm13 = vcmp.lt.s32.totalorder %v8458_v20, 0 }
 0x17c   :  { %v10029_v37 = vmul.u32.u64.low %v10013_v36, %v1127_v43  ;;  %v10030_v2 = vmul.u32.u64.high %v10013_v36, %v1127_v43, %v10029_v37  ;;  %v654_v15 = vsel %vm9951_vm14, 0, %v652_v54  ;;  %8078 = vsinq.f32 %v653_v14 }
 0x17d   :  { %v757_v58 = vsel %vm9999_vm1, 0, %v755_v42  ;;  %v1117_v9 = vsel %vm1115_vm15, %v1105_v49, 2102212464  ;;  %v752_v21 = vxor.u32 2147483648, %v751_v25  ;;  %v435_v57 = vsub.s32 4294967266, %v10019_v40 }
 0x17e   :  { %v7633_v38 = vadd.s32 4294967294, %v530_v28  ;;  %v1096_v47 = vshrl.u32 %v14381_v23, %v14451_v44  ;;  %v14465_v56 = vor.u32 %v9880_v12, %v9898_v22  ;;  %v10051_v3 = vsel %vm14197_vm2, %v9917_v31, 920167782 }
 0x17f   :  { %14467 = vst [vmem:[#allocation41_spill] sm:$0xff] %v10051_v3  ;;  %v446_v49 = vsel %vm361_vm13, %v445_v26, %v9791_v6  ;;  %v10056_v11 = vshrl.u32 %v1038_v16, 30  ;;  %v10060_v44 = vsel %vm14197_vm2, %v3377_v19, 1326507024  ;;  %v14470_v22 = vand.u32 2147483647, %v8458_v20 }
 0x180   :  { %v10046_v39 = vsel %vm14198_vm12, %v14465_v56, 1326507024  ;;  %14469 = vst [vmem:[#allocation51_spill] sm:$0xff] %v10060_v44  ;;  %v1116_v60 = vsel %vm1112_vm10, %v1096_v47, %v1099_v50  ;;  %v1118_v48 = vsel %vm1114_vm4, %v1102_v17, %v1117_v9  ;;  %v10072_v54 = vand.u32 3, %v654_v15  ;;  %v14473_v16 = vld [vmem:[#allocation7_spill] sm:$0xff] }
 0x181   :  { %14466 = vst [vmem:[#allocation36_spill] sm:$0xff] %v10046_v39  ;;  %14468 = vst [vmem:[#allocation50_spill] sm:$0xff] %v10056_v11  ;;  %vm10064_vm15 = vcmp.le.f32.partialorder %v14470_v22, 0.7853982  ;;  %v10074_v6 = vand.u32 3, %v757_v58  ;;  %v415_v19 = vadd.s32 %v9633_v18, %v9649_v5  ;;  %v431_v14 = vsub.s32 32, %v10019_v40 }
 0x182   :  { %v753_v43 = vsel %vm670_vm5, %v752_v21, %v751_v25  ;;  %v436_v42 = vadd.s32 127, %v435_v57  ;;  %v10083_v26 = vsel %vm10064_vm15, 0, %v446_v49  ;;  %vm7634_vm6 = vcmp.lt.s32.totalorder %v7633_v38, 0  ;;  %v14474_v18 = vld [vmem:[#allocation44_spill] sm:$0xff] }
 0x183   :  { %v1040_v50 = vshll.u32 %v10056_v11, 30  ;;  %v1119_v17 = vsel %vm1113_vm9, %v1116_v60, %v1118_v48  ;;  %v1138_v28 = vadd.s32 1, %v10024_v63  ;;  %v14188_v5 = vand.u32 2147483647, %v14473_v16  ;;  %v14475_v22 = vld [vmem:[#allocation40_spill] sm:$0xff] }
 0x184   :  { %vm1137_vm14 = vc.u32 %v10030_v2, %v10023_v10  ;;  %v789_v25 = vshrl.u32 %v14367_v30, %v14474_v18  ;;  %v792_v37 = vshrl.u32 %v14368_v0, %v14474_v18  ;;  %v795_v9 = vshrl.u32 %v14257_v8, %v14474_v18 }
 0x185   :  { %vm663_vm10 = vcmp.eq.s32.totalorder %v10072_v54, 2  ;;  %v756_v4 = vsel %vm9999_vm1, %v8554_v34, %v753_v43  ;;  %v433_v21 = vshrl.u32 %v415_v19, %v431_v14  ;;  %v10103_v57 = vand.u32 3, %v10083_v26  ;;  %v10105_v56 = vpop.eup %8076 }
 0x186   :  { %v4084_v47 = vadd.s32 3, %v654_v15  ;;  %vm660_vm4 = vcmp.eq.s32.totalorder %v10072_v54, 0  ;;  %v437_v49 = vshll.u32 %v436_v42, 23  ;;  %v788_v60 = vshll.u32 %v14381_v23, %v14475_v22  ;;  %v10114_v43 = vpop.eup %8078 }
 0x187   :  { %v791_v48 = vshll.u32 %v14367_v30, %v14475_v22  ;;  %v794_v51 = vshll.u32 %v14368_v0, %v14475_v22  ;;  %v10117_v19 = vsel %vm7634_vm6, 0, %v7633_v38  ;;  %v1135_v15 = vmul.u32 %v10013_v36, %v1119_v17 }
 0x188   :  { %v1139_v14 = vsel %vm1137_vm14, %v1138_v28, %v10024_v63  ;;  %v778_v42 = vand.u32 8388607, %v14188_v5  ;;  %v10127_v3 = vsub.s32 %v9994_v7, %v1040_v50  ;;  %v10129_v31 = vor.u32 %v789_v25, %v788_v60 }
 0x189   :  { %v10131_v22 = vor.u32 %v792_v37, %v791_v48  ;;  %v796_v44 = vor.u32 %v795_v9, %v794_v51  ;;  %v14189_v38 = vxor.u32 2147483648, %v10105_v56  ;;  %v432_v36 = vshll.u32 %v9851_v27, %v10019_v40 }
 0x18a   :  { %v10136_v17 = vand.u32 3, %v4084_v47  ;;  %v10138_v59 = vadd.s32 3, %v757_v58  ;;  %v661_v63 = vxor.u32 2147483648, %v10114_v43  ;;  %8080 = vcosq.f32 %v756_v4  ;;  %v14476_v58 = vld [vmem:[#allocation57_spill] sm:$0xff] }
 0x18b   :  { %v438_v28 = vor.u32 4788187, %v437_v49  ;;  %v10141_v7 = vadd.s32 %v1139_v14, %v1135_v15  ;;  %v434_v50 = vor.u32 %v433_v21, %v432_v36  ;;  %v538_v25 = vsub.s32 4294967266, %v10117_v19  ;;  %v14477_v49 = vld [vmem:[#allocation53_spill] sm:$0xff] }
 0x18c   :  { %vm803_vm1 = vcmp.lt.s32.totalorder %v8774_v45, 1  ;;  %vm805_vm5 = vcmp.lt.s32.totalorder %v8774_v45, 3  ;;  %v1043_v37 = vsub.s32 0, %v10127_v3  ;;  %v779_v27 = vor.u32 8388608, %v778_v42 }
 0x18d   :  { %v811_v40 = vsel %vm803_vm1, %v10129_v31, %v10131_v22  ;;  %v813_v9 = vsel %vm805_vm5, %v796_v44, %v14476_v58  ;;  %8082 = vsinq.f32 %v756_v4  ;;  %v518_v21 = vadd.s32 %v9706_v55, %v9714_v1 }
 0x18e   :  { %v815_v47 = vsel %vm803_vm1, %v10131_v22, %v796_v44  ;;  %v817_v60 = vsel %vm805_vm5, %v14477_v49, %v8856_v35  ;;  %v10168_v48 = vsel %vm663_vm10, %v14189_v38, %v10114_v43  ;;  %v439_v4 = vand.u32 2147483647, %v438_v28  ;;  %v14478_v28 = vld [vmem:[#allocation8_spill] sm:$0xff]  ;;  %v14479_v49 = vld [vmem:[#allocation47_spill] sm:$0xff] }
 0x18f   :  { %v1141_v51 = vadd.s32 536870912, %v10141_v7  ;;  %vm804_vm9 = vcmp.lt.s32.totalorder %v8774_v45, 2  ;;  %v10175_v55 = vsel %vm660_vm4, %v10105_v56, %v661_v63  ;;  %v441_v1 = vcvt.s32.f32 %v434_v50 }
 0x190   :  { %vm4087_vm6 = vcmp.eq.s32.totalorder %v10136_v17, 0  ;;  %v814_v35 = vsel %vm804_vm9, %v811_v40, %v813_v9  ;;  %v539_v15 = vadd.s32 127, %v538_v25  ;;  %v7652_v14 = vmin.u32 %v1043_v37, %v10127_v3 }
 0x191   :  { %v818_v42 = vsel %vm804_vm9, %v815_v47, %v817_v60  ;;  %v10183_v36 = vshll.u32 %v779_v27, 8  ;;  %v892_v5 = vshrl.u32 %v14367_v30, %v14479_v49  ;;  %v895_v50 = vshrl.u32 %v14368_v0, %v14479_v49  ;;  %v14480_v47 = vld [vmem:[#allocation43_spill] sm:$0xff] }
 0x192   :  { %v898_v38 = vshrl.u32 %v14257_v8, %v14479_v49  ;;  %v442_v40 = vmul.f32 %v441_v1, %v439_v4  ;;  %v10192_v25 = vshrl.u32 %v1141_v51, 30  ;;  %v534_v27 = vsub.s32 32, %v10117_v19 }
 0x193   :  { %v10195_v37 = vmul.u32.u64.low %v10183_v36, %v814_v35  ;;  %v10196_v9 = vmul.u32.u64.high %v10183_v36, %v814_v35, %v10195_v37  ;;  %v891_v60 = vshll.u32 %v14381_v23, %v14480_v47  ;;  %v894_v58 = vshll.u32 %v14367_v30, %v14480_v47 }
 0x194   :  { %v897_v53 = vshll.u32 %v14368_v0, %v14480_v47  ;;  %v10206_v39 = vpop.eup %8080  ;;  %v540_v4 = vshll.u32 %v539_v15, 23  ;;  %v1045_v51 = vclz %v7652_v14  ;;  %vm659_vm14 = vcmp.lt.s32.totalorder %v10072_v54, 2 }
 0x195   :  { %v10209_v1 = vmul.u32.u64.low %v10183_v36, %v818_v42  ;;  %v10210_v35 = vmul.u32.u64.high %v10183_v36, %v818_v42, %v10209_v1  ;;  %vm4086_vm10 = vcmp.lt.s32.totalorder %v10136_v17, 2  ;;  %v14481_v13 = vand.u32 2147483647, %v14478_v28 }
 0x196   :  { %v10216_v16 = vor.u32 %v892_v5, %v891_v60  ;;  %v10218_v41 = vor.u32 %v895_v50, %v894_v58  ;;  %v10220_v47 = vor.u32 %v898_v38, %v897_v53  ;;  %v443_v11 = vxor.u32 2147483648, %v442_v40  ;;  %v14484_v60 = vld [vmem:[#allocation56_spill] sm:$0xff] }
 0x197   :  { %v881_v24 = vand.u32 8388607, %v14481_v13  ;;  %v4089_v15 = vsel %vm4087_vm6, %v10105_v56, %v661_v63  ;;  %vm4090_vm4 = vcmp.eq.s32.totalorder %v10136_v17, 2  ;;  %v1143_v14 = vshll.u32 %v10192_v25, 30  ;;  %v10227_v42 = vpop.eup %8082 }
 0x198   :  { %v535_v13 = vshll.u32 %v9935_v33, %v10117_v19  ;;  %v536_v5 = vshrl.u32 %v518_v21, %v534_v27  ;;  %v787_v58 = vshrl.u32 %v14381_v23, %v14474_v18  ;;  %v808_v53 = vsel %vm806_vm0, %v796_v44, 2102212464  ;;  %v14482_v18 = vld [vmem:[#allocation63_spill] sm:$0xff] }
 0x199   :  { %vm464_vm2 = vcmp.lt.s32.totalorder %v14410_v32, 0  ;;  %v541_v38 = vor.u32 4788187, %v540_v4  ;;  %v7653_v63 = vadd.s32 4294967294, %v1045_v51  ;;  %vm906_vm6 = vcmp.lt.s32.totalorder %v8805_v61, 1 }
 0x19a   :  { %vm908_vm12 = vcmp.lt.s32.totalorder %v8805_v61, 3  ;;  %v807_v33 = vsel %vm803_vm1, %v787_v58, %v10129_v31  ;;  %v882_v19 = vor.u32 8388608, %v881_v24  ;;  %v914_v44 = vsel %vm906_vm6, %v10216_v16, %v10218_v41  ;;  %v14483_v24 = vld [vmem:[#allocation66_spill] sm:$0xff] }
 0x19b   :  { %v916_v21 = vsel %vm908_vm12, %v10220_v47, %v14482_v18  ;;  %v10251_v50 = vsub.s32 %v10141_v7, %v1143_v14  ;;  %v809_v27 = vsel %vm805_vm5, %v10131_v22, %v808_v53  ;;  %v918_v31 = vsel %vm906_vm6, %v10218_v41, %v10220_v47 }
 0x19c   :  { %v920_v4 = vsel %vm908_vm12, %v14484_v60, %v14483_v24  ;;  %v14485_v51 = vand.u32 2147483647, %v14410_v32  ;;  %v537_v7 = vor.u32 %v536_v5, %v535_v13  ;;  %v14488_v22 = vxor.u32 2147483648, %v10105_v56 }
 0x19d   :  { %v829_v58 = vadd.s32 1, %v10196_v9  ;;  %vm907_vm1 = vcmp.lt.s32.totalorder %v8805_v61, 2  ;;  %v444_v53 = vsel %vm361_vm13, %v443_v11, %v442_v40  ;;  %v548_v18 = vsub.s32 4, %v9874_v62 }
 0x19e   :  { %vm10266_vm0 = vcmp.le.f32.partialorder %v14485_v51, 0.7853982  ;;  %v4092_v14 = vsel %vm4090_vm4, %v14488_v22, %v10114_v43  ;;  %vm828_vm5 = vc.u32 %v10210_v35, %v10195_v37  ;;  %v917_v13 = vsel %vm907_vm1, %v914_v44, %v916_v21  ;;  %v10304_v21 = vpop.permute.xlu1 %3662 }
 0x19f   :  { %v542_v5 = vand.u32 2147483647, %v541_v38  ;;  %v810_v56 = vsel %vm804_vm9, %v807_v33, %v809_v27  ;;  %v921_v43 = vsel %vm907_vm1, %v918_v31, %v920_v4  ;;  %v10288_v24 = vshll.u32 %v882_v19, 8 }
 0x1a0   :  { %v666_v11 = vsel %vm659_vm14, %v10175_v55, %v10168_v48  ;;  %v4093_v40 = vsel %vm4086_vm10, %v4089_v15, %v4092_v14  ;;  %vm7654_vm13 = vcmp.lt.s32.totalorder %v7653_v63, 0  ;;  %v1146_v44 = vsub.s32 0, %v10251_v50 }
 0x1a1   :  { %vm766_vm4 = vcmp.eq.s32.totalorder %v10074_v6, 2  ;;  %v544_v45 = vcvt.s32.f32 %v537_v7  ;;  %v830_v38 = vsel %vm828_vm5, %v829_v58, %v10196_v9  ;;  %v447_v54 = vsel %vm10064_vm15, %v8458_v20, %v444_v53 }
 0x1a2   :  { %v10300_v33 = vmul.u32.u64.low %v10288_v24, %v917_v13  ;;  %v10301_v19 = vmul.u32.u64.high %v10288_v24, %v917_v13, %v10300_v33  ;;  %v826_v17 = vmul.u32 %v10183_v36, %v810_v56  ;;  %vm763_vm9 = vcmp.eq.s32.totalorder %v10074_v6, 0  ;;  %v10345_v58 = vpop.permute.xlu1 %7118 }
 0x1a3   :  { %v10311_v48 = vmul.u32.u64.low %v10288_v24, %v921_v43  ;;  %v10312_v55 = vmul.u32.u64.high %v10288_v24, %v921_v43, %v10311_v48  ;;  %v545_v9 = vmul.f32 %v544_v45, %v542_v5  ;;  %v549_v15 = vsel %vm464_vm2, %v548_v18, %v9874_v62 }
 0x1a4   :  { %v10319_v27 = vand.u32 3, %v10138_v59  ;;  %v10321_v31 = vsel %vm7654_vm13, 0, %v7653_v63  ;;  %v667_v12 = vsel %vm657_vm11, nan, %v666_v11  ;;  %v3876_v36 = vadd.s32 3, %v10083_v26 }
 0x1a5   :  { %v7656_v60 = vmin.u32 %v1146_v44, %v10251_v50  ;;  %v10327_v4 = vadd.s32 %v830_v38, %v826_v17  ;;  %v767_v51 = vxor.u32 2147483648, %v10206_v39  ;;  %8084 = vcosq.f32 %v447_v54 }
 0x1a6   :  { %v4094_v62 = vsel %vm657_vm11, nan, %v4093_v40  ;;  %v911_v59 = vsel %vm909_vm3, %v10220_v47, 2102212464  ;;  %8086 = vsinq.f32 %v447_v54  ;;  %v551_v63 = vsel %vm10266_vm0, 0, %v549_v15 }
 0x1a7   :  { %v1053_v26 = vsub.s32 4294967266, %v10321_v31  ;;  %v890_v7 = vshrl.u32 %v14381_v23, %v14479_v49  ;;  %v764_v22 = vxor.u32 2147483648, %v10227_v42  ;;  %v10342_v14 = vmul.f32 %v10304_v21, %v667_v12 }
 0x1a8   :  { %v546_v29 = vxor.u32 2147483648, %v545_v9  ;;  %vm4194_vm11 = vcmp.eq.s32.totalorder %v10319_v27, 2  ;;  %v1148_v47 = vclz %v7656_v60  ;;  %v832_v53 = vadd.s32 536870912, %v10327_v4 }
 0x1a9   :  { %14489 = vst [vmem:[#allocation45_spill] sm:$0xff] %v10342_v14  ;;  %v910_v18 = vsel %vm906_vm6, %v890_v7, %v10216_v16  ;;  %v912_v49 = vsel %vm908_vm12, %v10218_v41, %v911_v59  ;;  %vm762_vm3 = vcmp.lt.s32.totalorder %v10074_v6, 2  ;;  %v10355_v13 = vand.u32 3, %v551_v63  ;;  %v14493_v59 = vld [vmem:[#allocation49_spill] sm:$0xff] }
 0x1aa   :  { %vm4191_vm15 = vcmp.eq.s32.totalorder %v10319_v27, 0  ;;  %v10359_v5 = vmul.f32 %v10345_v58, %v4094_v62  ;;  %v10361_v56 = vand.u32 3, %v3876_v36  ;;  %v932_v43 = vadd.s32 1, %v10301_v19  ;;  %v14492_v36 = vld [vmem:[#allocation54_spill] sm:$0xff] }
 0x1ab   :  { %v768_v16 = vsel %vm766_vm4, %v767_v51, %v10227_v42  ;;  %v1049_v11 = vsub.s32 32, %v10321_v31  ;;  %v1054_v41 = vadd.s32 127, %v1053_v26  ;;  %vm931_vm12 = vc.u32 %v10312_v55, %v10300_v33 }
 0x1ac   :  { %14490 = vst [vmem:[#allocation44_spill] sm:$0xff] %v10359_v5  ;;  %v547_v40 = vsel %vm464_vm2, %v546_v29, %v545_v9  ;;  %v4196_v44 = vsel %vm4194_vm11, %v767_v51, %v10227_v42  ;;  %v10375_v45 = vadd.s32 3, %v551_v63  ;;  %v913_v38 = vsel %vm907_vm1, %v910_v18, %v912_v49  ;;  %v14491_v42 = vld [vmem:[#allocation9_spill] sm:$0xff] }
 0x1ad   :  { %v765_v54 = vsel %vm763_vm9, %v10206_v39, %v764_v22  ;;  %v1033_v17 = vadd.s32 %v9890_v46, %v9887_v52  ;;  %v7657_v48 = vadd.s32 4294967294, %v1148_v47  ;;  %v10384_v15 = vshrl.u32 %v832_v53, 30 }
 0x1ae   :  { %vm4190_vm2 = vcmp.lt.s32.totalorder %v10319_v27, 2  ;;  %v933_v9 = vsel %vm931_vm12, %v932_v43, %v10301_v19  ;;  %v14201_v12 = vand.u32 2147483647, %v14491_v42  ;;  %v1407_v61 = vshrl.u32 %v14367_v30, %v14492_v36 }
 0x1af   :  { %v1410_v60 = vshrl.u32 %v14368_v0, %v14492_v36  ;;  %vm454_vm14 = vcmp.eq.s32.totalorder %v10103_v57, 0  ;;  %vm457_vm10 = vcmp.eq.s32.totalorder %v10103_v57, 2  ;;  %v550_v46 = vsel %vm10266_vm0, %v14410_v32, %v547_v40  ;;  %v8085_v62 = vpop.eup %8084 }
 0x1b0   :  { %vm3882_vm6 = vcmp.eq.s32.totalorder %v10361_v56, 2  ;;  %v1051_v52 = vshrl.u32 %v1033_v17, %v1049_v11  ;;  %v1055_v19 = vshll.u32 %v1054_v41, 23  ;;  %v929_v51 = vmul.u32 %v10288_v24, %v913_v38  ;;  %v8087_v29 = vpop.eup %8086 }
 0x1b1   :  { %vm3879_vm1 = vcmp.eq.s32.totalorder %v10361_v56, 0  ;;  %v1406_v63 = vshll.u32 %v14381_v23, %v14493_v59  ;;  %v1409_v26 = vshll.u32 %v14367_v30, %v14493_v59  ;;  %v1412_v7 = vshll.u32 %v14368_v0, %v14493_v59 }
 0x1b2   :  { %v1413_v1 = vshrl.u32 %v14257_v8, %v14492_v36  ;;  %v1050_v47 = vshll.u32 %v10127_v3, %v10321_v31  ;;  %vm7658_vm0 = vcmp.lt.s32.totalorder %v7657_v48, 0  ;;  %v834_v24 = vshll.u32 %v10384_v15, 30 }
 0x1b3   :  { %v10412_v53 = vadd.s32 %v933_v9, %v929_v51  ;;  %vm760_vm5 = vweird.f32 %v8554_v34  ;;  %v1396_v18 = vand.u32 8388607, %v14201_v12  ;;  %v10417_v49 = vor.u32 %v1407_v61, %v1406_v63  ;;  %v14495_v61 = vld [vmem:[#allocation68_spill] sm:$0xff]  ;;  %v10495_v34 = vpop.permute.xlu0 %3657  ;;  %v14525_v12 = vld [vmem:[#allocation59_spill] sm:$0xff] }
 0x1b4   :  { %v10419_v43 = vor.u32 %v1410_v60, %v1409_v26  ;;  %v10421_v11 = vor.u32 %v1413_v1, %v1412_v7  ;;  %v769_v41 = vsel %vm762_vm3, %v765_v54, %v768_v16  ;;  %vm453_vm13 = vcmp.lt.s32.totalorder %v10103_v57, 2  ;;  %v14494_v16 = vld [vmem:[#allocation58_spill] sm:$0xff] }
 0x1b5   :  { %8088 = vcosq.f32 %v550_v46  ;;  %v4193_v3 = vsel %vm4191_vm15, %v10206_v39, %v764_v22  ;;  %vm3878_vm4 = vcmp.lt.s32.totalorder %v10361_v56, 2  ;;  %v1056_v31 = vor.u32 4788187, %v1055_v19  ;;  %v14497_v19 = vld [vmem:[#allocation62_spill] sm:$0xff] }
 0x1b6   :  { %v455_v40 = vxor.u32 2147483648, %v8087_v29  ;;  %v458_v38 = vxor.u32 2147483648, %v8085_v62  ;;  %8090 = vsinq.f32 %v550_v46  ;;  %v1052_v17 = vor.u32 %v1051_v52, %v1050_v47  ;;  %v14496_v52 = vld [vmem:[#allocation69_spill] sm:$0xff] }
 0x1b7   :  { %v10431_v9 = vsel %vm7658_vm0, 0, %v7657_v48  ;;  %v10434_v6 = vsub.s32 %v10327_v4, %v834_v24  ;;  %vm1421_vm9 = vcmp.lt.s32.totalorder %v14494_v16, 1  ;;  %vm1423_vm11 = vcmp.lt.s32.totalorder %v14494_v16, 3  ;;  %v14498_v47 = vld [vmem:[#allocation5_spill] sm:$0xff] }
 0x1b8   :  { %v935_v54 = vadd.s32 536870912, %v10412_v53  ;;  %v1397_v39 = vor.u32 8388608, %v1396_v18  ;;  %v1429_v22 = vsel %vm1421_vm9, %v10417_v49, %v10419_v43  ;;  %v1431_v48 = vsel %vm1423_vm11, %v10421_v11, %v14495_v61 }
 0x1b9   :  { %vm451_vm3 = vweird.f32 %v8458_v20  ;;  %v4197_v4 = vsel %vm4190_vm2, %v4193_v3, %v4196_v44  ;;  %v1057_v60 = vand.u32 2147483647, %v1056_v31  ;;  %v1433_v46 = vsel %vm1421_vm9, %v10419_v43, %v10421_v11  ;;  %v10536_v20 = vpop.permute.xlu0 %7113 }
 0x1ba   :  { %v1435_v51 = vsel %vm1423_vm11, %v14497_v19, %v14496_v52  ;;  %v456_v59 = vsel %vm454_vm14, %v8085_v62, %v455_v40  ;;  %v459_v63 = vsel %vm457_vm10, %v458_v38, %v8087_v29  ;;  %v3884_v27 = vsel %vm3882_vm6, %v458_v38, %v8087_v29 }
 0x1bb   :  { %vm1422_vm15 = vcmp.lt.s32.totalorder %v14494_v16, 2  ;;  %v3881_v44 = vsel %vm3879_vm1, %v8085_v62, %v455_v40  ;;  %v1059_v26 = vcvt.s32.f32 %v1052_v17  ;;  %v1156_v7 = vsub.s32 4294967266, %v10431_v9 }
 0x1bc   :  { %v1432_v1 = vsel %vm1422_vm15, %v1429_v22, %v1431_v48  ;;  %vm979_vm12 = vcmp.lt.s32.totalorder %v14498_v47, 0  ;;  %v837_v24 = vsub.s32 0, %v10434_v6  ;;  %v10472_v18 = vshrl.u32 %v935_v54, 30 }
 0x1bd   :  { %v1436_v29 = vsel %vm1422_vm15, %v1433_v46, %v1435_v51  ;;  %v10476_v3 = vshll.u32 %v1397_v39, 8  ;;  %v770_v62 = vsel %vm760_vm5, nan, %v769_v41  ;;  %v4198_v31 = vsel %vm760_vm5, nan, %v4197_v4 }
 0x1be   :  { %v10483_v40 = vand.u32 3, %v10375_v45  ;;  %v1060_v38 = vmul.f32 %v1059_v26, %v1057_v60  ;;  %v460_v17 = vsel %vm453_vm13, %v456_v59, %v459_v63  ;;  %vm557_vm2 = vcmp.eq.s32.totalorder %v10355_v13, 0 }
 0x1bf   :  { %v3885_v54 = vsel %vm3878_vm4, %v3881_v44, %v3884_v27  ;;  %v10491_v39 = vmul.u32.u64.low %v10476_v3, %v1432_v1  ;;  %v10492_v22 = vmul.u32.u64.high %v10476_v3, %v1432_v1, %v10491_v39  ;;  %v8089_v41 = vpop.eup %8088  ;;  %v14499_v45 = vand.u32 2147483647, %v14498_v47 }
 0x1c0   :  { %v1152_v57 = vsub.s32 32, %v10431_v9  ;;  %v1157_v48 = vadd.s32 127, %v1156_v7  ;;  %v10505_v56 = vmul.u32.u64.low %v10476_v3, %v1436_v29  ;;  %v10506_v4 = vmul.u32.u64.high %v10476_v3, %v1436_v29, %v10505_v56  ;;  %v8091_v60 = vpop.eup %8090 }
 0x1c1   :  { %vm10499_vm14 = vcmp.le.f32.partialorder %v14499_v45, 0.7853982  ;;  %v10509_v46 = vmul.f32 %v10304_v21, %v770_v62  ;;  %vm560_vm10 = vcmp.eq.s32.totalorder %v10355_v13, 2  ;;  %v7644_v52 = vmin.u32 %v837_v24, %v10434_v6 }
 0x1c2   :  { %v937_v19 = vshll.u32 %v10472_v18, 30  ;;  %vm556_vm6 = vcmp.lt.s32.totalorder %v10355_v13, 2  ;;  %v10516_v51 = vmul.f32 %v10345_v58, %v4198_v31  ;;  %vm3983_vm1 = vcmp.eq.s32.totalorder %v10483_v40, 0 }
 0x1c3   :  { %v1061_v59 = vxor.u32 2147483648, %v1060_v38  ;;  %v1136_v63 = vadd.s32 %v10023_v10, %v10030_v2  ;;  %v461_v21 = vsel %vm451_vm3, nan, %v460_v17  ;;  %v561_v27 = vxor.u32 2147483648, %v8089_v41  ;;  %v14503_v10 = vld [vmem:[#allocation50_spill] sm:$0xff] }
 0x1c4   :  { %14502 = vst [vmem:[#allocation40_spill] sm:$0xff] %v10516_v51  ;;  %v3886_v44 = vsel %vm451_vm3, nan, %v3885_v54  ;;  %v1426_v26 = vsel %vm1424_vm7, %v10421_v11, 2102212464  ;;  %v558_v7 = vxor.u32 2147483648, %v8091_v60  ;;  %v1158_v1 = vshll.u32 %v1157_v48, 23 }
 0x1c5   :  { %v1154_v58 = vshrl.u32 %v1136_v63, %v1152_v57  ;;  %v1405_v24 = vshrl.u32 %v14381_v23, %v14492_v36  ;;  %vm3986_vm0 = vcmp.eq.s32.totalorder %v10483_v40, 2  ;;  %v1063_v2 = vsub.s32 4, %v14503_v10  ;;  %v14507_v63 = vld [vmem:[#allocation7_spill] sm:$0xff] }
 0x1c6   :  { %v839_v29 = vclz %v7644_v52  ;;  %v10533_v62 = vsub.s32 %v10412_v53, %v937_v19  ;;  %vm554_vm5 = vweird.f32 %v14410_v32  ;;  %vm3982_vm7 = vcmp.lt.s32.totalorder %v10483_v40, 2 }
 0x1c7   :  { %v1062_v11 = vsel %vm979_vm12, %v1061_v59, %v1060_v38  ;;  %v1153_v36 = vshll.u32 %v10251_v50, %v10431_v9  ;;  %v1425_v31 = vsel %vm1421_vm9, %v1405_v24, %v10417_v49  ;;  %v1427_v53 = vsel %vm1423_vm11, %v10419_v43, %v1426_v26  ;;  %v14506_v59 = vld [vmem:[#allocation6_spill] sm:$0xff] }
 0x1c8   :  { %v562_v17 = vsel %vm560_vm10, %v561_v27, %v8091_v60  ;;  %v10552_v54 = vmul.f32 %v10495_v34, %v461_v21  ;;  %v10555_v45 = vmul.f32 %v10536_v20, %v3886_v44  ;;  %v1447_v38 = vadd.s32 1, %v10492_v22 }
 0x1c9   :  { %v559_v50 = vsel %vm557_vm2, %v8089_v41, %v558_v7  ;;  %v1155_v9 = vor.u32 %v1154_v58, %v1153_v36  ;;  %v1159_v49 = vor.u32 4788187, %v1158_v1  ;;  %vm1446_vm13 = vc.u32 %v10506_v4, %v10491_v39 }
 0x1ca   :  { %14504 = vst [vmem:[#allocation57_spill] sm:$0xff] %v10552_v54  ;;  %14505 = vst [vmem:[#allocation53_spill] sm:$0xff] %v10555_v45  ;;  %v1065_v43 = vsel %vm10499_vm14, %v14498_v47, %v1062_v11  ;;  %v7645_v57 = vadd.s32 4294967294, %v839_v29  ;;  %v940_v48 = vsub.s32 0, %v10533_v62  ;;  %v1428_v56 = vsel %vm1422_vm15, %v1425_v31, %v1427_v53  ;;  %v14512_v29 = vld [vmem:[#allocation55_spill] sm:$0xff] }
 0x1cb   :  { %v3988_v52 = vsel %vm3986_vm0, %v561_v27, %v8091_v60  ;;  %v1064_v19 = vsel %vm979_vm12, %v1063_v2, %v14503_v10  ;;  %vm1082_vm4 = vcmp.lt.s32.totalorder %v14506_v59, 0  ;;  %vm773_vm9 = vcmp.lt.s32.totalorder %v14507_v63, 0 }
 0x1cc   :  { %v563_v21 = vsel %vm556_vm6, %v559_v50, %v562_v17  ;;  %v3985_v44 = vsel %vm3983_vm1, %v8089_v41, %v558_v7  ;;  %v14508_v16 = vand.u32 2147483647, %v14506_v59  ;;  %v1166_v60 = vsub.s32 4, %v10192_v25  ;;  %v14511_v7 = vld [vmem:[#allocation10_spill] sm:$0xff]  ;;  %v14513_v50 = vld [vmem:[#allocation52_spill] sm:$0xff] }
 0x1cd   :  { %v1448_v27 = vsel %vm1446_vm13, %v1447_v38, %v10492_v22  ;;  %8092 = vcosq.f32 %v1065_v43  ;;  %v1160_v58 = vand.u32 2147483647, %v1159_v49  ;;  %v1162_v1 = vcvt.s32.f32 %v1155_v9 }
 0x1ce   :  { %vm10581_vm11 = vcmp.le.f32.partialorder %v14508_v16, 0.7853982  ;;  %v1444_v24 = vmul.u32 %v10476_v3, %v1428_v56  ;;  %vm7646_vm3 = vcmp.lt.s32.totalorder %v7645_v57, 0  ;;  %v857_v13 = vsub.s32 4, %v10384_v15 }
 0x1cf   :  { %v7648_v41 = vmin.u32 %v940_v48, %v10533_v62  ;;  %v14200_v10 = vand.u32 2147483647, %v14511_v7  ;;  %v1510_v11 = vshrl.u32 %v14367_v30, %v14512_v29  ;;  %v1513_v22 = vshrl.u32 %v14368_v0, %v14512_v29 }
 0x1d0   :  { %v10591_v2 = vadd.s32 %v1448_v27, %v1444_v24  ;;  %v1516_v36 = vshrl.u32 %v14257_v8, %v14512_v29  ;;  %v564_v3 = vsel %vm554_vm5, nan, %v563_v21  ;;  %v3989_v31 = vsel %vm3982_vm7, %v3985_v44, %v3988_v52 }
 0x1d1   :  { %v1066_v53 = vsel %vm10499_vm14, 0, %v1064_v19  ;;  %v1167_v17 = vsel %vm1082_vm4, %v1166_v60, %v10192_v25  ;;  %v1163_v38 = vmul.f32 %v1162_v1, %v1160_v58  ;;  %v1509_v9 = vshll.u32 %v14381_v23, %v14513_v50 }
 0x1d2   :  { %v1512_v49 = vshll.u32 %v14367_v30, %v14513_v50  ;;  %v1515_v48 = vshll.u32 %v14368_v0, %v14513_v50  ;;  %v10615_v40 = vsel %vm7646_vm3, 0, %v7645_v57  ;;  %v858_v61 = vsel %vm773_vm9, %v857_v13, %v10384_v15  ;;  %v14518_v13 = vld [vmem:[#allocation61_spill] sm:$0xff] }
 0x1d3   :  { %v942_v56 = vclz %v7648_v41  ;;  %v1499_v25 = vand.u32 8388607, %v14200_v10  ;;  %v1450_v52 = vadd.s32 536870912, %v10591_v2  ;;  %v10623_v19 = vor.u32 %v1510_v11, %v1509_v9 }
 0x1d4   :  { %v10625_v21 = vor.u32 %v1513_v22, %v1512_v49  ;;  %v10627_v44 = vor.u32 %v1516_v36, %v1515_v48  ;;  %v3990_v57 = vsel %vm554_vm5, nan, %v3989_v31  ;;  %8094 = vsinq.f32 %v1065_v43  ;;  %v14519_v36 = vld [vmem:[#allocation70_spill] sm:$0xff] }
 0x1d5   :  { %v10631_v16 = vand.u32 3, %v1066_v53  ;;  %v14514_v15 = vand.u32 2147483647, %v14507_v63  ;;  %v10640_v27 = vmul.f32 %v10495_v34, %v564_v3  ;;  %v1164_v58 = vxor.u32 2147483648, %v1163_v38 }
 0x1d6   :  { %v1169_v1 = vsel %vm10581_vm11, 0, %v1167_v17  ;;  %v847_v43 = vsub.s32 4294967266, %v10615_v40  ;;  %v7649_v24 = vadd.s32 4294967294, %v942_v56  ;;  %vm1524_vm12 = vcmp.lt.s32.totalorder %v14518_v13, 1 }
 0x1d7   :  { %vm10635_vm15 = vcmp.le.f32.partialorder %v14514_v15, 0.7853982  ;;  %14517 = vst [vmem:[#allocation8_spill] sm:$0xff] %v10640_v27  ;;  %vm1526_vm2 = vcmp.lt.s32.totalorder %v14518_v13, 3  ;;  %v10651_v41 = vpop.eup %8092  ;;  %v10653_v11 = vshrl.u32 %v1450_v52, 30  ;;  %v1500_v34 = vor.u32 8388608, %v1499_v25 }
 0x1d8   :  { %v10646_v32 = vsel %vm10635_vm15, 0, %v858_v61  ;;  %v1532_v22 = vsel %vm1524_vm12, %v10623_v19, %v10625_v21  ;;  %v1534_v3 = vsel %vm1526_vm2, %v10627_v44, %v14519_v36  ;;  %v10664_v31 = vmul.f32 %v10536_v20, %v3990_v57  ;;  %v14521_v20 = vld [vmem:[#allocation77_spill] sm:$0xff]  ;;  %v14522_v61 = vld [vmem:[#allocation64_spill] sm:$0xff]  ;;  %v14523_v15 = vld [vmem:[#allocation11_spill] sm:$0xff] }
 0x1d9   :  { %vm1075_vm14 = vcmp.eq.s32.totalorder %v10631_v16, 2  ;;  %v10667_v17 = vand.u32 3, %v1169_v1  ;;  %v827_v50 = vadd.s32 %v10195_v37, %v10210_v35  ;;  %v10672_v9 = vand.u32 3, %v10646_v32 }
 0x1da   :  { %14520 = vst [vmem:[#allocation47_spill] sm:$0xff] %v10664_v31  ;;  %v4500_v49 = vadd.s32 3, %v1066_v53  ;;  %vm1525_vm10 = vcmp.lt.s32.totalorder %v14518_v13, 2  ;;  %v1536_v48 = vsel %vm1524_vm12, %v10625_v21, %v10627_v44  ;;  %v1538_v56 = vsel %vm1526_vm2, %v14522_v61, %v14521_v20  ;;  %v14524_v20 = vld [vmem:[#allocation65_spill] sm:$0xff] }
 0x1db   :  { %v1165_v37 = vsel %vm1082_vm4, %v1164_v58, %v1163_v38  ;;  %v848_v35 = vadd.s32 127, %v847_v43  ;;  %v1535_v53 = vsel %vm1525_vm10, %v1532_v22, %v1534_v3  ;;  %vm7650_vm6 = vcmp.lt.s32.totalorder %v7649_v24, 0 }
 0x1dc   :  { %v1452_v52 = vshll.u32 %v10653_v11, 30  ;;  %v10689_v57 = vshll.u32 %v1500_v34, 8  ;;  %v1539_v10 = vsel %vm1525_vm10, %v1536_v48, %v1538_v56  ;;  %v1201_v61 = vshrl.u32 %v14367_v30, %v14524_v20 }
 0x1dd   :  { %v1204_v38 = vshrl.u32 %v14368_v0, %v14524_v20  ;;  %v1207_v58 = vshrl.u32 %v14257_v8, %v14524_v20  ;;  %vm1072_vm1 = vcmp.eq.s32.totalorder %v10631_v16, 0  ;;  %v1168_v43 = vsel %vm10581_vm11, %v14506_v59, %v1165_v37 }
 0x1de   :  { %v843_v34 = vsub.s32 32, %v10615_v40  ;;  %v10706_v22 = vmul.u32.u64.low %v10689_v57, %v1535_v53  ;;  %v10707_v3 = vmul.u32.u64.high %v10689_v57, %v1535_v53, %v10706_v22  ;;  %v10710_v48 = vpop.eup %8094  ;;  %v849_v56 = vshll.u32 %v848_v35, 23 }
 0x1df   :  { %v1200_v25 = vshll.u32 %v14381_v23, %v14525_v12  ;;  %v1203_v36 = vshll.u32 %v14367_v30, %v14525_v12  ;;  %v1206_v26 = vshll.u32 %v14368_v0, %v14525_v12  ;;  %v10719_v37 = vsel %vm7650_vm6, 0, %v7649_v24 }
 0x1e0   :  { %v10722_v45 = vsub.s32 %v10591_v2, %v1452_v52  ;;  %v10725_v53 = vmul.u32.u64.low %v10689_v57, %v1539_v10  ;;  %v10726_v54 = vmul.u32.u64.high %v10689_v57, %v1539_v10, %v10725_v53  ;;  %vm1071_vm0 = vcmp.lt.s32.totalorder %v10631_v16, 2 }
 0x1e1   :  { %v14526_v35 = vand.u32 2147483647, %v14523_v15  ;;  %v10731_v14 = vor.u32 %v1201_v61, %v1200_v25  ;;  %v10733_v31 = vor.u32 %v1204_v38, %v1203_v36  ;;  %v1208_v12 = vor.u32 %v1207_v58, %v1206_v26  ;;  %v14528_v38 = vld [vmem:[#allocation71_spill] sm:$0xff] }
 0x1e2   :  { %v1073_v24 = vxor.u32 2147483648, %v10710_v48  ;;  %v14527_v2 = vxor.u32 2147483648, %v10651_v41  ;;  %8096 = vcosq.f32 %v1168_v43  ;;  %v4604_v10 = vadd.s32 3, %v1169_v1 }
 0x1e3   :  { %v1190_v5 = vand.u32 8388607, %v14526_v35  ;;  %v844_v53 = vshll.u32 %v10434_v6, %v10615_v40  ;;  %v845_v27 = vshrl.u32 %v827_v50, %v843_v34  ;;  %v850_v35 = vor.u32 4788187, %v849_v56  ;;  %v14529_v40 = vld [vmem:[#allocation79_spill] sm:$0xff]  ;;  %v14530_v34 = vld [vmem:[#allocation81_spill] sm:$0xff] }
 0x1e4   :  { %v1077_v52 = vsel %vm1075_vm14, %v14527_v2, %v10710_v48  ;;  %v1529_v25 = vsel %vm1527_vm8, %v10627_v44, 2102212464  ;;  %v950_v36 = vsub.s32 4294967266, %v10719_v37  ;;  %v1508_v61 = vshrl.u32 %v14381_v23, %v14512_v29  ;;  %v14531_v56 = vld [vmem:[#allocation74_spill] sm:$0xff] }
 0x1e5   :  { %vm1215_vm5 = vcmp.lt.s32.totalorder %v14528_v38, 1  ;;  %vm1217_vm7 = vcmp.lt.s32.totalorder %v14528_v38, 3  ;;  %v1455_v1 = vsub.s32 0, %v10722_v45  ;;  %v1191_v58 = vor.u32 8388608, %v1190_v5 }
 0x1e6   :  { %v1223_v6 = vsel %vm1215_vm5, %v10731_v14, %v10733_v31  ;;  %v1225_v44 = vsel %vm1217_vm7, %v1208_v12, %v14529_v40  ;;  %vm1069_vm8 = vweird.f32 %v14498_v47  ;;  %v1528_v29 = vsel %vm1524_vm12, %v1508_v61, %v10623_v19 }
 0x1e7   :  { %v1530_v50 = vsel %vm1526_vm2, %v10625_v21, %v1529_v25  ;;  %v1227_v5 = vsel %vm1215_vm5, %v10733_v31, %v1208_v12  ;;  %v1229_v26 = vsel %vm1217_vm7, %v14531_v56, %v14530_v34  ;;  %v1074_v2 = vsel %vm1072_vm1, %v10651_v41, %v1073_v24 }
 0x1e8   :  { %v4501_v40 = vand.u32 3, %v4500_v49  ;;  %v1550_v19 = vadd.s32 1, %v10707_v3  ;;  %vm1216_vm13 = vcmp.lt.s32.totalorder %v14528_v38, 2  ;;  %v846_v61 = vor.u32 %v845_v27, %v844_v53 }
 0x1e9   :  { %v951_v21 = vadd.s32 127, %v950_v36  ;;  %vm1549_vm4 = vc.u32 %v10726_v54, %v10706_v22  ;;  %v1226_v25 = vsel %vm1216_vm13, %v1223_v6, %v1225_v44  ;;  %v7668_v51 = vmin.u32 %v1455_v1, %v10722_v45 }
 0x1ea   :  { %v1531_v34 = vsel %vm1525_vm10, %v1528_v29, %v1530_v50  ;;  %v1230_v49 = vsel %vm1216_vm13, %v1227_v5, %v1229_v26  ;;  %v10787_v56 = vshll.u32 %v1191_v58, 8  ;;  %v1078_v27 = vsel %vm1071_vm0, %v1074_v2, %v1077_v52 }
 0x1eb   :  { %8098 = vsinq.f32 %v1168_v43  ;;  %v851_v53 = vand.u32 2147483647, %v850_v35  ;;  %v930_v36 = vadd.s32 %v10300_v33, %v10312_v55  ;;  %v946_v6 = vsub.s32 32, %v10719_v37 }
 0x1ec   :  { %v1551_v1 = vsel %vm1549_vm4, %v1550_v19, %v10707_v3  ;;  %v10796_v13 = vmul.u32.u64.low %v10787_v56, %v1226_v25  ;;  %v10797_v44 = vmul.u32.u64.high %v10787_v56, %v1226_v25, %v10796_v13  ;;  %v10800_v29 = vpop.eup %8096  ;;  %v853_v58 = vcvt.s32.f32 %v846_v61  ;;  %v10830_v25 = vpop.permute.xlu1 %3672 }
 0x1ed   :  { %v1547_v16 = vmul.u32 %v10689_v57, %v1531_v34  ;;  %v10804_v43 = vmul.u32.u64.low %v10787_v56, %v1230_v49  ;;  %v10805_v52 = vmul.u32.u64.high %v10787_v56, %v1230_v49, %v10804_v43  ;;  %v952_v35 = vshll.u32 %v951_v21, 23 }
 0x1ee   :  { %vm4503_vm11 = vcmp.eq.s32.totalorder %v4501_v40, 0  ;;  %v1457_v33 = vclz %v7668_v51  ;;  %vm14532_vm3 = vcmp.lt.s32.totalorder %v14528_v38, 4  ;;  %v854_v3 = vmul.f32 %v853_v58, %v851_v53  ;;  %v14534_v53 = vld [vmem:[#allocation12_spill] sm:$0xff] }
 0x1ef   :  { %v1220_v55 = vsel %vm14532_vm3, %v1208_v12, 2102212464  ;;  %vm4506_vm12 = vcmp.eq.s32.totalorder %v4501_v40, 2  ;;  %v10809_v50 = vadd.s32 %v1551_v1, %v1547_v16  ;;  %v1199_v5 = vshrl.u32 %v14381_v23, %v14524_v20 }
 0x1f0   :  { %v1079_v57 = vsel %vm1069_vm8, nan, %v1078_v27  ;;  %v948_v26 = vshrl.u32 %v930_v36, %v946_v6  ;;  %v4505_v2 = vsel %vm4503_vm11, %v10651_v41, %v1073_v24  ;;  %v14533_v19 = vxor.u32 2147483648, %v10651_v41 }
 0x1f1   :  { %v10819_v61 = vand.u32 3, %v4604_v10  ;;  %v10822_v12 = vadd.s32 3, %v10646_v32  ;;  %v1219_v21 = vsel %vm1215_vm5, %v1199_v5, %v10731_v14  ;;  %v1221_v20 = vsel %vm1217_vm7, %v10733_v31, %v1220_v55 }
 0x1f2   :  { %v4508_v51 = vsel %vm4506_vm12, %v14533_v19, %v10710_v48  ;;  %vm1178_vm2 = vcmp.eq.s32.totalorder %v10667_v17, 2  ;;  %v947_v41 = vshll.u32 %v10533_v62, %v10719_v37  ;;  %v953_v48 = vor.u32 4788187, %v952_v35  ;;  %v14536_v35 = vld [vmem:[#allocation60_spill] sm:$0xff] }
 0x1f3   :  { %vm4502_vm14 = vcmp.lt.s32.totalorder %v4501_v40, 2  ;;  %v7669_v24 = vadd.s32 4294967294, %v1457_v33  ;;  %v10836_v32 = vmul.f32 %v10830_v25, %v1079_v57  ;;  %v855_v10 = vxor.u32 2147483648, %v854_v3  ;;  %v14535_v40 = vld [vmem:[#allocation67_spill] sm:$0xff] }
 0x1f4   :  { %vm876_vm10 = vcmp.lt.s32.totalorder %v14478_v28, 0  ;;  %v4509_v14 = vsel %vm4502_vm14, %v4505_v2, %v4508_v51  ;;  %v1553_v34 = vadd.s32 536870912, %v10809_v50  ;;  %v949_v31 = vor.u32 %v948_v26, %v947_v41 }
 0x1f5   :  { %v1222_v49 = vsel %vm1216_vm13, %v1219_v21, %v1221_v20  ;;  %v1241_v27 = vadd.s32 1, %v10797_v44  ;;  %v14204_v62 = vand.u32 2147483647, %v14534_v53  ;;  %v10844_v37 = vpop.eup %8098  ;;  %vm1175_vm6 = vcmp.eq.s32.totalorder %v10667_v17, 0 }
 0x1f6   :  { %vm1240_vm1 = vc.u32 %v10805_v52, %v10796_v13  ;;  %v1304_v36 = vshrl.u32 %v14367_v30, %v14535_v40  ;;  %v1307_v6 = vshrl.u32 %v14368_v0, %v14535_v40  ;;  %v1310_v38 = vshrl.u32 %v14257_v8, %v14535_v40 }
 0x1f7   :  { %v1179_v1 = vxor.u32 2147483648, %v10800_v29  ;;  %v954_v58 = vand.u32 2147483647, %v953_v48  ;;  %v960_v16 = vsub.s32 4, %v10472_v18  ;;  %vm7670_vm0 = vcmp.lt.s32.totalorder %v7669_v24, 0 }
 0x1f8   :  { %v10857_v43 = vshrl.u32 %v1553_v34, 30  ;;  %v1303_v33 = vshll.u32 %v14381_v23, %v14536_v35  ;;  %v1306_v55 = vshll.u32 %v14367_v30, %v14536_v35  ;;  %v1309_v5 = vshll.u32 %v14368_v0, %v14536_v35 }
 0x1f9   :  { %vm1174_vm5 = vcmp.lt.s32.totalorder %v10667_v17, 2  ;;  %v856_v57 = vsel %vm773_vm9, %v855_v10, %v854_v3  ;;  %v956_v26 = vcvt.s32.f32 %v949_v31  ;;  %v1238_v2 = vmul.u32 %v10787_v56, %v1222_v49 }
 0x1fa   :  { %v1242_v19 = vsel %vm1240_vm1, %v1241_v27, %v10797_v44  ;;  %v14537_v51 = vand.u32 2147483647, %v14478_v28  ;;  %vm4607_vm13 = vcmp.eq.s32.totalorder %v10819_v61, 0  ;;  %v1293_v20 = vand.u32 8388607, %v14204_v62 }
 0x1fb   :  { %v10882_v3 = vor.u32 %v1304_v36, %v1303_v33  ;;  %v10884_v41 = vor.u32 %v1307_v6, %v1306_v55  ;;  %v1311_v56 = vor.u32 %v1310_v38, %v1309_v5  ;;  %v1176_v48 = vxor.u32 2147483648, %v10844_v37  ;;  %v14540_v6 = vld [vmem:[#allocation72_spill] sm:$0xff]  ;;  %v14542_v33 = vld [vmem:[#allocation87_spill] sm:$0xff] }
 0x1fc   :  { %vm10875_vm7 = vcmp.le.f32.partialorder %v14537_v51, 0.7853982  ;;  %v957_v10 = vmul.f32 %v956_v26, %v954_v58  ;;  %vm4610_vm9 = vcmp.eq.s32.totalorder %v10819_v61, 2  ;;  %v10889_v44 = vsel %vm7670_vm0, 0, %v7669_v24  ;;  %v14541_v58 = vld [vmem:[#allocation82_spill] sm:$0xff]  ;;  %v14543_v55 = vld [vmem:[#allocation76_spill] sm:$0xff] }
 0x1fd   :  { %vm1172_vm4 = vweird.f32 %v14506_v59  ;;  %v1180_v34 = vsel %vm1178_vm2, %v1179_v1, %v10844_v37  ;;  %v4510_v31 = vsel %vm1069_vm8, nan, %v4509_v14  ;;  %v1555_v49 = vshll.u32 %v10857_v43, 30 }
 0x1fe   :  { %v10898_v27 = vadd.s32 %v1242_v19, %v1238_v2  ;;  %v859_v36 = vsel %vm10635_vm15, %v14507_v63, %v856_v57  ;;  %v961_v24 = vsel %vm876_vm10, %v960_v16, %v10472_v18  ;;  %vm1318_vm11 = vcmp.lt.s32.totalorder %v14540_v6, 1  ;;  %v10926_v57 = vpop.permute.xlu1 %7128 }
 0x1ff   :  { %vm1320_vm3 = vcmp.lt.s32.totalorder %v14540_v6, 3  ;;  %v1465_v38 = vsub.s32 4294967266, %v10889_v44  ;;  %v1294_v47 = vor.u32 8388608, %v1293_v20  ;;  %v1326_v14 = vsel %vm1318_vm11, %v10882_v3, %v10884_v41 }
 0x200   :  { %v1328_v60 = vsel %vm1320_vm3, %v1311_v56, %v14541_v58  ;;  %v1177_v18 = vsel %vm1175_vm6, %v10800_v29, %v1176_v48  ;;  %v958_v16 = vxor.u32 2147483648, %v957_v10  ;;  %v1330_v35 = vsel %vm1318_vm11, %v10884_v41, %v1311_v56 }
 0x201   :  { %v1332_v5 = vsel %vm1320_vm3, %v14543_v55, %v14542_v33  ;;  %8100 = vcosq.f32 %v859_v36  ;;  %v10929_v26 = vsub.s32 %v10809_v50, %v1555_v49  ;;  %v1244_v2 = vadd.s32 536870912, %v10898_v27 }
 0x202   :  { %vm1319_vm15 = vcmp.lt.s32.totalorder %v14540_v6, 2  ;;  %8102 = vsinq.f32 %v859_v36  ;;  %v4612_v19 = vsel %vm4610_vm9, %v1179_v1, %v10844_v37  ;;  %v7197_v51 = vmul.f32 %v10926_v57, %v4510_v31 }
 0x203   :  { %v1329_v20 = vsel %vm1319_vm15, %v1326_v14, %v1328_v60  ;;  %v1181_v58 = vsel %vm1174_vm5, %v1177_v18, %v1180_v34  ;;  %v1466_v33 = vadd.s32 127, %v1465_v38  ;;  %v1333_v50 = vsel %vm1319_vm15, %v1330_v35, %v1332_v5 }
 0x204   :  { %v10943_v49 = vshll.u32 %v1294_v47, 8  ;;  %v959_v36 = vsel %vm876_vm10, %v958_v16, %v957_v10  ;;  %v963_v37 = vsel %vm10875_vm7, 0, %v961_v24  ;;  %v4609_v1 = vsel %vm4607_vm13, %v10800_v29, %v1176_v48 }
 0x205   :  { %v1461_v31 = vsub.s32 32, %v10889_v44  ;;  %v1558_v17 = vsub.s32 0, %v10929_v26  ;;  %v10954_v34 = vshrl.u32 %v1244_v2, 30  ;;  %v1182_v10 = vsel %vm1172_vm4, nan, %v1181_v58 }
 0x206   :  { %v10957_v38 = vmul.u32.u64.low %v10943_v49, %v1329_v20  ;;  %v10958_v47 = vmul.u32.u64.high %v10943_v49, %v1329_v20, %v10957_v38  ;;  %vm4606_vm8 = vcmp.lt.s32.totalorder %v10819_v61, 2  ;;  %v962_v29 = vsel %vm10875_vm7, %v14478_v28, %v959_v36 }
 0x207   :  { %v10965_v24 = vmul.u32.u64.low %v10943_v49, %v1333_v50  ;;  %v10966_v14 = vmul.u32.u64.high %v10943_v49, %v1333_v50, %v10965_v24  ;;  %v4613_v48 = vsel %vm4606_vm8, %v4609_v1, %v4612_v19  ;;  %v1445_v60 = vadd.s32 %v10491_v39, %v10506_v4  ;;  %v14547_v50 = vld [vmem:[#allocation78_spill] sm:$0xff] }
 0x208   :  { %v1467_v18 = vshll.u32 %v1466_v33, 23  ;;  %v10973_v16 = vand.u32 3, %v963_v37  ;;  %v10976_v35 = vadd.f32 %v7197_v51, %v10836_v32  ;;  %v10979_v61 = vand.u32 3, %v10822_v12 }
 0x209   :  { %v4396_v55 = vadd.s32 3, %v963_v37  ;;  %vm869_vm12 = vcmp.eq.s32.totalorder %v10672_v9, 2  ;;  %v1463_v5 = vshrl.u32 %v1445_v60, %v1461_v31  ;;  %v7672_v21 = vmin.u32 %v1558_v17, %v10929_v26 }
 0x20a   :  { %14544 = vst [vmem:[#allocation43_spill] sm:$0xff] %v10976_v35  ;;  %v1246_v2 = vshll.u32 %v10954_v34, 30  ;;  %vm14545_vm2 = vcmp.lt.s32.totalorder %v14540_v6, 4  ;;  %v10987_v4 = vmul.f32 %v10830_v25, %v1182_v10  ;;  %vm866_vm14 = vcmp.eq.s32.totalorder %v10672_v9, 0 }
 0x20b   :  { %v1323_v39 = vsel %vm14545_vm2, %v1311_v56, 2102212464  ;;  %8104 = vcosq.f32 %v962_v29  ;;  %v4614_v12 = vsel %vm1172_vm4, nan, %v4613_v48  ;;  %v1302_v32 = vshrl.u32 %v14381_v23, %v14535_v40  ;;  %v10994_v19 = vpop.eup %8100  ;;  %v14546_v56 = vld [vmem:[#allocation14_spill] sm:$0xff] }
 0x20c   :  { %8106 = vsinq.f32 %v962_v29  ;;  %v1462_v51 = vshll.u32 %v10722_v45, %v10889_v44  ;;  %v1468_v20 = vor.u32 4788187, %v1467_v18  ;;  %v14203_v58 = vand.u32 2147483647, %v14546_v56  ;;  %v8103_v25 = vpop.eup %8102 }
 0x20d   :  { %v1322_v33 = vsel %vm1318_vm11, %v1302_v32, %v10882_v3  ;;  %v1324_v59 = vsel %vm1320_vm3, %v10884_v41, %v1323_v39  ;;  %v1819_v40 = vshrl.u32 %v14367_v30, %v14547_v50  ;;  %v1822_v36 = vshrl.u32 %v14368_v0, %v14547_v50  ;;  %v14548_v41 = vld [vmem:[#allocation73_spill] sm:$0xff] }
 0x20e   :  { %vm4298_vm10 = vcmp.eq.s32.totalorder %v10979_v61, 2  ;;  %v1464_v45 = vor.u32 %v1463_v5, %v1462_v51  ;;  %v1560_v44 = vclz %v7672_v21  ;;  %v11011_v37 = vsub.s32 %v10898_v27, %v1246_v2 }
 0x20f   :  { %v1344_v1 = vadd.s32 1, %v10958_v47  ;;  %vm865_vm6 = vcmp.lt.s32.totalorder %v10672_v9, 2  ;;  %v870_v3 = vxor.u32 2147483648, %v10994_v19  ;;  %vm4295_vm1 = vcmp.eq.s32.totalorder %v10979_v61, 0  ;;  %v11094_v9 = vpop.permute.xlu0 %3667 }
 0x210   :  { %vm1343_vm0 = vc.u32 %v10966_v14, %v10957_v38  ;;  %v1818_v31 = vshll.u32 %v14381_v23, %v14548_v41  ;;  %v1821_v17 = vshll.u32 %v14367_v30, %v14548_v41  ;;  %v867_v10 = vxor.u32 2147483648, %v8103_v25 }
 0x211   :  { %v1469_v27 = vand.u32 2147483647, %v1468_v20  ;;  %v1325_v24 = vsel %vm1319_vm15, %v1322_v33, %v1324_v59  ;;  %v1808_v29 = vand.u32 8388607, %v14203_v58  ;;  %v1824_v18 = vshll.u32 %v14368_v0, %v14548_v41 }
 0x212   :  { %v11027_v48 = vor.u32 %v1819_v40, %v1818_v31  ;;  %v11029_v60 = vor.u32 %v1822_v36, %v1821_v17  ;;  %v1825_v5 = vshrl.u32 %v14257_v8, %v14547_v50  ;;  %vm4294_vm5 = vcmp.lt.s32.totalorder %v10979_v61, 2  ;;  %v14549_v36 = vld [vmem:[#allocation83_spill] sm:$0xff] }
 0x213   :  { %v1471_v21 = vcvt.s32.f32 %v1464_v45  ;;  %v7673_v2 = vadd.s32 4294967294, %v1560_v44  ;;  %v1249_v6 = vsub.s32 0, %v11011_v37  ;;  %v1345_v39 = vsel %vm1343_vm0, %v1344_v1, %v10958_v47  ;;  %v14550_v44 = vld [vmem:[#allocation92_spill] sm:$0xff] }
 0x214   :  { %vm863_vm7 = vweird.f32 %v14507_v63  ;;  %v871_v32 = vsel %vm869_vm12, %v870_v3, %v8103_v25  ;;  %v11041_v51 = vand.u32 3, %v4396_v55  ;;  %v1341_v20 = vmul.u32 %v10943_v49, %v1325_v24  ;;  %v14552_v24 = vld [vmem:[#allocation88_spill] sm:$0xff] }
 0x215   :  { %v1826_v33 = vor.u32 %v1825_v5, %v1824_v18  ;;  %v868_v59 = vsel %vm866_vm14, %v10994_v19, %v867_v10  ;;  %vm1391_vm13 = vcmp.lt.s32.totalorder %v14491_v42, 0  ;;  %v1472_v40 = vmul.f32 %v1471_v21, %v1469_v27  ;;  %v8105_v47 = vpop.eup %8104  ;;  %v14551_v27 = vld [vmem:[#allocation93_spill] sm:$0xff] }
 0x216   :  { %vm1833_vm9 = vcmp.lt.s32.totalorder %v14549_v36, 1  ;;  %vm1835_vm4 = vcmp.lt.s32.totalorder %v14549_v36, 3  ;;  %vm969_vm11 = vcmp.eq.s32.totalorder %v10973_v16, 0  ;;  %v11051_v45 = vadd.s32 %v1345_v39, %v1341_v20  ;;  %v8107_v41 = vpop.eup %8106 }
 0x217   :  { %v1809_v55 = vor.u32 8388608, %v1808_v29  ;;  %v1841_v49 = vsel %vm1833_vm9, %v11027_v48, %v11029_v60  ;;  %v1843_v1 = vsel %vm1835_vm4, %v1826_v33, %v14550_v44  ;;  %vm7674_vm3 = vcmp.lt.s32.totalorder %v7673_v2, 0 }
 0x218   :  { %v7660_v31 = vmin.u32 %v1249_v6, %v11011_v37  ;;  %v1845_v17 = vsel %vm1833_vm9, %v11029_v60, %v1826_v33  ;;  %v1847_v29 = vsel %vm1835_vm4, %v14552_v24, %v14551_v27  ;;  %vm972_vm15 = vcmp.eq.s32.totalorder %v10973_v16, 2 }
 0x219   :  { %v7198_v18 = vmul.f32 %v10926_v57, %v4614_v12  ;;  %v4300_v5 = vsel %vm4298_vm10, %v870_v3, %v8103_v25  ;;  %v14553_v21 = vand.u32 2147483647, %v14491_v42  ;;  %vm1834_vm12 = vcmp.lt.s32.totalorder %v14549_v36, 2 }
 0x21a   :  { %v872_v39 = vsel %vm865_vm6, %v868_v59, %v871_v32  ;;  %vm968_vm2 = vcmp.lt.s32.totalorder %v10973_v16, 2  ;;  %v4297_v57 = vsel %vm4295_vm1, %v10994_v19, %v867_v10  ;;  %v1473_v12 = vxor.u32 2147483648, %v1472_v40 }
 0x21b   :  { %vm11074_vm8 = vcmp.le.f32.partialorder %v14553_v21, 0.7853982  ;;  %v1844_v25 = vsel %vm1834_vm12, %v1841_v49, %v1843_v1  ;;  %v11087_v3 = vsel %vm7674_vm3, 0, %v7673_v2  ;;  %v1347_v20 = vadd.s32 536870912, %v11051_v45 }
 0x21c   :  { %v1848_v44 = vsel %vm1834_vm12, %v1845_v17, %v1847_v29  ;;  %v11092_v27 = vshll.u32 %v1809_v55, 8  ;;  %v970_v32 = vxor.u32 2147483648, %v8107_v41  ;;  %v973_v59 = vxor.u32 2147483648, %v8105_v47 }
 0x21d   :  { %vm4398_vm14 = vcmp.lt.s32.totalorder %v11041_v51, 2  ;;  %vm4399_vm10 = vcmp.eq.s32.totalorder %v11041_v51, 0  ;;  %v1251_v19 = vclz %v7660_v31  ;;  %v11099_v10 = vadd.f32 %v7198_v18, %v10987_v4 }
 0x21e   :  { %v4301_v2 = vsel %vm4294_vm5, %v4297_v57, %v4300_v5  ;;  %v11104_v49 = vmul.u32.u64.low %v11092_v27, %v1844_v25  ;;  %v11105_v1 = vmul.u32.u64.high %v11092_v27, %v1844_v25, %v11104_v49  ;;  %v873_v55 = vsel %vm863_vm7, nan, %v872_v39 }
 0x21f   :  { %14556 = vst [vmem:[#allocation63_spill] sm:$0xff] %v11099_v10  ;;  %v1568_v17 = vsub.s32 4294967266, %v11087_v3  ;;  %v11112_v24 = vmul.u32.u64.low %v11092_v27, %v1848_v44  ;;  %v11113_v29 = vmul.u32.u64.high %v11092_v27, %v1848_v44, %v11112_v24  ;;  %vm966_vm6 = vweird.f32 %v14478_v28 }
 0x220   :  { %vm4402_vm1 = vcmp.eq.s32.totalorder %v11041_v51, 2  ;;  %v1474_v61 = vsel %vm1391_vm13, %v1473_v12, %v1472_v40  ;;  %v1475_v4 = vsub.s32 4, %v10653_v11  ;;  %v11120_v31 = vshrl.u32 %v1347_v20, 30  ;;  %v7124_v12 = vpop.permute.xlu0 %7123 }
 0x221   :  { %v971_v18 = vsel %vm969_vm11, %v8105_v47, %v970_v32  ;;  %v974_v5 = vsel %vm972_vm15, %v973_v59, %v8107_v41  ;;  %v4302_v21 = vsel %vm863_vm7, nan, %v4301_v2  ;;  %v7661_v39 = vadd.s32 4294967294, %v1251_v19 }
 0x222   :  { %v3739_v57 = vmul.f32 %v11094_v9, %v873_v55  ;;  %v4404_v25 = vsel %vm4402_vm1, %v973_v59, %v8107_v41  ;;  %vm1494_vm0 = vcmp.lt.s32.totalorder %v14511_v7, 0  ;;  %vm14557_vm5 = vcmp.lt.s32.totalorder %v14549_v36, 4 }
 0x223   :  { %v1838_v40 = vsel %vm14557_vm5, %v1826_v33, 2102212464  ;;  %v4401_v20 = vsel %vm4399_vm10, %v8105_v47, %v970_v32  ;;  %v1477_v44 = vsel %vm11074_vm8, %v14491_v42, %v1474_v61  ;;  %v1569_v24 = vadd.s32 127, %v1568_v17 }
 0x224   :  { %v1817_v63 = vshrl.u32 %v14381_v23, %v14547_v50  ;;  %v975_v41 = vsel %vm968_vm2, %v971_v18, %v974_v5  ;;  %v7195_v59 = vmul.f32 %v7124_v12, %v4302_v21  ;;  %v1476_v33 = vsel %vm1391_vm13, %v1475_v4, %v10653_v11 }
 0x225   :  { %v1349_v19 = vshll.u32 %v11120_v31, 30  ;;  %v1564_v47 = vsub.s32 32, %v11087_v3  ;;  %vm7662_vm7 = vcmp.lt.s32.totalorder %v7661_v39, 0  ;;  %v1839_v50 = vsel %vm1835_vm4, %v11029_v60, %v1838_v40 }
 0x226   :  { %v1837_v32 = vsel %vm1833_vm9, %v1817_v63, %v11027_v48  ;;  %v4405_v16 = vsel %vm4398_vm14, %v4401_v20, %v4404_v25  ;;  %8108 = vcosq.f32 %v1477_v44  ;;  %v1578_v2 = vsub.s32 4, %v10857_v43 }
 0x227   :  { %v1859_v11 = vadd.s32 1, %v11105_v1  ;;  %v11158_v55 = vsel %vm11074_vm8, 0, %v1476_v33  ;;  %v1548_v17 = vadd.s32 %v10706_v22, %v10726_v54  ;;  %v1570_v48 = vshll.u32 %v1569_v24, 23 }
 0x228   :  { %vm1858_vm13 = vc.u32 %v11113_v29, %v11104_v49  ;;  %v14558_v60 = vand.u32 2147483647, %v14511_v7  ;;  %v11170_v61 = vsel %vm7662_vm7, 0, %v7661_v39  ;;  %v11173_v4 = vsub.s32 %v11051_v45, %v1349_v19  ;;  %v14566_v19 = vld [vmem:[#allocation80_spill] sm:$0xff] }
 0x229   :  { %v1840_v6 = vsel %vm1834_vm12, %v1837_v32, %v1839_v50  ;;  %v976_v54 = vsel %vm966_vm6, nan, %v975_v41  ;;  %v4406_v22 = vsel %vm966_vm6, nan, %v4405_v16  ;;  %v11181_v18 = vadd.f32 %v7195_v59, %v3739_v57  ;;  %v14565_v59 = vld [vmem:[#allocation15_spill] sm:$0xff] }
 0x22a   :  { %vm11166_vm9 = vcmp.le.f32.partialorder %v14558_v60, 0.7853982  ;;  %v1566_v5 = vshrl.u32 %v1548_v17, %v1564_v47  ;;  %v11184_v21 = vand.u32 3, %v11158_v55  ;;  %v1565_v39 = vshll.u32 %v10929_v26, %v11087_v3 }
 0x22b   :  { %14561 = vst [vmem:[#allocation66_spill] sm:$0xff] %v11181_v18  ;;  %v1579_v36 = vsel %vm1494_vm0, %v1578_v2, %v10857_v43  ;;  %v14562_v45 = vand.u32 2147483647, %v14523_v15  ;;  %v1860_v28 = vsel %vm1858_vm13, %v1859_v11, %v11105_v1  ;;  %v1571_v57 = vor.u32 4788187, %v1570_v48  ;;  %v14567_v11 = vld [vmem:[#allocation75_spill] sm:$0xff] }
 0x22c   :  { %v1259_v40 = vsub.s32 4294967266, %v11170_v61  ;;  %v1269_v20 = vsub.s32 4, %v10954_v34  ;;  %v1856_v24 = vmul.u32 %v11092_v27, %v1840_v6  ;;  %v3740_v26 = vmul.f32 %v11094_v9, %v976_v54 }
 0x22d   :  { %vm11193_vm4 = vcmp.le.f32.partialorder %v14562_v45, 0.7853982  ;;  %v7196_v3 = vmul.f32 %v7124_v12, %v4406_v22  ;;  %vm1185_vm11 = vcmp.lt.s32.totalorder %v14523_v15, 0  ;;  %v1352_v43 = vsub.s32 0, %v11173_v4 }
 0x22e   :  { %v1567_v63 = vor.u32 %v1566_v5, %v1565_v39  ;;  %v11206_v41 = vsel %vm11166_vm9, 0, %v1579_v36  ;;  %v11208_v1 = vadd.s32 %v1860_v28, %v1856_v24  ;;  %v14202_v33 = vand.u32 2147483647, %v14565_v59 }
 0x22f   :  { %8110 = vsinq.f32 %v1477_v44  ;;  %v1922_v27 = vshrl.u32 %v14367_v30, %v14566_v19  ;;  %v1925_v9 = vshrl.u32 %v14368_v0, %v14566_v19  ;;  %v1928_v12 = vshrl.u32 %v14257_v8, %v14566_v19 }
 0x230   :  { %v1572_v47 = vand.u32 2147483647, %v1571_v57  ;;  %v1255_v32 = vsub.s32 32, %v11170_v61  ;;  %v1260_v50 = vadd.s32 127, %v1259_v40  ;;  %v1270_v16 = vsel %vm1185_vm11, %v1269_v20, %v10954_v34  ;;  %v11221_v2 = vpop.eup %8108 }
 0x231   :  { %v7664_v44 = vmin.u32 %v1352_v43, %v11173_v4  ;;  %v1921_v17 = vshll.u32 %v14381_v23, %v14567_v11  ;;  %v1924_v48 = vshll.u32 %v14367_v30, %v14567_v11  ;;  %v1927_v60 = vshll.u32 %v14368_v0, %v14567_v11 }
 0x232   :  { %v11230_v6 = vadd.f32 %v7196_v3, %v3740_v26  ;;  %v1574_v54 = vcvt.s32.f32 %v1567_v63  ;;  %v1862_v22 = vadd.s32 536870912, %v11208_v1  ;;  %v1911_v34 = vand.u32 8388607, %v14202_v33  ;;  %v14569_v63 = vld [vmem:[#allocation84_spill] sm:$0xff] }
 0x233   :  { %v1239_v5 = vadd.s32 %v10796_v13, %v10805_v52  ;;  %v11237_v39 = vor.u32 %v1922_v27, %v1921_v17  ;;  %v11239_v36 = vor.u32 %v1925_v9, %v1924_v48  ;;  %v1929_v45 = vor.u32 %v1928_v12, %v1927_v60  ;;  %v14570_v9 = vld [vmem:[#allocation98_spill] sm:$0xff] }
 0x234   :  { %14568 = vst [vmem:[#allocation56_spill] sm:$0xff] %v11230_v6  ;;  %v1575_v57 = vmul.f32 %v1574_v54, %v1572_v47  ;;  %v11243_v40 = vand.u32 3, %v11206_v41  ;;  %v11247_v20 = vsel %vm11193_vm4, 0, %v1270_v16  ;;  %v1256_v24 = vshll.u32 %v11011_v37, %v11170_v61  ;;  %v14571_v61 = vld [vmem:[#allocation101_spill] sm:$0xff]  ;;  %v14572_v47 = vld [vmem:[#allocation90_spill] sm:$0xff] }
 0x235   :  { %v1257_v26 = vshrl.u32 %v1239_v5, %v1255_v32  ;;  %v1261_v13 = vshll.u32 %v1260_v50, 23  ;;  %v1354_v52 = vclz %v7664_v44  ;;  %v11251_v3 = vshrl.u32 %v1862_v22, 30  ;;  %v14573_v50 = vld [vmem:[#allocation16_spill] sm:$0xff]  ;;  %v14574_v44 = vld [vmem:[#allocation89_spill] sm:$0xff] }
 0x236   :  { %v1912_v43 = vor.u32 8388608, %v1911_v34  ;;  %vm1936_vm3 = vcmp.lt.s32.totalorder %v14569_v63, 1  ;;  %vm1938_vm15 = vcmp.lt.s32.totalorder %v14569_v63, 3  ;;  %v14205_v16 = vand.u32 2147483647, %v14573_v50 }
 0x237   :  { %v1944_v27 = vsel %vm1936_vm3, %v11237_v39, %v11239_v36  ;;  %v1946_v12 = vsel %vm1938_vm15, %v1929_v45, %v14570_v9  ;;  %v1948_v37 = vsel %vm1936_vm3, %v11239_v36, %v1929_v45  ;;  %v1950_v32 = vsel %vm1938_vm15, %v14572_v47, %v14571_v61  ;;  %v14575_v9 = vld [vmem:[#allocation85_spill] sm:$0xff] }
 0x238   :  { %v1613_v11 = vshrl.u32 %v14367_v30, %v14574_v44  ;;  %v1616_v17 = vshrl.u32 %v14368_v0, %v14574_v44  ;;  %v1619_v48 = vshrl.u32 %v14257_v8, %v14574_v44  ;;  %vm1487_vm8 = vcmp.eq.s32.totalorder %v11184_v21, 2 }
 0x239   :  { %v11276_v60 = vpop.eup %8110  ;;  %v1258_v54 = vor.u32 %v1257_v26, %v1256_v24  ;;  %v1262_v22 = vor.u32 4788187, %v1261_v13  ;;  %v4916_v34 = vadd.s32 3, %v11158_v55  ;;  %vm1937_vm12 = vcmp.lt.s32.totalorder %v14569_v63, 2 }
 0x23a   :  { %vm1484_vm2 = vcmp.eq.s32.totalorder %v11184_v21, 0  ;;  %v1947_v5 = vsel %vm1937_vm12, %v1944_v27, %v1946_v12  ;;  %v1612_v61 = vshll.u32 %v14381_v23, %v14575_v9  ;;  %v1615_v47 = vshll.u32 %v14367_v30, %v14575_v9 }
 0x23b   :  { %v1618_v33 = vshll.u32 %v14368_v0, %v14575_v9  ;;  %v7665_v24 = vadd.s32 4294967294, %v1354_v52  ;;  %v1864_v26 = vshll.u32 %v11251_v3, 30  ;;  %v1951_v55 = vsel %vm1937_vm12, %v1948_v37, %v1950_v32 }
 0x23c   :  { %v11293_v13 = vshll.u32 %v1912_v43, 8  ;;  %v1602_v27 = vand.u32 8388607, %v14205_v16  ;;  %v11297_v12 = vor.u32 %v1613_v11, %v1612_v61  ;;  %v11299_v58 = vor.u32 %v1616_v17, %v1615_v47 }
 0x23d   :  { %v1620_v62 = vor.u32 %v1619_v48, %v1618_v33  ;;  %vm1483_vm14 = vcmp.lt.s32.totalorder %v11184_v21, 2  ;;  %v11304_v52 = vand.u32 3, %v11247_v20  ;;  %v1576_v43 = vxor.u32 2147483648, %v1575_v57  ;;  %v14576_v33 = vld [vmem:[#allocation94_spill] sm:$0xff] }
 0x23e   :  { %v11307_v28 = vmul.u32.u64.low %v11293_v13, %v1947_v5  ;;  %v11308_v37 = vmul.u32.u64.high %v11293_v13, %v1947_v5, %v11307_v28  ;;  %v1265_v32 = vcvt.s32.f32 %v1258_v54  ;;  %v1263_v17 = vand.u32 2147483647, %v1262_v22  ;;  %v14577_v54 = vld [vmem:[#allocation103_spill] sm:$0xff] }
 0x23f   :  { %v11312_v11 = vmul.u32.u64.low %v11293_v13, %v1951_v55  ;;  %v11313_v61 = vmul.u32.u64.high %v11293_v13, %v1951_v55, %v11312_v11  ;;  %vm7666_vm10 = vcmp.lt.s32.totalorder %v7665_v24, 0  ;;  %vm1627_vm6 = vcmp.lt.s32.totalorder %v14576_v33, 1 }
 0x240   :  { %vm1629_vm1 = vcmp.lt.s32.totalorder %v14576_v33, 3  ;;  %v11318_v48 = vsub.s32 %v11208_v1, %v1864_v26  ;;  %v1603_v47 = vor.u32 8388608, %v1602_v27  ;;  %v1635_v5 = vsel %vm1627_vm6, %v11297_v12, %v11299_v58  ;;  %v14579_v26 = vld [vmem:[#allocation106_spill] sm:$0xff]  ;;  %v14580_v27 = vld [vmem:[#allocation96_spill] sm:$0xff] }
 0x241   :  { %v1637_v55 = vsel %vm1629_vm1, %v1620_v62, %v14577_v54  ;;  %v1920_v22 = vshrl.u32 %v14381_v23, %v14566_v19  ;;  %vm14578_vm5 = vcmp.lt.s32.totalorder %v14569_v63, 4  ;;  %v1639_v1 = vsel %vm1627_vm6, %v11299_v58, %v1620_v62 }
 0x242   :  { %v1941_v11 = vsel %vm14578_vm5, %v1929_v45, 2102212464  ;;  %v1641_v16 = vsel %vm1629_vm1, %v14580_v27, %v14579_v26  ;;  %v14581_v9 = vxor.u32 2147483648, %v11221_v2  ;;  %v1577_v19 = vsel %vm1494_vm0, %v1576_v43, %v1575_v57 }
 0x243   :  { %v1357_v35 = vsel %vm7666_vm10, 0, %v7665_v24  ;;  %vm1628_vm7 = vcmp.lt.s32.totalorder %v14576_v33, 2  ;;  %v14582_v45 = vxor.u32 2147483648, %v11276_v60  ;;  %v1266_v10 = vmul.f32 %v1265_v32, %v1263_v17 }
 0x244   :  { %v1489_v54 = vsel %vm1487_vm8, %v14581_v9, %v11276_v60  ;;  %v1940_v26 = vsel %vm1936_vm3, %v1920_v22, %v11237_v39  ;;  %v1638_v9 = vsel %vm1628_vm7, %v1635_v5, %v1637_v55  ;;  %v1867_v27 = vsub.s32 0, %v11318_v48 }
 0x245   :  { %v1486_v18 = vsel %vm1484_vm2, %v11221_v2, %v14582_v45  ;;  %v1942_v57 = vsel %vm1938_vm15, %v11239_v36, %v1941_v11  ;;  %v1642_v24 = vsel %vm1628_vm7, %v1639_v1, %v1641_v16  ;;  %v11362_v43 = vshll.u32 %v1603_v47, 8 }
 0x246   :  { %v1580_v32 = vsel %vm11166_vm9, %v14511_v7, %v1577_v19  ;;  %v1362_v17 = vsub.s32 4294967266, %v1357_v35  ;;  %v11368_v39 = vadd.s32 3, %v11206_v41  ;;  %v1962_v5 = vadd.s32 1, %v11308_v37 }
 0x247   :  { %v11373_v55 = vsel %vm1483_vm14, %v1486_v18, %v1489_v54  ;;  %vm1961_vm0 = vc.u32 %v11313_v61, %v11307_v28  ;;  %v11378_v36 = vmul.u32.u64.low %v11362_v43, %v1638_v9  ;;  %v11379_v16 = vmul.u32.u64.high %v11362_v43, %v1638_v9, %v11378_v36  ;;  %v14584_v9 = vld [vmem:[#allocation17_spill] sm:$0xff] }
 0x248   :  { %v1267_v51 = vxor.u32 2147483648, %v1266_v10  ;;  %v1943_v47 = vsel %vm1937_vm12, %v1940_v26, %v1942_v57  ;;  %v11385_v41 = vmul.u32.u64.low %v11362_v43, %v1642_v24  ;;  %v11386_v22 = vmul.u32.u64.high %v11362_v43, %v1642_v24, %v11385_v41  ;;  %v14585_v57 = vld [vmem:[#allocation91_spill] sm:$0xff] }
 0x249   :  { %8112 = vcosq.f32 %v1580_v32  ;;  %v1358_v21 = vsub.s32 32, %v1357_v35  ;;  %v11388_v18 = vand.u32 3, %v4916_v34  ;;  %v7684_v11 = vmin.u32 %v1867_v27, %v11318_v48 }
 0x24a   :  { %8114 = vsinq.f32 %v1580_v32  ;;  %v1342_v1 = vadd.s32 %v10957_v38, %v10966_v14  ;;  %v1363_v54 = vadd.s32 127, %v1362_v17  ;;  %v1963_v19 = vsel %vm1961_vm0, %v1962_v5, %v11308_v37  ;;  %v14586_v32 = vld [vmem:[#allocation86_spill] sm:$0xff] }
 0x24b   :  { %v1959_v63 = vmul.u32 %v11293_v13, %v1943_v47  ;;  %v1611_v45 = vshrl.u32 %v14381_v23, %v14574_v44  ;;  %vm14583_vm13 = vcmp.lt.s32.totalorder %v14576_v33, 4  ;;  %v14206_v34 = vand.u32 2147483647, %v14584_v9 }
 0x24c   :  { %v1632_v26 = vsel %vm14583_vm13, %v1620_v62, 2102212464  ;;  %v1268_v27 = vsel %vm1185_vm11, %v1267_v51, %v1266_v10  ;;  %v1716_v24 = vshrl.u32 %v14367_v30, %v14585_v57  ;;  %v1719_v38 = vshrl.u32 %v14368_v0, %v14585_v57 }
 0x24d   :  { %v1722_v14 = vshrl.u32 %v14257_v8, %v14585_v57  ;;  %v1360_v13 = vshrl.u32 %v1342_v1, %v1358_v21  ;;  %v1869_v37 = vclz %v7684_v11  ;;  %v11408_v44 = vadd.s32 %v1963_v19, %v1959_v63 }
 0x24e   :  { %v1631_v62 = vsel %vm1627_vm6, %v1611_v45, %v11297_v12  ;;  %v1633_v10 = vsel %vm1629_vm1, %v11299_v58, %v1632_v26  ;;  %v1715_v17 = vshll.u32 %v14381_v23, %v14586_v32  ;;  %v1718_v5 = vshll.u32 %v14367_v30, %v14586_v32 }
 0x24f   :  { %v1721_v51 = vshll.u32 %v14368_v0, %v14586_v32  ;;  %v1359_v47 = vshll.u32 %v11173_v4, %v1357_v35  ;;  %v1364_v41 = vshll.u32 %v1363_v54, 23  ;;  %v1653_v21 = vadd.s32 1, %v11379_v16 }
 0x250   :  { %v1705_v12 = vand.u32 8388607, %v14206_v34  ;;  %vm1652_vm9 = vc.u32 %v11386_v22, %v11378_v36  ;;  %v11428_v58 = vor.u32 %v1716_v24, %v1715_v17  ;;  %v11430_v11 = vor.u32 %v1719_v38, %v1718_v5  ;;  %v14590_v17 = vld [vmem:[#allocation109_spill] sm:$0xff]  ;;  %v14591_v5 = vld [vmem:[#allocation99_spill] sm:$0xff] }
 0x251   :  { %v1723_v1 = vor.u32 %v1722_v14, %v1721_v51  ;;  %vm1481_vm11 = vweird.f32 %v14491_v42  ;;  %vm4919_vm3 = vcmp.eq.s32.totalorder %v11388_v18, 0  ;;  %v7685_v19 = vadd.s32 4294967294, %v1869_v37  ;;  %v14588_v37 = vld [vmem:[#allocation95_spill] sm:$0xff] }
 0x252   :  { %v1965_v35 = vadd.s32 536870912, %v11408_v44  ;;  %v1634_v4 = vsel %vm1628_vm7, %v1631_v62, %v1633_v10  ;;  %v1271_v54 = vsel %vm11193_vm4, %v14523_v15, %v1268_v27  ;;  %v1361_v63 = vor.u32 %v1360_v13, %v1359_v47  ;;  %v14589_v62 = vld [vmem:[#allocation107_spill] sm:$0xff] }
 0x253   :  { %v14587_v45 = vxor.u32 2147483648, %v11276_v60  ;;  %vm4922_vm15 = vcmp.eq.s32.totalorder %v11388_v18, 2  ;;  %v11444_v24 = vpop.eup %8112  ;;  %v1365_v38 = vor.u32 4788187, %v1364_v41  ;;  %v1654_v14 = vsel %vm1652_vm9, %v1653_v21, %v11379_v16 }
 0x254   :  { %vm1730_vm8 = vcmp.lt.s32.totalorder %v14588_v37, 1  ;;  %vm1732_vm12 = vcmp.lt.s32.totalorder %v14588_v37, 3  ;;  %v11449_v33 = vpop.eup %8114  ;;  %v1650_v25 = vmul.u32 %v11362_v43, %v1634_v4  ;;  %v1706_v27 = vor.u32 8388608, %v1705_v12 }
 0x255   :  { %v4921_v26 = vsel %vm4919_vm3, %v11221_v2, %v14587_v45  ;;  %v1738_v13 = vsel %vm1730_vm8, %v11428_v58, %v11430_v11  ;;  %v1740_v10 = vsel %vm1732_vm12, %v1723_v1, %v14589_v62  ;;  %vm7686_vm4 = vcmp.lt.s32.totalorder %v7685_v19, 0 }
 0x256   :  { %v11459_v16 = vshrl.u32 %v1965_v35, 30  ;;  %v1742_v32 = vsel %vm1730_vm8, %v11430_v11, %v1723_v1  ;;  %v1744_v43 = vsel %vm1732_vm12, %v14591_v5, %v14590_v17  ;;  %8116 = vcosq.f32 %v1271_v54  ;;  %v11480_v35 = vpop.permute.xlu1 %3682 }
 0x257   :  { %v14592_v51 = vxor.u32 2147483648, %v11221_v2  ;;  %v11473_v41 = vadd.s32 %v1654_v14, %v1650_v25  ;;  %vm1731_vm2 = vcmp.lt.s32.totalorder %v14588_v37, 2  ;;  %vm1590_vm14 = vcmp.eq.s32.totalorder %v11243_v40, 2 }
 0x258   :  { %8118 = vsinq.f32 %v1271_v54  ;;  %v1366_v21 = vand.u32 2147483647, %v1365_v38  ;;  %vm4918_vm10 = vcmp.lt.s32.totalorder %v11388_v18, 2  ;;  %v1741_v12 = vsel %vm1731_vm2, %v1738_v13, %v1740_v10 }
 0x259   :  { %v4924_v47 = vsel %vm4922_vm15, %v14592_v51, %v11276_v60  ;;  %v4708_v2 = vadd.s32 3, %v11247_v20  ;;  %v11483_v4 = vsel %vm7686_vm4, 0, %v7685_v19  ;;  %v1745_v60 = vsel %vm1731_vm2, %v1742_v32, %v1744_v43 }
 0x25a   :  { %v11487_v45 = vshll.u32 %v1706_v27, 8  ;;  %vm1587_vm6 = vcmp.eq.s32.totalorder %v11243_v40, 0  ;;  %v1368_v54 = vcvt.s32.f32 %v1361_v63  ;;  %v4925_v38 = vsel %vm4918_vm10, %v4921_v26, %v4924_v47  ;;  %v11530_v51 = vpop.permute.xlu1 %7138 }
 0x25b   :  { %v11491_v18 = vand.u32 3, %v11368_v39  ;;  %v1967_v14 = vshll.u32 %v11459_v16, 30  ;;  %v1491_v20 = vsel %vm1481_vm11, nan, %v11373_v55  ;;  %v1656_v19 = vadd.s32 536870912, %v11473_v41 }
 0x25c   :  { %v11499_v25 = vmul.u32.u64.low %v11487_v45, %v1741_v12  ;;  %v11500_v13 = vmul.u32.u64.high %v11487_v45, %v1741_v12, %v11499_v25  ;;  %v1369_v27 = vmul.f32 %v1368_v54, %v1366_v21  ;;  %v1877_v63 = vsub.s32 4294967266, %v11483_v4  ;;  %v14597_v12 = vld [vmem:[#allocation40_spill] sm:$0xff] }
 0x25d   :  { %v11505_v26 = vmul.u32.u64.low %v11487_v45, %v1745_v60  ;;  %v11506_v39 = vmul.u32.u64.high %v11487_v45, %v1745_v60, %v11505_v26  ;;  %v1591_v62 = vxor.u32 2147483648, %v11444_v24  ;;  %vm1288_vm1 = vcmp.lt.s32.totalorder %v14534_v53, 0 }
 0x25e   :  { %v4926_v55 = vsel %vm1481_vm11, nan, %v4925_v38  ;;  %v11512_v10 = vand.u32 3, %v4708_v2  ;;  %vm1586_vm5 = vcmp.lt.s32.totalorder %v11243_v40, 2  ;;  %v11516_v32 = vmul.f32 %v11480_v35, %v1491_v20  ;;  %v14598_v20 = vld [vmem:[#allocation8_spill] sm:$0xff] }
 0x25f   :  { %v14593_v17 = vand.u32 2147483647, %v14534_v53  ;;  %vm5023_vm0 = vcmp.eq.s32.totalorder %v11491_v18, 0  ;;  %vm5026_vm13 = vcmp.eq.s32.totalorder %v11491_v18, 2  ;;  %v11527_v42 = vsub.s32 %v11408_v44, %v1967_v14 }
 0x260   :  { %v1588_v43 = vxor.u32 2147483648, %v11449_v33  ;;  %v11532_v47 = vshrl.u32 %v1656_v19, 30  ;;  %vm14596_vm9 = vcmp.lt.s32.totalorder %v14588_v37, 4  ;;  %v7226_v2 = vadd.f32 %v14597_v12, %v10509_v46  ;;  %v8117_v14 = vpop.eup %8116  ;;  %v14599_v19 = vld [vmem:[#allocation47_spill] sm:$0xff] }
 0x261   :  { %vm11520_vm7 = vcmp.le.f32.partialorder %v14593_v17, 0.7853982  ;;  %v1735_v21 = vsel %vm14596_vm9, %v1723_v1, 2102212464  ;;  %vm1278_vm11 = vcmp.eq.s32.totalorder %v11304_v52, 0  ;;  %vm1281_vm3 = vcmp.eq.s32.totalorder %v11304_v52, 2 }
 0x262   :  { %v1370_v60 = vxor.u32 2147483648, %v1369_v27  ;;  %vm5022_vm15 = vcmp.lt.s32.totalorder %v11491_v18, 2  ;;  %v7201_v44 = vmul.f32 %v11530_v51, %v4926_v55  ;;  %v1878_v54 = vadd.s32 127, %v1877_v63  ;;  %v8119_v17 = vpop.eup %8118 }
 0x263   :  { %v1714_v38 = vshrl.u32 %v14381_v23, %v14585_v57  ;;  %v1592_v1 = vsel %vm1590_vm14, %v1591_v62, %v11449_v33  ;;  %v1372_v46 = vsub.s32 4, %v11120_v31  ;;  %vm4714_vm4 = vcmp.eq.s32.totalorder %v11512_v10, 2 }
 0x264   :  { %v7224_v26 = vadd.f32 %v14599_v19, %v14598_v20  ;;  %vm4711_vm10 = vcmp.eq.s32.totalorder %v11512_v10, 0  ;;  %v1873_v63 = vsub.s32 32, %v11483_v4  ;;  %v1970_v55 = vsub.s32 0, %v11527_v42 }
 0x265   :  { %v1734_v57 = vsel %vm1730_vm8, %v1714_v38, %v11428_v58  ;;  %v1736_v12 = vsel %vm1732_vm12, %v11430_v11, %v1735_v21  ;;  %v1589_v34 = vsel %vm1587_vm6, %v11444_v24, %v1588_v43  ;;  %v1658_v20 = vshll.u32 %v11532_v47, 30 }
 0x266   :  { %v1756_v19 = vadd.s32 1, %v11500_v13  ;;  %v7887_v6 = vpack.c.bf16 %v7226_v2, %v7224_v26  ;;  %vm1584_vm14 = vweird.f32 %v14511_v7  ;;  %vm1277_vm9 = vcmp.lt.s32.totalorder %v11304_v52, 2 }
 0x267   :  { %v1371_v58 = vsel %vm1288_vm1, %v1370_v60, %v1369_v27  ;;  %v1857_v38 = vadd.s32 %v11104_v49, %v11113_v29  ;;  %v1879_v11 = vshll.u32 %v1878_v54, 23  ;;  %vm1755_vm8 = vc.u32 %v11506_v39, %v11499_v25 }
 0x268   :  { %v1279_v21 = vxor.u32 2147483648, %v8119_v17  ;;  %v1282_v9 = vxor.u32 2147483648, %v8117_v14  ;;  %v1373_v2 = vsel %vm1288_vm1, %v1372_v46, %v11120_v31  ;;  %v1737_v26 = vsel %vm1731_vm2, %v1734_v57, %v1736_v12  ;;  %7888 = vmatprep.subr.bf16.mxu0 %v7887_v6 }
 0x269   :  { %v5025_v27 = vsel %vm5023_vm0, %v11444_v24, %v1588_v43  ;;  %v5028_v49 = vsel %vm5026_vm13, %v1591_v62, %v11449_v33  ;;  %v1875_v29 = vshrl.u32 %v1857_v38, %v1873_v63  ;;  %v7688_v60 = vmin.u32 %v1970_v55, %v11527_v42  ;;  %v14601_v38 = vld [vmem:[#allocation21_spill] sm:$0xff] }
 0x26a   :  { %v1593_v54 = vsel %vm1586_vm5, %v1589_v34, %v1592_v1  ;;  %v1374_v31 = vsel %vm11520_vm7, %v14534_v53, %v1371_v58  ;;  %v11591_v6 = vsub.s32 %v11473_v41, %v1658_v20  ;;  %v1757_v37 = vsel %vm1755_vm8, %v1756_v19, %v11500_v13 }
 0x26b   :  { %vm1275_vm12 = vweird.f32 %v14523_v15  ;;  %v1375_v24 = vsel %vm11520_vm7, 0, %v1373_v2  ;;  %v1874_v33 = vshll.u32 %v11318_v48, %v11483_v4  ;;  %v1880_v62 = vor.u32 4788187, %v1879_v11 }
 0x26c   :  { %v1753_v40 = vmul.u32 %v11487_v45, %v1737_v26  ;;  %v1280_v34 = vsel %vm1278_vm11, %v8117_v14, %v1279_v21  ;;  %v1283_v41 = vsel %vm1281_vm3, %v1282_v9, %v8119_v17  ;;  %v5029_v13 = vsel %vm5022_vm15, %v5025_v27, %v5028_v49 }
 0x26d   :  { %v4716_v43 = vsel %vm4714_vm4, %v1282_v9, %v8119_v17  ;;  %8120 = vcosq.f32 %v1374_v31  ;;  %v1876_v5 = vor.u32 %v1875_v29, %v1874_v33  ;;  %v1972_v1 = vclz %v7688_v60  ;;  %v11621_v17 = vpop.permute.xlu0 %3677  ;;  %v14605_v29 = vld [vmem:[#allocation105_spill] sm:$0xff] }
 0x26e   :  { %v11608_v46 = vadd.s32 %v1757_v37, %v1753_v40  ;;  %8122 = vsinq.f32 %v1374_v31  ;;  %v4713_v48 = vsel %vm4711_vm10, %v8117_v14, %v1279_v21  ;;  %v1887_v4 = vsub.s32 4, %v11251_v3 }
 0x26f   :  { %v1661_v45 = vsub.s32 0, %v11591_v6  ;;  %v11615_v63 = vadd.f32 %v7201_v44, %v11516_v32  ;;  %vm4710_vm2 = vcmp.lt.s32.totalorder %v11512_v10, 2  ;;  %vm1803_vm6 = vcmp.lt.s32.totalorder %v14546_v56, 0 }
 0x270   :  { %v1881_v9 = vand.u32 2147483647, %v1880_v62  ;;  %v1594_v18 = vsel %vm1584_vm14, nan, %v1593_v54  ;;  %v1284_v14 = vsel %vm1277_vm9, %v1280_v34, %v1283_v41  ;;  %v5030_v55 = vsel %vm1584_vm14, nan, %v5029_v13 }
 0x271   :  { %14600 = vst [vmem:[#allocation9_spill] sm:$0xff] %v11615_v63  ;;  %v4812_v57 = vadd.s32 3, %v1375_v24  ;;  %v4717_v12 = vsel %vm4710_vm2, %v4713_v48, %v4716_v43  ;;  %v1883_v32 = vcvt.s32.f32 %v1876_v5  ;;  %v7689_v44 = vadd.s32 4294967294, %v1972_v1  ;;  %v11661_v15 = vpop.permute.xlu0 %7133 }
 0x272   :  { %v1759_v10 = vadd.s32 536870912, %v11608_v46  ;;  %v11628_v20 = vand.u32 3, %v1375_v24  ;;  %v1888_v19 = vsel %vm1803_vm6, %v1887_v4, %v11251_v3  ;;  %v7676_v58 = vmin.u32 %v1661_v45, %v11591_v6  ;;  %v14606_v24 = vld [vmem:[#allocation97_spill] sm:$0xff] }
 0x273   :  { %v14210_v52 = vand.u32 2147483647, %v14601_v38  ;;  %v3746_v11 = vmul.f32 %v11480_v35, %v1594_v18  ;;  %v7202_v7 = vmul.f32 %v11530_v51, %v5030_v55  ;;  %v14602_v21 = vand.u32 2147483647, %v14546_v56 }
 0x274   :  { %v1884_v26 = vmul.f32 %v1883_v32, %v1881_v9  ;;  %v1285_v27 = vsel %vm1275_vm12, nan, %v1284_v14  ;;  %v4718_v3 = vsel %vm1275_vm12, nan, %v4717_v12  ;;  %v11647_v49 = vand.u32 3, %v4812_v57 }
 0x275   :  { %vm11639_vm1 = vcmp.le.f32.partialorder %v14602_v21, 0.7853982  ;;  %v2231_v35 = vshrl.u32 %v14367_v30, %v14605_v29  ;;  %vm7690_vm5 = vcmp.lt.s32.totalorder %v7689_v44, 0  ;;  %v11655_v60 = vshrl.u32 %v1759_v10, 30  ;;  %v14607_v10 = vld [vmem:[#allocation104_spill] sm:$0xff]  ;;  %v14610_v21 = vld [vmem:[#allocation122_spill] sm:$0xff] }
 0x276   :  { %v11653_v51 = vsel %vm11639_vm1, 0, %v1888_v19  ;;  %v2234_v54 = vshrl.u32 %v14368_v0, %v14605_v29  ;;  %vm1381_vm7 = vcmp.eq.s32.totalorder %v11628_v20, 0  ;;  %vm1384_vm0 = vcmp.eq.s32.totalorder %v11628_v20, 2 }
 0x277   :  { %v1663_v31 = vclz %v7676_v58  ;;  %v2220_v37 = vand.u32 8388607, %v14210_v52  ;;  %v2230_v33 = vshll.u32 %v14381_v23, %v14606_v24  ;;  %v2233_v62 = vshll.u32 %v14367_v30, %v14606_v24  ;;  %v8121_v40 = vpop.eup %8120 }
 0x278   :  { %v11670_v34 = vmul.f32 %v11621_v17, %v1285_v27  ;;  %v11672_v41 = vadd.f32 %v7202_v7, %v3746_v11  ;;  %v11675_v13 = vmul.f32 %v11661_v15, %v4718_v3  ;;  %v1885_v43 = vxor.u32 2147483648, %v1884_v26  ;;  %v8123_v5 = vpop.eup %8122  ;;  %v14608_v11 = vld [vmem:[#allocation124_spill] sm:$0xff] }
 0x279   :  { %v2232_v1 = vor.u32 %v2231_v35, %v2230_v33  ;;  %v2235_v48 = vor.u32 %v2234_v54, %v2233_v62  ;;  %v2236_v4 = vshll.u32 %v14368_v0, %v14606_v24  ;;  %v2237_v45 = vshrl.u32 %v14257_v8, %v14605_v29  ;;  %v14609_v7 = vld [vmem:[#allocation116_spill] sm:$0xff] }
 0x27a   :  { %vm4815_vm13 = vcmp.eq.s32.totalorder %v11647_v49, 0  ;;  %vm4818_vm11 = vcmp.eq.s32.totalorder %v11647_v49, 2  ;;  %v11684_v9 = vand.u32 3, %v11653_v51  ;;  %v1960_v18 = vadd.s32 %v11307_v28, %v11313_v61 }
 0x27b   :  { %v11689_v14 = vsel %vm7690_vm5, 0, %v7689_v44  ;;  %v1761_v55 = vshll.u32 %v11655_v60, 30  ;;  %vm1380_vm3 = vcmp.lt.s32.totalorder %v11628_v20, 2  ;;  %v7677_v57 = vadd.s32 4294967294, %v1663_v31 }
 0x27c   :  { %v2221_v12 = vor.u32 8388608, %v2220_v37  ;;  %v2238_v32 = vor.u32 %v2237_v45, %v2236_v4  ;;  %vm2247_vm15 = vcmp.lt.s32.totalorder %v14607_v10, 3  ;;  %v1382_v19 = vxor.u32 2147483648, %v8123_v5 }
 0x27d   :  { %v1385_v58 = vxor.u32 2147483648, %v8121_v40  ;;  %vm2245_vm4 = vcmp.lt.s32.totalorder %v14607_v10, 1  ;;  %v2259_v28 = vsel %vm2247_vm15, %v14609_v7, %v14608_v11  ;;  %v1886_v61 = vsel %vm1803_vm6, %v1885_v43, %v1884_v26  ;;  %v14612_v7 = vld [vmem:[#allocation22_spill] sm:$0xff] }
 0x27e   :  { %v2253_v44 = vsel %vm2245_vm4, %v2232_v1, %v2235_v48  ;;  %v2255_v27 = vsel %vm2247_vm15, %v2238_v32, %v14610_v21  ;;  %v2257_v3 = vsel %vm2245_vm4, %v2235_v48, %v2238_v32  ;;  %v1980_v35 = vsub.s32 4294967266, %v11689_v14 }
 0x27f   :  { %v11710_v54 = vsub.s32 %v11608_v46, %v1761_v55  ;;  %vm2246_vm10 = vcmp.lt.s32.totalorder %v14607_v10, 2  ;;  %vm14611_vm14 = vcmp.lt.s32.totalorder %v14607_v10, 4  ;;  %vm7678_vm9 = vcmp.lt.s32.totalorder %v7677_v57, 0 }
 0x280   :  { %v2250_v26 = vsel %vm14611_vm14, %v2238_v32, 2102212464  ;;  %v2229_v31 = vshrl.u32 %v14381_v23, %v14605_v29  ;;  %v2260_v37 = vsel %vm2246_vm10, %v2257_v3, %v2259_v28  ;;  %v2261_v24 = vshll.u32 %v2221_v12, 8 }
 0x281   :  { %v1383_v33 = vsel %vm1381_vm7, %v8121_v40, %v1382_v19  ;;  %v1386_v46 = vsel %vm1384_vm0, %v1385_v58, %v8123_v5  ;;  %v1889_v62 = vsel %vm11639_vm1, %v14546_v56, %v1886_v61  ;;  %v2256_v43 = vsel %vm2246_vm10, %v2253_v44, %v2255_v27  ;;  %v14613_v27 = vld [vmem:[#allocation100_spill] sm:$0xff] }
 0x282   :  { %v2249_v29 = vsel %vm2245_vm4, %v2229_v31, %v2232_v1  ;;  %v2251_v4 = vsel %vm2247_vm15, %v2235_v48, %v2250_v26  ;;  %v11732_v45 = vmul.u32.u64.low %v2261_v24, %v2260_v37  ;;  %v11733_v55 = vmul.u32.u64.high %v2261_v24, %v2260_v37, %v11732_v45 }
 0x283   :  { %v1981_v12 = vadd.s32 127, %v1980_v35  ;;  %v11735_v32 = vsel %vm7678_vm9, 0, %v7677_v57  ;;  %v1764_v11 = vsub.s32 0, %v11710_v54  ;;  %v14208_v2 = vand.u32 2147483647, %v14612_v7 }
 0x284   :  { %v4817_v28 = vsel %vm4815_vm13, %v8121_v40, %v1382_v19  ;;  %v4820_v61 = vsel %vm4818_vm11, %v1385_v58, %v8123_v5  ;;  %v11743_v1 = vmul.u32.u64.low %v2261_v24, %v2256_v43  ;;  %v11744_v44 = vmul.u32.u64.high %v2261_v24, %v2256_v43, %v11743_v1 }
 0x285   :  { %v1387_v48 = vsel %vm1380_vm3, %v1383_v33, %v1386_v46  ;;  %8124 = vcosq.f32 %v1889_v62  ;;  %v1651_v57 = vadd.s32 %v11378_v36, %v11386_v22  ;;  %v2252_v21 = vsel %vm2246_vm10, %v2249_v29, %v2251_v4 }
 0x286   :  { %8126 = vsinq.f32 %v1889_v62  ;;  %v1976_v40 = vsub.s32 32, %v11689_v14  ;;  %v1977_v5 = vshll.u32 %v11527_v42, %v11689_v14  ;;  %v1671_v19 = vsub.s32 4294967266, %v11735_v32  ;;  %v14614_v14 = vld [vmem:[#allocation110_spill] sm:$0xff] }
 0x287   :  { %vm1378_vm8 = vweird.f32 %v14534_v53  ;;  %vm4814_vm12 = vcmp.lt.s32.totalorder %v11647_v49, 2  ;;  %v1982_v20 = vshll.u32 %v1981_v12, 23  ;;  %v7680_v58 = vmin.u32 %v1764_v11, %v11710_v54 }
 0x288   :  { %vm2270_vm2 = vc.u32 %v11733_v55, %v11743_v1  ;;  %v2323_v36 = vand.u32 8388607, %v14208_v2  ;;  %v2268_v22 = vmul.u32 %v2261_v24, %v2252_v21  ;;  %v2271_v10 = vadd.s32 1, %v11744_v44  ;;  %v14615_v21 = vld [vmem:[#allocation111_spill] sm:$0xff] }
 0x289   :  { %v2333_v42 = vshll.u32 %v14381_v23, %v14613_v27  ;;  %v2334_v3 = vshrl.u32 %v14367_v30, %v14614_v14  ;;  %v2336_v35 = vshll.u32 %v14367_v30, %v14613_v27  ;;  %v2337_v26 = vshrl.u32 %v14368_v0, %v14614_v14 }
 0x28a   :  { %v2339_v31 = vshll.u32 %v14368_v0, %v14613_v27  ;;  %v2340_v37 = vshrl.u32 %v14257_v8, %v14614_v14  ;;  %v1978_v24 = vshrl.u32 %v1960_v18, %v1976_v40  ;;  %v1672_v33 = vadd.s32 127, %v1671_v19 }
 0x28b   :  { %v2272_v46 = vsel %vm2270_vm2, %v2271_v10, %v11744_v44  ;;  %v2335_v62 = vor.u32 %v2334_v3, %v2333_v42  ;;  %vm1906_vm6 = vcmp.lt.s32.totalorder %v14565_v59, 0  ;;  %v2324_v29 = vor.u32 8388608, %v2323_v36  ;;  %v14616_v44 = vld [vmem:[#allocation125_spill] sm:$0xff]  ;;  %v14617_v36 = vld [vmem:[#allocation126_spill] sm:$0xff] }
 0x28c   :  { %v2273_v43 = vadd.s32 %v2272_v46, %v2268_v22  ;;  %v2338_v4 = vor.u32 %v2337_v26, %v2336_v35  ;;  %v2341_v45 = vor.u32 %v2340_v37, %v2339_v31  ;;  %v1983_v12 = vor.u32 4788187, %v1982_v20  ;;  %v14618_v22 = vld [vmem:[#allocation118_spill] sm:$0xff] }
 0x28d   :  { %v1667_v11 = vsub.s32 32, %v11735_v32  ;;  %vm2348_vm1 = vcmp.lt.s32.totalorder %v14615_v21, 1  ;;  %vm2350_vm5 = vcmp.lt.s32.totalorder %v14615_v21, 3  ;;  %v1766_v27 = vclz %v7680_v58 }
 0x28e   :  { %v2274_v2 = vadd.s32 536870912, %v2273_v43  ;;  %v2356_v18 = vsel %vm2348_vm1, %v2335_v62, %v2338_v4  ;;  %v2358_v40 = vsel %vm2350_vm5, %v2341_v45, %v14616_v44  ;;  %v1673_v19 = vshll.u32 %v1672_v33, 23 }
 0x28f   :  { %vm2349_vm7 = vcmp.lt.s32.totalorder %v14615_v21, 2  ;;  %v2360_v20 = vsel %vm2348_vm1, %v2338_v4, %v2341_v45  ;;  %v2362_v10 = vsel %vm2350_vm5, %v14618_v22, %v14617_v36  ;;  %v11794_v58 = vpop.eup %8124  ;;  %vm1899_vm0 = vcmp.eq.s32.totalorder %v11684_v9, 2 }
 0x290   :  { %v14619_v42 = vand.u32 2147483647, %v14565_v59  ;;  %v11803_v35 = vshrl.u32 %v2274_v2, 30  ;;  %v2359_v26 = vsel %vm2349_vm7, %v2356_v18, %v2358_v40  ;;  %v2363_v31 = vsel %vm2349_vm7, %v2360_v20, %v2362_v10  ;;  %v11809_v33 = vpop.eup %8126 }
 0x291   :  { %v2364_v37 = vshll.u32 %v2324_v29, 8  ;;  %v1388_v46 = vsel %vm1378_vm8, nan, %v1387_v48  ;;  %v4821_v44 = vsel %vm4814_vm12, %v4817_v28, %v4820_v61  ;;  %vm1896_vm11 = vcmp.eq.s32.totalorder %v11684_v9, 0 }
 0x292   :  { %vm11799_vm13 = vcmp.le.f32.partialorder %v14619_v42, 0.7853982  ;;  %v1979_v36 = vor.u32 %v1978_v24, %v1977_v5  ;;  %v1990_v2 = vsub.s32 4, %v11459_v16  ;;  %v1669_v22 = vshrl.u32 %v1651_v57, %v1667_v11 }
 0x293   :  { %v7681_v42 = vadd.s32 4294967294, %v1766_v27  ;;  %v11817_v18 = vmul.u32.u64.low %v2364_v37, %v2363_v31  ;;  %v11818_v40 = vmul.u32.u64.high %v2364_v37, %v2363_v31, %v11817_v18  ;;  %vm1597_vm3 = vcmp.lt.s32.totalorder %v14573_v50, 0 }
 0x294   :  { %v2276_v29 = vshll.u32 %v11803_v35, 30  ;;  %vm14622_vm15 = vcmp.lt.s32.totalorder %v14615_v21, 4  ;;  %v11824_v20 = vmul.u32.u64.low %v2364_v37, %v2359_v26  ;;  %v11825_v49 = vmul.u32.u64.high %v2364_v37, %v2359_v26, %v11824_v20 }
 0x295   :  { %v2353_v48 = vsel %vm14622_vm15, %v2341_v45, 2102212464  ;;  %v1984_v28 = vand.u32 2147483647, %v1983_v12  ;;  %v1668_v61 = vshll.u32 %v11591_v6, %v11735_v32  ;;  %v1674_v57 = vor.u32 4788187, %v1673_v19 }
 0x296   :  { %v2332_v5 = vshrl.u32 %v14381_v23, %v14614_v14  ;;  %v4822_v24 = vsel %vm1378_vm8, nan, %v4821_v44  ;;  %vm1895_vm4 = vcmp.lt.s32.totalorder %v11684_v9, 2  ;;  %v14211_v11 = vxor.u32 2147483648, %v11794_v58  ;;  %v14634_v19 = vld [vmem:[#allocation24_spill] sm:$0xff] }
 0x297   :  { %v1986_v45 = vcvt.s32.f32 %v1979_v36  ;;  %v1991_v27 = vsel %vm1906_vm6, %v1990_v2, %v11459_v16  ;;  %v1897_v12 = vxor.u32 2147483648, %v11809_v33  ;;  %v1670_v10 = vor.u32 %v1669_v22, %v1668_v61  ;;  %v14626_v22 = vld [vmem:[#allocation23_spill] sm:$0xff] }
 0x298   :  { %v2352_v6 = vsel %vm2348_vm1, %v2332_v5, %v2335_v62  ;;  %v2354_v32 = vsel %vm2350_vm5, %v2338_v4, %v2353_v48  ;;  %v3744_v53 = vmul.f32 %v11621_v17, %v1388_v46  ;;  %v14623_v14 = vand.u32 2147483647, %v14573_v50 }
 0x299   :  { %vm7682_vm14 = vcmp.lt.s32.totalorder %v7681_v42, 0  ;;  %v11851_v26 = vsub.s32 %v2273_v43, %v2276_v29  ;;  %v2374_v16 = vadd.s32 1, %v11825_v49  ;;  %vm1893_vm9 = vweird.f32 %v14546_v56 }
 0x29a   :  { %vm11847_vm10 = vcmp.le.f32.partialorder %v14623_v14, 0.7853982  ;;  %v1987_v31 = vmul.f32 %v1986_v45, %v1984_v28  ;;  %v1675_v62 = vand.u32 2147483647, %v1674_v57  ;;  %v1681_v44 = vsub.s32 4, %v11532_v47  ;;  %v14627_v28 = vld [vmem:[#allocation112_spill] sm:$0xff] }
 0x29b   :  { %vm2373_vm8 = vc.u32 %v11818_v40, %v11824_v20  ;;  %v7200_v17 = vmul.f32 %v11661_v15, %v4822_v24  ;;  %v1901_v43 = vsel %vm1899_vm0, %v14211_v11, %v11809_v33  ;;  %v1993_v4 = vsel %vm11799_vm13, 0, %v1991_v27  ;;  %v14628_v45 = vld [vmem:[#allocation102_spill] sm:$0xff] }
 0x29c   :  { %v2355_v46 = vsel %vm2349_vm7, %v2352_v6, %v2354_v32  ;;  %v1898_v36 = vsel %vm1896_vm11, %v11794_v58, %v1897_v12  ;;  %v1677_v2 = vcvt.s32.f32 %v1670_v10  ;;  %v11873_v15 = vsel %vm7682_vm14, 0, %v7681_v42 }
 0x29d   :  { %v14209_v18 = vand.u32 2147483647, %v14626_v22  ;;  %v2279_v29 = vsub.s32 0, %v11851_v26  ;;  %v2375_v48 = vsel %vm2373_vm8, %v2374_v16, %v11825_v49  ;;  %v2025_v61 = vshrl.u32 %v14367_v30, %v14627_v28 }
 0x29e   :  { %v2028_v21 = vshrl.u32 %v14368_v0, %v14627_v28  ;;  %v1988_v57 = vxor.u32 2147483648, %v1987_v31  ;;  %v1678_v5 = vmul.f32 %v1677_v2, %v1675_v62  ;;  %v1682_v24 = vsel %vm1597_vm3, %v1681_v44, %v11532_v47 }
 0x29f   :  { %v2371_v42 = vmul.u32 %v2364_v37, %v2355_v46  ;;  %v2024_v27 = vshll.u32 %v14381_v23, %v14628_v45  ;;  %v2027_v10 = vshll.u32 %v14367_v30, %v14628_v45  ;;  %v2030_v49 = vshll.u32 %v14368_v0, %v14628_v45 }
 0x2a0   :  { %v2031_v6 = vshrl.u32 %v14257_v8, %v14627_v28  ;;  %v1902_v32 = vsel %vm1895_vm4, %v1898_v36, %v1901_v43  ;;  %v1774_v14 = vsub.s32 4294967266, %v11873_v15  ;;  %v2014_v47 = vand.u32 8388607, %v14209_v18 }
 0x2a1   :  { %v11896_v16 = vadd.s32 %v2375_v48, %v2371_v42  ;;  %v7700_v37 = vmin.u32 %v2279_v29, %v11851_v26  ;;  %v11901_v62 = vor.u32 %v2025_v61, %v2024_v27  ;;  %v11903_v44 = vor.u32 %v2028_v21, %v2027_v10 }
 0x2a2   :  { %v2032_v46 = vor.u32 %v2031_v6, %v2030_v49  ;;  %v11907_v2 = vadd.f32 %v11675_v13, %v11670_v34  ;;  %v11909_v9 = vadd.f32 %v7200_v17, %v3744_v53  ;;  %v11911_v43 = vand.u32 3, %v1993_v4  ;;  %v14630_v13 = vld [vmem:[#allocation114_spill] sm:$0xff]  ;;  %v11923_v53 = vpop.permute.xlu1 %3692 }
 0x2a3   :  { %v1684_v36 = vsel %vm11847_vm10, 0, %v1682_v24  ;;  %v1903_v48 = vsel %vm1893_vm9, nan, %v1902_v32  ;;  %v1989_v29 = vsel %vm1906_vm6, %v1988_v57, %v1987_v31  ;;  %v1679_v61 = vxor.u32 2147483648, %v1678_v5  ;;  %v14631_v31 = vld [vmem:[#allocation127_spill] sm:$0xff] }
 0x2a4   :  { %14629 = vst [vmem:[#allocation54_spill] sm:$0xff] %v11907_v2  ;;  %v5332_v21 = vadd.s32 3, %v11653_v51  ;;  %v1775_v42 = vadd.s32 127, %v1774_v14  ;;  %v2377_v34 = vadd.s32 536870912, %v11896_v16  ;;  %vm2039_vm12 = vcmp.lt.s32.totalorder %v14630_v13, 1  ;;  %v14632_v14 = vld [vmem:[#allocation128_spill] sm:$0xff] }
 0x2a5   :  { %vm2041_vm2 = vcmp.lt.s32.totalorder %v14630_v13, 3  ;;  %v2281_v17 = vclz %v7700_v37  ;;  %v2015_v24 = vor.u32 8388608, %v2014_v47  ;;  %v2047_v45 = vsel %vm2039_vm12, %v11901_v62, %v11903_v44  ;;  %v14633_v47 = vld [vmem:[#allocation119_spill] sm:$0xff] }
 0x2a6   :  { %v2049_v51 = vsel %vm2041_vm2, %v2032_v46, %v14631_v31  ;;  %v11933_v57 = vmul.f32 %v11923_v53, %v1903_v48  ;;  %v11935_v27 = vand.u32 3, %v1684_v36  ;;  %v1770_v10 = vsub.s32 32, %v11873_v15 }
 0x2a7   :  { %v2051_v49 = vsel %vm2039_vm12, %v11903_v44, %v2032_v46  ;;  %v1992_v6 = vsel %vm11799_vm13, %v14565_v59, %v1989_v29  ;;  %v1754_v32 = vadd.s32 %v11499_v25, %v11506_v39  ;;  %vm2040_vm6 = vcmp.lt.s32.totalorder %v14630_v13, 2 }
 0x2a8   :  { %v2053_v37 = vsel %vm2041_vm2, %v14633_v47, %v14632_v14  ;;  %v1680_v48 = vsel %vm1597_vm3, %v1679_v61, %v1678_v5  ;;  %v1776_v31 = vshll.u32 %v1775_v42, 23  ;;  %v11953_v18 = vshrl.u32 %v2377_v34, 30 }
 0x2a9   :  { %v2050_v3 = vsel %vm2040_vm6, %v2047_v45, %v2049_v51  ;;  %v11957_v29 = vand.u32 3, %v5332_v21  ;;  %v7701_v52 = vadd.s32 4294967294, %v2281_v17  ;;  %v2054_v25 = vsel %vm2040_vm6, %v2051_v49, %v2053_v37 }
 0x2aa   :  { %v11961_v39 = vshll.u32 %v2015_v24, 8  ;;  %8128 = vcosq.f32 %v1992_v6  ;;  %v1772_v11 = vshrl.u32 %v1754_v32, %v1770_v10  ;;  %v5436_v14 = vadd.s32 3, %v1993_v4  ;;  %v14637_v32 = vld [vmem:[#allocation113_spill] sm:$0xff] }
 0x2ab   :  { %v5124_v47 = vadd.s32 3, %v1684_v36  ;;  %v1683_v5 = vsel %vm11847_vm10, %v14573_v50, %v1680_v48  ;;  %v1771_v61 = vshll.u32 %v11710_v54, %v11873_v15  ;;  %v1777_v34 = vor.u32 4788187, %v1776_v31 }
 0x2ac   :  { %v11969_v21 = vmul.u32.u64.low %v11961_v39, %v2050_v3  ;;  %v11970_v42 = vmul.u32.u64.high %v11961_v39, %v2050_v3, %v11969_v21  ;;  %v2379_v17 = vshll.u32 %v11953_v18, 30  ;;  %vm5335_vm1 = vcmp.eq.s32.totalorder %v11957_v29, 0 }
 0x2ad   :  { %v11975_v24 = vmul.u32.u64.low %v11961_v39, %v2054_v25  ;;  %v11976_v45 = vmul.u32.u64.high %v11961_v39, %v2054_v25, %v11975_v24  ;;  %vm5338_vm5 = vcmp.eq.s32.totalorder %v11957_v29, 2  ;;  %vm7702_vm7 = vcmp.lt.s32.totalorder %v7701_v52, 0 }
 0x2ae   :  { %v14212_v4 = vand.u32 2147483647, %v14634_v19  ;;  %8130 = vsinq.f32 %v1992_v6  ;;  %v1773_v54 = vor.u32 %v1772_v11, %v1771_v61  ;;  %v5337_v15 = vsel %vm5335_vm1, %v11794_v58, %v1897_v12 }
 0x2af   :  { %v14635_v36 = vxor.u32 2147483648, %v11794_v58  ;;  %8132 = vcosq.f32 %v1683_v5  ;;  %v11987_v10 = vand.u32 3, %v5436_v14  ;;  %vm14636_vm0 = vcmp.lt.s32.totalorder %v14630_v13, 4  ;;  %v14639_v14 = vld [vmem:[#allocation17_spill] sm:$0xff] }
 0x2b0   :  { %v2044_v49 = vsel %vm14636_vm0, %v2032_v46, 2102212464  ;;  %v2128_v37 = vshrl.u32 %v14367_v30, %v14637_v32  ;;  %v1778_v48 = vand.u32 2147483647, %v1777_v34  ;;  %v11993_v6 = vsel %vm7702_vm7, 0, %v7701_v52 }
 0x2b1   :  { %v5340_v51 = vsel %vm5338_vm5, %v14635_v36, %v11809_v33  ;;  %v11996_v11 = vsub.s32 %v11896_v16, %v2379_v17  ;;  %v2023_v12 = vshrl.u32 %v14381_v23, %v14627_v28  ;;  %vm5334_vm13 = vcmp.lt.s32.totalorder %v11957_v29, 2  ;;  %v14638_v33 = vld [vmem:[#allocation108_spill] sm:$0xff] }
 0x2b2   :  { %v2117_v58 = vand.u32 8388607, %v14212_v4  ;;  %v2127_v46 = vshll.u32 %v14381_v23, %v14638_v33  ;;  %v2130_v31 = vshll.u32 %v14367_v30, %v14638_v33  ;;  %v2131_v52 = vshrl.u32 %v14368_v0, %v14637_v32 }
 0x2b3   :  { %v1780_v3 = vcvt.s32.f32 %v1773_v54  ;;  %v2043_v16 = vsel %vm2039_vm12, %v2023_v12, %v11901_v62  ;;  %v2045_v28 = vsel %vm2041_vm2, %v11903_v44, %v2044_v49  ;;  %v2065_v25 = vadd.s32 1, %v11970_v42 }
 0x2b4   :  { %vm1700_vm11 = vcmp.lt.s32.totalorder %v14639_v14, 0  ;;  %v2129_v61 = vor.u32 %v2128_v37, %v2127_v46  ;;  %v2132_v34 = vor.u32 %v2131_v52, %v2130_v31  ;;  %v2133_v17 = vshll.u32 %v14368_v0, %v14638_v33  ;;  %v12021_v54 = vpop.eup %8128  ;;  %v14640_v46 = vld [vmem:[#allocation115_spill] sm:$0xff]  ;;  %v14644_v52 = vld [vmem:[#allocation132_spill] sm:$0xff] }
 0x2b5   :  { %v2134_v24 = vshrl.u32 %v14257_v8, %v14637_v32  ;;  %v1781_v36 = vmul.f32 %v1780_v3, %v1778_v48  ;;  %v2289_v62 = vsub.s32 4294967266, %v11993_v6  ;;  %v2382_v12 = vsub.s32 0, %v11996_v11  ;;  %v14645_v3 = vld [vmem:[#allocation123_spill] sm:$0xff] }
 0x2b6   :  { %vm2064_vm3 = vc.u32 %v11976_v45, %v11969_v21  ;;  %v2046_v44 = vsel %vm2040_vm6, %v2043_v16, %v2045_v28  ;;  %v2118_v49 = vor.u32 8388608, %v2117_v58  ;;  %vm2144_vm15 = vcmp.lt.s32.totalorder %v14640_v46, 3  ;;  %v14646_v16 = vld [vmem:[#allocation130_spill] sm:$0xff] }
 0x2b7   :  { %v2135_v37 = vor.u32 %v2134_v24, %v2133_v17  ;;  %8134 = vsinq.f32 %v1683_v5  ;;  %v14641_v33 = vand.u32 2147483647, %v14639_v14  ;;  %v12036_v48 = vand.u32 3, %v5124_v47 }
 0x2b8   :  { %vm2142_vm10 = vcmp.lt.s32.totalorder %v14640_v46, 1  ;;  %v2156_v13 = vsel %vm2144_vm15, %v14645_v3, %v14644_v52  ;;  %v2066_v58 = vsel %vm2064_vm3, %v2065_v25, %v11970_v42  ;;  %v12051_v17 = vpop.eup %8130  ;;  %v1782_v24 = vxor.u32 2147483648, %v1781_v36 }
 0x2b9   :  { %vm12032_vm4 = vcmp.le.f32.partialorder %v14641_v33, 0.7853982  ;;  %v2150_v5 = vsel %vm2142_vm10, %v2129_v61, %v2132_v34  ;;  %v2152_v28 = vsel %vm2144_vm15, %v2135_v37, %v14646_v16  ;;  %v2154_v47 = vsel %vm2142_vm10, %v2132_v34, %v2135_v37  ;;  %v12056_v42 = vpop.eup %8132 }
 0x2ba   :  { %v7704_v33 = vmin.u32 %v2382_v12, %v11996_v11  ;;  %v2062_v4 = vmul.u32 %v11961_v39, %v2046_v44  ;;  %vm2143_vm14 = vcmp.lt.s32.totalorder %v14640_v46, 2  ;;  %v2290_v25 = vadd.s32 127, %v2289_v62 }
 0x2bb   :  { %vm14647_vm8 = vcmp.lt.s32.totalorder %v14640_v46, 4  ;;  %v2157_v3 = vsel %vm2143_vm14, %v2154_v47, %v2156_v13  ;;  %v2158_v16 = vshll.u32 %v2118_v49, 8  ;;  %v5341_v63 = vsel %vm5334_vm13, %v5337_v15, %v5340_v51  ;;  %v14648_v47 = vld [vmem:[#allocation45_spill] sm:$0xff] }
 0x2bc   :  { %v2147_v52 = vsel %vm14647_vm8, %v2135_v37, 2102212464  ;;  %v12064_v2 = vadd.s32 %v2066_v58, %v2062_v4  ;;  %v2126_v39 = vshrl.u32 %v14381_v23, %v14637_v32  ;;  %v2153_v12 = vsel %vm2143_vm14, %v2150_v5, %v2152_v28 }
 0x2bd   :  { %vm2002_vm12 = vcmp.eq.s32.totalorder %v11911_v43, 2  ;;  %v1784_v62 = vsub.s32 4, %v11655_v60  ;;  %v2285_v44 = vsub.s32 32, %v11993_v6  ;;  %vm1999_vm2 = vcmp.eq.s32.totalorder %v11911_v43, 0 }
 0x2be   :  { %v12073_v37 = vmul.u32.u64.low %v2158_v16, %v2157_v3  ;;  %v12074_v13 = vmul.u32.u64.high %v2158_v16, %v2157_v3, %v12073_v37  ;;  %v1783_v29 = vsel %vm1700_vm11, %v1782_v24, %v1781_v36  ;;  %v2384_v4 = vclz %v7704_v33  ;;  %v14650_v3 = vld [vmem:[#allocation57_spill] sm:$0xff] }
 0x2bf   :  { %v2146_v15 = vsel %vm2142_vm10, %v2126_v39, %v2129_v61  ;;  %v2148_v51 = vsel %vm2144_vm15, %v2132_v34, %v2147_v52  ;;  %v2269_v32 = vadd.s32 %v11743_v1, %v11733_v55  ;;  %v2291_v49 = vshll.u32 %v2290_v25, 23  ;;  %v14649_v61 = vld [vmem:[#allocation44_spill] sm:$0xff]  ;;  %v14651_v39 = vld [vmem:[#allocation53_spill] sm:$0xff] }
 0x2c0   :  { %v12085_v58 = vmul.u32.u64.low %v2158_v16, %v2153_v12  ;;  %v12086_v5 = vmul.u32.u64.high %v2158_v16, %v2153_v12, %v12085_v58  ;;  %v5342_v28 = vsel %vm1893_vm9, nan, %v5341_v63  ;;  %vm5439_vm6 = vcmp.eq.s32.totalorder %v11987_v10, 0 }
 0x2c1   :  { %v2068_v36 = vadd.s32 536870912, %v12064_v2  ;;  %v7225_v24 = vadd.f32 %v14649_v61, %v14648_v47  ;;  %vm1998_vm1 = vcmp.lt.s32.totalorder %v11911_v43, 2  ;;  %v2003_v34 = vxor.u32 2147483648, %v12021_v54  ;;  %v8135_v63 = vpop.eup %8134  ;;  %v7149_v47 = vpop.permute.xlu1 %7148 }
 0x2c2   :  { %v1786_v55 = vsel %vm12032_vm4, %v14639_v14, %v1783_v29  ;;  %v2287_v1 = vshrl.u32 %v2269_v32, %v2285_v44  ;;  %v2149_v56 = vsel %vm2143_vm14, %v2146_v15, %v2148_v51  ;;  %v2000_v33 = vxor.u32 2147483648, %v12051_v17 }
 0x2c3   :  { %vm1693_vm9 = vcmp.eq.s32.totalorder %v11935_v27, 2  ;;  %v1785_v25 = vsel %vm1700_vm11, %v1784_v62, %v11655_v60  ;;  %vm5438_vm5 = vcmp.lt.s32.totalorder %v11987_v10, 2  ;;  %v7705_v52 = vadd.s32 4294967294, %v2384_v4 }
 0x2c4   :  { %v7223_v12 = vadd.f32 %v14651_v39, %v14650_v3  ;;  %vm1690_vm7 = vcmp.eq.s32.totalorder %v11935_v27, 0  ;;  %v2286_v46 = vshll.u32 %v11851_v26, %v11993_v6  ;;  %v2292_v44 = vor.u32 4788187, %v2291_v49  ;;  %v14652_v3 = vld [vmem:[#allocation56_spill] sm:$0xff]  ;;  %v14653_v39 = vld [vmem:[#allocation63_spill] sm:$0xff] }
 0x2c5   :  { %vm2167_vm0 = vc.u32 %v12074_v13, %v12085_v58  ;;  %v2168_v37 = vadd.s32 1, %v12086_v5  ;;  %8136 = vcosq.f32 %v1786_v55  ;;  %v12116_v29 = vshrl.u32 %v2068_v36, 30 }
 0x2c6   :  { %v2165_v60 = vmul.u32 %v2158_v16, %v2149_v56  ;;  %v7889_v62 = vpack.c.bf16 %v7225_v24, %v7223_v12  ;;  %vm1996_vm13 = vweird.f32 %v14565_v59  ;;  %8138 = vsinq.f32 %v1786_v55 }
 0x2c7   :  { %vm5442_vm11 = vcmp.eq.s32.totalorder %v11987_v10, 2  ;;  %v2288_v4 = vor.u32 %v2287_v1, %v2286_v46  ;;  %v2169_v15 = vsel %vm2167_vm0, %v2168_v37, %v12086_v5  ;;  %v2004_v26 = vsel %vm2002_vm12, %v2003_v34, %v12051_v17 }
 0x2c8   :  { %vm1689_vm3 = vcmp.lt.s32.totalorder %v11935_v27, 2  ;;  %v1787_v6 = vsel %vm12032_vm4, 0, %v1785_v25  ;;  %vm7706_vm15 = vcmp.lt.s32.totalorder %v7705_v52, 0  ;;  %v12127_v16 = vadd.s32 %v2169_v15, %v2165_v60  ;;  %7890 = vmatpush1.bf16.msra.mxu0 %v7889_v62 }
 0x2c9   :  { %v2001_v51 = vsel %vm1999_vm2, %v12021_v54, %v2000_v33  ;;  %v1694_v32 = vxor.u32 2147483648, %v12056_v42  ;;  %v5441_v49 = vsel %vm5439_vm6, %v12021_v54, %v2000_v33  ;;  %v2293_v5 = vand.u32 2147483647, %v2292_v44 }
 0x2ca   :  { %v1691_v36 = vxor.u32 2147483648, %v8135_v63  ;;  %v5444_v31 = vsel %vm5442_vm11, %v2003_v34, %v12051_v17  ;;  %v2070_v61 = vshll.u32 %v12116_v29, 30  ;;  %v2171_v24 = vadd.s32 536870912, %v12127_v16 }
 0x2cb   :  { %vm1687_vm4 = vweird.f32 %v14573_v50  ;;  %v7205_v55 = vmul.f32 %v7149_v47, %v5342_v28  ;;  %vm5127_vm10 = vcmp.eq.s32.totalorder %v12036_v48, 0  ;;  %v2295_v1 = vcvt.s32.f32 %v2288_v4 }
 0x2cc   :  { %v12142_v56 = vsel %vm7706_vm15, 0, %v7705_v52  ;;  %v2005_v54 = vsel %vm1998_vm1, %v2001_v51, %v2004_v26  ;;  %v12146_v33 = vand.u32 3, %v1787_v6  ;;  %vm5130_vm14 = vcmp.eq.s32.totalorder %v12036_v48, 2 }
 0x2cd   :  { %v5228_v17 = vadd.s32 3, %v1787_v6  ;;  %v1695_v34 = vsel %vm1693_vm9, %v1694_v32, %v8135_v63  ;;  %v5445_v28 = vsel %vm5438_vm5, %v5441_v49, %v5444_v31  ;;  %v2296_v25 = vmul.f32 %v2295_v1, %v2293_v5  ;;  %v14658_v1 = vld [vmem:[#allocation27_spill] sm:$0xff] }
 0x2ce   :  { %v7891_v12 = vpack.c.bf16 %v14653_v39, %v14652_v3  ;;  %v1692_v43 = vsel %vm1690_vm7, %v12056_v42, %v1691_v36  ;;  %v2392_v52 = vsub.s32 4294967266, %v12142_v56  ;;  %v12160_v46 = vsub.s32 %v12064_v2, %v2070_v61 }
 0x2cf   :  { %v12162_v44 = vshrl.u32 %v2171_v24, 30  ;;  %v12165_v37 = vadd.f32 %v7205_v55, %v11933_v57  ;;  %vm5126_vm8 = vcmp.lt.s32.totalorder %v12036_v48, 2  ;;  %v5129_v10 = vsel %vm5127_vm10, %v12056_v42, %v1691_v36  ;;  %v8137_v62 = vpop.eup %8136 }
 0x2d0   :  { %v5132_v60 = vsel %vm5130_vm14, %v1694_v32, %v8135_v63  ;;  %7892 = vmatprep.subr.bf16.mxu0 %v7891_v12  ;;  %v2006_v4 = vsel %vm1996_vm13, nan, %v2005_v54  ;;  %v5446_v2 = vsel %vm1996_vm13, nan, %v5445_v28  ;;  %v14655_v15 = vand.u32 2147483647, %v14601_v38  ;;  %v8139_v26 = vpop.eup %8138  ;;  %v12187_v32 = vpop.permute.xlu0 %3687 }
 0x2d1   :  { %14654 = vst [vmem:[#allocation49_spill] sm:$0xff] %v12165_v37  ;;  %vm2215_vm2 = vcmp.lt.s32.totalorder %v14601_v38, 0  ;;  %v1696_v42 = vsel %vm1689_vm3, %v1692_v43, %v1695_v34  ;;  %v12184_v63 = vand.u32 3, %v5228_v17  ;;  %v2297_v6 = vxor.u32 2147483648, %v2296_v25  ;;  %v14695_v37 = vld [vmem:[#allocation143_spill] sm:$0xff] }
 0x2d2   :  { %vm12177_vm12 = vcmp.le.f32.partialorder %v14655_v15, 0.7853982  ;;  %v2299_v51 = vsub.s32 4, %v11803_v35  ;;  %vm1792_vm6 = vcmp.lt.s32.totalorder %v12146_v33, 2  ;;  %v5133_v59 = vsel %vm5126_vm8, %v5129_v10, %v5132_v60 }
 0x2d3   :  { %v2393_v49 = vadd.s32 127, %v2392_v52  ;;  %v2073_v5 = vsub.s32 0, %v12160_v46  ;;  %v2173_v36 = vshll.u32 %v12162_v44, 30  ;;  %v3750_v27 = vmul.f32 %v11923_v53, %v2006_v4 }
 0x2d4   :  { %vm1793_vm1 = vcmp.eq.s32.totalorder %v12146_v33, 0  ;;  %vm1796_vm9 = vcmp.eq.s32.totalorder %v12146_v33, 2  ;;  %v7206_v31 = vmul.f32 %v7149_v47, %v5446_v2  ;;  %v1697_v61 = vsel %vm1687_vm4, nan, %v1696_v42  ;;  %v12225_v43 = vpop.permute.xlu0 %7143 }
 0x2d5   :  { %v1794_v24 = vxor.u32 2147483648, %v8139_v26  ;;  %v1797_v55 = vxor.u32 2147483648, %v8137_v62  ;;  %v14216_v48 = vand.u32 2147483647, %v14658_v1  ;;  %v5134_v54 = vsel %vm1687_vm4, nan, %v5133_v59 }
 0x2d6   :  { %vm5231_vm5 = vcmp.eq.s32.totalorder %v12184_v63, 0  ;;  %v2298_v53 = vsel %vm2215_vm2, %v2297_v6, %v2296_v25  ;;  %v2300_v17 = vsel %vm2215_vm2, %v2299_v51, %v11803_v35  ;;  %v2388_v47 = vsub.s32 32, %v12142_v56  ;;  %v14659_v51 = vld [vmem:[#allocation117_spill] sm:$0xff] }
 0x2d7   :  { %v2394_v34 = vshll.u32 %v2393_v49, 23  ;;  %v7692_v28 = vmin.u32 %v2073_v5, %v12160_v46  ;;  %v12211_v3 = vsub.s32 %v12127_v16, %v2173_v36  ;;  %v12214_v50 = vmul.f32 %v12187_v32, %v1697_v61 }
 0x2d8   :  { %v12216_v39 = vadd.f32 %v7206_v31, %v3750_v27  ;;  %vm5234_vm7 = vcmp.eq.s32.totalorder %v12184_v63, 2  ;;  %v2372_v25 = vadd.s32 %v11824_v20, %v11818_v40  ;;  %v1795_v35 = vsel %vm1793_vm1, %v8137_v62, %v1794_v24 }
 0x2d9   :  { %v1798_v12 = vsel %vm1796_vm9, %v1797_v55, %v8139_v26  ;;  %v2301_v16 = vsel %vm12177_vm12, %v14601_v38, %v2298_v53  ;;  %v2632_v52 = vand.u32 8388607, %v14216_v48  ;;  %vm5230_vm0 = vcmp.lt.s32.totalorder %v12184_v63, 2 }
 0x2da   :  { %v5233_v40 = vsel %vm5231_vm5, %v8137_v62, %v1794_v24  ;;  %v5236_v20 = vsel %vm5234_vm7, %v1797_v55, %v8139_v26  ;;  %v7203_v10 = vmul.f32 %v12225_v43, %v5134_v54  ;;  %v12238_v60 = vsel %vm12177_vm12, 0, %v2300_v17  ;;  %v14660_v26 = vld [vmem:[#allocation120_spill] sm:$0xff]  ;;  %v14661_v17 = vld [vmem:[#allocation133_spill] sm:$0xff] }
 0x2db   :  { %v2390_v4 = vshrl.u32 %v2372_v25, %v2388_v47  ;;  %v2395_v2 = vor.u32 4788187, %v2394_v34  ;;  %v2075_v15 = vclz %v7692_v28  ;;  %v2176_v42 = vsub.s32 0, %v12211_v3  ;;  %v14662_v47 = vld [vmem:[#allocation144_spill] sm:$0xff]  ;;  %v14663_v34 = vld [vmem:[#allocation135_spill] sm:$0xff] }
 0x2dc   :  { %vm1790_vm13 = vweird.f32 %v14639_v14  ;;  %v1799_v6 = vsel %vm1792_vm6, %v1795_v35, %v1798_v12  ;;  %8140 = vcosq.f32 %v2301_v16  ;;  %v2642_v62 = vshll.u32 %v14381_v23, %v14659_v51 }
 0x2dd   :  { %v2643_v59 = vshrl.u32 %v14367_v30, %v14660_v26  ;;  %8142 = vsinq.f32 %v2301_v16  ;;  %v2389_v57 = vshll.u32 %v11996_v11, %v12142_v56  ;;  %v2633_v49 = vor.u32 8388608, %v2632_v52  ;;  %v14665_v16 = vld [vmem:[#allocation141_spill] sm:$0xff] }
 0x2de   :  { %v2645_v5 = vshll.u32 %v14367_v30, %v14659_v51  ;;  %v2646_v33 = vshrl.u32 %v14368_v0, %v14660_v26  ;;  %v2648_v27 = vshll.u32 %v14368_v0, %v14659_v51  ;;  %v2649_v31 = vshrl.u32 %v14257_v8, %v14660_v26 }
 0x2df   :  { %v2644_v36 = vor.u32 %v2643_v59, %v2642_v62  ;;  %v2391_v61 = vor.u32 %v2390_v4, %v2389_v57  ;;  %v2396_v24 = vand.u32 2147483647, %v2395_v2  ;;  %v7693_v55 = vadd.s32 4294967294, %v2075_v15 }
 0x2e0   :  { %v7696_v54 = vmin.u32 %v2176_v42, %v12211_v3  ;;  %v2641_v11 = vshrl.u32 %v14381_v23, %v14660_v26  ;;  %v2647_v56 = vor.u32 %v2646_v33, %v2645_v5  ;;  %v2650_v53 = vor.u32 %v2649_v31, %v2648_v27 }
 0x2e1   :  { %vm2659_vm11 = vcmp.lt.s32.totalorder %v14661_v17, 3  ;;  %vm2657_vm3 = vcmp.lt.s32.totalorder %v14661_v17, 1  ;;  %vm2658_vm15 = vcmp.lt.s32.totalorder %v14661_v17, 2  ;;  %v2673_v25 = vshll.u32 %v2633_v49, 8 }
 0x2e2   :  { %v2671_v28 = vsel %vm2659_vm11, %v14663_v34, %v14662_v47  ;;  %vm14664_vm4 = vcmp.lt.s32.totalorder %v14661_v17, 4  ;;  %v2665_v12 = vsel %vm2657_vm3, %v2644_v36, %v2647_v56  ;;  %v2667_v52 = vsel %vm2659_vm11, %v2650_v53, %v14665_v16 }
 0x2e3   :  { %v2662_v35 = vsel %vm14664_vm4, %v2650_v53, 2102212464  ;;  %v2669_v4 = vsel %vm2657_vm3, %v2647_v56, %v2650_v53  ;;  %v5237_v2 = vsel %vm5230_vm0, %v5233_v40, %v5236_v20  ;;  %v2398_v15 = vcvt.s32.f32 %v2391_v61 }
 0x2e4   :  { %v2661_v42 = vsel %vm2657_vm3, %v2641_v11, %v2644_v36  ;;  %v2668_v51 = vsel %vm2658_vm15, %v2665_v12, %v2667_v52  ;;  %v2663_v62 = vsel %vm2659_vm11, %v2647_v56, %v2662_v35  ;;  %v2672_v26 = vsel %vm2658_vm15, %v2669_v4, %v2671_v28 }
 0x2e5   :  { %v12275_v59 = vmul.u32.u64.low %v2673_v25, %v2668_v51  ;;  %v12276_v57 = vmul.u32.u64.high %v2673_v25, %v2668_v51, %v12275_v59  ;;  %v1800_v49 = vsel %vm1790_vm13, nan, %v1799_v6  ;;  %v2399_v5 = vmul.f32 %v2398_v15, %v2396_v24 }
 0x2e6   :  { %v12281_v33 = vmul.u32.u64.low %v2673_v25, %v2672_v26  ;;  %v12282_v63 = vmul.u32.u64.high %v2673_v25, %v2672_v26, %v12281_v33  ;;  %v12284_v40 = vpop.eup %8140  ;;  %v5238_v20 = vsel %vm1790_vm13, nan, %v5237_v2  ;;  %v2402_v36 = vsub.s32 4, %v11953_v18 }
 0x2e7   :  { %vm7694_vm10 = vcmp.lt.s32.totalorder %v7693_v55, 0  ;;  %v2178_v27 = vclz %v7696_v54  ;;  %v12289_v31 = vpop.eup %8142  ;;  %v12292_v61 = vand.u32 3, %v12238_v60  ;;  %vm2318_vm14 = vcmp.lt.s32.totalorder %v14612_v7, 0  ;;  %v14667_v54 = vld [vmem:[#allocation28_spill] sm:$0xff] }
 0x2e8   :  { %v2093_v6 = vsub.s32 4, %v12116_v29  ;;  %v2664_v24 = vsel %vm2658_vm15, %v2661_v42, %v2663_v62  ;;  %v12299_v11 = vadd.f32 %v7203_v10, %v12214_v50  ;;  %vm2009_vm8 = vcmp.lt.s32.totalorder %v14626_v22, 0  ;;  %v14681_v62 = vld [vmem:[#allocation29_spill] sm:$0xff] }
 0x2e9   :  { %v2683_v14 = vadd.s32 1, %v12276_v57  ;;  %v14213_v56 = vand.u32 2147483647, %v14667_v54  ;;  %v12305_v53 = vmul.f32 %v12187_v32, %v1800_v49  ;;  %v7204_v47 = vmul.f32 %v12225_v43, %v5238_v20 }
 0x2ea   :  { %14666 = vst [vmem:[#allocation58_spill] sm:$0xff] %v12299_v11  ;;  %v2400_v34 = vxor.u32 2147483648, %v2399_v5  ;;  %v12309_v28 = vsel %vm7694_vm10, 0, %v7693_v55  ;;  %v12314_v50 = vsel %vm2318_vm14, %v2402_v36, %v11953_v18  ;;  %v7697_v10 = vadd.s32 4294967294, %v2178_v27 }
 0x2eb   :  { %v2680_v17 = vmul.u32 %v2673_v25, %v2664_v24  ;;  %vm2682_vm12 = vc.u32 %v12282_v63, %v12275_v59  ;;  %vm2311_vm2 = vcmp.eq.s32.totalorder %v12292_v61, 2  ;;  %v2312_v32 = vxor.u32 2147483648, %v12284_v40 }
 0x2ec   :  { %v2063_v43 = vadd.s32 %v11969_v21, %v11976_v45  ;;  %v12325_v55 = vsel %vm2009_vm8, %v2093_v6, %v12116_v29  ;;  %v2684_v18 = vsel %vm2682_vm12, %v2683_v14, %v12276_v57  ;;  %v2083_v35 = vsub.s32 4294967266, %v12309_v28  ;;  %v14668_v45 = vld [vmem:[#allocation121_spill] sm:$0xff] }
 0x2ed   :  { %v5748_v25 = vadd.s32 3, %v12238_v60  ;;  %v2685_v12 = vadd.s32 %v2684_v18, %v2680_v17  ;;  %v2735_v16 = vand.u32 8388607, %v14213_v56  ;;  %v2309_v52 = vxor.u32 2147483648, %v12289_v31  ;;  %v14669_v29 = vld [vmem:[#allocation129_spill] sm:$0xff]  ;;  %v14676_v17 = vld [vmem:[#allocation134_spill] sm:$0xff] }
 0x2ee   :  { %v2401_v21 = vsel %vm2318_vm14, %v2400_v34, %v2399_v5  ;;  %v2745_v4 = vshll.u32 %v14381_v23, %v14668_v45  ;;  %v2746_v2 = vshrl.u32 %v14367_v30, %v14669_v29  ;;  %vm2308_vm6 = vcmp.eq.s32.totalorder %v12292_v61, 0 }
 0x2ef   :  { %vm7698_vm1 = vcmp.lt.s32.totalorder %v7697_v10, 0  ;;  %v2686_v15 = vadd.s32 536870912, %v2685_v12  ;;  %v2748_v60 = vshll.u32 %v14367_v30, %v14668_v45  ;;  %v2749_v42 = vshrl.u32 %v14368_v0, %v14669_v29 }
 0x2f0   :  { %v14670_v51 = vand.u32 2147483647, %v14612_v7  ;;  %v2079_v26 = vsub.s32 32, %v12309_v28  ;;  %v2747_v57 = vor.u32 %v2746_v2, %v2745_v4  ;;  %v2751_v49 = vshll.u32 %v14368_v0, %v14668_v45  ;;  %v14677_v45 = vld [vmem:[#allocation147_spill] sm:$0xff]  ;;  %v14678_v4 = vld [vmem:[#allocation142_spill] sm:$0xff] }
 0x2f1   :  { %v2752_v5 = vshrl.u32 %v14257_v8, %v14669_v29  ;;  %v2084_v33 = vadd.s32 127, %v2083_v35  ;;  %v12355_v20 = vshrl.u32 %v2686_v15, 30  ;;  %v2736_v36 = vor.u32 8388608, %v2735_v16  ;;  %v14680_v15 = vld [vmem:[#allocation146_spill] sm:$0xff] }
 0x2f2   :  { %vm12346_vm9 = vcmp.le.f32.partialorder %v14670_v51, 0.7853982  ;;  %v2750_v27 = vor.u32 %v2749_v42, %v2748_v60  ;;  %v14673_v6 = vand.u32 2147483647, %v14626_v22  ;;  %v12363_v14 = vsel %vm7698_vm1, 0, %v7697_v10 }
 0x2f3   :  { %v2753_v34 = vor.u32 %v2752_v5, %v2751_v49  ;;  %vm2760_vm7 = vcmp.lt.s32.totalorder %v14676_v17, 1  ;;  %vm2762_vm0 = vcmp.lt.s32.totalorder %v14676_v17, 3  ;;  %v2688_v18 = vshll.u32 %v12355_v20, 30 }
 0x2f4   :  { %vm12359_vm5 = vcmp.le.f32.partialorder %v14673_v6, 0.7853982  ;;  %v2744_v35 = vshrl.u32 %v14381_v23, %v14669_v29  ;;  %v2768_v16 = vsel %vm2760_vm7, %v2747_v57, %v2750_v27  ;;  %v2774_v2 = vsel %vm2762_vm0, %v14678_v4, %v14677_v45 }
 0x2f5   :  { %vm2761_vm13 = vcmp.lt.s32.totalorder %v14676_v17, 2  ;;  %vm14679_vm11 = vcmp.lt.s32.totalorder %v14676_v17, 4  ;;  %v2770_v60 = vsel %vm2762_vm0, %v2753_v34, %v14680_v15  ;;  %v2772_v29 = vsel %vm2760_vm7, %v2750_v27, %v2753_v34 }
 0x2f6   :  { %v2765_v10 = vsel %vm14679_vm11, %v2753_v34, 2102212464  ;;  %v2313_v42 = vsel %vm2311_vm2, %v2312_v32, %v12289_v31  ;;  %v12389_v51 = vsub.s32 %v2685_v12, %v2688_v18  ;;  %v2771_v49 = vsel %vm2761_vm13, %v2768_v16, %v2770_v60 }
 0x2f7   :  { %v2776_v5 = vshll.u32 %v2736_v36, 8  ;;  %vm2305_vm3 = vweird.f32 %v14601_v38  ;;  %v2085_v6 = vshll.u32 %v2084_v33, 23  ;;  %v2186_v45 = vsub.s32 4294967266, %v12363_v14  ;;  %v14692_v38 = vld [vmem:[#allocation30_spill] sm:$0xff] }
 0x2f8   :  { %v2764_v34 = vsel %vm2760_vm7, %v2744_v35, %v2747_v57  ;;  %v2775_v4 = vsel %vm2761_vm13, %v2772_v29, %v2774_v2  ;;  %v2691_v15 = vsub.s32 0, %v12389_v51  ;;  %v2766_v12 = vsel %vm2762_vm0, %v2750_v27, %v2765_v10 }
 0x2f9   :  { %v12402_v18 = vmul.u32.u64.low %v2776_v5, %v2775_v4  ;;  %v12403_v56 = vmul.u32.u64.high %v2776_v5, %v2775_v4, %v12402_v18  ;;  %v2310_v33 = vsel %vm2308_vm6, %v12284_v40, %v2309_v52  ;;  %v2081_v36 = vshrl.u32 %v2063_v43, %v2079_v26 }
 0x2fa   :  { %v12410_v16 = vmul.u32.u64.low %v2776_v5, %v2771_v49  ;;  %v12411_v57 = vmul.u32.u64.high %v2776_v5, %v2771_v49, %v12410_v16  ;;  %v12415_v35 = vadd.f32 %v7204_v47, %v12305_v53  ;;  %vm2307_vm15 = vcmp.lt.s32.totalorder %v12292_v61, 2 }
 0x2fb   :  { %v2404_v27 = vsel %vm12346_vm9, %v14612_v7, %v2401_v21  ;;  %v7716_v2 = vmin.u32 %v2691_v15, %v12389_v51  ;;  %v2080_v10 = vshll.u32 %v12160_v46, %v12309_v28  ;;  %v2086_v60 = vor.u32 4788187, %v2085_v6 }
 0x2fc   :  { %v2187_v43 = vadd.s32 127, %v2186_v45  ;;  %v2767_v26 = vsel %vm2761_vm13, %v2764_v34, %v2766_v12  ;;  %v2314_v29 = vsel %vm2307_vm15, %v2310_v33, %v2313_v42  ;;  %v12429_v53 = vsel %vm12346_vm9, 0, %v12314_v50  ;;  %v14682_v12 = vld [vmem:[#allocation136_spill] sm:$0xff] }
 0x2fd   :  { %v12434_v61 = vsel %vm12359_vm5, 0, %v12325_v55  ;;  %v5749_v47 = vand.u32 3, %v5748_v25  ;;  %v2082_v21 = vor.u32 %v2081_v36, %v2080_v10  ;;  %v2182_v46 = vsub.s32 32, %v12363_v14 }
 0x2fe   :  { %vm2785_vm4 = vc.u32 %v12403_v56, %v12410_v16  ;;  %v2786_v28 = vadd.s32 1, %v12411_v57  ;;  %8144 = vcosq.f32 %v2404_v27  ;;  %v2693_v17 = vclz %v7716_v2 }
 0x2ff   :  { %v2783_v42 = vmul.u32 %v2776_v5, %v2767_v26  ;;  %v14214_v50 = vand.u32 2147483647, %v14681_v62  ;;  %v2087_v49 = vand.u32 2147483647, %v2086_v60  ;;  %v2166_v6 = vadd.s32 %v12085_v58, %v12074_v13  ;;  %v14683_v58 = vld [vmem:[#allocation131_spill] sm:$0xff] }
 0x300   :  { %v2188_v55 = vshll.u32 %v2187_v43, 23  ;;  %v2787_v25 = vsel %vm2785_vm4, %v2786_v28, %v12411_v57  ;;  %v2315_v45 = vsel %vm2305_vm3, nan, %v2314_v29  ;;  %8146 = vsinq.f32 %v2404_v27 }
 0x301   :  { %vm5751_vm10 = vcmp.eq.s32.totalorder %v5749_v47, 0  ;;  %v12446_v34 = vadd.s32 %v2787_v25, %v2783_v42  ;;  %v2089_v4 = vcvt.s32.f32 %v2082_v21  ;;  %v2184_v15 = vshrl.u32 %v2166_v6, %v2182_v46 }
 0x302   :  { %v2437_v5 = vshrl.u32 %v14367_v30, %v14682_v12  ;;  %v2440_v18 = vshrl.u32 %v14368_v0, %v14682_v12  ;;  %v7717_v33 = vadd.s32 4294967294, %v2693_v17  ;;  %v2426_v13 = vand.u32 8388607, %v14214_v50 }
 0x303   :  { %v2436_v36 = vshll.u32 %v14381_v23, %v14683_v58  ;;  %v2439_v57 = vshll.u32 %v14367_v30, %v14683_v58  ;;  %v2090_v27 = vmul.f32 %v2089_v4, %v2087_v49  ;;  %v2183_v2 = vshll.u32 %v12211_v3, %v12363_v14 }
 0x304   :  { %v2189_v10 = vor.u32 4788187, %v2188_v55  ;;  %v2789_v60 = vadd.s32 536870912, %v12446_v34  ;;  %v2442_v29 = vshll.u32 %v14368_v0, %v14683_v58  ;;  %v2443_v21 = vshrl.u32 %v14257_v8, %v14682_v12  ;;  %v14684_v55 = vld [vmem:[#allocation139_spill] sm:$0xff] }
 0x305   :  { %v2438_v43 = vor.u32 %v2437_v5, %v2436_v36  ;;  %v2441_v26 = vor.u32 %v2440_v18, %v2439_v57  ;;  %v2185_v46 = vor.u32 %v2184_v15, %v2183_v2  ;;  %v5753_v28 = vsel %vm5751_vm10, %v12284_v40, %v2309_v52  ;;  %v14685_v15 = vld [vmem:[#allocation151_spill] sm:$0xff] }
 0x306   :  { %vm5754_vm14 = vcmp.eq.s32.totalorder %v5749_v47, 2  ;;  %v5852_v3 = vadd.s32 3, %v12429_v53  ;;  %vm7718_vm12 = vcmp.lt.s32.totalorder %v7717_v33, 0  ;;  %v2427_v17 = vor.u32 8388608, %v2426_v13 }
 0x307   :  { %v5756_v14 = vsel %vm5754_vm14, %v2312_v32, %v12289_v31  ;;  %v2444_v42 = vor.u32 %v2443_v21, %v2442_v29  ;;  %v2091_v49 = vxor.u32 2147483648, %v2090_v27  ;;  %v2190_v6 = vand.u32 2147483647, %v2189_v10  ;;  %v14686_v31 = vld [vmem:[#allocation152_spill] sm:$0xff] }
 0x308   :  { %vm2451_vm2 = vcmp.lt.s32.totalorder %v14684_v55, 1  ;;  %vm2453_vm6 = vcmp.lt.s32.totalorder %v14684_v55, 3  ;;  %v12475_v25 = vpop.eup %8144  ;;  %v12477_v4 = vshrl.u32 %v2789_v60, 30  ;;  %v14687_v32 = vld [vmem:[#allocation148_spill] sm:$0xff]  ;;  %v2192_v18 = vcvt.s32.f32 %v2185_v46 }
 0x309   :  { %v2459_v52 = vsel %vm2451_vm2, %v2438_v43, %v2441_v26  ;;  %v2461_v40 = vsel %vm2453_vm6, %v2444_v42, %v14685_v15  ;;  %v2465_v5 = vsel %vm2453_vm6, %v14687_v32, %v14686_v31  ;;  %vm5750_vm1 = vcmp.lt.s32.totalorder %v5749_v47, 2 }
 0x30a   :  { %v5540_v13 = vadd.s32 3, %v12434_v61  ;;  %v12489_v58 = vsel %vm7718_vm12, 0, %v7717_v33  ;;  %v12491_v36 = vpop.eup %8146  ;;  %v5757_v57 = vsel %vm5750_vm1, %v5753_v28, %v5756_v14  ;;  %vm2452_vm9 = vcmp.lt.s32.totalorder %v14684_v55, 2 }
 0x30b   :  { %v2463_v2 = vsel %vm2451_vm2, %v2441_v26, %v2444_v42  ;;  %v12496_v10 = vshll.u32 %v2427_v17, 8  ;;  %v2092_v60 = vsel %vm2009_vm8, %v2091_v49, %v2090_v27  ;;  %v2193_v29 = vmul.f32 %v2192_v18, %v2190_v6  ;;  %v12510_v17 = vpop.permute.xlu1 %3702 }
 0x30c   :  { %v2462_v47 = vsel %vm2452_vm9, %v2459_v52, %v2461_v40  ;;  %v2466_v33 = vsel %vm2452_vm9, %v2463_v2, %v2465_v5  ;;  %v2701_v21 = vsub.s32 4294967266, %v12489_v58  ;;  %v2791_v46 = vshll.u32 %v12477_v4, 30 }
 0x30d   :  { %v12507_v28 = vmul.u32.u64.low %v12496_v10, %v2466_v33  ;;  %v12508_v14 = vmul.u32.u64.high %v12496_v10, %v2466_v33, %v12507_v28  ;;  %v12513_v15 = vand.u32 3, %v12429_v53  ;;  %v12516_v27 = vand.u32 3, %v12434_v61 }
 0x30e   :  { %v14688_v49 = vand.u32 2147483647, %v14634_v19  ;;  %vm2112_vm7 = vcmp.lt.s32.totalorder %v14634_v19, 0  ;;  %v12526_v52 = vmul.f32 %v12510_v17, %v2315_v45  ;;  %v12528_v40 = vand.u32 3, %v5852_v3 }
 0x30f   :  { %v12531_v31 = vmul.u32.u64.low %v12496_v10, %v2462_v47  ;;  %v12532_v53 = vmul.u32.u64.high %v12496_v10, %v2462_v47, %v12531_v31  ;;  %v2095_v61 = vsel %vm12359_vm5, %v14626_v22, %v2092_v60  ;;  %v2194_v32 = vxor.u32 2147483648, %v2193_v29  ;;  %v12597_v11 = vpop.permute.xlu1 %7158 }
 0x310   :  { %vm12520_vm8 = vcmp.le.f32.partialorder %v14688_v49, 0.7853982  ;;  %v5758_v5 = vsel %vm2305_vm3, nan, %v5757_v57  ;;  %vm14691_vm0 = vcmp.lt.s32.totalorder %v14684_v55, 4  ;;  %v12542_v45 = vand.u32 3, %v5540_v13  ;;  %v14693_v13 = vld [vmem:[#allocation145_spill] sm:$0xff] }
 0x311   :  { %v2456_v18 = vsel %vm14691_vm0, %v2444_v42, 2102212464  ;;  %v2702_v3 = vadd.s32 127, %v2701_v21  ;;  %v12545_v2 = vsub.s32 %v12446_v34, %v2791_v46  ;;  %v2435_v47 = vshrl.u32 %v14381_v23, %v14682_v12 }
 0x312   :  { %v2196_v60 = vsub.s32 4, %v12162_v44  ;;  %v14215_v57 = vand.u32 2147483647, %v14692_v38  ;;  %vm2414_vm5 = vcmp.eq.s32.totalorder %v12513_v15, 2  ;;  %8148 = vcosq.f32 %v2095_v61 }
 0x313   :  { %v2455_v42 = vsel %vm2451_vm2, %v2435_v47, %v2438_v43  ;;  %v2457_v34 = vsel %vm2453_vm6, %v2441_v26, %v2456_v18  ;;  %v2543_v12 = vshrl.u32 %v14368_v0, %v14693_v13  ;;  %vm2411_vm13 = vcmp.eq.s32.totalorder %v12513_v15, 0  ;;  %v14694_v43 = vld [vmem:[#allocation140_spill] sm:$0xff] }
 0x314   :  { %8150 = vsinq.f32 %v2095_v61  ;;  %v2195_v21 = vsel %vm2112_vm7, %v2194_v32, %v2193_v29  ;;  %v2697_v46 = vsub.s32 32, %v12489_v58  ;;  %v2477_v28 = vadd.s32 1, %v12532_v53 }
 0x315   :  { %v2703_v49 = vshll.u32 %v2702_v3, 23  ;;  %v2794_v50 = vsub.s32 0, %v12545_v2  ;;  %vm2476_vm11 = vc.u32 %v12508_v14, %v12531_v31  ;;  %v2542_v26 = vshll.u32 %v14367_v30, %v14694_v43 }
 0x316   :  { %v2681_v18 = vadd.s32 %v12275_v59, %v12282_v63  ;;  %v2458_v61 = vsel %vm2452_vm9, %v2455_v42, %v2457_v34  ;;  %v2529_v29 = vand.u32 8388607, %v14215_v57  ;;  %v2540_v32 = vshrl.u32 %v14367_v30, %v14693_v13 }
 0x317   :  { %vm2410_vm3 = vcmp.lt.s32.totalorder %v12513_v15, 2  ;;  %v2198_v3 = vsel %vm12520_vm8, %v14634_v19, %v2195_v21  ;;  %v12582_v47 = vor.u32 %v2543_v12, %v2542_v26  ;;  %v2545_v59 = vshll.u32 %v14368_v0, %v14694_v43 }
 0x318   :  { %v2546_v63 = vshrl.u32 %v14257_v8, %v14693_v13  ;;  %v2698_v55 = vshll.u32 %v12389_v51, %v12489_v58  ;;  %v2699_v42 = vshrl.u32 %v2681_v18, %v2697_v46  ;;  %v2478_v34 = vsel %vm2476_vm11, %v2477_v28, %v12532_v53  ;;  %v14696_v53 = vld [vmem:[#allocation159_spill] sm:$0xff]  ;;  %v14697_v46 = vld [vmem:[#allocation153_spill] sm:$0xff] }
 0x319   :  { %v2539_v57 = vshll.u32 %v14381_v23, %v14694_v43  ;;  %v2704_v48 = vor.u32 4788187, %v2703_v49  ;;  %v7720_v21 = vmin.u32 %v2794_v50, %v12545_v2  ;;  %v2474_v12 = vmul.u32 %v12496_v10, %v2458_v61  ;;  %v14698_v10 = vld [vmem:[#allocation66_spill] sm:$0xff]  ;;  %v14699_v28 = vld [vmem:[#allocation43_spill] sm:$0xff] }
 0x31a   :  { %v2547_v26 = vor.u32 %v2546_v63, %v2545_v59  ;;  %v2530_v33 = vor.u32 8388608, %v2529_v29  ;;  %vm2554_vm15 = vcmp.lt.s32.totalorder %v14695_v37, 1  ;;  %vm2556_vm4 = vcmp.lt.s32.totalorder %v14695_v37, 3 }
 0x31b   :  { %v2541_v24 = vor.u32 %v2540_v32, %v2539_v57  ;;  %v12599_v51 = vadd.s32 %v2478_v34, %v2474_v12  ;;  %v2568_v50 = vsel %vm2556_vm4, %v14697_v46, %v14696_v53  ;;  %v7893_v57 = vpack.c.bf16 %v14699_v28, %v14698_v10 }
 0x31c   :  { %v2566_v58 = vsel %vm2554_vm15, %v12582_v47, %v2547_v26  ;;  %vm2408_vm10 = vweird.f32 %v14612_v7  ;;  %v14700_v49 = vxor.u32 2147483648, %v12475_v25  ;;  %vm5855_vm14 = vcmp.eq.s32.totalorder %v12528_v40, 0  ;;  %v8149_v61 = vpop.eup %8148 }
 0x31d   :  { %vm5858_vm12 = vcmp.eq.s32.totalorder %v12528_v40, 2  ;;  %v7209_v18 = vmul.f32 %v12597_v11, %v5758_v5  ;;  %v14701_v29 = vxor.u32 2147483648, %v12491_v36  ;;  %vm2105_vm2 = vcmp.eq.s32.totalorder %v12516_v27, 2  ;;  %7894 = vmatpush1.bf16.msra.mxu0 %v7893_v57 }
 0x31e   :  { %v2416_v43 = vsel %vm2414_vm5, %v14700_v49, %v12491_v36  ;;  %v2197_v59 = vsel %vm2112_vm7, %v2196_v60, %v12162_v44  ;;  %vm5854_vm6 = vcmp.lt.s32.totalorder %v12528_v40, 2  ;;  %v2700_v63 = vor.u32 %v2699_v42, %v2698_v55  ;;  %v8151_v5 = vpop.eup %8150  ;;  %v14702_v60 = vld [vmem:[#allocation154_spill] sm:$0xff] }
 0x31f   :  { %v2413_v32 = vsel %vm2411_vm13, %v12475_v25, %v14701_v29  ;;  %vm2555_vm1 = vcmp.lt.s32.totalorder %v14695_v37, 2  ;;  %vm2102_vm9 = vcmp.eq.s32.totalorder %v12516_v27, 0  ;;  %8152 = vcosq.f32 %v2198_v3 }
 0x320   :  { %v2705_v34 = vand.u32 2147483647, %v2704_v48  ;;  %v2796_v12 = vclz %v7720_v21  ;;  %v2569_v53 = vsel %vm2555_vm1, %v2566_v58, %v2568_v50  ;;  %vm5543_vm0 = vcmp.eq.s32.totalorder %v12542_v45, 0 }
 0x321   :  { %v2480_v46 = vadd.s32 536870912, %v12599_v51  ;;  %v2562_v44 = vsel %vm2554_vm15, %v2541_v24, %v12582_v47  ;;  %v2564_v55 = vsel %vm2556_vm4, %v2547_v26, %v14702_v60  ;;  %v2570_v42 = vshll.u32 %v2530_v33, 8 }
 0x322   :  { %v2417_v48 = vsel %vm2410_vm3, %v2413_v32, %v2416_v43  ;;  %v2199_v21 = vsel %vm12520_vm8, 0, %v2197_v59  ;;  %8154 = vsinq.f32 %v2198_v3  ;;  %v14703_v58 = vmov %v14700_v49 }
 0x323   :  { %v5860_v50 = vsel %vm5858_vm12, %v14703_v58, %v12491_v36  ;;  %vm2101_vm7 = vcmp.lt.s32.totalorder %v12516_v27, 2  ;;  %v2707_v10 = vcvt.s32.f32 %v2700_v63  ;;  %vm14704_vm5 = vcmp.lt.s32.totalorder %v14695_v37, 4 }
 0x324   :  { %v2559_v28 = vsel %vm14704_vm5, %v2547_v26, 2102212464  ;;  %v12653_v33 = vmul.u32.u64.low %v2570_v42, %v2569_v53  ;;  %v12654_v57 = vmul.u32.u64.high %v2570_v42, %v2569_v53, %v12653_v33  ;;  %v2106_v15 = vxor.u32 2147483648, %v8149_v61 }
 0x325   :  { %vm5542_vm13 = vcmp.lt.s32.totalorder %v12542_v45, 2  ;;  %v7721_v6 = vadd.s32 4294967294, %v2796_v12  ;;  %v2538_v3 = vshrl.u32 %v14381_v23, %v14693_v13  ;;  %v2565_v49 = vsel %vm2555_vm1, %v2562_v44, %v2564_v55 }
 0x326   :  { %v2103_v43 = vxor.u32 2147483648, %v8151_v5  ;;  %v5857_v26 = vsel %vm5855_vm14, %v12475_v25, %v14701_v29  ;;  %v2708_v32 = vmul.f32 %v2707_v10, %v2705_v34  ;;  %v12666_v59 = vshrl.u32 %v2480_v46, 30 }
 0x327   :  { %v12668_v63 = vand.u32 3, %v2199_v21  ;;  %v12671_v12 = vadd.f32 %v7209_v18, %v12526_v52  ;;  %v2558_v13 = vsel %vm2554_vm15, %v2538_v3, %v2541_v24  ;;  %v2560_v53 = vsel %vm2556_vm4, %v12582_v47, %v2559_v28 }
 0x328   :  { %v2418_v36 = vsel %vm2408_vm10, nan, %v2417_v48  ;;  %vm5546_vm8 = vcmp.eq.s32.totalorder %v12542_v45, 2  ;;  %v12681_v25 = vmul.u32.u64.low %v2570_v42, %v2565_v49  ;;  %v12682_v34 = vmul.u32.u64.high %v2570_v42, %v2565_v49, %v12681_v25 }
 0x329   :  { %14705 = vst [vmem:[#allocation68_spill] sm:$0xff] %v12671_v12  ;;  %vm2099_vm11 = vweird.f32 %v14626_v22  ;;  %v2107_v52 = vsel %vm2105_vm2, %v2106_v15, %v8151_v5  ;;  %v5861_v24 = vsel %vm5854_vm6, %v5857_v26, %v5860_v50  ;;  %v5644_v18 = vadd.s32 3, %v2199_v21  ;;  %v8153_v55 = vpop.eup %8152 }
 0x32a   :  { %vm7722_vm3 = vcmp.lt.s32.totalorder %v7721_v6, 0  ;;  %v2104_v47 = vsel %vm2102_vm9, %v8149_v61, %v2103_v43  ;;  %v2709_v46 = vxor.u32 2147483648, %v2708_v32  ;;  %v2482_v44 = vshll.u32 %v12666_v59, 30 }
 0x32b   :  { %v2561_v60 = vsel %vm2555_vm1, %v2558_v13, %v2560_v53  ;;  %v3754_v48 = vmul.f32 %v12510_v17, %v2418_v36  ;;  %v5545_v58 = vsel %vm5543_vm0, %v8149_v61, %v2103_v43  ;;  %v5548_v10 = vsel %vm5546_vm8, %v2106_v15, %v8151_v5  ;;  %v12710_v5 = vpop.permute.xlu0 %3697 }
 0x32c   :  { %vm2579_vm15 = vc.u32 %v12654_v57, %v12681_v25  ;;  %v5862_v40 = vsel %vm2408_vm10, nan, %v5861_v24  ;;  %v12702_v21 = vsel %vm7722_vm3, 0, %v7721_v6  ;;  %v2580_v50 = vadd.s32 1, %v12682_v34  ;;  %v8155_v28 = vpop.eup %8154 }
 0x32d   :  { %v7895_v37 = vpack.c.bf16 %v11672_v41, %v11909_v9  ;;  %v2108_v17 = vsel %vm2101_vm7, %v2104_v47, %v2107_v52  ;;  %v5645_v33 = vand.u32 3, %v5644_v18  ;;  %vm2627_vm4 = vcmp.lt.s32.totalorder %v14658_v1, 0 }
 0x32e   :  { %v2577_v61 = vmul.u32 %v2570_v42, %v2561_v60  ;;  %vm2204_vm14 = vcmp.lt.s32.totalorder %v12668_v63, 2  ;;  %v5549_v7 = vsel %vm5542_vm13, %v5545_v58, %v5548_v10  ;;  %v2710_v15 = vsel %vm2627_vm4, %v2709_v46, %v2708_v32 }
 0x32f   :  { %v12718_v41 = vsub.s32 %v12599_v51, %v2482_v44  ;;  %v2581_v9 = vsel %vm2579_vm15, %v2580_v50, %v12682_v34  ;;  %7896 = vmatprep.subr.bf16.mxu0 %v7895_v37  ;;  %v2209_v27 = vxor.u32 2147483648, %v8153_v55  ;;  %v2711_v6 = vsub.s32 4, %v12355_v20  ;;  %v7154_v18 = vpop.permute.xlu0 %7153 }
 0x330   :  { %v2804_v42 = vsub.s32 4294967266, %v12702_v21  ;;  %v2582_v3 = vadd.s32 %v2581_v9, %v2577_v61  ;;  %vm2205_vm10 = vcmp.eq.s32.totalorder %v12668_v63, 0  ;;  %v2206_v49 = vxor.u32 2147483648, %v8155_v28 }
 0x331   :  { %vm2208_vm12 = vcmp.eq.s32.totalorder %v12668_v63, 2  ;;  %v14706_v45 = vand.u32 2147483647, %v14658_v1  ;;  %v7210_v51 = vmul.f32 %v12597_v11, %v5862_v40  ;;  %vm5647_vm6 = vcmp.eq.s32.totalorder %v5645_v33, 0 }
 0x332   :  { %v2583_v26 = vadd.s32 536870912, %v2582_v3  ;;  %v2109_v32 = vsel %vm2099_vm11, nan, %v2108_v17  ;;  %vm2202_vm1 = vweird.f32 %v14634_v19  ;;  %v5550_v13 = vsel %vm2099_vm11, nan, %v5549_v7 }
 0x333   :  { %vm12727_vm2 = vcmp.le.f32.partialorder %v14706_v45, 0.7853982  ;;  %vm5650_vm9 = vcmp.eq.s32.totalorder %v5645_v33, 2  ;;  %v2485_v53 = vsub.s32 0, %v12718_v41  ;;  %v2210_v36 = vsel %vm2208_vm12, %v2209_v27, %v8155_v28 }
 0x334   :  { %v2713_v29 = vsel %vm12727_vm2, %v14658_v1, %v2710_v15  ;;  %v5652_v34 = vsel %vm5650_vm9, %v2209_v27, %v8155_v28  ;;  %v2712_v11 = vsel %vm2627_vm4, %v2711_v6, %v12355_v20  ;;  %v2805_v52 = vadd.s32 127, %v2804_v42  ;;  %v14709_v28 = vld [vmem:[#allocation137_spill] sm:$0xff] }
 0x335   :  { %v2207_v24 = vsel %vm2205_vm10, %v8153_v55, %v2206_v49  ;;  %v5649_v47 = vsel %vm5647_vm6, %v8153_v55, %v2206_v49  ;;  %8156 = vcosq.f32 %v2713_v29  ;;  %v12746_v46 = vshrl.u32 %v2583_v26, 30  ;;  %v14711_v27 = vld [vmem:[#allocation157_spill] sm:$0xff] }
 0x336   :  { %v3751_v22 = vmul.f32 %v12710_v5, %v2109_v32  ;;  %v12749_v44 = vadd.f32 %v7210_v51, %v3754_v48  ;;  %v7207_v60 = vmul.f32 %v7154_v18, %v5550_v13  ;;  %v2800_v58 = vsub.s32 32, %v12702_v21 }
 0x337   :  { %vm5646_vm0 = vcmp.lt.s32.totalorder %v5645_v33, 2  ;;  %v12754_v20 = vsel %vm12727_vm2, 0, %v2712_v11  ;;  %8158 = vsinq.f32 %v2713_v29  ;;  %v7708_v10 = vmin.u32 %v2485_v53, %v12718_v41  ;;  %v14710_v33 = vld [vmem:[#allocation160_spill] sm:$0xff] }
 0x338   :  { %v2211_v55 = vsel %vm2204_vm14, %v2207_v24, %v2210_v36  ;;  %v5653_v40 = vsel %vm5646_vm0, %v5649_v47, %v5652_v34  ;;  %v2784_v50 = vadd.s32 %v12410_v16, %v12403_v56  ;;  %v2806_v48 = vshll.u32 %v2805_v52, 23 }
 0x339   :  { %v2585_v37 = vshll.u32 %v12746_v46, 30  ;;  %v14219_v17 = vand.u32 2147483647, %v14709_v28  ;;  %v3055_v61 = vshrl.u32 %v14367_v30, %v14710_v33  ;;  %v3058_v7 = vshrl.u32 %v14368_v0, %v14710_v33 }
 0x33a   :  { %v12767_v15 = vadd.f32 %v7207_v60, %v3751_v22  ;;  %v12770_v63 = vand.u32 3, %v12754_v20  ;;  %vm2730_vm7 = vcmp.lt.s32.totalorder %v14667_v54, 0  ;;  %v2802_v9 = vshrl.u32 %v2784_v50, %v2800_v58  ;;  %v14718_v58 = vld [vmem:[#allocation164_spill] sm:$0xff] }
 0x33b   :  { %v2814_v56 = vsub.s32 4, %v12477_v4  ;;  %v2487_v16 = vclz %v7708_v10  ;;  %v3054_v6 = vshll.u32 %v14381_v23, %v14711_v27  ;;  %v3057_v42 = vshll.u32 %v14367_v30, %v14711_v27 }
 0x33c   :  { %v2212_v49 = vsel %vm2202_vm1, nan, %v2211_v55  ;;  %v5654_v45 = vsel %vm2202_vm1, nan, %v5653_v40  ;;  %v2801_v43 = vshll.u32 %v12545_v2, %v12702_v21  ;;  %v2807_v51 = vor.u32 4788187, %v2806_v48 }
 0x33d   :  { %v12784_v29 = vsub.s32 %v2582_v3, %v2585_v37  ;;  %v3044_v26 = vand.u32 8388607, %v14219_v17  ;;  %v3056_v32 = vor.u32 %v3055_v61, %v3054_v6  ;;  %v3059_v13 = vor.u32 %v3058_v7, %v3057_v42  ;;  %v14719_v37 = vld [vmem:[#allocation173_spill] sm:$0xff] }
 0x33e   :  { %v2803_v53 = vor.u32 %v2802_v9, %v2801_v43  ;;  %vm2421_vm5 = vcmp.lt.s32.totalorder %v14681_v62, 0  ;;  %v3060_v36 = vshll.u32 %v14368_v0, %v14711_v27  ;;  %v3061_v19 = vshrl.u32 %v14257_v8, %v14710_v33 }
 0x33f   :  { %v12793_v34 = vpop.eup %8156  ;;  %v3752_v2 = vmul.f32 %v12710_v5, %v2212_v49  ;;  %v7208_v21 = vmul.f32 %v7154_v18, %v5654_v45  ;;  %v14712_v3 = vand.u32 2147483647, %v14667_v54  ;;  %v2815_v52 = vsel %vm2730_vm7, %v2814_v56, %v12477_v4  ;;  %v14721_v56 = vld [vmem:[#allocation174_spill] sm:$0xff] }
 0x340   :  { %v14715_v24 = vand.u32 2147483647, %v14681_v62  ;;  %v7709_v22 = vadd.s32 4294967294, %v2487_v16  ;;  %v2808_v60 = vand.u32 2147483647, %v2807_v51  ;;  %v2505_v5 = vsub.s32 4, %v12666_v59 }
 0x341   :  { %vm12798_vm13 = vcmp.le.f32.partialorder %v14712_v3, 0.7853982  ;;  %v3062_v18 = vor.u32 %v3061_v19, %v3060_v36  ;;  %vm3069_vm11 = vcmp.lt.s32.totalorder %v14718_v58, 1  ;;  %v12813_v10 = vpop.eup %8158  ;;  %v2588_v55 = vsub.s32 0, %v12784_v29  ;;  %v14722_v16 = vld [vmem:[#allocation168_spill] sm:$0xff] }
 0x342   :  { %vm12807_vm8 = vcmp.le.f32.partialorder %v14715_v24, 0.7853982  ;;  %v3045_v40 = vor.u32 8388608, %v3044_v26  ;;  %vm3071_vm3 = vcmp.lt.s32.totalorder %v14718_v58, 3  ;;  %v3077_v4 = vsel %vm3069_vm11, %v3056_v32, %v3059_v13 }
 0x343   :  { %v2724_v50 = vxor.u32 2147483648, %v12793_v34  ;;  %v2810_v48 = vcvt.s32.f32 %v2803_v53  ;;  %v3079_v61 = vsel %vm3071_vm3, %v3062_v18, %v14719_v37  ;;  %v3081_v7 = vsel %vm3069_vm11, %v3059_v13, %v3062_v18 }
 0x344   :  { %vm2719_vm15 = vcmp.lt.s32.totalorder %v12770_v63, 2  ;;  %vm7710_vm4 = vcmp.lt.s32.totalorder %v7709_v22, 0  ;;  %vm3070_vm14 = vcmp.lt.s32.totalorder %v14718_v58, 2  ;;  %vm14720_vm10 = vcmp.lt.s32.totalorder %v14718_v58, 4 }
 0x345   :  { %v3074_v9 = vsel %vm14720_vm10, %v3062_v18, 2102212464  ;;  %v3083_v27 = vsel %vm3071_vm3, %v14722_v16, %v14721_v56  ;;  %v2721_v6 = vxor.u32 2147483648, %v12813_v10  ;;  %v2506_v42 = vsel %vm2421_vm5, %v2505_v5, %v12666_v59 }
 0x346   :  { %v3053_v49 = vshrl.u32 %v14381_v23, %v14710_v33  ;;  %v3080_v45 = vsel %vm3070_vm14, %v3077_v4, %v3079_v61  ;;  %v2811_v43 = vmul.f32 %v2810_v48, %v2808_v60  ;;  %v7712_v51 = vmin.u32 %v2588_v55, %v12784_v29  ;;  %v14723_v48 = vld [vmem:[#allocation138_spill] sm:$0xff] }
 0x347   :  { %v3084_v26 = vsel %vm3070_vm14, %v3081_v7, %v3083_v27  ;;  %v3085_v53 = vshll.u32 %v3045_v40, 8  ;;  %v12844_v36 = vsel %vm7710_vm4, 0, %v7709_v22  ;;  %v6164_v19 = vadd.s32 3, %v12754_v20 }
 0x348   :  { %v3073_v59 = vsel %vm3069_vm11, %v3053_v49, %v3056_v32  ;;  %v3075_v33 = vsel %vm3071_vm3, %v3059_v13, %v3074_v9  ;;  %vm2720_vm12 = vcmp.eq.s32.totalorder %v12770_v63, 0  ;;  %vm2723_vm2 = vcmp.eq.s32.totalorder %v12770_v63, 2  ;;  %v14724_v9 = vld [vmem:[#allocation163_spill] sm:$0xff] }
 0x349   :  { %v12851_v3 = vmul.u32.u64.low %v3085_v53, %v3084_v26  ;;  %v12852_v24 = vmul.u32.u64.high %v3085_v53, %v3084_v26, %v12851_v3  ;;  %v12854_v60 = vmul.u32.u64.low %v3085_v53, %v3080_v45  ;;  %v12855_v5 = vmul.u32.u64.high %v3085_v53, %v3080_v45, %v12854_v60  ;;  %v14725_v45 = vld [vmem:[#allocation158_spill] sm:$0xff] }
 0x34a   :  { %v12862_v20 = vsel %vm12798_vm13, 0, %v2815_v52  ;;  %v12866_v32 = vsel %vm12807_vm8, 0, %v2506_v42  ;;  %v2722_v13 = vsel %vm2720_vm12, %v12793_v34, %v2721_v6  ;;  %v2725_v22 = vsel %vm2723_vm2, %v2724_v50, %v12813_v10 }
 0x34b   :  { %v2812_v18 = vxor.u32 2147483648, %v2811_v43  ;;  %v2590_v55 = vclz %v7712_v51  ;;  %v2495_v40 = vsub.s32 4294967266, %v12844_v36  ;;  %v12873_v4 = vand.u32 3, %v6164_v19 }
 0x34c   :  { %v3076_v52 = vsel %vm3070_vm14, %v3073_v59, %v3075_v33  ;;  %v14218_v37 = vand.u32 2147483647, %v14723_v48  ;;  %v12878_v61 = vadd.f32 %v7208_v21, %v3752_v2  ;;  %v12881_v7 = vand.u32 3, %v12862_v20 }
 0x34d   :  { %vm3094_vm6 = vc.u32 %v12852_v24, %v12854_v60  ;;  %v3158_v56 = vshrl.u32 %v14367_v30, %v14724_v9  ;;  %v2726_v16 = vsel %vm2719_vm15, %v2722_v13, %v2725_v22  ;;  %v2475_v58 = vadd.s32 %v12531_v31, %v12508_v14 }
 0x34e   :  { %v12892_v27 = vand.u32 3, %v12866_v32  ;;  %v3095_v2 = vadd.s32 1, %v12855_v5  ;;  %v2813_v21 = vsel %vm2730_vm7, %v2812_v18, %v2811_v43  ;;  %v7713_v42 = vadd.s32 4294967294, %v2590_v55 }
 0x34f   :  { %v3092_v49 = vmul.u32 %v3085_v53, %v3076_v52  ;;  %v3157_v51 = vshll.u32 %v14381_v23, %v14725_v45  ;;  %v2496_v26 = vadd.s32 127, %v2495_v40  ;;  %vm6167_vm1 = vcmp.eq.s32.totalorder %v12873_v4, 0  ;;  %v14726_v52 = vld [vmem:[#allocation165_spill] sm:$0xff] }
 0x350   :  { %v3096_v63 = vsel %vm3094_vm6, %v3095_v2, %v12855_v5  ;;  %v3147_v14 = vand.u32 8388607, %v14218_v37  ;;  %v3160_v59 = vshll.u32 %v14367_v30, %v14725_v45  ;;  %v3161_v43 = vshrl.u32 %v14368_v0, %v14724_v9  ;;  %v14727_v2 = vld [vmem:[#allocation176_spill] sm:$0xff] }
 0x351   :  { %v3097_v31 = vadd.s32 %v3096_v63, %v3092_v49  ;;  %v3159_v19 = vor.u32 %v3158_v56, %v3157_v51  ;;  %v2816_v53 = vsel %vm12798_vm13, %v14667_v54, %v2813_v21  ;;  %v6169_v33 = vsel %vm6167_vm1, %v12793_v34, %v2721_v6  ;;  %v14728_v21 = vld [vmem:[#allocation169_spill] sm:$0xff]  ;;  %v14729_v51 = vld [vmem:[#allocation175_spill] sm:$0xff] }
 0x352   :  { %v3163_v3 = vshll.u32 %v14368_v0, %v14725_v45  ;;  %v3164_v5 = vshrl.u32 %v14257_v8, %v14724_v9  ;;  %v2491_v13 = vsub.s32 32, %v12844_v36  ;;  %vm7714_vm9 = vcmp.lt.s32.totalorder %v7713_v42, 0 }
 0x353   :  { %v3098_v22 = vadd.s32 536870912, %v3097_v31  ;;  %v3162_v18 = vor.u32 %v3161_v43, %v3160_v59  ;;  %vm2717_vm0 = vweird.f32 %v14658_v1  ;;  %v3148_v55 = vor.u32 8388608, %v3147_v14 }
 0x354   :  { %v3165_v40 = vor.u32 %v3164_v5, %v3163_v3  ;;  %vm3172_vm7 = vcmp.lt.s32.totalorder %v14726_v52, 1  ;;  %vm3174_vm13 = vcmp.lt.s32.totalorder %v14726_v52, 3  ;;  %v2497_v11 = vshll.u32 %v2496_v26, 23 }
 0x355   :  { %v12919_v6 = vshrl.u32 %v3098_v22, 30  ;;  %v3180_v56 = vsel %vm3172_vm7, %v3159_v19, %v3162_v18  ;;  %v3186_v49 = vsel %vm3174_vm13, %v14728_v21, %v14727_v2  ;;  %8160 = vcosq.f32 %v2816_v53 }
 0x356   :  { %v12927_v45 = vsel %vm7714_vm9, 0, %v7713_v42  ;;  %v3182_v63 = vsel %vm3174_vm13, %v3165_v40, %v14729_v51  ;;  %v3184_v26 = vsel %vm3172_vm7, %v3162_v18, %v3165_v40  ;;  %v2493_v14 = vshrl.u32 %v2475_v58, %v2491_v13 }
 0x357   :  { %v3100_v59 = vshll.u32 %v12919_v6, 30  ;;  %vm3173_vm11 = vcmp.lt.s32.totalorder %v14726_v52, 2  ;;  %vm14730_vm3 = vcmp.lt.s32.totalorder %v14726_v52, 4  ;;  %v3156_v3 = vshrl.u32 %v14381_v23, %v14724_v9 }
 0x358   :  { %v3177_v43 = vsel %vm14730_vm3, %v3165_v40, 2102212464  ;;  %v3183_v42 = vsel %vm3173_vm11, %v3180_v56, %v3182_v63  ;;  %v3187_v5 = vsel %vm3173_vm11, %v3184_v26, %v3186_v49  ;;  %v3188_v22 = vshll.u32 %v3148_v55, 8 }
 0x359   :  { %v2492_v58 = vshll.u32 %v12718_v41, %v12844_v36  ;;  %v2498_v13 = vor.u32 4788187, %v2497_v11  ;;  %v2598_v2 = vsub.s32 4294967266, %v12927_v45  ;;  %v12947_v21 = vsub.s32 %v3097_v31, %v3100_v59 }
 0x35a   :  { %v3176_v40 = vsel %vm3172_vm7, %v3156_v3, %v3159_v19  ;;  %v3178_v9 = vsel %vm3174_vm13, %v3162_v18, %v3177_v43  ;;  %v12953_v51 = vmul.u32.u64.low %v3188_v22, %v3187_v5  ;;  %v12954_v56 = vmul.u32.u64.high %v3188_v22, %v3187_v5, %v12953_v51  ;;  %v14731_v3 = vld [vmem:[#allocation149_spill] sm:$0xff] }
 0x35b   :  { %vm6170_vm15 = vcmp.eq.s32.totalorder %v12873_v4, 2  ;;  %v3103_v55 = vsub.s32 0, %v12947_v21  ;;  %v12958_v49 = vmul.u32.u64.low %v3188_v22, %v3183_v42  ;;  %v12959_v41 = vmul.u32.u64.high %v3188_v22, %v3183_v42, %v12958_v49  ;;  %v14733_v51 = vld [vmem:[#allocation166_spill] sm:$0xff] }
 0x35c   :  { %8162 = vsinq.f32 %v2816_v53  ;;  %v2494_v36 = vor.u32 %v2493_v14, %v2492_v58  ;;  %v6172_v31 = vsel %vm6170_vm15, %v2724_v50, %v12813_v10  ;;  %v6268_v19 = vadd.s32 3, %v12862_v20 }
 0x35d   :  { %v2727_v18 = vsel %vm2717_vm0, nan, %v2726_v16  ;;  %vm6166_vm4 = vcmp.lt.s32.totalorder %v12873_v4, 2  ;;  %v7732_v11 = vmin.u32 %v3103_v55, %v12947_v21  ;;  %v3179_v63 = vsel %vm3173_vm11, %v3176_v40, %v3178_v9  ;;  %v12980_v16 = vpop.permute.xlu1 %3712 }
 0x35e   :  { %v2499_v26 = vand.u32 2147483647, %v2498_v13  ;;  %v2594_v53 = vsub.s32 32, %v12927_v45  ;;  %v2599_v14 = vadd.s32 127, %v2598_v2  ;;  %vm3197_vm14 = vc.u32 %v12954_v56, %v12958_v49  ;;  %v14732_v13 = vld [vmem:[#allocation172_spill] sm:$0xff] }
 0x35f   :  { %v2578_v34 = vadd.s32 %v12681_v25, %v12654_v57  ;;  %v6173_v10 = vsel %vm6166_vm4, %v6169_v33, %v6172_v31  ;;  %v3105_v50 = vclz %v7732_v11  ;;  %v3198_v20 = vadd.s32 1, %v12959_v41  ;;  %v12978_v4 = vpop.eup %8160 }
 0x360   :  { %v2501_v52 = vcvt.s32.f32 %v2494_v36  ;;  %v12982_v59 = vand.u32 3, %v6268_v19  ;;  %v3195_v43 = vmul.u32 %v3188_v22, %v3179_v63  ;;  %v14217_v42 = vand.u32 2147483647, %v14731_v3 }
 0x361   :  { %v7733_v5 = vadd.s32 4294967294, %v3105_v50  ;;  %v3199_v58 = vsel %vm3197_vm14, %v3198_v20, %v12959_v41  ;;  %v2849_v57 = vshrl.u32 %v14367_v30, %v14732_v13  ;;  %v2852_v25 = vshrl.u32 %v14368_v0, %v14732_v13 }
 0x362   :  { %v2502_v33 = vmul.f32 %v2501_v52, %v2499_v26  ;;  %v2596_v2 = vshrl.u32 %v2578_v34, %v2594_v53  ;;  %v2600_v40 = vshll.u32 %v2599_v14, 23  ;;  %v3200_v9 = vadd.s32 %v3199_v58, %v3195_v43 }
 0x363   :  { %vm7734_vm10 = vcmp.lt.s32.totalorder %v7733_v5, 0  ;;  %v2848_v55 = vshll.u32 %v14381_v23, %v14733_v51  ;;  %v2851_v22 = vshll.u32 %v14367_v30, %v14733_v51  ;;  %v2855_v41 = vshrl.u32 %v14257_v8, %v14732_v13 }
 0x364   :  { %v2595_v36 = vshll.u32 %v12784_v29, %v12927_v45  ;;  %v6174_v31 = vsel %vm2717_vm0, nan, %v6173_v10  ;;  %v5956_v19 = vadd.s32 3, %v12866_v32  ;;  %v3201_v11 = vadd.s32 536870912, %v3200_v9  ;;  %v13010_v45 = vpop.permute.xlu1 %7168 }
 0x365   :  { %v2838_v63 = vand.u32 8388607, %v14217_v42  ;;  %v2850_v26 = vor.u32 %v2849_v57, %v2848_v55  ;;  %v2853_v53 = vor.u32 %v2852_v25, %v2851_v22  ;;  %v2854_v14 = vshll.u32 %v14368_v0, %v14733_v51  ;;  %v14734_v57 = vld [vmem:[#allocation167_spill] sm:$0xff] }
 0x366   :  { %v13005_v34 = vpop.eup %8162  ;;  %v13008_v50 = vmul.f32 %v12980_v16, %v2727_v18  ;;  %v2601_v29 = vor.u32 4788187, %v2600_v40  ;;  %v13013_v1 = vsel %vm7734_vm10, 0, %v7733_v5  ;;  %v13015_v32 = vshrl.u32 %v3201_v11, 30 }
 0x367   :  { %vm2826_vm12 = vcmp.eq.s32.totalorder %v12881_v7, 2  ;;  %v2503_v10 = vxor.u32 2147483648, %v2502_v33  ;;  %v2597_v20 = vor.u32 %v2596_v2, %v2595_v36  ;;  %v13019_v52 = vmul.f32 %v13010_v45, %v6174_v31 }
 0x368   :  { %v2856_v43 = vor.u32 %v2855_v41, %v2854_v14  ;;  %vm2823_vm2 = vcmp.eq.s32.totalorder %v12881_v7, 0  ;;  %v2827_v18 = vxor.u32 2147483648, %v12978_v4  ;;  %vm6274_vm6 = vcmp.eq.s32.totalorder %v12982_v59, 2 }
 0x369   :  { %v13024_v58 = vand.u32 3, %v5956_v19  ;;  %v3203_v5 = vshll.u32 %v13015_v32, 30  ;;  %vm2863_vm1 = vcmp.lt.s32.totalorder %v14734_v57, 1  ;;  %v3113_v2 = vsub.s32 4294967266, %v13013_v1  ;;  %v14735_v19 = vld [vmem:[#allocation32_spill] sm:$0xff] }
 0x36a   :  { %v2839_v40 = vor.u32 8388608, %v2838_v63  ;;  %v2871_v51 = vsel %vm2863_vm1, %v2850_v26, %v2853_v53  ;;  %vm2524_vm9 = vcmp.lt.s32.totalorder %v14692_v38, 0  ;;  %v2602_v55 = vand.u32 2147483647, %v2601_v29 }
 0x36b   :  { %v2608_v22 = vsub.s32 4, %v12746_v46  ;;  %v13034_v41 = vsub.s32 %v3200_v9, %v3203_v5  ;;  %vm2865_vm0 = vcmp.lt.s32.totalorder %v14734_v57, 3  ;;  %vm2822_vm7 = vcmp.lt.s32.totalorder %v12881_v7, 2 }
 0x36c   :  { %v2504_v36 = vsel %vm2421_vm5, %v2503_v10, %v2502_v33  ;;  %v2604_v31 = vcvt.s32.f32 %v2597_v20  ;;  %vm2864_vm13 = vcmp.lt.s32.totalorder %v14734_v57, 2  ;;  %v2873_v11 = vsel %vm2865_vm0, %v2856_v43, %v14735_v19  ;;  %v14737_v10 = vld [vmem:[#allocation33_spill] sm:$0xff]  ;;  %v14738_v20 = vld [vmem:[#allocation178_spill] sm:$0xff] }
 0x36d   :  { %v3206_v63 = vsub.s32 0, %v13034_v41  ;;  %v2847_v9 = vshrl.u32 %v14381_v23, %v14732_v13  ;;  %vm14736_vm11 = vcmp.lt.s32.totalorder %v14734_v57, 4  ;;  %v2874_v29 = vsel %vm2864_vm13, %v2871_v51, %v2873_v11 }
 0x36e   :  { %v2868_v14 = vsel %vm14736_vm11, %v2856_v43, 2102212464  ;;  %v3114_v5 = vadd.s32 127, %v3113_v2  ;;  %v2875_v33 = vsel %vm2863_vm1, %v2853_v53, %v2856_v43  ;;  %v2877_v19 = vsel %vm2865_vm0, %v14738_v20, %v14737_v10  ;;  %v14747_v2 = vld [vmem:[#allocation170_spill] sm:$0xff] }
 0x36f   :  { %v2879_v42 = vshll.u32 %v2839_v40, 8  ;;  %v2605_v37 = vmul.f32 %v2604_v31, %v2602_v55  ;;  %v3109_v17 = vsub.s32 32, %v13013_v1  ;;  %v7736_v13 = vmin.u32 %v3206_v63, %v13034_v41 }
 0x370   :  { %v2867_v25 = vsel %vm2863_vm1, %v2847_v9, %v2850_v26  ;;  %v14739_v51 = vand.u32 2147483647, %v14692_v38  ;;  %v2869_v43 = vsel %vm2865_vm0, %v2853_v53, %v2868_v14  ;;  %v2878_v40 = vsel %vm2864_vm13, %v2875_v33, %v2877_v19  ;;  %v14743_v19 = vld [vmem:[#allocation150_spill] sm:$0xff] }
 0x371   :  { %v13071_v55 = vmul.u32.u64.low %v2879_v42, %v2874_v29  ;;  %v13072_v31 = vmul.u32.u64.high %v2879_v42, %v2874_v29, %v13071_v55  ;;  %v2828_v26 = vsel %vm2826_vm12, %v2827_v18, %v13005_v34  ;;  %v2507_v11 = vsel %vm12807_vm8, %v14681_v62, %v2504_v36 }
 0x372   :  { %vm13063_vm5 = vcmp.le.f32.partialorder %v14739_v51, 0.7853982  ;;  %v13081_v63 = vmul.u32.u64.low %v2879_v42, %v2878_v40  ;;  %v13082_v9 = vmul.u32.u64.high %v2879_v42, %v2878_v40, %v13081_v63  ;;  %v14742_v53 = vxor.u32 2147483648, %v13005_v34 }
 0x373   :  { %vm6271_vm3 = vcmp.eq.s32.totalorder %v12982_v59, 0  ;;  %v13093_v29 = vsel %vm6274_vm6, %v2827_v18, %v13005_v34  ;;  %v3093_v47 = vadd.s32 %v12854_v60, %v12852_v24  ;;  %v3115_v36 = vshll.u32 %v3114_v5, 23  ;;  %v14744_v24 = vld [vmem:[#allocation177_spill] sm:$0xff] }
 0x374   :  { %v2825_v14 = vsel %vm2823_vm2, %v12978_v4, %v14742_v53  ;;  %v2606_v33 = vxor.u32 2147483648, %v2605_v37  ;;  %v3208_v10 = vclz %v7736_v13  ;;  %v2870_v20 = vsel %vm2864_vm13, %v2867_v25, %v2869_v43  ;;  %v14745_v13 = vld [vmem:[#allocation171_spill] sm:$0xff] }
 0x375   :  { %v14220_v51 = vand.u32 2147483647, %v14743_v19  ;;  %8164 = vcosq.f32 %v2507_v11  ;;  %v2609_v40 = vsel %vm2524_vm9, %v2608_v22, %v12746_v46  ;;  %v3111_v63 = vshrl.u32 %v3093_v47, %v3109_v17 }
 0x376   :  { %v2889_v18 = vadd.s32 1, %v13072_v31  ;;  %v13106_v53 = vsel %vm2822_vm7, %v2825_v14, %v2828_v26  ;;  %8166 = vsinq.f32 %v2507_v11  ;;  %vm2888_vm8 = vc.u32 %v13082_v9, %v13071_v55 }
 0x377   :  { %v2952_v60 = vshrl.u32 %v14367_v30, %v14744_v24  ;;  %v3110_v57 = vshll.u32 %v12947_v21, %v13013_v1  ;;  %v3116_v25 = vor.u32 4788187, %v3115_v36  ;;  %v2886_v5 = vmul.u32 %v2879_v42, %v2870_v20 }
 0x378   :  { %v2890_v46 = vsel %vm2888_vm8, %v2889_v18, %v13072_v31  ;;  %v2607_v17 = vsel %vm2524_vm9, %v2606_v33, %v2605_v37  ;;  %v7737_v7 = vadd.s32 4294967294, %v3208_v10  ;;  %v2941_v22 = vand.u32 8388607, %v14220_v51 }
 0x379   :  { %v2951_v43 = vshll.u32 %v14381_v23, %v14745_v13  ;;  %v3112_v26 = vor.u32 %v3111_v63, %v3110_v57  ;;  %v2891_v11 = vadd.s32 %v2890_v46, %v2886_v5  ;;  %v2954_v14 = vshll.u32 %v14367_v30, %v14745_v13  ;;  %v14749_v5 = vld [vmem:[#allocation26_spill] sm:$0xff]  ;;  %v14750_v46 = vld [vmem:[#allocation25_spill] sm:$0xff] }
 0x37a   :  { %v2955_v21 = vshrl.u32 %v14368_v0, %v14744_v24  ;;  %v13127_v42 = vsel %vm13063_vm5, 0, %v2609_v40  ;;  %v2957_v1 = vshll.u32 %v14368_v0, %v14745_v13  ;;  %v2958_v31 = vshrl.u32 %v14257_v8, %v14744_v24 }
 0x37b   :  { %v2953_v37 = vor.u32 %v2952_v60, %v2951_v43  ;;  %v2610_v47 = vsel %vm13063_vm5, %v14692_v38, %v2607_v17  ;;  %v3117_v36 = vand.u32 2147483647, %v3116_v25  ;;  %v2892_v33 = vadd.s32 536870912, %v2891_v11 }
 0x37c   :  { %v2956_v10 = vor.u32 %v2955_v21, %v2954_v14  ;;  %vm2820_vm15 = vweird.f32 %v14667_v54  ;;  %v14746_v20 = vxor.u32 2147483648, %v13005_v34  ;;  %vm7738_vm4 = vcmp.lt.s32.totalorder %v7737_v7, 0  ;;  %v14748_v34 = vld [vmem:[#allocation35_spill] sm:$0xff] }
 0x37d   :  { %v2942_v63 = vor.u32 8388608, %v2941_v22  ;;  %v2959_v18 = vor.u32 %v2958_v31, %v2957_v1  ;;  %vm6270_vm14 = vcmp.lt.s32.totalorder %v12982_v59, 2  ;;  %v3119_v60 = vcvt.s32.f32 %v3112_v26 }
 0x37e   :  { %v6273_v40 = vsel %vm6271_vm3, %v12978_v4, %v14746_v20  ;;  %v13143_v57 = vshrl.u32 %v2892_v33, 30  ;;  %vm2966_vm10 = vcmp.lt.s32.totalorder %v14747_v2, 1  ;;  %vm2968_vm12 = vcmp.lt.s32.totalorder %v14747_v2, 3 }
 0x37f   :  { %vm2517_vm2 = vcmp.eq.s32.totalorder %v12892_v27, 2  ;;  %8168 = vcosq.f32 %v2610_v47  ;;  %vm3039_vm6 = vcmp.lt.s32.totalorder %v14709_v28, 0  ;;  %v2974_v4 = vsel %vm2966_vm10, %v2953_v37, %v2956_v10  ;;  %v8165_v22 = vpop.eup %8164 }
 0x380   :  { %v2976_v25 = vsel %vm2968_vm12, %v2959_v18, %v14748_v34  ;;  %v2980_v17 = vsel %vm2968_vm12, %v14750_v46, %v14749_v5  ;;  %8170 = vsinq.f32 %v2610_v47  ;;  %v3120_v13 = vmul.f32 %v3119_v60, %v3117_v36  ;;  %v8167_v14 = vpop.eup %8166 }
 0x381   :  { %v13159_v43 = vsel %vm7738_vm4, 0, %v7737_v7  ;;  %v2894_v26 = vshll.u32 %v13143_v57, 30  ;;  %vm2514_vm1 = vcmp.eq.s32.totalorder %v12892_v27, 0  ;;  %vm2967_vm9 = vcmp.lt.s32.totalorder %v14747_v2, 2 }
 0x382   :  { %vm14751_vm0 = vcmp.lt.s32.totalorder %v14747_v2, 4  ;;  %v2978_v1 = vsel %vm2966_vm10, %v2956_v10, %v2959_v18  ;;  %v2982_v31 = vshll.u32 %v2942_v63, 8  ;;  %v2950_v7 = vshrl.u32 %v14381_v23, %v14744_v24  ;;  %v14755_v2 = vld [vmem:[#allocation54_spill] sm:$0xff] }
 0x383   :  { %v2971_v21 = vsel %vm14751_vm0, %v2959_v18, 2102212464  ;;  %v13168_v33 = vsub.s32 %v2891_v11, %v2894_v26  ;;  %v2977_v47 = vsel %vm2967_vm9, %v2974_v4, %v2976_v25  ;;  %v2981_v36 = vsel %vm2967_vm9, %v2978_v1, %v2980_v17  ;;  %v14757_v26 = vld [vmem:[#allocation155_spill] sm:$0xff] }
 0x384   :  { %v2518_v20 = vxor.u32 2147483648, %v8165_v22  ;;  %v3216_v60 = vsub.s32 4294967266, %v13159_v43  ;;  %v13177_v34 = vmul.u32.u64.low %v2982_v31, %v2981_v36  ;;  %v13178_v5 = vmul.u32.u64.high %v2982_v31, %v2981_v36, %v13177_v34 }
 0x385   :  { %vm2513_vm7 = vcmp.lt.s32.totalorder %v12892_v27, 2  ;;  %v3121_v63 = vxor.u32 2147483648, %v3120_v13  ;;  %v2897_v11 = vsub.s32 0, %v13168_v33  ;;  %v2970_v24 = vsel %vm2966_vm10, %v2950_v7, %v2953_v37 }
 0x386   :  { %v2972_v18 = vsel %vm2968_vm12, %v2956_v10, %v2971_v21  ;;  %vm5958_vm13 = vcmp.lt.s32.totalorder %v13024_v58, 2  ;;  %vm5959_vm11 = vcmp.eq.s32.totalorder %v13024_v58, 0  ;;  %v2830_v46 = vsel %vm2820_vm15, nan, %v13106_v53 }
 0x387   :  { %v13188_v4 = vmul.u32.u64.low %v2982_v31, %v2977_v47  ;;  %v13189_v25 = vmul.u32.u64.high %v2982_v31, %v2977_v47, %v13188_v4  ;;  %v2515_v17 = vxor.u32 2147483648, %v8167_v14  ;;  %vm5962_vm5 = vcmp.eq.s32.totalorder %v13024_v58, 2 }
 0x388   :  { %v14752_v37 = vand.u32 2147483647, %v14709_v28  ;;  %v6277_v10 = vsel %vm6270_vm14, %v6273_v40, %v13093_v29  ;;  %v6060_v21 = vadd.s32 3, %v13127_v42  ;;  %v3217_v1 = vadd.s32 127, %v3216_v60  ;;  %v14756_v60 = vld [vmem:[#allocation9_spill] sm:$0xff] }
 0x389   :  { %v2973_v7 = vsel %vm2967_vm9, %v2970_v24, %v2972_v18  ;;  %v2519_v53 = vsel %vm2517_vm2, %v2518_v20, %v8167_v14  ;;  %v3122_v47 = vsel %vm3039_vm6, %v3121_v63, %v3120_v13  ;;  %v7724_v36 = vmin.u32 %v2897_v11, %v13168_v33  ;;  %v8169_v34 = vpop.eup %8168 }
 0x38a   :  { %vm13198_vm3 = vcmp.le.f32.partialorder %v14752_v37, 0.7853982  ;;  %vm2991_vm8 = vc.u32 %v13178_v5, %v13188_v4  ;;  %vm2511_vm4 = vweird.f32 %v14681_v62  ;;  %v5964_v59 = vsel %vm5962_vm5, %v2518_v20, %v8167_v14  ;;  %v8171_v18 = vpop.eup %8170 }
 0x38b   :  { %v3212_v29 = vsub.s32 32, %v13159_v43  ;;  %v2992_v40 = vadd.s32 1, %v13189_v25  ;;  %v7897_v24 = vpack.c.bf16 %v14756_v60, %v14755_v2  ;;  %v2516_v13 = vsel %vm2514_vm1, %v8165_v22, %v2515_v17 }
 0x38c   :  { %v5961_v63 = vsel %vm5959_vm11, %v8165_v22, %v2515_v17  ;;  %v3196_v11 = vadd.s32 %v12958_v49, %v12954_v56  ;;  %v2989_v37 = vmul.u32 %v2982_v31, %v2973_v7  ;;  %v3125_v14 = vsel %vm13198_vm3, %v14709_v28, %v3122_v47 }
 0x38d   :  { %v3218_v20 = vshll.u32 %v3217_v1, 23  ;;  %v2993_v51 = vsel %vm2991_vm8, %v2992_v40, %v13189_v25  ;;  %7898 = vmatpush1.bf16.msra.mxu0 %v7897_v24  ;;  %v7899_v2 = vpack.c.bf16 %v12216_v39, %v12415_v35  ;;  %v2615_v60 = vand.u32 3, %v13127_v42  ;;  %v3708_v42 = vpop.permute.xlu0 %3707 }
 0x38e   :  { %v6278_v22 = vsel %vm2820_vm15, nan, %v6277_v10  ;;  %v2899_v17 = vclz %v7724_v36  ;;  %v2994_v12 = vadd.s32 %v2993_v51, %v2989_v37  ;;  %v2520_v56 = vsel %vm2513_vm7, %v2516_v13, %v2519_v53 }
 0x38f   :  { %v5965_v49 = vsel %vm5958_vm13, %v5961_v63, %v5964_v59  ;;  %v6061_v31 = vand.u32 3, %v6060_v21  ;;  %v3214_v1 = vshrl.u32 %v3196_v11, %v3212_v29  ;;  %7900 = vmatprep.subr.bf16.mxu0 %v7899_v2  ;;  %v2621_v25 = vxor.u32 2147483648, %v8169_v34 }
 0x390   :  { %v3123_v7 = vsub.s32 4, %v12919_v6  ;;  %8172 = vcosq.f32 %v3125_v14  ;;  %v2995_v39 = vadd.s32 536870912, %v2994_v12  ;;  %v2618_v35 = vxor.u32 2147483648, %v8171_v18 }
 0x391   :  { %8174 = vsinq.f32 %v3125_v14  ;;  %v3213_v54 = vshll.u32 %v13034_v41, %v13159_v43  ;;  %v3219_v51 = vor.u32 4788187, %v3218_v20  ;;  %v3758_v27 = vmul.f32 %v12980_v16, %v2830_v46  ;;  %v7164_v63 = vpop.permute.xlu0 %7163 }
 0x392   :  { %vm2617_vm15 = vcmp.eq.s32.totalorder %v2615_v60, 0  ;;  %v7725_v58 = vadd.s32 4294967294, %v2899_v17  ;;  %v13243_v10 = vshrl.u32 %v2995_v39, 30  ;;  %vm2620_vm14 = vcmp.eq.s32.totalorder %v2615_v60, 2 }
 0x393   :  { %v7214_v21 = vmul.f32 %v13010_v45, %v6278_v22  ;;  %vm6063_vm10 = vcmp.eq.s32.totalorder %v6061_v31, 0  ;;  %v3215_v53 = vor.u32 %v3214_v1, %v3213_v54  ;;  %v2521_v47 = vsel %vm2511_vm4, nan, %v2520_v56 }
 0x394   :  { %v5966_v36 = vsel %vm2511_vm4, nan, %v5965_v49  ;;  %vm6066_vm12 = vcmp.eq.s32.totalorder %v6061_v31, 2  ;;  %v2997_v41 = vshll.u32 %v13243_v10, 30  ;;  %v2619_v16 = vsel %vm2617_vm15, %v8169_v34, %v2618_v35 }
 0x395   :  { %v2622_v43 = vsel %vm2620_vm14, %v2621_v25, %v8171_v18  ;;  %v3124_v46 = vsel %vm3039_vm6, %v3123_v7, %v12919_v6  ;;  %v3220_v59 = vand.u32 2147483647, %v3219_v51  ;;  %v6065_v29 = vsel %vm6063_vm10, %v8169_v34, %v2618_v35 }
 0x396   :  { %v6068_v45 = vsel %vm6066_vm12, %v2621_v25, %v8171_v18  ;;  %vm7726_vm2 = vcmp.lt.s32.totalorder %v7725_v58, 0  ;;  %v13254_v40 = vsub.s32 %v2994_v12, %v2997_v41  ;;  %vm2614_vm1 = vweird.f32 %v14692_v38 }
 0x397   :  { %vm2616_vm9 = vcmp.lt.s32.totalorder %v2615_v60, 2  ;;  %vm6062_vm0 = vcmp.lt.s32.totalorder %v6061_v31, 2  ;;  %v3222_v62 = vcvt.s32.f32 %v3215_v53  ;;  %v3755_v13 = vmul.f32 %v3708_v42, %v2521_v47 }
 0x398   :  { %v2623_v24 = vsel %vm2616_vm9, %v2619_v16, %v2622_v43  ;;  %v13259_v11 = vsel %vm13198_vm3, 0, %v3124_v46  ;;  %v3000_v6 = vsub.s32 0, %v13254_v40  ;;  %v6069_v37 = vsel %vm6062_vm0, %v6065_v29, %v6068_v45  ;;  %v14761_v16 = vld [vmem:[#allocation34_spill] sm:$0xff]  ;;  %v14762_v29 = vld [vmem:[#allocation13_spill] sm:$0xff] }
 0x399   :  { %v7211_v34 = vmul.f32 %v7164_v63, %v5966_v36  ;;  %v3223_v18 = vmul.f32 %v3222_v62, %v3220_v59  ;;  %v13262_v14 = vsel %vm7726_vm2, 0, %v7725_v58  ;;  %v13268_v20 = vadd.f32 %v13019_v52, %v13008_v50 }
 0x39a   :  { %v13264_v12 = vpop.eup %8172  ;;  %v13270_v2 = vadd.f32 %v7214_v21, %v3758_v27  ;;  %v7728_v60 = vmin.u32 %v3000_v6, %v13254_v40  ;;  %v3449_v22 = vand.u32 2147483647, %v14757_v26  ;;  %v2624_v56 = vsel %vm2614_vm1, nan, %v2623_v24 }
 0x39b   :  { %v13274_v17 = vpop.eup %8174  ;;  %v13279_v49 = vand.u32 3, %v13259_v11  ;;  %v14758_v31 = vand.u32 2147483647, %v14723_v48  ;;  %vm3142_vm7 = vcmp.lt.s32.totalorder %v14723_v48, 0  ;;  %v6070_v50 = vsel %vm2614_vm1, nan, %v6069_v37 }
 0x39c   :  { %v3226_v52 = vsub.s32 4, %v13015_v32  ;;  %v2907_v25 = vsub.s32 4294967266, %v13262_v14  ;;  %v3002_v7 = vclz %v7728_v60  ;;  %v13292_v39 = vadd.f32 %v7211_v34, %v3755_v13 }
 0x39d   :  { %vm13283_vm6 = vcmp.le.f32.partialorder %v14758_v31, 0.7853982  ;;  %v3136_v35 = vxor.u32 2147483648, %v13264_v12  ;;  %v3224_v54 = vxor.u32 2147483648, %v3223_v18  ;;  %v2917_v51 = vsub.s32 4, %v13143_v57 }
 0x39e   :  { %v3133_v27 = vxor.u32 2147483648, %v13274_v17  ;;  %vm2833_vm13 = vcmp.lt.s32.totalorder %v14731_v3, 0  ;;  %v7729_v58 = vadd.s32 4294967294, %v3002_v7  ;;  %v3456_v38 = vand.u32 8388607, %v3449_v22  ;;  %v14768_v7 = vld [vmem:[#allocation180_spill] sm:$0xff] }
 0x39f   :  { %v3756_v21 = vmul.f32 %v3708_v42, %v2624_v56  ;;  %v7212_v53 = vmul.f32 %v7164_v63, %v6070_v50  ;;  %vm3132_vm11 = vcmp.eq.s32.totalorder %v13279_v49, 0  ;;  %vm3135_vm5 = vcmp.eq.s32.totalorder %v13279_v49, 2 }
 0x3a0   :  { %v3227_v47 = vsel %vm3142_vm7, %v3226_v52, %v13015_v32  ;;  %v2887_v36 = vadd.s32 %v13071_v55, %v13082_v9  ;;  %v2908_v41 = vadd.s32 127, %v2907_v25  ;;  %v3467_v43 = vshrl.u32 %v14367_v30, %v14761_v16  ;;  %v14766_v52 = vld [vmem:[#allocation19_spill] sm:$0xff] }
 0x3a1   :  { %v3137_v42 = vsel %vm3135_vm5, %v3136_v35, %v13274_v17  ;;  %v3225_v46 = vsel %vm3142_vm7, %v3224_v54, %v3223_v18  ;;  %v2918_v59 = vsel %vm2833_vm13, %v2917_v51, %v13143_v57  ;;  %v3466_v32 = vshll.u32 %v14381_v23, %v14762_v29  ;;  %v14767_v25 = vld [vmem:[#allocation183_spill] sm:$0xff] }
 0x3a2   :  { %v3134_v55 = vsel %vm3132_vm11, %v13264_v12, %v3133_v27  ;;  %v14763_v9 = vand.u32 2147483647, %v14731_v3  ;;  %vm7730_vm8 = vcmp.lt.s32.totalorder %v7729_v58, 0  ;;  %v3457_v62 = vor.u32 8388608, %v3456_v38 }
 0x3a3   :  { %v3469_v24 = vshll.u32 %v14367_v30, %v14762_v29  ;;  %vm3131_vm4 = vcmp.lt.s32.totalorder %v13279_v49, 2  ;;  %v3468_v57 = vor.u32 %v3467_v43, %v3466_v32  ;;  %v3470_v13 = vshrl.u32 %v14368_v0, %v14761_v16 }
 0x3a4   :  { %vm13324_vm3 = vcmp.le.f32.partialorder %v14763_v9, 0.7853982  ;;  %v3472_v63 = vshll.u32 %v14368_v0, %v14762_v29  ;;  %v3473_v6 = vshrl.u32 %v14257_v8, %v14761_v16  ;;  %v3228_v37 = vsel %vm13283_vm6, %v14723_v48, %v3225_v46 }
 0x3a5   :  { %v2903_v34 = vsub.s32 32, %v13262_v14  ;;  %v2909_v18 = vshll.u32 %v2908_v41, 23  ;;  %v3465_v60 = vshrl.u32 %v14381_v23, %v14761_v16  ;;  %v13343_v56 = vsel %vm7730_vm8, 0, %v7729_v58  ;;  %v14770_v58 = vld [vmem:[#allocation31_spill] sm:$0xff] }
 0x3a6   :  { %v3471_v31 = vor.u32 %v3470_v13, %v3469_v24  ;;  %v3474_v50 = vor.u32 %v3473_v6, %v3472_v63  ;;  %vm3483_vm15 = vcmp.lt.s32.totalorder %v14766_v52, 3  ;;  %vm3481_vm14 = vcmp.lt.s32.totalorder %v14766_v52, 1 }
 0x3a7   :  { %vm3482_vm10 = vcmp.lt.s32.totalorder %v14766_v52, 2  ;;  %v3495_v54 = vsel %vm3483_vm15, %v14768_v7, %v14767_v25  ;;  %v3497_v51 = vshll.u32 %v3457_v62, 8  ;;  %vm3129_vm12 = vweird.f32 %v14709_v28 }
 0x3a8   :  { %vm14769_vm2 = vcmp.lt.s32.totalorder %v14766_v52, 4  ;;  %v3489_v41 = vsel %vm3481_vm14, %v3468_v57, %v3471_v31  ;;  %v3491_v16 = vsel %vm3483_vm15, %v3474_v50, %v14770_v58  ;;  %v3493_v43 = vsel %vm3481_vm14, %v3471_v31, %v3474_v50 }
 0x3a9   :  { %v3486_v38 = vsel %vm14769_vm2, %v3474_v50, 2102212464  ;;  %v2905_v46 = vshrl.u32 %v2887_v36, %v2903_v34  ;;  %v3010_v29 = vsub.s32 4294967266, %v13343_v56  ;;  %v3485_v32 = vsel %vm3481_vm14, %v3465_v60, %v3468_v57 }
 0x3aa   :  { %v3492_v9 = vsel %vm3482_vm10, %v3489_v41, %v3491_v16  ;;  %v3487_v24 = vsel %vm3483_vm15, %v3471_v31, %v3486_v38  ;;  %v3496_v62 = vsel %vm3482_vm10, %v3493_v43, %v3495_v54  ;;  %v13363_v6 = vadd.f32 %v7212_v53, %v3756_v21  ;;  %v14771_v54 = vld [vmem:[#allocation156_spill] sm:$0xff] }
 0x3ab   :  { %v13359_v13 = vmul.u32.u64.low %v3497_v51, %v3492_v9  ;;  %v13360_v63 = vmul.u32.u64.high %v3497_v51, %v3492_v9, %v13359_v13  ;;  %v3229_v50 = vsel %vm13283_vm6, 0, %v3227_v47  ;;  %8176 = vcosq.f32 %v3228_v37 }
 0x3ac   :  { %v13367_v36 = vmul.u32.u64.low %v3497_v51, %v3496_v62  ;;  %v13368_v34 = vmul.u32.u64.high %v3497_v51, %v3496_v62, %v13367_v36  ;;  %v2904_v57 = vshll.u32 %v13168_v33, %v13262_v14  ;;  %v2910_v60 = vor.u32 4788187, %v2909_v18 }
 0x3ad   :  { %v2920_v31 = vsel %vm13324_vm3, 0, %v2918_v59  ;;  %v3138_v25 = vsel %vm3131_vm4, %v3134_v55, %v3137_v42  ;;  %8178 = vsinq.f32 %v3228_v37  ;;  %v6580_v21 = vadd.s32 3, %v13259_v11 }
 0x3ae   :  { %v3488_v1 = vsel %vm3482_vm10, %v3485_v32, %v3487_v24  ;;  %v2906_v53 = vor.u32 %v2905_v46, %v2904_v57  ;;  %v3011_v47 = vadd.s32 127, %v3010_v29  ;;  %v3507_v7 = vadd.s32 1, %v13360_v63  ;;  %v14773_v32 = vld [vmem:[#allocation179_spill] sm:$0xff] }
 0x3af   :  { %v3552_v38 = vand.u32 2147483647, %v14771_v54  ;;  %v13381_v33 = vand.u32 3, %v3229_v50  ;;  %v13383_v14 = vand.u32 3, %v2920_v31  ;;  %v3006_v59 = vsub.s32 32, %v13343_v56 }
 0x3b0   :  { %v6684_v49 = vadd.s32 3, %v3229_v50  ;;  %v2911_v42 = vand.u32 2147483647, %v2910_v60  ;;  %v2990_v11 = vadd.s32 %v13188_v4, %v13178_v5  ;;  %v3504_v55 = vmul.u32 %v3497_v51, %v3488_v1  ;;  %v14772_v51 = vld [vmem:[#allocation18_spill] sm:$0xff] }
 0x3b1   :  { %vm3506_vm1 = vc.u32 %v13368_v34, %v13359_v13  ;;  %v13392_v37 = vsel %vm3129_vm12, nan, %v3138_v25  ;;  %v13394_v18 = vand.u32 3, %v6580_v21  ;;  %v6372_v52 = vadd.s32 3, %v2920_v31 }
 0x3b2   :  { %v3508_v41 = vsel %vm3506_vm1, %v3507_v7, %v13360_v63  ;;  %v2913_v58 = vcvt.s32.f32 %v2906_v53  ;;  %v3012_v16 = vshll.u32 %v3011_v47, 23  ;;  %v3559_v46 = vand.u32 8388607, %v3552_v38 }
 0x3b3   :  { %v3509_v43 = vadd.s32 %v3508_v41, %v3504_v55  ;;  %v3008_v5 = vshrl.u32 %v2990_v11, %v3006_v59  ;;  %v13399_v4 = vand.u32 3, %v6684_v49  ;;  %v3569_v29 = vshll.u32 %v14381_v23, %v14772_v51  ;;  %v14775_v11 = vld [vmem:[#allocation48_spill] sm:$0xff]  ;;  %v14776_v55 = vld [vmem:[#allocation37_spill] sm:$0xff] }
 0x3b4   :  { %v3570_v9 = vshrl.u32 %v14367_v30, %v14773_v32  ;;  %v2914_v24 = vmul.f32 %v2913_v58, %v2911_v42  ;;  %v3572_v63 = vshll.u32 %v14367_v30, %v14772_v51  ;;  %v3573_v50 = vshrl.u32 %v14368_v0, %v14773_v32 }
 0x3b5   :  { %v3510_v62 = vadd.s32 536870912, %v3509_v43  ;;  %v3007_v36 = vshll.u32 %v13254_v40, %v13343_v56  ;;  %v3575_v60 = vshll.u32 %v14368_v0, %v14772_v51  ;;  %v3576_v31 = vshrl.u32 %v14257_v8, %v14773_v32  ;;  %v13415_v25 = vpop.eup %8176  ;;  %v14774_v40 = vld [vmem:[#allocation20_spill] sm:$0xff] }
 0x3b6   :  { %v3571_v57 = vor.u32 %v3570_v9, %v3569_v29  ;;  %v3013_v21 = vor.u32 4788187, %v3012_v16  ;;  %v3560_v53 = vor.u32 8388608, %v3559_v46  ;;  %v3574_v47 = vor.u32 %v3573_v50, %v3572_v63  ;;  %v14778_v46 = vld [vmem:[#allocation46_spill] sm:$0xff] }
 0x3b7   :  { %v13417_v1 = vshrl.u32 %v3510_v62, 30  ;;  %v8179_v7 = vpop.eup %8178  ;;  %vm3238_vm9 = vcmp.eq.s32.totalorder %v13381_v33, 2  ;;  %v3009_v59 = vor.u32 %v3008_v5, %v3007_v36  ;;  %v3577_v49 = vor.u32 %v3576_v31, %v3575_v60 }
 0x3b8   :  { %vm3584_vm0 = vcmp.lt.s32.totalorder %v14774_v40, 1  ;;  %vm3586_vm6 = vcmp.lt.s32.totalorder %v14774_v40, 3  ;;  %vm3235_vm7 = vcmp.eq.s32.totalorder %v13381_v33, 0  ;;  %v2915_v56 = vxor.u32 2147483648, %v2914_v24 }
 0x3b9   :  { %vm3585_vm11 = vcmp.lt.s32.totalorder %v14774_v40, 2  ;;  %v3592_v42 = vsel %vm3584_vm0, %v3571_v57, %v3574_v47  ;;  %v3598_v41 = vsel %vm3586_vm6, %v14776_v55, %v14775_v11  ;;  %v3512_v58 = vshll.u32 %v13417_v1, 30 }
 0x3ba   :  { %vm14777_vm5 = vcmp.lt.s32.totalorder %v14774_v40, 4  ;;  %v3594_v5 = vsel %vm3586_vm6, %v3577_v49, %v14778_v46  ;;  %v3596_v51 = vsel %vm3584_vm0, %v3574_v47, %v3577_v49  ;;  %v3014_v29 = vand.u32 2147483647, %v3013_v21 }
 0x3bb   :  { %v3589_v16 = vsel %vm14777_vm5, %v3577_v49, 2102212464  ;;  %v3568_v9 = vshrl.u32 %v14381_v23, %v14773_v32  ;;  %v3595_v62 = vsel %vm3585_vm11, %v3592_v42, %v3594_v5  ;;  %v3600_v63 = vshll.u32 %v3560_v53, 8 }
 0x3bc   :  { %vm3234_vm8 = vcmp.lt.s32.totalorder %v13381_v33, 2  ;;  %v3236_v50 = vxor.u32 2147483648, %v8179_v7  ;;  %v3239_v36 = vxor.u32 2147483648, %v13415_v25  ;;  %v3016_v60 = vcvt.s32.f32 %v3009_v59 }
 0x3bd   :  { %v3599_v31 = vsel %vm3585_vm11, %v3596_v51, %v3598_v41  ;;  %v3588_v49 = vsel %vm3584_vm0, %v3568_v9, %v3571_v57  ;;  %v3590_v21 = vsel %vm3586_vm6, %v3574_v47, %v3589_v16  ;;  %v2916_v53 = vsel %vm2833_vm13, %v2915_v56, %v2914_v24  ;;  %v14782_v51 = vld [vmem:[#allocation161_spill] sm:$0xff] }
 0x3be   :  { %v13450_v32 = vmul.u32.u64.low %v3600_v63, %v3599_v31  ;;  %v13451_v11 = vmul.u32.u64.high %v3600_v63, %v3599_v31, %v13450_v32  ;;  %vm2936_vm4 = vcmp.lt.s32.totalorder %v14743_v19, 0  ;;  %v13456_v42 = vsub.s32 %v3509_v43, %v3512_v58 }
 0x3bf   :  { %v13458_v59 = vmul.u32.u64.low %v3600_v63, %v3595_v62  ;;  %v13459_v55 = vmul.u32.u64.high %v3600_v63, %v3595_v62, %v13458_v59  ;;  %vm3232_vm15 = vweird.f32 %v14723_v48  ;;  %v3017_v57 = vmul.f32 %v3016_v60, %v3014_v29 }
 0x3c0   :  { %vm6582_vm14 = vcmp.lt.s32.totalorder %v13394_v18, 2  ;;  %vm6583_vm10 = vcmp.eq.s32.totalorder %v13394_v18, 0  ;;  %v13465_v47 = vand.u32 3, %v6372_v52  ;;  %vm6586_vm13 = vcmp.eq.s32.totalorder %v13394_v18, 2 }
 0x3c1   :  { %v6585_v24 = vsel %vm6583_vm10, %v13264_v12, %v3133_v27  ;;  %vm6686_vm2 = vcmp.lt.s32.totalorder %v13399_v4, 2  ;;  %v3591_v43 = vsel %vm3585_vm11, %v3588_v49, %v3590_v21  ;;  %v3240_v56 = vsel %vm3238_vm9, %v3239_v36, %v8179_v7  ;;  %v14783_v49 = vld [vmem:[#allocation184_spill] sm:$0xff] }
 0x3c2   :  { %v2919_v41 = vsel %vm13324_vm3, %v14731_v3, %v2916_v53  ;;  %v14779_v52 = vand.u32 2147483647, %v14743_v19  ;;  %v6588_v27 = vsel %vm6586_vm13, %v3136_v35, %v13274_v17  ;;  %vm6687_vm0 = vcmp.eq.s32.totalorder %v13399_v4, 0  ;;  %v14784_v53 = vld [vmem:[#allocation181_spill] sm:$0xff] }
 0x3c3   :  { %v3237_v40 = vsel %vm3235_vm7, %v13415_v25, %v3236_v50  ;;  %v3515_v16 = vsub.s32 0, %v13456_v42  ;;  %vm3609_vm3 = vc.u32 %v13451_v11, %v13458_v59  ;;  %v3610_v45 = vadd.s32 1, %v13459_v55 }
 0x3c4   :  { %vm13481_vm1 = vcmp.le.f32.partialorder %v14779_v52, 0.7853982  ;;  %v3018_v46 = vxor.u32 2147483648, %v3017_v57  ;;  %vm6690_vm9 = vcmp.eq.s32.totalorder %v13399_v4, 2  ;;  %v3607_v5 = vmul.u32 %v3600_v63, %v3591_v43  ;;  %v3723_v52 = vpop.permute.xlu1 %3722 }
 0x3c5   :  { %v14222_v12 = vand.u32 2147483647, %v14782_v51  ;;  %8180 = vcosq.f32 %v2919_v41  ;;  %v3020_v17 = vsub.s32 4, %v13243_v10  ;;  %v6589_v35 = vsel %vm6582_vm14, %v6585_v24, %v6588_v27 }
 0x3c6   :  { %v3611_v29 = vsel %vm3609_vm3, %v3610_v45, %v13459_v55  ;;  %v3241_v9 = vsel %vm3234_vm8, %v3237_v40, %v3240_v56  ;;  %v6689_v62 = vsel %vm6687_vm0, %v13415_v25, %v3236_v50  ;;  %v6692_v60 = vsel %vm6690_vm9, %v3239_v36, %v8179_v7 }
 0x3c7   :  { %v3612_v31 = vadd.s32 %v3611_v29, %v3607_v5  ;;  %8182 = vsinq.f32 %v2919_v41  ;;  %v7748_v63 = vmin.u32 %v3515_v16, %v13456_v42  ;;  %v3261_v21 = vshrl.u32 %v14367_v30, %v14783_v49 }
 0x3c8   :  { %v3264_v32 = vshrl.u32 %v14368_v0, %v14783_v49  ;;  %v3019_v18 = vsel %vm2936_vm4, %v3018_v46, %v3017_v57  ;;  %v3250_v33 = vand.u32 8388607, %v14222_v12  ;;  %v3260_v25 = vshll.u32 %v14381_v23, %v14784_v53  ;;  %v3718_v12 = vpop.permute.xlu0 %3717 }
 0x3c9   :  { %v3263_v7 = vshll.u32 %v14367_v30, %v14784_v53  ;;  %v3242_v50 = vsel %vm3232_vm15, nan, %v3241_v9  ;;  %v3021_v36 = vsel %vm2936_vm4, %v3020_v17, %v13243_v10  ;;  %v6693_v55 = vsel %vm6686_vm2, %v6689_v62, %v6692_v60  ;;  %v14785_v9 = vld [vmem:[#allocation42_spill] sm:$0xff]  ;;  %v14787_v62 = vld [vmem:[#allocation36_spill] sm:$0xff] }
 0x3ca   :  { %v3613_v57 = vadd.s32 536870912, %v3612_v31  ;;  %v3262_v24 = vor.u32 %v3261_v21, %v3260_v25  ;;  %v3266_v56 = vshll.u32 %v14368_v0, %v14784_v53  ;;  %v3267_v41 = vshrl.u32 %v14257_v8, %v14783_v49  ;;  %v14788_v60 = vld [vmem:[#allocation186_spill] sm:$0xff] }
 0x3cb   :  { %v3265_v43 = vor.u32 %v3264_v32, %v3263_v7  ;;  %v3022_v27 = vsel %vm13481_vm1, %v14743_v19, %v3019_v18  ;;  %v6590_v10 = vsel %vm3129_vm12, nan, %v6589_v35  ;;  %v3517_v40 = vclz %v7748_v63  ;;  %v14786_v35 = vld [vmem:[#allocation38_spill] sm:$0xff] }
 0x3cc   :  { %v13534_v4 = vshrl.u32 %v3613_v57, 30  ;;  %v3762_v16 = vmul.f32 %v3723_v52, %v3242_v50  ;;  %v3023_v45 = vsel %vm13481_vm1, 0, %v3021_v36  ;;  %v3251_v46 = vor.u32 8388608, %v3250_v33  ;;  %v7179_v50 = vpop.permute.xlu1 %7178 }
 0x3cd   :  { %v3268_v5 = vor.u32 %v3267_v41, %v3266_v56  ;;  %v6694_v17 = vsel %vm3232_vm15, nan, %v6693_v55  ;;  %vm3275_vm6 = vcmp.lt.s32.totalorder %v14785_v9, 1  ;;  %vm3277_vm7 = vcmp.lt.s32.totalorder %v14785_v9, 3 }
 0x3ce   :  { %v3615_v29 = vshll.u32 %v13534_v4, 30  ;;  %vm2929_vm12 = vcmp.eq.s32.totalorder %v13383_v14, 2  ;;  %8184 = vcosq.f32 %v3022_v27  ;;  %v3283_v28 = vsel %vm3275_vm6, %v3262_v24, %v3265_v43 }
 0x3cf   :  { %v3285_v58 = vsel %vm3277_vm7, %v3268_v5, %v14786_v35  ;;  %v3289_v48 = vsel %vm3277_vm7, %v14788_v60, %v14787_v62  ;;  %v8181_v63 = vpop.eup %8180  ;;  %vm2926_vm11 = vcmp.eq.s32.totalorder %v13383_v14, 0  ;;  %8186 = vsinq.f32 %v3022_v27 }
 0x3d0   :  { %v6476_v21 = vadd.s32 3, %v3023_v45  ;;  %v7749_v32 = vadd.s32 4294967294, %v3517_v40  ;;  %v13554_v18 = vsub.s32 %v3612_v31, %v3615_v29  ;;  %vm3276_vm5 = vcmp.lt.s32.totalorder %v14785_v9, 2 }
 0x3d1   :  { %vm14789_vm8 = vcmp.lt.s32.totalorder %v14785_v9, 4  ;;  %v3287_v53 = vsel %vm3275_vm6, %v3265_v43, %v3268_v5  ;;  %v3291_v25 = vshll.u32 %v3251_v46, 8  ;;  %v8183_v7 = vpop.eup %8182  ;;  %v3259_v55 = vshrl.u32 %v14381_v23, %v14783_v49 }
 0x3d2   :  { %v3280_v33 = vsel %vm14789_vm8, %v3268_v5, 2102212464  ;;  %v3618_v36 = vsub.s32 0, %v13554_v18  ;;  %v3286_v31 = vsel %vm3276_vm5, %v3283_v28, %v3285_v58  ;;  %v3290_v57 = vsel %vm3276_vm5, %v3287_v53, %v3289_v48 }
 0x3d3   :  { %vm2925_vm4 = vcmp.lt.s32.totalorder %v13383_v14, 2  ;;  %v2930_v56 = vxor.u32 2147483648, %v8181_v63  ;;  %v7218_v41 = vmul.f32 %v7179_v50, %v6694_v17  ;;  %vm7750_vm15 = vcmp.lt.s32.totalorder %v7749_v32, 0 }
 0x3d4   :  { %v13569_v27 = vmul.u32.u64.low %v3291_v25, %v3290_v57  ;;  %v13570_v40 = vmul.u32.u64.high %v3291_v25, %v3290_v57, %v13569_v27  ;;  %v7752_v46 = vmin.u32 %v3618_v36, %v13554_v18  ;;  %v3279_v5 = vsel %vm3275_vm6, %v3259_v55, %v3262_v24  ;;  %v14791_v36 = vld [vmem:[#allocation39_spill] sm:$0xff] }
 0x3d5   :  { %v3281_v49 = vsel %vm3277_vm7, %v3265_v43, %v3280_v33  ;;  %v2927_v29 = vxor.u32 2147483648, %v8183_v7  ;;  %v13577_v28 = vand.u32 3, %v3023_v45  ;;  %v13584_v17 = vmul.f32 %v3723_v52, %v13392_v37  ;;  %v14790_v45 = vld [vmem:[#allocation162_spill] sm:$0xff] }
 0x3d6   :  { %v13579_v35 = vmul.u32.u64.low %v3291_v25, %v3286_v31  ;;  %v13580_v58 = vmul.u32.u64.high %v3291_v25, %v3286_v31, %v13579_v35  ;;  %vm6375_vm14 = vcmp.eq.s32.totalorder %v13465_v47, 0  ;;  %v13587_v62 = vand.u32 3, %v6476_v21 }
 0x3d7   :  { %v3620_v60 = vclz %v7752_v46  ;;  %vm6378_vm10 = vcmp.eq.s32.totalorder %v13465_v47, 2  ;;  %v13590_v24 = vsel %vm7750_vm15, 0, %v7749_v32  ;;  %v3282_v43 = vsel %vm3276_vm5, %v3279_v5, %v3281_v49 }
 0x3d8   :  { %v14221_v48 = vand.u32 2147483647, %v14790_v45  ;;  %v2931_v33 = vsel %vm2929_vm12, %v2930_v56, %v8183_v7  ;;  %v13597_v53 = vmul.f32 %v7179_v50, %v6590_v10  ;;  %v13599_v37 = vadd.f32 %v7218_v41, %v3762_v16  ;;  %v8185_v52 = vpop.eup %8184 }
 0x3d9   :  { %vm3300_vm13 = vc.u32 %v13570_v40, %v13579_v35  ;;  %v2928_v21 = vsel %vm2926_vm11, %v8181_v63, %v2927_v29  ;;  %vm3029_vm2 = vcmp.eq.s32.totalorder %v13577_v28, 0  ;;  %vm3032_vm1 = vcmp.eq.s32.totalorder %v13577_v28, 2  ;;  %v8187_v50 = vpop.eup %8186 }
 0x3da   :  { %v7753_v9 = vadd.s32 4294967294, %v3620_v60  ;;  %v3301_v32 = vadd.s32 1, %v13580_v58  ;;  %v3367_v10 = vshrl.u32 %v14368_v0, %v14791_v36  ;;  %v6380_v16 = vsel %vm6378_vm10, %v2930_v56, %v8183_v7  ;;  %v14792_v56 = vld [vmem:[#allocation182_spill] sm:$0xff] }
 0x3db   :  { %vm6479_vm0 = vcmp.eq.s32.totalorder %v13587_v62, 0  ;;  %vm6482_vm3 = vcmp.eq.s32.totalorder %v13587_v62, 2  ;;  %v3525_v55 = vsub.s32 4294967266, %v13590_v24  ;;  %v3298_v31 = vmul.u32 %v3291_v25, %v3282_v43 }
 0x3dc   :  { %vm6374_vm9 = vcmp.lt.s32.totalorder %v13465_v47, 2  ;;  %v6377_v57 = vsel %vm6375_vm14, %v8181_v63, %v2927_v29  ;;  %v3302_v41 = vsel %vm3300_vm13, %v3301_v32, %v13580_v58  ;;  %v3353_v7 = vand.u32 8388607, %v14221_v48 }
 0x3dd   :  { %v3366_v27 = vshll.u32 %v14367_v30, %v14792_v56  ;;  %v2932_v46 = vsel %vm2925_vm4, %v2928_v21, %v2931_v33  ;;  %vm3028_vm6 = vcmp.lt.s32.totalorder %v13577_v28, 2  ;;  %v3505_v25 = vadd.s32 %v13359_v13, %v13368_v34 }
 0x3de   :  { %v3303_v63 = vadd.s32 %v3302_v41, %v3298_v31  ;;  %v3364_v5 = vshrl.u32 %v14367_v30, %v14791_v36  ;;  %vm6478_vm7 = vcmp.lt.s32.totalorder %v13587_v62, 2  ;;  %vm7754_vm12 = vcmp.lt.s32.totalorder %v7753_v9, 0  ;;  %v14794_v31 = vld [vmem:[#allocation51_spill] sm:$0xff] }
 0x3df   :  { %v3368_v49 = vor.u32 %v3367_v10, %v3366_v27  ;;  %v3369_v29 = vshll.u32 %v14368_v0, %v14792_v56  ;;  %v3370_v14 = vshrl.u32 %v14257_v8, %v14791_v36  ;;  %v3030_v58 = vxor.u32 2147483648, %v8187_v50  ;;  %v14793_v8 = vld [vmem:[#allocation185_spill] sm:$0xff]  ;;  %v14795_v41 = vld [vmem:[#allocation187_spill] sm:$0xff] }
 0x3e0   :  { %v3033_v60 = vxor.u32 2147483648, %v8185_v52  ;;  %v3526_v43 = vadd.s32 127, %v3525_v55  ;;  %v3304_v33 = vadd.s32 536870912, %v3303_v63  ;;  %v3521_v13 = vsub.s32 32, %v13590_v24  ;;  %v14797_v27 = vld [vmem:[#allocation49_spill] sm:$0xff] }
 0x3e1   :  { %v3354_v34 = vor.u32 8388608, %v3353_v7  ;;  %v3363_v30 = vshll.u32 %v14381_v23, %v14792_v56  ;;  %v3371_v21 = vor.u32 %v3370_v14, %v3369_v29  ;;  %vm2923_vm11 = vweird.f32 %v14731_v3  ;;  %v14796_v56 = vld [vmem:[#allocation58_spill] sm:$0xff] }
 0x3e2   :  { %vm3026_vm5 = vweird.f32 %v14743_v19  ;;  %v13643_v32 = vsel %vm7754_vm12, 0, %v7753_v9  ;;  %v13645_v0 = vshrl.u32 %v3304_v33, 30  ;;  %vm3378_vm8 = vcmp.lt.s32.totalorder %v14793_v8, 1 }
 0x3e3   :  { %vm3380_vm4 = vcmp.lt.s32.totalorder %v14793_v8, 3  ;;  %v3365_v10 = vor.u32 %v3364_v5, %v3363_v30  ;;  %v3390_v55 = vsel %vm3378_vm8, %v3368_v49, %v3371_v21  ;;  %v7901_v29 = vpack.c.bf16 %v14797_v27, %v14796_v56 }
 0x3e4   :  { %v3392_v7 = vsel %vm3380_vm4, %v14795_v41, %v14794_v31  ;;  %v3031_v9 = vsel %vm3029_vm2, %v8185_v52, %v3030_v58  ;;  %v3034_v14 = vsel %vm3032_vm1, %v3033_v60, %v8187_v50  ;;  %v3527_v33 = vshll.u32 %v3526_v43, 23 }
 0x3e5   :  { %v3306_v5 = vshll.u32 %v13645_v0, 30  ;;  %v6481_v30 = vsel %vm6479_vm0, %v8185_v52, %v3030_v58  ;;  %v6484_v48 = vsel %vm6482_vm3, %v3033_v60, %v8187_v50  ;;  %v3628_v31 = vsub.s32 4294967266, %v13643_v32  ;;  %7902 = vmatpush1.bf16.msra.mxu0 %v7901_v29  ;;  %v14798_v58 = vld [vmem:[#allocation41_spill] sm:$0xff] }
 0x3e6   :  { %vm3379_vm15 = vcmp.lt.s32.totalorder %v14793_v8, 2  ;;  %v6381_v41 = vsel %vm6374_vm9, %v6377_v57, %v6380_v16  ;;  %v3523_v56 = vshrl.u32 %v3505_v25, %v3521_v13  ;;  %v3035_v52 = vsel %vm3028_vm6, %v3031_v9, %v3034_v14 }
 0x3e7   :  { %v13670_v27 = vsub.s32 %v3303_v63, %v3306_v5  ;;  %v3393_v43 = vsel %vm3379_vm15, %v3390_v55, %v3392_v7  ;;  %v3386_v50 = vsel %vm3378_vm8, %v3365_v10, %v3368_v49  ;;  %v3388_v60 = vsel %vm3380_vm4, %v3371_v21, %v14798_v58 }
 0x3e8   :  { %v3394_v29 = vshll.u32 %v3354_v34, 8  ;;  %v6485_v47 = vsel %vm6478_vm7, %v6481_v30, %v6484_v48  ;;  %v3522_v16 = vshll.u32 %v13456_v42, %v13590_v24  ;;  %v3528_v57 = vor.u32 4788187, %v3527_v33 }
 0x3e9   :  { %v3309_v25 = vsub.s32 0, %v13670_v27  ;;  %v3629_v28 = vadd.s32 127, %v3628_v31  ;;  %vm14799_vm14 = vcmp.lt.s32.totalorder %v14793_v8, 4  ;;  %v3362_v62 = vshrl.u32 %v14381_v23, %v14791_v36 }
 0x3ea   :  { %v3383_v63 = vsel %vm14799_vm14, %v3371_v21, 2102212464  ;;  %v13688_v13 = vmul.u32.u64.low %v3394_v29, %v3393_v43  ;;  %v13689_v55 = vmul.u32.u64.high %v3394_v29, %v3393_v43, %v13688_v13  ;;  %v3524_v7 = vor.u32 %v3523_v56, %v3522_v16  ;;  %v7174_v56 = vpop.permute.xlu0 %7173 }
 0x3eb   :  { %v7740_v34 = vmin.u32 %v3309_v25, %v13670_v27  ;;  %v3389_v48 = vsel %vm3379_vm15, %v3386_v50, %v3388_v60  ;;  %v2933_v42 = vsel %vm2923_vm11, nan, %v2932_v46  ;;  %v3036_v24 = vsel %vm3026_vm5, nan, %v3035_v52 }
 0x3ec   :  { %v6486_v21 = vsel %vm3026_vm5, nan, %v6485_v47  ;;  %v3624_v9 = vsub.s32 32, %v13643_v32  ;;  %v3529_v14 = vand.u32 2147483647, %v3528_v57  ;;  %v3382_v5 = vsel %vm3378_vm8, %v3362_v62, %v3365_v10 }
 0x3ed   :  { %v3311_v33 = vclz %v7740_v34  ;;  %v3384_v23 = vsel %vm3380_vm4, %v3368_v49, %v3383_v63  ;;  %v3608_v36 = vadd.s32 %v13458_v59, %v13451_v11  ;;  %v3630_v46 = vshll.u32 %v3629_v28, 23 }
 0x3ee   :  { %v13709_v30 = vmul.u32.u64.low %v3394_v29, %v3389_v48  ;;  %v13710_v31 = vmul.u32.u64.high %v3394_v29, %v3389_v48, %v13709_v30  ;;  %v3759_v19 = vmul.f32 %v3718_v12, %v2933_v42  ;;  %v6382_v43 = vsel %vm2923_vm11, nan, %v6381_v41 }
 0x3ef   :  { %v3531_v52 = vcvt.s32.f32 %v3524_v7  ;;  %v7741_v50 = vadd.s32 4294967294, %v3311_v33  ;;  %v3760_v58 = vmul.f32 %v3718_v12, %v3036_v24  ;;  %v7216_v10 = vmul.f32 %v7174_v56, %v6486_v21 }
 0x3f0   :  { %v3626_v60 = vshrl.u32 %v3608_v36, %v3624_v9  ;;  %v3385_v49 = vsel %vm3379_vm15, %v3382_v5, %v3384_v23  ;;  %v3625_v11 = vshll.u32 %v13554_v18, %v13643_v32  ;;  %vm3403_vm13 = vc.u32 %v13689_v55, %v13709_v30 }
 0x3f1   :  { %v3532_v47 = vmul.f32 %v3531_v52, %v3529_v14  ;;  %vm7742_vm10 = vcmp.lt.s32.totalorder %v7741_v50, 0  ;;  %v3631_v59 = vor.u32 4788187, %v3630_v46  ;;  %v3404_v3 = vadd.s32 1, %v13710_v31 }
 0x3f2   :  { %v3314_v16 = vsel %vm7742_vm10, 0, %v7741_v50  ;;  %v7903_v12 = vpack.c.bf16 %v12749_v44, %v12878_v61  ;;  %v3299_v41 = vadd.s32 %v13579_v35, %v13570_v40  ;;  %v3401_v25 = vmul.u32 %v3394_v29, %v3385_v49  ;;  %v14800_v44 = vld [vmem:[#allocation68_spill] sm:$0xff] }
 0x3f3   :  { %v3315_v8 = vsub.s32 32, %v3314_v16  ;;  %v3319_v57 = vsub.s32 4294967266, %v3314_v16  ;;  %v7215_v28 = vmul.f32 %v7174_v56, %v6382_v43  ;;  %v7248_v63 = vadd.f32 %v7216_v10, %v3760_v58 }
 0x3f4   :  { %v3627_v18 = vor.u32 %v3626_v60, %v3625_v11  ;;  %v3405_v32 = vsel %vm3403_vm13, %v3404_v3, %v13710_v31  ;;  %7904 = vmatprep.subr.bf16.mxu0 %v7903_v12  ;;  %v3316_v13 = vshll.u32 %v13670_v27, %v3314_v16  ;;  %v3533_v48 = vxor.u32 2147483648, %v3532_v47 }
 0x3f5   :  { %v3317_v7 = vshrl.u32 %v3299_v41, %v3315_v8  ;;  %v3320_v34 = vadd.s32 127, %v3319_v57  ;;  %v3406_v62 = vadd.s32 %v3405_v32, %v3401_v25  ;;  %v3632_v42 = vand.u32 2147483647, %v3631_v59 }
 0x3f6   :  { %v7905_v61 = vpack.c.bf16 %v14800_v44, %v12767_v15  ;;  %v7907_v40 = vpack.c.bf16 %v13270_v2, %v13363_v6  ;;  %vm3451_vm2 = vcmp.lt.s32.totalorder %v14757_v26, 0  ;;  %v7249_v21 = vadd.f32 %v13597_v53, %v13584_v17 }
 0x3f7   :  { %v3318_v35 = vor.u32 %v3317_v7, %v3316_v13  ;;  %v3321_v29 = vshll.u32 %v3320_v34, 23  ;;  %v3407_v24 = vadd.s32 536870912, %v3406_v62  ;;  %v7247_v27 = vadd.f32 %v7215_v28, %v3759_v19 }
 0x3f8   :  { %v3634_v9 = vcvt.s32.f32 %v3627_v18  ;;  %7906 = vmatpush1.bf16.msra.mxu0 %v7905_v61  ;;  %v7909_v14 = vpack.c.bf16 %v13268_v20, %v13292_v39  ;;  %v7911_v15 = vpack.c.bf16 %v13599_v37, %v7248_v63  ;;  %v3534_v2 = vsel %vm3451_vm2, %v3533_v48, %v3532_v47 }
 0x3f9   :  { %v3322_v33 = vor.u32 4788187, %v3321_v29  ;;  %v13737_v5 = vshrl.u32 %v3407_v24, 30  ;;  %7908 = vmatprep.subr.bf16.mxu0 %v7907_v40  ;;  %v8235_v23 = vmov 0.0   ;;  %v3325_v53 = vcvt.s32.f32 %v3318_v35 }
 0x3fa   :  { %v3635_v6 = vmul.f32 %v3634_v9, %v3632_v42  ;;  %7375 = vmatprep.mubr.f32.mxu0 %v8235_v23  ;;  %7577 = vmatprep.mubr.f32.mxu1 %v8235_v23  ;;  %vm13747_vm1 = vcmp.le.f32.partialorder %v3449_v22, 0.7853982  ;;  %v7913_v39 = vpack.c.bf16 %v7249_v21, %v7247_v27  ;;  %v3535_v52 = vsub.s32 4, %v13417_v1 }
 0x3fb   :  { %v3323_v17 = vand.u32 2147483647, %v3322_v33  ;;  %v3409_v36 = vshll.u32 %v13737_v5, 30  ;;  %v3537_v37 = vsel %vm13747_vm1, %v14757_v26, %v3534_v2  ;;  %vm3554_vm0 = vcmp.lt.s32.totalorder %v14771_v54, 0 }
 0x3fc   :  { %7910 = vmatpush1.bf16.msra.mxu0 %v7909_v14  ;;  %v3636_v19 = vxor.u32 2147483648, %v3635_v6  ;;  %8188 = vcosq.f32 %v3537_v37  ;;  %vm3245_vm3 = vcmp.lt.s32.totalorder %v14782_v51, 0  ;;  %vm13761_vm9 = vcmp.le.f32.partialorder %v3552_v38, 0.7853982 }
 0x3fd   :  { %v3326_v46 = vmul.f32 %v3325_v53, %v3323_v17  ;;  %v3410_v31 = vsub.s32 %v3406_v62, %v3409_v36  ;;  %7912 = vmatprep.subr.bf16.mxu0 %v7911_v15  ;;  %8190 = vsinq.f32 %v3537_v37  ;;  %v3536_v49 = vsel %vm3451_vm2, %v3535_v52, %v13417_v1 }
 0x3fe   :  { %v3637_v50 = vsel %vm3554_vm0, %v3636_v19, %v3635_v6  ;;  %v3638_v59 = vsub.s32 4, %v13534_v4  ;;  %v14805_v16 = vand.u32 2147483647, %v14782_v51  ;;  %v3329_v3 = vsub.s32 4, %v13645_v0 }
 0x3ff   :  { %v3412_v56 = vsub.s32 0, %v3410_v31  ;;  %v3327_v43 = vxor.u32 2147483648, %v3326_v46  ;;  %v3640_v47 = vsel %vm13761_vm9, %v14771_v54, %v3637_v50  ;;  %v3538_v1 = vsel %vm13747_vm1, 0, %v3536_v49 }
 0x400   :  { %7914 = vmatpush1.bf16.msra.mxu0 %v7913_v39  ;;  %vm13776_vm6 = vcmp.le.f32.partialorder %v14805_v16, 0.7853982  ;;  %8192 = vcosq.f32 %v3640_v47  ;;  %v3402_v8 = vadd.s32 %v13709_v30, %v13689_v55  ;;  %v3639_v63 = vsel %vm3554_vm0, %v3638_v59, %v13534_v4  ;;  %v3733_v59 = vpop.permute.xlu1 %3732 }
 0x401   :  { %v7744_v22 = vmin.u32 %v3412_v56, %v3410_v31  ;;  %v3328_v60 = vsel %vm3245_vm3, %v3327_v43, %v3326_v46  ;;  %8194 = vsinq.f32 %v3640_v47  ;;  %v3330_v18 = vsel %vm3245_vm3, %v3329_v3, %v13645_v0 }
 0x402   :  { %v3331_v12 = vsel %vm13776_vm6, %v14782_v51, %v3328_v60  ;;  %v3542_v62 = vand.u32 3, %v3538_v1  ;;  %v3641_v55 = vsel %vm13761_vm9, 0, %v3639_v63  ;;  %v6996_v42 = vadd.s32 3, %v3538_v1 }
 0x403   :  { %v3414_v58 = vclz %v7744_v22  ;;  %8196 = vcosq.f32 %v3331_v12  ;;  %v3332_v4 = vsel %vm13776_vm6, 0, %v3330_v18  ;;  %v3645_v0 = vand.u32 3, %v3641_v55 }
 0x404   :  { %8198 = vsinq.f32 %v3331_v12  ;;  %vm3544_vm12 = vcmp.eq.s32.totalorder %v3542_v62, 0  ;;  %vm3547_vm11 = vcmp.eq.s32.totalorder %v3542_v62, 2  ;;  %v13798_v35 = vand.u32 3, %v3332_v4 }
 0x405   :  { %v7745_v11 = vadd.s32 4294967294, %v3414_v58  ;;  %v6997_v21 = vand.u32 3, %v6996_v42  ;;  %v7100_v33 = vadd.s32 3, %v3641_v55  ;;  %v6788_v15 = vadd.s32 3, %v3332_v4 }
 0x406   :  { %v8189_v28 = vpop.eup %8188  ;;  %v3432_v17 = vsub.s32 4, %v13737_v5  ;;  %vm3543_vm5 = vcmp.lt.s32.totalorder %v3542_v62, 2  ;;  %vm3647_vm8 = vcmp.eq.s32.totalorder %v3645_v0, 0  ;;  %vm3650_vm4 = vcmp.eq.s32.totalorder %v3645_v0, 2 }
 0x407   :  { %vm7746_vm7 = vcmp.lt.s32.totalorder %v7745_v11, 0  ;;  %v8191_v32 = vpop.eup %8190  ;;  %v3548_v61 = vxor.u32 2147483648, %v8189_v28  ;;  %vm3348_vm15 = vcmp.lt.s32.totalorder %v14790_v45, 0  ;;  %vm3646_vm14 = vcmp.lt.s32.totalorder %v3645_v0, 2 }
 0x408   :  { %v3417_v41 = vsel %vm7746_vm7, 0, %v7745_v11  ;;  %v3545_v44 = vxor.u32 2147483648, %v8191_v32  ;;  %vm3338_vm10 = vcmp.eq.s32.totalorder %v13798_v35, 0  ;;  %v14808_v39 = vand.u32 2147483647, %v14790_v45 }
 0x409   :  { %v3418_v57 = vsub.s32 32, %v3417_v41  ;;  %v3422_v25 = vsub.s32 4294967266, %v3417_v41  ;;  %v3419_v13 = vshll.u32 %v3410_v31, %v3417_v41  ;;  %v3549_v14 = vsel %vm3547_vm11, %v3548_v61, %v8191_v32 }
 0x40a   :  { %v8193_v27 = vpop.eup %8192  ;;  %v3546_v9 = vsel %vm3544_vm12, %v8189_v28, %v3545_v44  ;;  %vm13805_vm13 = vcmp.le.f32.partialorder %v14808_v39, 0.7853982  ;;  %vm3341_vm2 = vcmp.eq.s32.totalorder %v13798_v35, 2  ;;  %vm6999_vm1 = vcmp.eq.s32.totalorder %v6997_v21, 0 }
 0x40b   :  { %v3420_v7 = vshrl.u32 %v3402_v8, %v3418_v57  ;;  %v3423_v34 = vadd.s32 127, %v3422_v25  ;;  %v8195_v2 = vpop.eup %8194  ;;  %v3550_v20 = vsel %vm3543_vm5, %v3546_v9, %v3549_v14  ;;  %v7101_v31 = vand.u32 3, %v7100_v33 }
 0x40c   :  { %v6789_v19 = vand.u32 3, %v6788_v15  ;;  %v3648_v56 = vxor.u32 2147483648, %v8195_v2  ;;  %v3651_v43 = vxor.u32 2147483648, %v8193_v27  ;;  %v3433_v22 = vsel %vm3348_vm15, %v3432_v17, %v13737_v5 }
 0x40d   :  { %v3421_v30 = vor.u32 %v3420_v7, %v3419_v13  ;;  %v3424_v48 = vshll.u32 %v3423_v34, 23  ;;  %v8197_v53 = vpop.eup %8196  ;;  %vm7002_vm0 = vcmp.eq.s32.totalorder %v6997_v21, 2  ;;  %vm6998_vm3 = vcmp.lt.s32.totalorder %v6997_v21, 2 }
 0x40e   :  { %v8199_v36 = vpop.eup %8198  ;;  %v3342_v58 = vxor.u32 2147483648, %v8197_v53  ;;  %v7001_v60 = vsel %vm6999_vm1, %v8189_v28, %v3545_v44  ;;  %v7004_v49 = vsel %vm7002_vm0, %v3548_v61, %v8191_v32  ;;  %v3435_v47 = vsel %vm13805_vm13, 0, %v3433_v22  ;;  %v3728_v28 = vpop.permute.xlu0 %3727  ;;  %v7259_v22 = vld [vmem:[%s13895_s4 + $0x20] sm:$0xff] }
 0x40f   :  { %v3425_v40 = vor.u32 4788187, %v3424_v48  ;;  %v3428_v24 = vcvt.s32.f32 %v3421_v30  ;;  %v3339_v50 = vxor.u32 2147483648, %v8199_v36  ;;  %vm7103_vm9 = vcmp.eq.s32.totalorder %v7101_v31, 0  ;;  %v7189_v30 = vpop.permute.xlu1 %7188 }
 0x410   :  { %vm7106_vm6 = vcmp.eq.s32.totalorder %v7101_v31, 2  ;;  %v3649_v11 = vsel %vm3647_vm8, %v8193_v27, %v3648_v56  ;;  %v3652_v5 = vsel %vm3650_vm4, %v3651_v43, %v8195_v2  ;;  %vm6791_vm7 = vcmp.eq.s32.totalorder %v6789_v19, 0 }
 0x411   :  { %v3426_v29 = vand.u32 2147483647, %v3425_v40  ;;  %vm6794_vm12 = vcmp.eq.s32.totalorder %v6789_v19, 2  ;;  %v3340_v16 = vsel %vm3338_vm10, %v8197_v53, %v3339_v50  ;;  %v3343_v38 = vsel %vm3341_vm2, %v3342_v58, %v8199_v36 }
 0x412   :  { %v6793_v3 = vsel %vm6791_vm7, %v8197_v53, %v3339_v50  ;;  %v6796_v12 = vsel %vm6794_vm12, %v3342_v58, %v8199_v36  ;;  %v7005_v1 = vsel %vm6998_vm3, %v7001_v60, %v7004_v49  ;;  %v7105_v41 = vsel %vm7103_vm9, %v8193_v27, %v3648_v56  ;;  %v7255_v56 = vld [vmem:[%s13895_s4] sm:$0xff]  ;;  %v7260_v50 = vld [vmem:[%s13895_s4 + $0x28] sm:$0xff]  ;;  %v7261_v58 = vld [vmem:[%s13895_s4 + $0x30] sm:$0xff] }
 0x413   :  { %v3429_v6 = vmul.f32 %v3428_v24, %v3426_v29  ;;  %v7108_v8 = vsel %vm7106_vm6, %v3651_v43, %v8195_v2  ;;  %v6892_v57 = vadd.s32 3, %v3435_v47  ;;  %vm3541_vm11 = vweird.f32 %v14757_v26  ;;  %v7184_v29 = vpop.permute.xlu0 %7183  ;;  %v7257_v43 = vld [vmem:[%s13895_s4 + $0x10] sm:$0xff] }
 0x414   :  { %v3653_v25 = vsel %vm3646_vm14, %v3649_v11, %v3652_v5  ;;  %vm3337_vm5 = vcmp.lt.s32.totalorder %v13798_v35, 2  ;;  %vm6790_vm8 = vcmp.lt.s32.totalorder %v6789_v19, 2  ;;  %vm3644_vm4 = vweird.f32 %v14771_v54 }
 0x415   :  { %v3430_v46 = vxor.u32 2147483648, %v3429_v6  ;;  %v3344_v63 = vsel %vm3337_vm5, %v3340_v16, %v3343_v38  ;;  %v6797_v18 = vsel %vm6790_vm8, %v6793_v3, %v6796_v12  ;;  %v3551_v32 = vsel %vm3541_vm11, nan, %v3550_v20 }
 0x416   :  { %v3439_v13 = vand.u32 3, %v3435_v47  ;;  %v7006_v7 = vsel %vm3541_vm11, nan, %v7005_v1  ;;  %v3654_v62 = vsel %vm3644_vm4, nan, %v3653_v25  ;;  %vm3335_vm10 = vweird.f32 %v14782_v51 }
 0x417   :  { %v3431_v52 = vsel %vm3348_vm15, %v3430_v46, %v3429_v6  ;;  %vm7102_vm15 = vcmp.lt.s32.totalorder %v7101_v31, 2  ;;  %v6893_v26 = vand.u32 3, %v6892_v57  ;;  %v3345_v55 = vsel %vm3335_vm10, nan, %v3344_v63  ;;  %v7274_v60 = vpop.permute.xlu0 %7273 }
 0x418   :  { %v3434_v10 = vsel %vm13805_vm13, %v14790_v45, %v3431_v52  ;;  %v7109_v34 = vsel %vm7102_vm15, %v7105_v41, %v7108_v8  ;;  %v6798_v48 = vsel %vm3335_vm10, nan, %v6797_v18  ;;  %v3765_v44 = vmul.f32 %v3733_v59, %v3551_v32  ;;  %v7258_v52 = vld [vmem:[%s13895_s4 + $0x18] sm:$0xff] }
 0x419   :  { %8200 = vcosq.f32 %v3434_v10  ;;  %v7110_v61 = vsel %vm3644_vm4, nan, %v7109_v34  ;;  %v7221_v4 = vmul.f32 %v7189_v30, %v7006_v7  ;;  %v3766_v0 = vmul.f32 %v3733_v59, %v3654_v62  ;;  %v7279_v59 = vpop.permute.xlu1 %7278 }
 0x41a   :  { %8202 = vsinq.f32 %v3434_v10  ;;  %vm3441_vm14 = vcmp.eq.s32.totalorder %v3439_v13, 0  ;;  %vm3444_vm13 = vcmp.eq.s32.totalorder %v3439_v13, 2  ;;  %v3763_v21 = vmul.f32 %v3728_v28, %v3345_v55  ;;  %v7262_v10 = vld [vmem:[%s13895_s4 + $0x38] sm:$0xff] }
 0x41b   :  { %vm6898_vm2 = vcmp.eq.s32.totalorder %v6893_v26, 2  ;;  %v7219_v51 = vmul.f32 %v7184_v29, %v6798_v48  ;;  %v7222_v9 = vmul.f32 %v7189_v30, %v7110_v61  ;;  %vm6895_vm1 = vcmp.eq.s32.totalorder %v6893_v26, 0  ;;  %v7284_v57 = vpop.permute.xlu0 %7283 }
 0x41c   :  { %vm3440_vm0 = vcmp.lt.s32.totalorder %v3439_v13, 2  ;;  %vm6894_vm3 = vcmp.lt.s32.totalorder %v6893_v26, 2  ;;  %vm3438_vm9 = vweird.f32 %v14790_v45  ;;  %v7253_v17 = vadd.f32 %v7221_v4, %v3765_v44  ;;  %v7256_v45 = vld [vmem:[%s13895_s4 + $0x8] sm:$0xff] }
 0x41d   :  { %v7251_v36 = vadd.f32 %v7219_v51, %v3763_v21  ;;  %v7254_v39 = vadd.f32 %v7222_v9, %v3766_v0  ;;  %v7289_v30 = vpop.permute.xlu1 %7288 }
 0x41f   :  { %v7917_v31 = vpack.c.bf16 %v7253_v17, %v7251_v36 }
 0x423   :  { %v8201_v42 = vpop.eup %8200 }
 0x424   :  { %v8203_v40 = vpop.eup %8202  ;;  %v3445_v35 = vxor.u32 2147483648, %v8201_v42 }
 0x425   :  { %v3442_v24 = vxor.u32 2147483648, %v8203_v40 }
 0x426   :  { %v3446_v27 = vsel %vm3444_vm13, %v3445_v35, %v8203_v40  ;;  %v6900_v14 = vsel %vm6898_vm2, %v3445_v35, %v8203_v40  ;;  %v7294_v35 = vpop.permute.xlu0 %7293 }
 0x427   :  { %v3443_v33 = vsel %vm3441_vm14, %v8201_v42, %v3442_v24  ;;  %v6897_v54 = vsel %vm6895_vm1, %v8201_v42, %v3442_v24 }
 0x428   :  { %v3447_v15 = vsel %vm3440_vm0, %v3443_v33, %v3446_v27  ;;  %v6901_v2 = vsel %vm6894_vm3, %v6897_v54, %v6900_v14 }
 0x429   :  { %v3448_v6 = vsel %vm3438_vm9, nan, %v3447_v15  ;;  %v6902_v53 = vsel %vm3438_vm9, nan, %v6901_v2 }
 0x42a   :  { %v3764_v20 = vmul.f32 %v3728_v28, %v3448_v6  ;;  %v7220_v37 = vmul.f32 %v7184_v29, %v6902_v53  ;;  %v7299_v6 = vpop.permute.xlu1 %7298 }
 0x42c   :  { %v7252_v46 = vadd.f32 %v7220_v37, %v3764_v20 }
 0x42e   :  { %v7915_v19 = vpack.c.bf16 %v7254_v39, %v7252_v46 }
 0x430   :  { %7916 = vmatprep.subr.bf16.mxu0 %v7915_v19 }
 0x431   :  { %7918 = vmatpush1.bf16.msra.mxu0 %v7917_v31  ;;  %v7304_v31 = vpop.permute.xlu0 %7303 }
 0x434   :  { %7376 = vmatmul.mubr.f32.vlgmr.msra.gmra.mrb[0].mxu0 %v7255_v56 }
 0x435   :  { %7381 = vmatprep.mubr.f32.mxu0 %v8235_v23 }
 0x438   :  { %7382 = vmatmul.mubr.f32.gmra.mrb[2].mxu0 %v7256_v45 }
 0x439   :  { %7387 = vmatprep.mubr.f32.mxu0 %v8235_v23 }
 0x43c   :  { %7388 = vmatmul.mubr.f32.gmra.mrb[4].mxu0 %v7257_v43 }
 0x43d   :  { %7393 = vmatprep.mubr.f32.mxu0 %v8235_v23 }
 0x440   :  { %7394 = vmatmul.mubr.f32.gmra.mrb[6].mxu0 %v7258_v52 }
 0x441   :  { %7399 = vmatprep.mubr.f32.mxu0 %v8235_v23 }
 0x444   :  { %7400 = vmatmul.mubr.f32.gmra.mrb[8].mxu0 %v7259_v22 }
 0x445   :  { %7405 = vmatprep.mubr.f32.mxu0 %v8235_v23 }
 0x448   :  { %7406 = vmatmul.mubr.f32.gmra.mrb[10].mxu0 %v7260_v50 }
 0x449   :  { %7411 = vmatprep.mubr.f32.mxu0 %v8235_v23 }
 0x44c   :  { %7412 = vmatmul.mubr.f32.gmra.mrb[12].mxu0 %v7261_v58 }
 0x44d   :  { %7417 = vmatprep.mubr.f32.mxu0 %v8235_v23 }
 0x450   :  { %7418 = vmatmul.mubr.f32.gmra.mrb[14].mxu0 %v7262_v10 }
 0x507   :  { %v7377_v49 = vpop.f32.mrb[0].mxu0 }
 0x508   :  { %v7378_v47 = vadd.f32 %v7377_v49, %v7274_v60  ;;  %v7379_v11 = vpop.f32.mrb[1].mxu0 }
 0x509   :  { %v7380_v5 = vadd.f32 %v7379_v11, %v7274_v60 }
 0x50a   :  { %v7440_v38 = vmul.f32 0.01, %v7378_v47  ;;  %vm7424_vm6 = vcmp.ge.f32.partialorder %v7378_v47, 0.0 }
 0x50b   :  { %v7383_v16 = vpop.f32.mrb[2].mxu0  ;;  %v7441_v1 = vmul.f32 0.01, %v7380_v5  ;;  %vm7425_vm7 = vcmp.ge.f32.partialorder %v7380_v5, 0.0 }
 0x50c   :  { %v7384_v3 = vadd.f32 %v7383_v16, %v7279_v59  ;;  %v7385_v12 = vpop.f32.mrb[3].mxu0  ;;  %v7456_v32 = vsel %vm7424_vm6, %v7378_v47, %v7440_v38  ;;  %v7309_v47 = vpop.permute.xlu1 %7308  ;;  %vm7500_vm6 = vcmask 523264  }
 0x50d   :  { %v7386_v41 = vadd.f32 %v7385_v12, %v7279_v59  ;;  %v7457_v34 = vsel %vm7425_vm7, %v7380_v5, %v7441_v1 }
 0x50e   :  { %v7442_v8 = vmul.f32 0.01, %v7384_v3  ;;  %vm7426_vm12 = vcmp.ge.f32.partialorder %v7384_v3, 0.0 }
 0x50f   :  { %v7443_v25 = vmul.f32 0.01, %v7386_v41  ;;  %v7389_v28 = vpop.f32.mrb[4].mxu0  ;;  %vm7427_vm11 = vcmp.ge.f32.partialorder %v7386_v41, 0.0 }
 0x510   :  { %v7390_v63 = vadd.f32 %v7389_v28, %v7284_v57  ;;  %v7391_v18 = vpop.f32.mrb[5].mxu0  ;;  %v7458_v13 = vsel %vm7426_vm12, %v7384_v3, %v7442_v8 }
 0x511   :  { %v7392_v7 = vadd.f32 %v7391_v18, %v7284_v57  ;;  %v7459_v62 = vsel %vm7427_vm11, %v7386_v41, %v7443_v25  ;;  %v7921_v26 = vpack.c.bf16 %v7458_v13, %v7456_v32  ;;  %v7472_v18 = vld [vmem:[%s13897_s6] sm:$0xff]  ;;  %v7473_v32 = vld [vmem:[%s13897_s6 + $0x8] sm:$0xff]  ;;  %v7474_v13 = vld [vmem:[%s13897_s6 + $0x10] sm:$0xff] }
 0x512   :  { %v7919_v55 = vpack.c.bf16 %v7459_v62, %v7457_v34  ;;  %v7444_v42 = vmul.f32 0.01, %v7390_v63  ;;  %vm7428_vm5 = vcmp.ge.f32.partialorder %v7390_v63, 0.0  ;;  %v7483_v34 = vpop.permute.xlu0 %7482 }
 0x513   :  { %v7395_v48 = vpop.f32.mrb[6].mxu0  ;;  %v7445_v4 = vmul.f32 0.01, %v7392_v7  ;;  %vm7429_vm8 = vcmp.ge.f32.partialorder %v7392_v7, 0.0 }
 0x514   :  { %v7396_v44 = vadd.f32 %v7395_v48, %v7289_v30  ;;  %v7397_v61 = vpop.f32.mrb[7].mxu0  ;;  %7920 = vmatprep.subr.bf16.mxu1 %v7919_v55  ;;  %v7460_v27 = vsel %vm7428_vm5, %v7390_v63, %v7444_v42  ;;  %v7488_v48 = vpop.permute.xlu1 %7487 }
 0x515   :  { %v7398_v40 = vadd.f32 %v7397_v61, %v7289_v30  ;;  %7922 = vmatpush1.bf16.msra.mxu1 %v7921_v26  ;;  %v7461_v33 = vsel %vm7429_vm8, %v7392_v7, %v7445_v4  ;;  %v7475_v7 = vld [vmem:[%s13897_s6 + $0x18] sm:$0xff]  ;;  %s8236_s6 = smov [#allocation2]  }
 0x516   :  { %vm7430_vm4 = vcmp.ge.f32.partialorder %v7396_v44, 0.0  ;;  %v7446_v0 = vmul.f32 0.01, %v7396_v44  ;;  %s7615_s5 = sshll.u32 %s8236_s6, 4  ;;  %s7616_s5 = int_to_ptr.vmem [resolvable:$true] %s7615_s5 }
 0x517   :  { %vm7431_vm15 = vcmp.ge.f32.partialorder %v7398_v40, 0.0  ;;  %v7447_v29 = vmul.f32 0.01, %v7398_v40  ;;  %v7401_v24 = vpop.f32.mrb[8].mxu0  ;;  %s8204_s27 = scalar_lea.vmem %s7616_s5, 1024  ;;  %p8209_p1 = scmp.lt.s32.totalorder %s7616_s5, %s7616_s5 }
 0x518   :  { %v7402_v21 = vadd.f32 %v7401_v24, %v7294_v35  ;;  %v7403_v51 = vpop.f32.mrb[9].mxu0  ;;  %v7462_v9 = vsel %vm7430_vm4, %v7396_v44, %v7446_v0  ;;  %v7498_v24 = vpop.permute.xlu1 %7497  ;;  %p8205_p0 = scmp.ne.s32.totalorder %s7616_s5, %s8204_s27  ;;  %p8210_p2 = scmp.lt.s32.totalorder %s8204_s27, %s8204_s27 }
 0x519   :  { %v7404_v14 = vadd.f32 %v7403_v51, %v7294_v35  ;;  %v7463_v54 = vsel %vm7431_vm15, %v7398_v40, %v7447_v29  ;;  %v7925_v15 = vpack.c.bf16 %v7462_v9, %v7460_v27  ;;  %v7493_v40 = vpop.permute.xlu0 %7492 }
 0x51a   :  { %v7923_v2 = vpack.c.bf16 %v7463_v54, %v7461_v33  ;;  %v7448_v53 = vmul.f32 0.01, %v7402_v21  ;;  %vm7432_vm10 = vcmp.ge.f32.partialorder %v7402_v21, 0.0  ;;  %p8211_p3 = por %p8210_p2, %p8209_p1 }
 0x51b   :  { %v7407_v17 = vpop.f32.mrb[10].mxu0  ;;  %v7449_v39 = vmul.f32 0.01, %v7404_v14  ;;  %vm7433_vm14 = vcmp.ge.f32.partialorder %v7404_v14, 0.0 }
 0x51c   :  { %v7408_v36 = vadd.f32 %v7407_v17, %v7299_v6  ;;  %v7409_v20 = vpop.f32.mrb[11].mxu0  ;;  %7924 = vmatprep.subr.bf16.mxu1 %v7923_v2  ;;  %v7464_v52 = vsel %vm7432_vm10, %v7402_v21, %v7448_v53  ;;  %p8212_p4 = pnand %p8211_p3, %p8205_p0 }
 0x51d   :  { %v7410_v37 = vadd.f32 %v7409_v20, %v7299_v6  ;;  %7926 = vmatpush1.bf16.msra.mxu1 %v7925_v15  ;;  %v7465_v58 = vsel %vm7433_vm14, %v7404_v14, %v7449_v39 }
 0x51e   :  { %vm7434_vm13 = vcmp.ge.f32.partialorder %v7408_v36, 0.0  ;;  %v7450_v46 = vmul.f32 0.01, %v7408_v36 }
 0x51f   :  { %vm7435_vm2 = vcmp.ge.f32.partialorder %v7410_v37, 0.0  ;;  %v7451_v19 = vmul.f32 0.01, %v7410_v37  ;;  %v7413_v56 = vpop.f32.mrb[12].mxu0 }
 0x520   :  { %v7414_v45 = vadd.f32 %v7413_v56, %v7304_v31  ;;  %v7415_v43 = vpop.f32.mrb[13].mxu0  ;;  %v7466_v22 = vsel %vm7434_vm13, %v7408_v36, %v7450_v46 }
 0x521   :  { %v7416_v50 = vadd.f32 %v7415_v43, %v7304_v31  ;;  %v7467_v10 = vsel %vm7435_vm2, %v7410_v37, %v7451_v19  ;;  %v7929_v60 = vpack.c.bf16 %v7466_v22, %v7464_v52 }
 0x522   :  { %v7927_v49 = vpack.c.bf16 %v7467_v10, %v7465_v58  ;;  %v7452_v5 = vmul.f32 0.01, %v7414_v45  ;;  %vm7436_vm1 = vcmp.ge.f32.partialorder %v7414_v45, 0.0 }
 0x523   :  { %v7419_v11 = vpop.f32.mrb[14].mxu0  ;;  %v7453_v38 = vmul.f32 0.01, %v7416_v50  ;;  %vm7437_vm0 = vcmp.ge.f32.partialorder %v7416_v50, 0.0 }
 0x524   :  { %v7420_v59 = vadd.f32 %v7419_v11, %v7309_v47  ;;  %v7421_v16 = vpop.f32.mrb[15].mxu0  ;;  %7928 = vmatprep.subr.bf16.mxu1 %v7927_v49  ;;  %v7468_v41 = vsel %vm7436_vm1, %v7414_v45, %v7452_v5 }
 0x525   :  { %v7422_v3 = vadd.f32 %v7421_v16, %v7309_v47  ;;  %7930 = vmatpush1.bf16.msra.mxu1 %v7929_v60  ;;  %v7469_v57 = vsel %vm7437_vm0, %v7416_v50, %v7453_v38 }
 0x526   :  { %vm7438_vm3 = vcmp.ge.f32.partialorder %v7420_v59, 0.0  ;;  %v7454_v12 = vmul.f32 0.01, %v7420_v59 }
 0x527   :  { %vm7439_vm9 = vcmp.ge.f32.partialorder %v7422_v3, 0.0  ;;  %v7455_v1 = vmul.f32 0.01, %v7422_v3 }
 0x528   :  { %v7470_v8 = vsel %vm7438_vm3, %v7420_v59, %v7454_v12 }
 0x529   :  { %v7471_v25 = vsel %vm7439_vm9, %v7422_v3, %v7455_v1  ;;  %v7933_v28 = vpack.c.bf16 %v7470_v8, %v7468_v41 }
 0x52a   :  { %v7931_v63 = vpack.c.bf16 %v7471_v25, %v7469_v57 }
 0x52c   :  { %7932 = vmatprep.subr.bf16.mxu1 %v7931_v63 }
 0x52d   :  { %7934 = vmatpush1.bf16.msra.mxu1 %v7933_v28 }
 0x530   :  { %7883 = vmatmul.mubr.msk.f32.vlgmr.msra.gmra.mrb[0].mxu1 %vm7500_vm6, %v7472_v18 }
 0x531   :  { %7583 = vmatprep.mubr.f32.mxu1 %v8235_v23 }
 0x534   :  { %7884 = vmatmul.mubr.msk.f32.gmra.mrb[2].mxu1 %vm7500_vm6, %v7473_v32 }
 0x535   :  { %7589 = vmatprep.mubr.f32.mxu1 %v8235_v23 }
 0x538   :  { %7885 = vmatmul.mubr.msk.f32.gmra.mrb[4].mxu1 %vm7500_vm6, %v7474_v13 }
 0x539   :  { %7595 = vmatprep.mubr.f32.mxu1 %v8235_v23 }
 0x53c   :  { %7886 = vmatmul.mubr.msk.f32.gmra.mrb[6].mxu1 %vm7500_vm6, %v7475_v7 }
 0x603   :  { %v7579_v62 = vpop.f32.mrb[0].mxu1 }
 0x604   :  { %v7580_v26 = vadd.f32 %v7579_v62, %v7483_v34  ;;  %v7581_v55 = vpop.f32.mrb[1].mxu1 }
 0x605   :  { %v7582_v30 = vadd.f32 %v7581_v55, %v7483_v34 }
 0x606   :  { %7602 = vst [vmem:[#allocation2] sm:$0xff] %v7580_v26 }
 0x607   :  { %7603 = vst [vmem:[#allocation2 + $0x8] sm:$0xff] %v7582_v30  ;;  %v7585_v42 = vpop.f32.mrb[2].mxu1 }
 0x608   :  { %v7586_v44 = vadd.f32 %v7585_v42, %v7488_v48  ;;  %v7587_v61 = vpop.f32.mrb[3].mxu1 }
 0x609   :  { %v7588_v4 = vadd.f32 %v7587_v61, %v7488_v48 }
 0x60a   :  { %7604 = vst [vmem:[#allocation2 + $0x10] sm:$0xff] %v7586_v44 }
 0x60b   :  { %7605 = vst [vmem:[#allocation2 + $0x18] sm:$0xff] %v7588_v4  ;;  %v7591_v23 = vpop.f32.mrb[4].mxu1 }
 0x60c   :  { %v7592_v0 = vadd.f32 %v7591_v23, %v7493_v40  ;;  %v7593_v35 = vpop.f32.mrb[5].mxu1 }
 0x60d   :  { %v7594_v29 = vadd.f32 %v7593_v35, %v7493_v40 }
 0x60e   :  { %7606 = vst [vmem:[#allocation2 + $0x20] sm:$0xff] %v7592_v0 }
 0x60f   :  { %7607 = vst [vmem:[#allocation2 + $0x28] sm:$0xff] %v7594_v29  ;;  %v7597_v21 = vpop.f32.mrb[6].mxu1 }
 0x610   :  { %v7598_v51 = vadd.f32 %v7597_v21, %v7498_v24  ;;  %v7599_v27 = vpop.f32.mrb[7].mxu1 }
 0x611   :  { %v7600_v9 = vadd.f32 %v7599_v27, %v7498_v24 }
 0x612   :  { %7608 = vst [vmem:[#allocation2 + $0x30] sm:$0xff] %v7598_v51 }
 0x613   :  { %7609 = vst [vmem:[#allocation2 + $0x38] sm:$0xff] %v7600_v9 }
 0x614   :  { %8215 = shalt.err (!%p8212_p4)
}
 0x615   :  { %s8216_s30 = scalar_lea.hbm %s13899_s8, 1024 }
 0x616   :  { %p8217_p5 = scmp.ne.s32.totalorder %s13899_s8, %s8216_s30  ;;  %p8220_p6 = scmp.lt.u32.totalorder %s8216_s30, %s13899_s8 }
 0x618   :  { %p8222_p7 = pnand %p8220_p6, %p8217_p5 }
 0x61a   :  { %8225 = shalt.err (!%p8222_p7)
}
 0x61b   :  { %s8237_s10 = smov 256   ;;  %s8238_s11 = smov 16  }
 0x61c   :  { %7621 = dma.vmem_to_hbm [thread:$0]  %s7616_s5, 1024, %s13899_s8, [#allocation3], %s8237_s10, %s8237_s10, %s8238_s11  }
 0x61d   :  { %8226 = dma.done.wait [#allocation3], 1024  }
 0x61e   :  { %8227 = vsyncadd [#allocation3], 4294966272 }
 0x61f   :  { %7625 = vsyncpa [#allocation3], 1 }

// kernel: tpu_custom_call.1
= control target key start
LH: loop header
LB: loop body
LE: loop exit
PB: predicated region body
PF: predicated region fallthrough
CT: control target
= control target key end

     0   :  { %10 = vsyncpa [#allocation3], 0  ;;  %s697_s0 = inlined_call_operand.hbm [shape: f32[128,256], index: 0, kind: input, shape index: {}]   ;;  %s698_s1 = inlined_call_operand.vmem [shape: f32[64,128], index: 1, kind: input, shape index: {}]   ;;  %s699_s2 = inlined_call_operand.vmem [shape: f32[64,1], index: 2, kind: input, shape index: {}]   ;;  %s700_s3 = inlined_call_operand.vmem [shape: f32[32,64], index: 3, kind: input, shape index: {}]   ;;  %s701_s4 = inlined_call_operand.vmem [shape: f32[32,1], index: 4, kind: input, shape index: {}]   ;;  %s702_s5 = inlined_call_operand.hbm [shape: f32[32,256], index: 5, kind: output, shape index: {}]  }
   0x1   :  { %11 = vsyncpa [#allocation4], 0  ;;  %s547_s18 = smov [#allocation2]   ;;  %s499_s22 = scalar_lea.hbm %s697_s0, 4096 }
   0x2   :  { %s17_s19 = sshll.u32 %s547_s18, 4  ;;  %p500_p0 = scmp.ne.s32.totalorder %s697_s0, %s499_s22  ;;  %s18_s19 = int_to_ptr.vmem [resolvable:$true] %s17_s19 }
   0x3   :  { %p503_p1 = scmp.lt.u32.totalorder %s499_s22, %s697_s0 }
   0x5   :  { %p505_p2 = pnand %p503_p1, %p500_p0 }
   0x7   :  { %508 = shalt.err (!%p505_p2)
}
   0x8   :  { %s509_s27 = scalar_lea.vmem %s18_s19, 4096  ;;  %p514_p4 = scmp.lt.s32.totalorder %s18_s19, %s18_s19 }
   0x9   :  { %p510_p3 = scmp.ne.s32.totalorder %s18_s19, %s509_s27  ;;  %p515_p5 = scmp.lt.s32.totalorder %s509_s27, %s509_s27 }
   0xb   :  { %p516_p6 = por %p515_p5, %p514_p4 }
   0xd   :  { %p517_p7 = pnand %p516_p6, %p510_p3 }
   0xf   :  { %520 = shalt.err (!%p517_p7)
}
  0x10   :  { %s548_s28 = smov 256   ;;  %s549_s29 = smov 16  }
  0x11   :  { %23 = dma.hbm_to_vmem [thread:$0]  %s697_s0, 4096, %s18_s19, [#allocation3], %s548_s28, %s548_s28, %s549_s29  }
  0x12   :  { %543 = dma.done.wait [#allocation3], 4096  }
  0x13   :  { %544 = vsyncadd [#allocation3], 4294963200  ;;  %v550_v0 = vmov 0.0   ;;  %v551_v1 = vmov 0   ;;  %v36_v2 = vld [vmem:[#allocation2 + $0x8] sm:$0xff]  ;;  %v38_v3 = vld [vmem:[#allocation2 + $0x18] sm:$0xff] }
  0x14   :  { %187 = vmatprep.mubr.f32.mxu0 %v550_v0  ;;  %497 = vset.pattern.permute.xlu0 %v551_v1  ;;  %v35_v4 = vld [vmem:[#allocation2] sm:$0xff]  ;;  %v443_v5 = vpack.c.bf16 %v38_v3, %v36_v2  ;;  %v37_v6 = vld [vmem:[#allocation2 + $0x10] sm:$0xff]  ;;  %v40_v7 = vld [vmem:[#allocation2 + $0x28] sm:$0xff] }
  0x15   :  { %498 = vset.pattern.permute.xlu1 %v551_v1  ;;  %389 = vmatprep.mubr.f32.mxu1 %v550_v0  ;;  %v42_v8 = vld [vmem:[#allocation2 + $0x38] sm:$0xff]  ;;  %v445_v9 = vpack.c.bf16 %v37_v6, %v35_v4  ;;  %v39_v11 = vld [vmem:[#allocation2 + $0x20] sm:$0xff]  ;;  %v41_v12 = vld [vmem:[#allocation2 + $0x30] sm:$0xff] }
  0x16   :  { %v447_v10 = vpack.c.bf16 %v42_v8, %v40_v7  ;;  %v44_v13 = vld [vmem:[#allocation2 + $0x48] sm:$0xff]  ;;  %444 = vmatprep.subr.bf16.mxu0 %v443_v5  ;;  %v46_v14 = vld [vmem:[#allocation2 + $0x58] sm:$0xff]  ;;  %v449_v15 = vpack.c.bf16 %v41_v12, %v39_v11  ;;  %v43_v17 = vld [vmem:[#allocation2 + $0x40] sm:$0xff] }
  0x17   :  { %446 = vmatpush1.bf16.msra.mxu0 %v445_v9  ;;  %v451_v16 = vpack.c.bf16 %v46_v14, %v44_v13  ;;  %v45_v18 = vld [vmem:[#allocation2 + $0x50] sm:$0xff]  ;;  %v48_v19 = vld [vmem:[#allocation2 + $0x68] sm:$0xff]  ;;  %v50_v20 = vld [vmem:[#allocation2 + $0x78] sm:$0xff] }
  0x18   :  { %448 = vmatprep.subr.bf16.mxu0 %v447_v10  ;;  %v453_v21 = vpack.c.bf16 %v45_v18, %v43_v17  ;;  %v455_v22 = vpack.c.bf16 %v50_v20, %v48_v19  ;;  %v47_v23 = vld [vmem:[#allocation2 + $0x60] sm:$0xff]  ;;  %v49_v24 = vld [vmem:[#allocation2 + $0x70] sm:$0xff]  ;;  %v52_v25 = vld [vmem:[#allocation2 + $0x88] sm:$0xff] }
  0x19   :  { %v54_v26 = vld [vmem:[#allocation2 + $0x98] sm:$0xff]  ;;  %v457_v27 = vpack.c.bf16 %v49_v24, %v47_v23  ;;  %v51_v28 = vld [vmem:[#allocation2 + $0x80] sm:$0xff]  ;;  %v53_v30 = vld [vmem:[#allocation2 + $0x90] sm:$0xff] }
  0x1a   :  { %v459_v29 = vpack.c.bf16 %v54_v26, %v52_v25  ;;  %v75_v31 = vld [vmem:[%s699_s2] sm:$0xff]  ;;  %v77_v32 = vld [vmem:[%s699_s2 + $0x10] sm:$0xff]  ;;  %v56_v33 = vld [vmem:[#allocation2 + $0xa8] sm:$0xff]  ;;  %v461_v37 = vpack.c.bf16 %v53_v30, %v51_v28 }
  0x1b   :  { %450 = vmatpush1.bf16.msra.mxu0 %v449_v15  ;;  %v58_v34 = vld [vmem:[#allocation2 + $0xb8] sm:$0xff]  ;;  %85 = vperm.xlu0 %497, %v75_v31   ;;  %v76_v35 = vld [vmem:[%s699_s2 + $0x8] sm:$0xff]  ;;  %v55_v39 = vld [vmem:[#allocation2 + $0xa0] sm:$0xff] }
  0x1c   :  { %452 = vmatprep.subr.bf16.mxu0 %v451_v16  ;;  %95 = vperm.xlu1 %498, %v77_v32   ;;  %v78_v36 = vld [vmem:[%s699_s2 + $0x18] sm:$0xff]  ;;  %v463_v38 = vpack.c.bf16 %v58_v34, %v56_v33  ;;  %v57_v40 = vld [vmem:[#allocation2 + $0xb0] sm:$0xff]  ;;  %v60_v41 = vld [vmem:[#allocation2 + $0xc8] sm:$0xff] }
  0x1d   :  { %v62_v42 = vld [vmem:[#allocation2 + $0xd8] sm:$0xff]  ;;  %v79_v43 = vld [vmem:[%s699_s2 + $0x20] sm:$0xff]  ;;  %v80_v44 = vld [vmem:[%s699_s2 + $0x28] sm:$0xff]  ;;  %v465_v45 = vpack.c.bf16 %v57_v40, %v55_v39 }
  0x1e   :  { %v467_v46 = vpack.c.bf16 %v62_v42, %v60_v41  ;;  %v59_v47 = vld [vmem:[#allocation2 + $0xc0] sm:$0xff]  ;;  %v61_v48 = vld [vmem:[#allocation2 + $0xd0] sm:$0xff]  ;;  %v64_v49 = vld [vmem:[#allocation2 + $0xe8] sm:$0xff] }
  0x1f   :  { %454 = vmatpush1.bf16.msra.mxu0 %v453_v21  ;;  %90 = vperm.xlu0 %497, %v76_v35   ;;  %v66_v50 = vld [vmem:[#allocation2 + $0xf8] sm:$0xff]  ;;  %v81_v51 = vld [vmem:[%s699_s2 + $0x30] sm:$0xff]  ;;  %v469_v53 = vpack.c.bf16 %v61_v48, %v59_v47  ;;  %v63_v55 = vld [vmem:[#allocation2 + $0xe0] sm:$0xff] }
  0x20   :  { %456 = vmatprep.subr.bf16.mxu0 %v455_v22  ;;  %100 = vperm.xlu1 %498, %v78_v36   ;;  %v82_v52 = vld [vmem:[%s699_s2 + $0x38] sm:$0xff]  ;;  %v471_v54 = vpack.c.bf16 %v66_v50, %v64_v49  ;;  %v65_v56 = vld [vmem:[#allocation2 + $0xf0] sm:$0xff]  ;;  %v288_v57 = vld [vmem:[%s701_s4] sm:$0xff] }
  0x21   :  { %v289_v58 = vld [vmem:[%s701_s4 + $0x8] sm:$0xff]  ;;  %v473_v59 = vpack.c.bf16 %v65_v56, %v63_v55  ;;  %v290_v60 = vld [vmem:[%s701_s4 + $0x10] sm:$0xff]  ;;  %v291_v61 = vld [vmem:[%s701_s4 + $0x18] sm:$0xff] }
  0x22   :  { %v67_v62 = vld [vmem:[%s698_s1] sm:$0xff]  ;;  %v68_v63 = vld [vmem:[%s698_s1 + $0x8] sm:$0xff]  ;;  %v69_v1 = vld [vmem:[%s698_s1 + $0x10] sm:$0xff] }
  0x23   :  { %458 = vmatpush1.bf16.msra.mxu0 %v457_v27  ;;  %105 = vperm.xlu0 %497, %v79_v43   ;;  %v70_v2 = vld [vmem:[%s698_s1 + $0x18] sm:$0xff]  ;;  %v71_v3 = vld [vmem:[%s698_s1 + $0x20] sm:$0xff]  ;;  %v72_v4 = vld [vmem:[%s698_s1 + $0x28] sm:$0xff] }
  0x24   :  { %460 = vmatprep.subr.bf16.mxu0 %v459_v29  ;;  %110 = vperm.xlu1 %498, %v80_v44   ;;  %v73_v5 = vld [vmem:[%s698_s1 + $0x30] sm:$0xff]  ;;  %v74_v6 = vld [vmem:[%s698_s1 + $0x38] sm:$0xff] }
  0x27   :  { %462 = vmatpush1.bf16.msra.mxu0 %v461_v37  ;;  %115 = vperm.xlu0 %497, %v81_v51  }
  0x28   :  { %464 = vmatprep.subr.bf16.mxu0 %v463_v38  ;;  %120 = vperm.xlu1 %498, %v82_v52  }
  0x2b   :  { %466 = vmatpush1.bf16.msra.mxu0 %v465_v45  ;;  %294 = vperm.xlu0 %497, %v288_v57  }
  0x2c   :  { %468 = vmatprep.subr.bf16.mxu0 %v467_v46  ;;  %299 = vperm.xlu1 %498, %v289_v58  }
  0x2f   :  { %470 = vmatpush1.bf16.msra.mxu0 %v469_v53  ;;  %304 = vperm.xlu0 %497, %v290_v60  }
  0x30   :  { %472 = vmatprep.subr.bf16.mxu0 %v471_v54  ;;  %309 = vperm.xlu1 %498, %v291_v61  }
  0x33   :  { %474 = vmatpush1.bf16.msra.mxu0 %v473_v59 }
  0x36   :  { %188 = vmatmul.mubr.f32.vlgmr.msra.gmra.mrb[0].mxu0 %v67_v62 }
  0x37   :  { %193 = vmatprep.mubr.f32.mxu0 %v550_v0 }
  0x3a   :  { %194 = vmatmul.mubr.f32.gmra.mrb[2].mxu0 %v68_v63 }
  0x3b   :  { %199 = vmatprep.mubr.f32.mxu0 %v550_v0 }
  0x3e   :  { %200 = vmatmul.mubr.f32.gmra.mrb[4].mxu0 %v69_v1 }
  0x3f   :  { %205 = vmatprep.mubr.f32.mxu0 %v550_v0 }
  0x42   :  { %206 = vmatmul.mubr.f32.gmra.mrb[6].mxu0 %v70_v2 }
  0x43   :  { %211 = vmatprep.mubr.f32.mxu0 %v550_v0 }
  0x46   :  { %212 = vmatmul.mubr.f32.gmra.mrb[8].mxu0 %v71_v3 }
  0x47   :  { %217 = vmatprep.mubr.f32.mxu0 %v550_v0 }
  0x4a   :  { %218 = vmatmul.mubr.f32.gmra.mrb[10].mxu0 %v72_v4 }
  0x4b   :  { %223 = vmatprep.mubr.f32.mxu0 %v550_v0 }
  0x4e   :  { %224 = vmatmul.mubr.f32.gmra.mrb[12].mxu0 %v73_v5 }
  0x4f   :  { %229 = vmatprep.mubr.f32.mxu0 %v550_v0 }
  0x52   :  { %230 = vmatmul.mubr.f32.gmra.mrb[14].mxu0 %v74_v6 }
  0x9a   :  { %v86_v7 = vpop.permute.xlu0 %85 }
  0x9b   :  { %v96_v17 = vpop.permute.xlu1 %95 }
  0x9e   :  { %v91_v12 = vpop.permute.xlu0 %90 }
  0x9f   :  { %v101_v32 = vpop.permute.xlu1 %100 }
  0xa2   :  { %v106_v40 = vpop.permute.xlu0 %105 }
  0xa3   :  { %v111_v52 = vpop.permute.xlu1 %110 }
  0xa6   :  { %v116_v60 = vpop.permute.xlu0 %115 }
 0x109   :  { %v189_v8 = vpop.f32.mrb[0].mxu0 }
 0x10a   :  { %v190_v9 = vadd.f32 %v189_v8, %v86_v7  ;;  %v191_v10 = vpop.f32.mrb[1].mxu0 }
 0x10b   :  { %v192_v11 = vadd.f32 %v191_v10, %v86_v7 }
 0x10c   :  { %v252_v14 = vmul.f32 0.01, %v190_v9  ;;  %vm236_vm0 = vcmp.ge.f32.partialorder %v190_v9, 0.0 }
 0x10d   :  { %v195_v13 = vpop.f32.mrb[2].mxu0  ;;  %v253_v18 = vmul.f32 0.01, %v192_v11  ;;  %vm237_vm1 = vcmp.ge.f32.partialorder %v192_v11, 0.0 }
 0x10e   :  { %v196_v15 = vadd.f32 %v195_v13, %v91_v12  ;;  %v197_v16 = vpop.f32.mrb[3].mxu0  ;;  %v268_v25 = vsel %vm236_vm0, %v190_v9, %v252_v14  ;;  %v121_v9 = vpop.permute.xlu1 %120  ;;  %vm312_vm0 = vcmask 523264  }
 0x10f   :  { %v198_v19 = vadd.f32 %v197_v16, %v91_v12  ;;  %v269_v28 = vsel %vm237_vm1, %v192_v11, %v253_v18 }
 0x110   :  { %v254_v20 = vmul.f32 0.01, %v196_v15  ;;  %vm238_vm2 = vcmp.ge.f32.partialorder %v196_v15, 0.0 }
 0x111   :  { %v255_v21 = vmul.f32 0.01, %v198_v19  ;;  %v201_v22 = vpop.f32.mrb[4].mxu0  ;;  %vm239_vm3 = vcmp.ge.f32.partialorder %v198_v19, 0.0 }
 0x112   :  { %v202_v23 = vadd.f32 %v201_v22, %v96_v17  ;;  %v203_v24 = vpop.f32.mrb[5].mxu0  ;;  %v270_v26 = vsel %vm238_vm2, %v196_v15, %v254_v20 }
 0x113   :  { %v204_v27 = vadd.f32 %v203_v24, %v96_v17  ;;  %v271_v29 = vsel %vm239_vm3, %v198_v19, %v255_v21  ;;  %v477_v30 = vpack.c.bf16 %v270_v26, %v268_v25  ;;  %v284_v24 = vld [vmem:[%s700_s3] sm:$0xff]  ;;  %v285_v25 = vld [vmem:[%s700_s3 + $0x8] sm:$0xff]  ;;  %v286_v26 = vld [vmem:[%s700_s3 + $0x10] sm:$0xff] }
 0x114   :  { %v475_v31 = vpack.c.bf16 %v271_v29, %v269_v28  ;;  %v256_v34 = vmul.f32 0.01, %v202_v23  ;;  %vm240_vm4 = vcmp.ge.f32.partialorder %v202_v23, 0.0  ;;  %v295_v28 = vpop.permute.xlu0 %294 }
 0x115   :  { %v207_v33 = vpop.f32.mrb[6].mxu0  ;;  %v257_v37 = vmul.f32 0.01, %v204_v27  ;;  %vm241_vm5 = vcmp.ge.f32.partialorder %v204_v27, 0.0 }
 0x116   :  { %v208_v35 = vadd.f32 %v207_v33, %v101_v32  ;;  %v209_v36 = vpop.f32.mrb[7].mxu0  ;;  %476 = vmatprep.subr.bf16.mxu1 %v475_v31  ;;  %v272_v45 = vsel %vm240_vm4, %v202_v23, %v256_v34  ;;  %v300_v33 = vpop.permute.xlu1 %299 }
 0x117   :  { %v210_v38 = vadd.f32 %v209_v36, %v101_v32  ;;  %478 = vmatpush1.bf16.msra.mxu1 %v477_v30  ;;  %v273_v48 = vsel %vm241_vm5, %v204_v27, %v257_v37  ;;  %v287_v27 = vld [vmem:[%s700_s3 + $0x18] sm:$0xff]  ;;  %s552_s3 = smov [#allocation5]  }
 0x118   :  { %vm242_vm6 = vcmp.ge.f32.partialorder %v208_v35, 0.0  ;;  %v258_v39 = vmul.f32 0.01, %v208_v35  ;;  %s427_s26 = sshll.u32 %s552_s3, 4  ;;  %s428_s26 = int_to_ptr.vmem [resolvable:$true] %s427_s26 }
 0x119   :  { %vm243_vm7 = vcmp.ge.f32.partialorder %v210_v38, 0.0  ;;  %v259_v41 = vmul.f32 0.01, %v210_v38  ;;  %v213_v42 = vpop.f32.mrb[8].mxu0  ;;  %s521_s27 = scalar_lea.vmem %s428_s26, 1024  ;;  %p526_p9 = scmp.lt.s32.totalorder %s428_s26, %s428_s26 }
 0x11a   :  { %v214_v43 = vadd.f32 %v213_v42, %v106_v40  ;;  %v215_v44 = vpop.f32.mrb[9].mxu0  ;;  %v274_v46 = vsel %vm242_vm6, %v208_v35, %v258_v39  ;;  %v310_v42 = vpop.permute.xlu1 %309  ;;  %p522_p8 = scmp.ne.s32.totalorder %s428_s26, %s521_s27  ;;  %p527_p10 = scmp.lt.s32.totalorder %s521_s27, %s521_s27 }
 0x11b   :  { %v216_v47 = vadd.f32 %v215_v44, %v106_v40  ;;  %v275_v49 = vsel %vm243_vm7, %v210_v38, %v259_v41  ;;  %v481_v50 = vpack.c.bf16 %v274_v46, %v272_v45  ;;  %v305_v38 = vpop.permute.xlu0 %304 }
 0x11c   :  { %v479_v51 = vpack.c.bf16 %v275_v49, %v273_v48  ;;  %v260_v54 = vmul.f32 0.01, %v214_v43  ;;  %vm244_vm8 = vcmp.ge.f32.partialorder %v214_v43, 0.0  ;;  %p528_p11 = por %p527_p10, %p526_p9 }
 0x11d   :  { %v219_v53 = vpop.f32.mrb[10].mxu0  ;;  %v261_v57 = vmul.f32 0.01, %v216_v47  ;;  %vm245_vm9 = vcmp.ge.f32.partialorder %v216_v47, 0.0 }
 0x11e   :  { %v220_v55 = vadd.f32 %v219_v53, %v111_v52  ;;  %v221_v56 = vpop.f32.mrb[11].mxu0  ;;  %480 = vmatprep.subr.bf16.mxu1 %v479_v51  ;;  %v276_v2 = vsel %vm244_vm8, %v214_v43, %v260_v54  ;;  %p529_p12 = pnand %p528_p11, %p522_p8 }
 0x11f   :  { %v222_v58 = vadd.f32 %v221_v56, %v111_v52  ;;  %482 = vmatpush1.bf16.msra.mxu1 %v481_v50  ;;  %v277_v5 = vsel %vm245_vm9, %v216_v47, %v261_v57 }
 0x120   :  { %vm246_vm10 = vcmp.ge.f32.partialorder %v220_v55, 0.0  ;;  %v262_v59 = vmul.f32 0.01, %v220_v55 }
 0x121   :  { %vm247_vm11 = vcmp.ge.f32.partialorder %v222_v58, 0.0  ;;  %v263_v61 = vmul.f32 0.01, %v222_v58  ;;  %v225_v62 = vpop.f32.mrb[12].mxu0 }
 0x122   :  { %v226_v63 = vadd.f32 %v225_v62, %v116_v60  ;;  %v227_v1 = vpop.f32.mrb[13].mxu0  ;;  %v278_v3 = vsel %vm246_vm10, %v220_v55, %v262_v59 }
 0x123   :  { %v228_v4 = vadd.f32 %v227_v1, %v116_v60  ;;  %v279_v6 = vsel %vm247_vm11, %v222_v58, %v263_v61  ;;  %v485_v7 = vpack.c.bf16 %v278_v3, %v276_v2 }
 0x124   :  { %v483_v8 = vpack.c.bf16 %v279_v6, %v277_v5  ;;  %v264_v11 = vmul.f32 0.01, %v226_v63  ;;  %vm248_vm12 = vcmp.ge.f32.partialorder %v226_v63, 0.0 }
 0x125   :  { %v231_v10 = vpop.f32.mrb[14].mxu0  ;;  %v265_v14 = vmul.f32 0.01, %v228_v4  ;;  %vm249_vm13 = vcmp.ge.f32.partialorder %v228_v4, 0.0 }
 0x126   :  { %v232_v12 = vadd.f32 %v231_v10, %v121_v9  ;;  %v233_v13 = vpop.f32.mrb[15].mxu0  ;;  %484 = vmatprep.subr.bf16.mxu1 %v483_v8  ;;  %v280_v18 = vsel %vm248_vm12, %v226_v63, %v264_v11 }
 0x127   :  { %v234_v15 = vadd.f32 %v233_v13, %v121_v9  ;;  %486 = vmatpush1.bf16.msra.mxu1 %v485_v7  ;;  %v281_v20 = vsel %vm249_vm13, %v228_v4, %v265_v14 }
 0x128   :  { %vm250_vm14 = vcmp.ge.f32.partialorder %v232_v12, 0.0  ;;  %v266_v16 = vmul.f32 0.01, %v232_v12 }
 0x129   :  { %vm251_vm15 = vcmp.ge.f32.partialorder %v234_v15, 0.0  ;;  %v267_v17 = vmul.f32 0.01, %v234_v15 }
 0x12a   :  { %v282_v19 = vsel %vm250_vm14, %v232_v12, %v266_v16 }
 0x12b   :  { %v283_v21 = vsel %vm251_vm15, %v234_v15, %v267_v17  ;;  %v489_v22 = vpack.c.bf16 %v282_v19, %v280_v18 }
 0x12c   :  { %v487_v23 = vpack.c.bf16 %v283_v21, %v281_v20 }
 0x12e   :  { %488 = vmatprep.subr.bf16.mxu1 %v487_v23 }
 0x12f   :  { %490 = vmatpush1.bf16.msra.mxu1 %v489_v22 }
 0x132   :  { %439 = vmatmul.mubr.msk.f32.vlgmr.msra.gmra.mrb[0].mxu1 %vm312_vm0, %v284_v24 }
 0x133   :  { %395 = vmatprep.mubr.f32.mxu1 %v550_v0 }
 0x136   :  { %440 = vmatmul.mubr.msk.f32.gmra.mrb[2].mxu1 %vm312_vm0, %v285_v25 }
 0x137   :  { %401 = vmatprep.mubr.f32.mxu1 %v550_v0 }
 0x13a   :  { %441 = vmatmul.mubr.msk.f32.gmra.mrb[4].mxu1 %vm312_vm0, %v286_v26 }
 0x13b   :  { %407 = vmatprep.mubr.f32.mxu1 %v550_v0 }
 0x13e   :  { %442 = vmatmul.mubr.msk.f32.gmra.mrb[6].mxu1 %vm312_vm0, %v287_v27 }
 0x205   :  { %v391_v29 = vpop.f32.mrb[0].mxu1 }
 0x206   :  { %v392_v30 = vadd.f32 %v391_v29, %v295_v28  ;;  %v393_v31 = vpop.f32.mrb[1].mxu1 }
 0x207   :  { %v394_v32 = vadd.f32 %v393_v31, %v295_v28 }
 0x208   :  { %414 = vst [vmem:[#allocation5] sm:$0xff] %v392_v30 }
 0x209   :  { %415 = vst [vmem:[#allocation5 + $0x8] sm:$0xff] %v394_v32  ;;  %v397_v34 = vpop.f32.mrb[2].mxu1 }
 0x20a   :  { %v398_v35 = vadd.f32 %v397_v34, %v300_v33  ;;  %v399_v36 = vpop.f32.mrb[3].mxu1 }
 0x20b   :  { %v400_v37 = vadd.f32 %v399_v36, %v300_v33 }
 0x20c   :  { %416 = vst [vmem:[#allocation5 + $0x10] sm:$0xff] %v398_v35 }
 0x20d   :  { %417 = vst [vmem:[#allocation5 + $0x18] sm:$0xff] %v400_v37  ;;  %v403_v0 = vpop.f32.mrb[4].mxu1 }
 0x20e   :  { %v404_v39 = vadd.f32 %v403_v0, %v305_v38  ;;  %v405_v40 = vpop.f32.mrb[5].mxu1 }
 0x20f   :  { %v406_v41 = vadd.f32 %v405_v40, %v305_v38 }
 0x210   :  { %418 = vst [vmem:[#allocation5 + $0x20] sm:$0xff] %v404_v39 }
 0x211   :  { %419 = vst [vmem:[#allocation5 + $0x28] sm:$0xff] %v406_v41  ;;  %v409_v43 = vpop.f32.mrb[6].mxu1 }
 0x212   :  { %v410_v44 = vadd.f32 %v409_v43, %v310_v42  ;;  %v411_v45 = vpop.f32.mrb[7].mxu1 }
 0x213   :  { %v412_v46 = vadd.f32 %v411_v45, %v310_v42 }
 0x214   :  { %420 = vst [vmem:[#allocation5 + $0x30] sm:$0xff] %v410_v44 }
 0x215   :  { %421 = vst [vmem:[#allocation5 + $0x38] sm:$0xff] %v412_v46 }
 0x216   :  { %532 = shalt.err (!%p529_p12)
}
 0x217   :  { %s533_s0 = scalar_lea.hbm %s702_s5, 1024 }
 0x218   :  { %p534_p13 = scmp.ne.s32.totalorder %s702_s5, %s533_s0  ;;  %p537_p0 = scmp.lt.u32.totalorder %s533_s0, %s702_s5 }
 0x21a   :  { %p539_p1 = pnand %p537_p0, %p534_p13 }
 0x21c   :  { %542 = shalt.err (!%p539_p1)
}
 0x21d   :  { %433 = dma.vmem_to_hbm [thread:$0]  %s428_s26, 1024, %s702_s5, [#allocation4], %s548_s28, %s548_s28, %s549_s29  }
 0x21e   :  { %545 = dma.done.wait [#allocation4], 1024  }
 0x21f   :  { %546 = vsyncadd [#allocation4], 4294966272 }
 0x220   :  { %437 = vsyncpa [#allocation3], 1 }
 0x221   :  { %438 = vsyncpa [#allocation4], 1 }

</bundles_post_ra>
